<compile_context>
chip_gen: v7x
topology: tpu7x:2x2x1
jax: 0.10.0
libtpu: 0.0.40
codegen_flags: <defaults>
</compile_context>

<pallas_src>
import jax
import jax.numpy as jnp
from jax import lax
from jax.experimental import pallas as pl
from jax.experimental.pallas import tpu as pltpu

EPS = 1e-5
LANE = 128


def _round_up(x, m):
    return (x + m - 1) // m * m


def bottleneck_kernel(x_ref, w1_ref, s1_ref, b1_ref,
                      w2_ref, s2_ref, b2_ref,
                      w3_ref, s3_ref, b3_ref,
                      o_ref, patch_ref):
    # x_ref : (1, H, W, Cp)   bf16  whole image resident in VMEM (halo in-kernel)
    # w1    : (Cp, Pp)        bf16  1x1 conv as channel matmul
    # w2    : (9*Pp, Pp)      bf16  3x3 conv flattened as (kh, kw, cin) rows
    # w3    : (Pp, Cop)       bf16  1x1 conv
    # s*/b* : (1, C)          f32   folded BN scale / bias
    # o_ref : (1, TH, W, Cop) f32
    # patch_ref : (TH*W, 9*Pp) bf16 VMEM scratch, im2col patch (lane-aligned)
    H = x_ref.shape[1]
    W = x_ref.shape[2]
    Cp = x_ref.shape[3]
    Pp = w1_ref.shape[1]
    Cop = w3_ref.shape[1]
    TH = o_ref.shape[1]

    r0 = pl.multiple_of(pl.program_id(1) * TH, TH)

    # ---- (TH+2)-row input window with clamped halo reads --------------------
    top = x_ref[0, pl.ds(jnp.maximum(r0 - 1, 0), 1), :, :]        # (1, W, Cp)
    mid = x_ref[0, pl.ds(r0, TH), :, :]                           # (TH, W, Cp)
    bot = x_ref[0, pl.ds(jnp.minimum(r0 + TH, H - 1), 1), :, :]   # (1, W, Cp)
    xw = jnp.concatenate([top, mid, bot], axis=0)                 # (TH+2, W, Cp)

    # ---- conv1 (1x1) + bn1 + relu -------------------------------------------
    h1 = jnp.dot(xw.reshape((TH + 2) * W, Cp), w1_ref[...],
                 preferred_element_type=jnp.float32)
    h1 = jnp.maximum(h1 * s1_ref[...] + b1_ref[...], 0.0)         # ((TH+2)*W, Pp)

    # Out-of-image halo rows must be zero going into the 3x3 conv (they would
    # be relu(bn_bias) otherwise). Only window row 0 / TH+1 can ever be out of
    # the image -> scalar-predicated zeroing, no iota / integer divide.
    top_ok = (r0 > 0).astype(jnp.float32)
    bot_ok = (r0 + TH < H).astype(jnp.float32)
    h1 = jnp.concatenate([h1[:W] * top_ok,
                          h1[W:(TH + 1) * W],
                          h1[(TH + 1) * W:] * bot_ok], axis=0)
    h1f = h1.astype(jnp.bfloat16)                                 # ((TH+2)*W, Pp)

    # ---- conv2 (3x3, pad=1) + bn2 + relu: ONE matmul with K = 9*Pp ----------
    # Column-shifted variants built on the flat (rows*W) layout: a +/-1 flat
    # shift equals a same-row +/-1 column shift everywhere except w==0 / w==W-1,
    # which the column mask zeroes anyway (conv padding).
    zrow = jnp.zeros((1, Pp), jnp.bfloat16)
    lshift = jnp.concatenate([zrow, h1f[:-1, :]], axis=0)         # w -> h1[w-1]
    rshift = jnp.concatenate([h1f[1:, :], zrow], axis=0)          # w -> h1[w+1]

    col = lax.broadcasted_iota(jnp.int32, (1, W, Pp), 1)
    mid3 = h1f.reshape(TH + 2, W, Pp)
    left3 = jnp.where(col >= 1, lshift.reshape(TH + 2, W, Pp), 0.0)
    right3 = jnp.where(col <= W - 2, rshift.reshape(TH + 2, W, Pp), 0.0)
    variants = (left3, mid3, right3)                              # dw = 0, 1, 2

    # im2col taps: lane-aligned stores into the persistent VMEM patch scratch.
    for dh in range(3):
        for dw in range(3):
            k = dh * 3 + dw
            patch_ref[:, k * Pp:(k + 1) * Pp] = (
                variants[dw][dh:dh + TH].reshape(TH * W, Pp))

    h2 = jnp.dot(patch_ref[...], w2_ref[...], preferred_element_type=jnp.float32)
    h2 = jnp.maximum(h2 * s2_ref[...] + b2_ref[...], 0.0)         # (TH*W, Pp)

    # ---- conv3 (1x1) + bn3 + residual + relu --------------------------------
    h3 = jnp.dot(h2.astype(jnp.bfloat16), w3_ref[...],
                 preferred_element_type=jnp.float32)
    h3 = h3 * s3_ref[...] + b3_ref[...]                           # (TH*W, Cop)

    # Residual loaded right before the add (short live range), upcast to f32.
    res = x_ref[0, pl.ds(r0, TH), :, :].astype(jnp.float32).reshape(TH * W, Cp)
    out = jnp.maximum(h3 + res, 0.0)
    o_ref[0] = out.reshape(TH, W, Cop).astype(o_ref.dtype)


# ---------------------------------------------------------------------------
# Wrapper: tile selection, VMEM budgeting, pallas_call.
# ---------------------------------------------------------------------------
def _tile_working_set_bytes(th, W, Cp, Pp, Cop, out_itemsize):
    win = (th + 2) * W
    n_out = th * W
    b = win * Cp * 2                 # xw window value (bf16)
    b += win * Pp * 4                # h1 f32
    b += 3 * win * Pp * 2            # bf16 shifted variants
    b += n_out * 9 * Pp * 2          # im2col patch scratch
    b += n_out * Pp * 4              # h2 f32
    b += 2 * n_out * Cop * 4         # h3 f32 + residual f32
    b += 2 * n_out * Cop * out_itemsize   # double-buffered output block
    return b


def _pick_tile_h(H, W, Cp, Pp, Cop, out_itemsize, budget):
    for th in sorted((d for d in range(1, H + 1) if H % d == 0), reverse=True):
        if _tile_working_set_bytes(th, W, Cp, Pp, Cop, out_itemsize) <= budget:
            return th
    return 1


def _const_spec(shape, single_buffer):
    idx = lambda n, r: (0, 0)
    if single_buffer and hasattr(pl, "Buffered"):
        try:
            # Constant index map -> one buffer is enough; saves VMEM.
            return pl.BlockSpec(shape, idx, pipeline_mode=pl.Buffered(1))
        except Exception:
            pass
    return pl.BlockSpec(shape, idx)


def bottleneck_pallas_nhwc(x, p, *, single_buffer_weights=True):
    """Core entry point: x is NHWC (unpadded channels); returns NHWC f32."""
    N, H, W, Cin = x.shape
    Cp, Pp = p["w1"].shape
    Cop = p["w3"].shape[1]
    cout = p["cout"]
    assert Cin == cout and Cp == Cop, (
        "residual path requires inplanes == planes * expansion (downsample is None)")

    out_dtype = jnp.float32
    # TODO(synk): for inference-only pipelines emit bf16 here to halve output
    # writeback bytes (the block is memory-bound at these channel widths).

    # bf16 activations in HBM (matmuls are bf16 anyway; residual is upcast to
    # f32 inside the kernel). Channel pad only when not already lane-aligned
    # (real ResNet stages: no-op). NO spatial halo pad: handled in-kernel.
    if Cin != Cp:
        x = jnp.pad(x, ((0, 0), (0, 0), (0, 0), (0, Cp - Cin)))
    x = x.astype(jnp.bfloat16)

    # VMEM-aware row tile + vmem limit derived from actual buffer sizes.
    try:
        vmem_cap = int(pltpu.get_tpu_info().vmem_capacity_bytes)
    except Exception:
        vmem_cap = 64 * 1024 * 1024          # conservative (v7x per-TC VMEM)
    out_isz = jnp.dtype(out_dtype).itemsize
    fixed = (2 * H * W * Cp * 2                              # x block, 2 buffers
             + (Cp * Pp + 9 * Pp * Pp + Pp * Cop) * 2        # bf16 weights
             + 6 * max(Pp, Cop) * 4)                         # BN scale/bias
    budget = max(8 * 1024 * 1024, int(vmem_cap * 0.45) - fixed)
    TH = _pick_tile_h(H, W, Cp, Pp, Cop, out_isz, budget)
    tile_bytes = _tile_working_set_bytes(TH, W, Cp, Pp, Cop, out_isz)
    vmem_limit = int(min(max(int(1.5 * (fixed + tile_bytes)) + (8 << 20), 32 << 20),
                         int(vmem_cap * 0.8)))

    flops = 2 * N * H * W * (Cp * Pp + 9 * Pp * Pp + Pp * Cop)
    bytes_accessed = (x.size * 2 + N * H * W * Cop * out_isz
                      + (p["w1"].size + p["w2"].size + p["w3"].size) * 2)

    sb = single_buffer_weights
    out = pl.pallas_call(
        bottleneck_kernel,
        out_shape=jax.ShapeDtypeStruct((N, H, W, Cop), out_dtype),
        grid_spec=pltpu.PrefetchScalarGridSpec(
            num_scalar_prefetch=0,
            grid=(N, H // TH),
            in_specs=[
                pl.BlockSpec((1, H, W, Cp), lambda n, r: (n, 0, 0, 0)),
                _const_spec((Cp, Pp), sb),
                _const_spec((1, Pp), sb),
                _const_spec((1, Pp), sb),
                _const_spec((9 * Pp, Pp), sb),
                _const_spec((1, Pp), sb),
                _const_spec((1, Pp), sb),
                _const_spec((Pp, Cop), sb),
                _const_spec((1, Cop), sb),
                _const_spec((1, Cop), sb),
            ],
            out_specs=pl.BlockSpec((1, TH, W, Cop), lambda n, r: (n, r, 0, 0)),
            scratch_shapes=[pltpu.VMEM((TH * W, 9 * Pp), jnp.bfloat16)],
        ),
        compiler_params=pltpu.CompilerParams(
            dimension_semantics=("parallel", "parallel"),
            vmem_limit_bytes=vmem_limit),
        cost_estimate=pl.CostEstimate(
            flops=flops, transcendentals=0, bytes_accessed=bytes_accessed),
    )(x, p["w1"], p["s1"], p["b1"],
      p["w2"], p["s2"], p["b2"],
      p["w3"], p["s3"], p["b3"])

    return out[..., :cout]


def bottleneck_pallas(x_nchw, p):
    # PyTorch-layout compatibility boundary.
    # TODO(synk): in a full network keep activations NHWC (channel-padded,
    # bf16) end-to-end so these transposes disappear from the hot path.
    x = jnp.transpose(x_nchw, (0, 2, 3, 1))
    try:
        out = jax.block_until_ready(
            bottleneck_pallas_nhwc(x, p, single_buffer_weights=True))
    except Exception:
        # Fallback if this JAX build rejects pl.Buffered(1) on constant
        # operands; identical kernel, default double-buffered weights.
        out = jax.block_until_ready(
            bottleneck_pallas_nhwc(x, p, single_buffer_weights=False))
    return jnp.transpose(out, (0, 3, 1, 2))


# ---------------------------------------------------------------------------
# Parameter construction (deterministic) and a pure-JAX NCHW reference.
# ---------------------------------------------------------------------------
def make_params(key, inplanes, planes):
    expansion = 4
    cout = planes * expansion
    ks = jax.random.split(key, 18)

    def conv_init(k, shape):          # OIHW, like PyTorch
        fan_in = shape[1] * shape[2] * shape[3]
        return jax.random.normal(k, shape, jnp.float32) / jnp.sqrt(fan_in)

    raw = {
        "conv1_w": conv_init(ks[0], (planes, inplanes, 1, 1)),
        "conv1_b": 0.1 * jax.random.normal(ks[1], (planes,), jnp.float32),
        "conv2_w": conv_init(ks[2], (planes, planes, 3, 3)),
        "conv2_b": 0.1 * jax.random.normal(ks[3], (planes,), jnp.float32),
        "conv3_w": conv_init(ks[4], (cout, planes, 1, 1)),
        "conv3_b": 0.1 * jax.random.normal(ks[5], (cout,), jnp.float32),
    }
    for i, c in zip(range(3), (planes, planes, cout)):
        raw[f"bn{i+1}_gamma"] = 1.0 + 0.1 * jax.random.normal(ks[6 + 4 * i], (c,), jnp.float32)
        raw[f"bn{i+1}_beta"] = 0.1 * jax.random.normal(ks[7 + 4 * i], (c,), jnp.float32)
        raw[f"bn{i+1}_mean"] = 0.1 * jax.random.normal(ks[8 + 4 * i], (c,), jnp.float32)
        raw[f"bn{i+1}_var"] = 0.5 + jax.random.uniform(ks[9 + 4 * i], (c,), jnp.float32)

    def fold(conv_b, g, b, m, v):
        scale = g / jnp.sqrt(v + EPS)
        bias = b + scale * (conv_b - m)
        return scale, bias

    s1, b1 = fold(raw["conv1_b"], raw["bn1_gamma"], raw["bn1_beta"], raw["bn1_mean"], raw["bn1_var"])
    s2, b2 = fold(raw["conv2_b"], raw["bn2_gamma"], raw["bn2_beta"], raw["bn2_mean"], raw["bn2_var"])
    s3, b3 = fold(raw["conv3_b"], raw["bn3_gamma"], raw["bn3_beta"], raw["bn3_mean"], raw["bn3_var"])

    cin_p = _round_up(inplanes, LANE)
    p_p = _round_up(planes, LANE)
    cout_p = _round_up(cout, LANE)

    def pad2(a, rows, cols):
        return jnp.pad(a, ((0, rows - a.shape[0]), (0, cols - a.shape[1])))

    def pad_vec(v, n):
        return jnp.pad(v, (0, n - v.shape[0]))[None, :].astype(jnp.float32)

    w1 = jnp.transpose(raw["conv1_w"][:, :, 0, 0], (1, 0))          # (Cin, P)
    w2 = jnp.transpose(raw["conv2_w"], (2, 3, 1, 0))                # (kh, kw, in, out)
    w3 = jnp.transpose(raw["conv3_w"][:, :, 0, 0], (1, 0))          # (P, Cout)

    w2p = jnp.pad(w2, ((0, 0), (0, 0), (0, p_p - planes), (0, p_p - planes)))

    kernel_params = {
        # Lane-dense, bf16 matmul weights; BN scale/bias stay f32.
        "w1": pad2(w1, cin_p, p_p).astype(jnp.bfloat16),
        "w2": w2p.reshape(9 * p_p, p_p).astype(jnp.bfloat16),
        "w3": pad2(w3, p_p, cout_p).astype(jnp.bfloat16),
        "s1": pad_vec(s1, p_p), "b1": pad_vec(b1, p_p),
        "s2": pad_vec(s2, p_p), "b2": pad_vec(b2, p_p),
        "s3": pad_vec(s3, cout_p), "b3": pad_vec(b3, cout_p),
        "cout": cout,
    }
    return raw, kernel_params


def bottleneck_ref(x, raw):
    """Independent NCHW reference using lax.conv (matches PyTorch eval mode)."""
    def conv(h, w, b, pad):
        y = lax.conv_general_dilated(
            h, w, (1, 1), [(pad, pad), (pad, pad)],
            dimension_numbers=("NCHW", "OIHW", "NCHW"))
        return y + b[None, :, None, None]

    def bn(h, g, b, m, v):
        return (g[None, :, None, None] * (h - m[None, :, None, None])
                / jnp.sqrt(v + EPS)[None, :, None, None]
                + b[None, :, None, None])

    out = conv(x, raw["conv1_w"], raw["conv1_b"], 0)
    out = jnp.maximum(bn(out, raw["bn1_gamma"], raw["bn1_beta"], raw["bn1_mean"], raw["bn1_var"]), 0.0)
    out = conv(out, raw["conv2_w"], raw["conv2_b"], 1)
    out = jnp.maximum(bn(out, raw["bn2_gamma"], raw["bn2_beta"], raw["bn2_mean"], raw["bn2_var"]), 0.0)
    out = conv(out, raw["conv3_w"], raw["conv3_b"], 0)
    out = bn(out, raw["bn3_gamma"], raw["bn3_beta"], raw["bn3_mean"], raw["bn3_var"])
    return jnp.maximum(out + x, 0.0)


if __name__ == "__main__":
    key = jax.random.PRNGKey(0)
    k_x, k_p = jax.random.split(key)

    planes = 4
    inplanes = planes * 4        # expansion=4, downsample=None -> residual matches
    N, H, W = 2, 16, 16

    x = jax.random.normal(k_x, (N, inplanes, H, W), jnp.float32)   # NCHW, like PyTorch
    raw, kp = make_params(k_p, inplanes, planes)

    out = jax.block_until_ready(bottleneck_pallas(x, kp))
    ref = jax.block_until_ready(bottleneck_ref(x, raw))

    assert out.shape == (N, planes * 4, H, W)
    max_err = float(jnp.max(jnp.abs(out - ref)))
    # bf16 MXU operands and bf16 activations in HBM (f32 accumulation, f32
    # residual add) -> slightly looser tolerance than the pure-f32 reference.
    assert jnp.allclose(out, ref, rtol=5e-2, atol=5e-2), max_err

    print("KERNEL_OK")
</pallas_src>

<mosaic_0001>
module attributes {stable_mosaic.version = 11 : i64} {
  func.func @bottleneck_kernel(%arg0: i32, %arg1: i32, %arg2: memref<1x16x16x128xbf16, #tpu.memory_space<vmem>>, %arg3: memref<128x128xbf16, #tpu.memory_space<vmem>>, %arg4: memref<1x128xf32, #tpu.memory_space<vmem>>, %arg5: memref<1x128xf32, #tpu.memory_space<vmem>>, %arg6: memref<1152x128xbf16, #tpu.memory_space<vmem>>, %arg7: memref<1x128xf32, #tpu.memory_space<vmem>>, %arg8: memref<1x128xf32, #tpu.memory_space<vmem>>, %arg9: memref<128x128xbf16, #tpu.memory_space<vmem>>, %arg10: memref<1x128xf32, #tpu.memory_space<vmem>>, %arg11: memref<1x128xf32, #tpu.memory_space<vmem>>, %arg12: memref<1x16x16x128xf32, #tpu.memory_space<vmem>>, %arg13: memref<256x1152xbf16, #tpu.memory_space<vmem>>) attributes {dimension_semantics = [#tpu.dimension_semantics<parallel>, #tpu.dimension_semantics<parallel>], iteration_bounds = array<i64: 2, 1>, scalar_prefetch = 0 : i64, scratch_operands = 1 : i64, tpu.core_type = #tpu.core_type<tc>, window_params = [{transform_indices = @transform_0, window_bounds = array<i64: 1, 16, 16, 128>}, {pipeline_mode = #tpu.pipeline_mode<synchronous>, transform_indices = @transform_1, window_bounds = array<i64: 128, 128>}, {pipeline_mode = #tpu.pipeline_mode<synchronous>, transform_indices = @transform_2, window_bounds = array<i64: 1, 128>}, {pipeline_mode = #tpu.pipeline_mode<synchronous>, transform_indices = @transform_3, window_bounds = array<i64: 1, 128>}, {pipeline_mode = #tpu.pipeline_mode<synchronous>, transform_indices = @transform_4, window_bounds = array<i64: 1152, 128>}, {pipeline_mode = #tpu.pipeline_mode<synchronous>, transform_indices = @transform_5, window_bounds = array<i64: 1, 128>}, {pipeline_mode = #tpu.pipeline_mode<synchronous>, transform_indices = @transform_6, window_bounds = array<i64: 1, 128>}, {pipeline_mode = #tpu.pipeline_mode<synchronous>, transform_indices = @transform_7, window_bounds = array<i64: 128, 128>}, {pipeline_mode = #tpu.pipeline_mode<synchronous>, transform_indices = @transform_8, window_bounds = array<i64: 1, 128>}, {pipeline_mode = #tpu.pipeline_mode<synchronous>, transform_indices = @transform_9, window_bounds = array<i64: 1, 128>}, {transform_indices = @transform_10, window_bounds = array<i64: 1, 16, 16, 128>}]} {
    %c16_i32 = arith.constant 16 : i32
    %0 = arith.muli %arg1, %c16_i32 : i32
    %1 = tpu.assume_multiple %0, 16 : i32
    %c1_i32 = arith.constant 1 : i32
    %2 = arith.subi %1, %c1_i32 : i32
    %c0_i32 = arith.constant 0 : i32
    %3 = arith.maxsi %2, %c0_i32 : i32
    %c0 = arith.constant 0 : index
    %4 = arith.index_cast %3 : i32 to index
    %c0_0 = arith.constant 0 : index
    %c0_1 = arith.constant 0 : index
    %5 = vector.load %arg2[%c0, %4, %c0_0, %c0_1] : memref<1x16x16x128xbf16, #tpu.memory_space<vmem>>, vector<1x1x16x128xbf16>
    %6 = vector.shape_cast %5 : vector<1x1x16x128xbf16> to vector<1x16x128xbf16>
    %c0_2 = arith.constant 0 : index
    %7 = arith.index_cast %1 : i32 to index
    %c0_3 = arith.constant 0 : index
    %c0_4 = arith.constant 0 : index
    %8 = vector.load %arg2[%c0_2, %7, %c0_3, %c0_4] : memref<1x16x16x128xbf16, #tpu.memory_space<vmem>>, vector<1x16x16x128xbf16>
    %9 = vector.shape_cast %8 : vector<1x16x16x128xbf16> to vector<16x16x128xbf16>
    %c16_i32_5 = arith.constant 16 : i32
    %10 = arith.addi %1, %c16_i32_5 : i32
    %c15_i32 = arith.constant 15 : i32
    %11 = arith.minsi %10, %c15_i32 : i32
    %c0_6 = arith.constant 0 : index
    %12 = arith.index_cast %11 : i32 to index
    %c0_7 = arith.constant 0 : index
    %c0_8 = arith.constant 0 : index
    %13 = vector.load %arg2[%c0_6, %12, %c0_7, %c0_8] : memref<1x16x16x128xbf16, #tpu.memory_space<vmem>>, vector<1x1x16x128xbf16>
    %14 = vector.shape_cast %13 : vector<1x1x16x128xbf16> to vector<1x16x128xbf16>
    %15 = tpu.concatenate %6, %9, %14 in 0 : vector<1x16x128xbf16>, vector<16x16x128xbf16>, vector<1x16x128xbf16> -> vector<18x16x128xbf16>
    %16 = vector.shape_cast %15 : vector<18x16x128xbf16> to vector<288x128xbf16>
    %c0_9 = arith.constant 0 : index
    %c0_10 = arith.constant 0 : index
    %17 = vector.load %arg3[%c0_9, %c0_10] : memref<128x128xbf16, #tpu.memory_space<vmem>>, vector<128x128xbf16>
    %cst = arith.constant dense<0.000000e+00> : vector<288x128xf32>
    %18 = tpu.matmul %16, %17, %cst {dimension_numbers = #tpu.dot_dimension_numbers<[1], [0], [0], [1], [0, 0, 1, 1], [], []>} : vector<288x128xbf16>, vector<128x128xbf16>, vector<288x128xf32> -> vector<288x128xf32>
    %c0_11 = arith.constant 0 : index
    %c0_12 = arith.constant 0 : index
    %19 = vector.load %arg4[%c0_11, %c0_12] : memref<1x128xf32, #tpu.memory_space<vmem>>, vector<1x128xf32>
    %20 = vector.broadcast %19 : vector<1x128xf32> to vector<288x128xf32>
    %21 = arith.mulf %18, %20 : vector<288x128xf32>
    %c0_13 = arith.constant 0 : index
    %c0_14 = arith.constant 0 : index
    %22 = vector.load %arg5[%c0_13, %c0_14] : memref<1x128xf32, #tpu.memory_space<vmem>>, vector<1x128xf32>
    %23 = vector.broadcast %22 : vector<1x128xf32> to vector<288x128xf32>
    %24 = arith.addf %21, %23 : vector<288x128xf32>
    %cst_15 = arith.constant 0.000000e+00 : f32
    %25 = vector.broadcast %cst_15 : f32 to vector<288x128xf32>
    %26 = arith.maximumf %24, %25 : vector<288x128xf32>
    %c0_i32_16 = arith.constant 0 : i32
    %27 = arith.cmpi sgt, %1, %c0_i32_16 : i32
    %28 = arith.extui %27 : i1 to i32
    %29 = arith.sitofp %28 : i32 to f32
    %c16_i32_17 = arith.constant 16 : i32
    %30 = arith.addi %1, %c16_i32_17 : i32
    %c16_i32_18 = arith.constant 16 : i32
    %31 = arith.cmpi slt, %30, %c16_i32_18 : i32
    %32 = arith.extui %31 : i1 to i32
    %33 = arith.sitofp %32 : i32 to f32
    %34 = vector.extract_strided_slice %26 {offsets = [0, 0], sizes = [16, 128], strides = [1, 1]} : vector<288x128xf32> to vector<16x128xf32>
    %35 = vector.broadcast %29 : f32 to vector<16x128xf32>
    %36 = arith.mulf %34, %35 : vector<16x128xf32>
    %37 = vector.extract_strided_slice %26 {offsets = [16, 0], sizes = [256, 128], strides = [1, 1]} : vector<288x128xf32> to vector<256x128xf32>
    %38 = vector.extract_strided_slice %26 {offsets = [272, 0], sizes = [16, 128], strides = [1, 1]} : vector<288x128xf32> to vector<16x128xf32>
    %39 = vector.broadcast %33 : f32 to vector<16x128xf32>
    %40 = arith.mulf %38, %39 : vector<16x128xf32>
    %41 = tpu.concatenate %36, %37, %40 in 0 : vector<16x128xf32>, vector<256x128xf32>, vector<16x128xf32> -> vector<288x128xf32>
    %42 = arith.truncf %41 : vector<288x128xf32> to vector<288x128xbf16>
    %cst_19 = arith.constant 0.000000e+00 : bf16
    %43 = vector.broadcast %cst_19 : bf16 to vector<1x128xbf16>
    %44 = vector.extract_strided_slice %42 {offsets = [0, 0], sizes = [287, 128], strides = [1, 1]} : vector<288x128xbf16> to vector<287x128xbf16>
    %45 = tpu.concatenate %43, %44 in 0 : vector<1x128xbf16>, vector<287x128xbf16> -> vector<288x128xbf16>
    %46 = vector.extract_strided_slice %42 {offsets = [1, 0], sizes = [287, 128], strides = [1, 1]} : vector<288x128xbf16> to vector<287x128xbf16>
    %47 = tpu.concatenate %46, %43 in 0 : vector<287x128xbf16>, vector<1x128xbf16> -> vector<288x128xbf16>
    %48 = tpu.iota {dimensions = array<i32: 1>} : vector<1x16x128xi32>
    %49 = vector.shape_cast %42 : vector<288x128xbf16> to vector<18x16x128xbf16>
    %c1_i32_20 = arith.constant 1 : i32
    %50 = vector.broadcast %c1_i32_20 : i32 to vector<1x16x128xi32>
    %51 = arith.cmpi sge, %48, %50 : vector<1x16x128xi32>
    %52 = vector.shape_cast %45 : vector<288x128xbf16> to vector<18x16x128xbf16>
    %cst_21 = arith.constant 0.000000e+00 : f32
    %53 = arith.truncf %cst_21 : f32 to bf16
    %54 = vector.shape_cast %51 : vector<1x16x128xi1> to vector<1x16x128xi1>
    %55 = vector.broadcast %54 : vector<1x16x128xi1> to vector<18x16x128xi1>
    %56 = vector.broadcast %53 : bf16 to vector<18x16x128xbf16>
    %57 = arith.select %55, %52, %56 : vector<18x16x128xi1>, vector<18x16x128xbf16>
    %c14_i32 = arith.constant 14 : i32
    %58 = vector.broadcast %c14_i32 : i32 to vector<1x16x128xi32>
    %59 = arith.cmpi sle, %48, %58 : vector<1x16x128xi32>
    %60 = vector.shape_cast %47 : vector<288x128xbf16> to vector<18x16x128xbf16>
    %cst_22 = arith.constant 0.000000e+00 : f32
    %61 = arith.truncf %cst_22 : f32 to bf16
    %62 = vector.shape_cast %59 : vector<1x16x128xi1> to vector<1x16x128xi1>
    %63 = vector.broadcast %62 : vector<1x16x128xi1> to vector<18x16x128xi1>
    %64 = vector.broadcast %61 : bf16 to vector<18x16x128xbf16>
    %65 = arith.select %63, %60, %64 : vector<18x16x128xi1>, vector<18x16x128xbf16>
    %66 = vector.extract_strided_slice %57 {offsets = [0, 0, 0], sizes = [16, 16, 128], strides = [1, 1, 1]} : vector<18x16x128xbf16> to vector<16x16x128xbf16>
    %67 = vector.shape_cast %66 : vector<16x16x128xbf16> to vector<256x128xbf16>
    %c0_23 = arith.constant 0 : index
    %c0_24 = arith.constant 0 : index
    %68 = vector.load %arg13[%c0_23, %c0_24] : memref<256x1152xbf16, #tpu.memory_space<vmem>>, vector<256x128xbf16>
    tpu.vector_store %arg13[%c0_23, %c0_24], %67 {strides = array<i32>} : memref<256x1152xbf16, #tpu.memory_space<vmem>>, vector<256x128xbf16>,
    %69 = vector.extract_strided_slice %49 {offsets = [0, 0, 0], sizes = [16, 16, 128], strides = [1, 1, 1]} : vector<18x16x128xbf16> to vector<16x16x128xbf16>
    %70 = vector.shape_cast %69 : vector<16x16x128xbf16> to vector<256x128xbf16>
    %c0_25 = arith.constant 0 : index
    %c128 = arith.constant 128 : index
    %71 = vector.load %arg13[%c0_25, %c128] : memref<256x1152xbf16, #tpu.memory_space<vmem>>, vector<256x128xbf16>
    tpu.vector_store %arg13[%c0_25, %c128], %70 {strides = array<i32>} : memref<256x1152xbf16, #tpu.memory_space<vmem>>, vector<256x128xbf16>,
    %72 = vector.extract_strided_slice %65 {offsets = [0, 0, 0], sizes = [16, 16, 128], strides = [1, 1, 1]} : vector<18x16x128xbf16> to vector<16x16x128xbf16>
    %73 = vector.shape_cast %72 : vector<16x16x128xbf16> to vector<256x128xbf16>
    %c0_26 = arith.constant 0 : index
    %c256 = arith.constant 256 : index
    %74 = vector.load %arg13[%c0_26, %c256] : memref<256x1152xbf16, #tpu.memory_space<vmem>>, vector<256x128xbf16>
    tpu.vector_store %arg13[%c0_26, %c256], %73 {strides = array<i32>} : memref<256x1152xbf16, #tpu.memory_space<vmem>>, vector<256x128xbf16>,
    %75 = vector.extract_strided_slice %57 {offsets = [1, 0, 0], sizes = [16, 16, 128], strides = [1, 1, 1]} : vector<18x16x128xbf16> to vector<16x16x128xbf16>
    %76 = vector.shape_cast %75 : vector<16x16x128xbf16> to vector<256x128xbf16>
    %c0_27 = arith.constant 0 : index
    %c384 = arith.constant 384 : index
    %77 = vector.load %arg13[%c0_27, %c384] : memref<256x1152xbf16, #tpu.memory_space<vmem>>, vector<256x128xbf16>
    tpu.vector_store %arg13[%c0_27, %c384], %76 {strides = array<i32>} : memref<256x1152xbf16, #tpu.memory_space<vmem>>, vector<256x128xbf16>,
    %78 = vector.extract_strided_slice %49 {offsets = [1, 0, 0], sizes = [16, 16, 128], strides = [1, 1, 1]} : vector<18x16x128xbf16> to vector<16x16x128xbf16>
    %79 = vector.shape_cast %78 : vector<16x16x128xbf16> to vector<256x128xbf16>
    %c0_28 = arith.constant 0 : index
    %c512 = arith.constant 512 : index
    %80 = vector.load %arg13[%c0_28, %c512] : memref<256x1152xbf16, #tpu.memory_space<vmem>>, vector<256x128xbf16>
    tpu.vector_store %arg13[%c0_28, %c512], %79 {strides = array<i32>} : memref<256x1152xbf16, #tpu.memory_space<vmem>>, vector<256x128xbf16>,
    %81 = vector.extract_strided_slice %65 {offsets = [1, 0, 0], sizes = [16, 16, 128], strides = [1, 1, 1]} : vector<18x16x128xbf16> to vector<16x16x128xbf16>
    %82 = vector.shape_cast %81 : vector<16x16x128xbf16> to vector<256x128xbf16>
    %c0_29 = arith.constant 0 : index
    %c640 = arith.constant 640 : index
    %83 = vector.load %arg13[%c0_29, %c640] : memref<256x1152xbf16, #tpu.memory_space<vmem>>, vector<256x128xbf16>
    tpu.vector_store %arg13[%c0_29, %c640], %82 {strides = array<i32>} : memref<256x1152xbf16, #tpu.memory_space<vmem>>, vector<256x128xbf16>,
    %84 = vector.extract_strided_slice %57 {offsets = [2, 0, 0], sizes = [16, 16, 128], strides = [1, 1, 1]} : vector<18x16x128xbf16> to vector<16x16x128xbf16>
    %85 = vector.shape_cast %84 : vector<16x16x128xbf16> to vector<256x128xbf16>
    %c0_30 = arith.constant 0 : index
    %c768 = arith.constant 768 : index
    %86 = vector.load %arg13[%c0_30, %c768] : memref<256x1152xbf16, #tpu.memory_space<vmem>>, vector<256x128xbf16>
    tpu.vector_store %arg13[%c0_30, %c768], %85 {strides = array<i32>} : memref<256x1152xbf16, #tpu.memory_space<vmem>>, vector<256x128xbf16>,
    %87 = vector.extract_strided_slice %49 {offsets = [2, 0, 0], sizes = [16, 16, 128], strides = [1, 1, 1]} : vector<18x16x128xbf16> to vector<16x16x128xbf16>
    %88 = vector.shape_cast %87 : vector<16x16x128xbf16> to vector<256x128xbf16>
    %c0_31 = arith.constant 0 : index
    %c896 = arith.constant 896 : index
    %89 = vector.load %arg13[%c0_31, %c896] : memref<256x1152xbf16, #tpu.memory_space<vmem>>, vector<256x128xbf16>
    tpu.vector_store %arg13[%c0_31, %c896], %88 {strides = array<i32>} : memref<256x1152xbf16, #tpu.memory_space<vmem>>, vector<256x128xbf16>,
    %90 = vector.extract_strided_slice %65 {offsets = [2, 0, 0], sizes = [16, 16, 128], strides = [1, 1, 1]} : vector<18x16x128xbf16> to vector<16x16x128xbf16>
    %91 = vector.shape_cast %90 : vector<16x16x128xbf16> to vector<256x128xbf16>
    %c0_32 = arith.constant 0 : index
    %c1024 = arith.constant 1024 : index
    %92 = vector.load %arg13[%c0_32, %c1024] : memref<256x1152xbf16, #tpu.memory_space<vmem>>, vector<256x128xbf16>
    tpu.vector_store %arg13[%c0_32, %c1024], %91 {strides = array<i32>} : memref<256x1152xbf16, #tpu.memory_space<vmem>>, vector<256x128xbf16>,
    %c0_33 = arith.constant 0 : index
    %c0_34 = arith.constant 0 : index
    %93 = vector.load %arg13[%c0_33, %c0_34] : memref<256x1152xbf16, #tpu.memory_space<vmem>>, vector<256x1152xbf16>
    %c0_35 = arith.constant 0 : index
    %c0_36 = arith.constant 0 : index
    %94 = vector.load %arg6[%c0_35, %c0_36] : memref<1152x128xbf16, #tpu.memory_space<vmem>>, vector<1152x128xbf16>
    %cst_37 = arith.constant dense<0.000000e+00> : vector<256x128xf32>
    %95 = tpu.matmul %93, %94, %cst_37 {dimension_numbers = #tpu.dot_dimension_numbers<[1], [0], [0], [1], [0, 0, 1, 1], [], []>} : vector<256x1152xbf16>, vector<1152x128xbf16>, vector<256x128xf32> -> vector<256x128xf32>
    %c0_38 = arith.constant 0 : index
    %c0_39 = arith.constant 0 : index
    %96 = vector.load %arg7[%c0_38, %c0_39] : memref<1x128xf32, #tpu.memory_space<vmem>>, vector<1x128xf32>
    %97 = vector.broadcast %96 : vector<1x128xf32> to vector<256x128xf32>
    %98 = arith.mulf %95, %97 : vector<256x128xf32>
    %c0_40 = arith.constant 0 : index
    %c0_41 = arith.constant 0 : index
    %99 = vector.load %arg8[%c0_40, %c0_41] : memref<1x128xf32, #tpu.memory_space<vmem>>, vector<1x128xf32>
    %100 = vector.broadcast %99 : vector<1x128xf32> to vector<256x128xf32>
    %101 = arith.addf %98, %100 : vector<256x128xf32>
    %cst_42 = arith.constant 0.000000e+00 : f32
    %102 = vector.broadcast %cst_42 : f32 to vector<256x128xf32>
    %103 = arith.maximumf %101, %102 : vector<256x128xf32>
    %104 = arith.truncf %103 : vector<256x128xf32> to vector<256x128xbf16>
    %c0_43 = arith.constant 0 : index
    %c0_44 = arith.constant 0 : index
    %105 = vector.load %arg9[%c0_43, %c0_44] : memref<128x128xbf16, #tpu.memory_space<vmem>>, vector<128x128xbf16>
    %cst_45 = arith.constant dense<0.000000e+00> : vector<256x128xf32>
    %106 = tpu.matmul %104, %105, %cst_45 {dimension_numbers = #tpu.dot_dimension_numbers<[1], [0], [0], [1], [0, 0, 1, 1], [], []>} : vector<256x128xbf16>, vector<128x128xbf16>, vector<256x128xf32> -> vector<256x128xf32>
    %c0_46 = arith.constant 0 : index
    %c0_47 = arith.constant 0 : index
    %107 = vector.load %arg10[%c0_46, %c0_47] : memref<1x128xf32, #tpu.memory_space<vmem>>, vector<1x128xf32>
    %108 = vector.broadcast %107 : vector<1x128xf32> to vector<256x128xf32>
    %109 = arith.mulf %106, %108 : vector<256x128xf32>
    %c0_48 = arith.constant 0 : index
    %c0_49 = arith.constant 0 : index
    %110 = vector.load %arg11[%c0_48, %c0_49] : memref<1x128xf32, #tpu.memory_space<vmem>>, vector<1x128xf32>
    %111 = vector.broadcast %110 : vector<1x128xf32> to vector<256x128xf32>
    %112 = arith.addf %109, %111 : vector<256x128xf32>
    %c0_50 = arith.constant 0 : index
    %113 = arith.index_cast %1 : i32 to index
    %c0_51 = arith.constant 0 : index
    %c0_52 = arith.constant 0 : index
    %114 = vector.load %arg2[%c0_50, %113, %c0_51, %c0_52] : memref<1x16x16x128xbf16, #tpu.memory_space<vmem>>, vector<1x16x16x128xbf16>
    %115 = vector.shape_cast %114 : vector<1x16x16x128xbf16> to vector<16x16x128xbf16>
    %116 = arith.extf %115 : vector<16x16x128xbf16> to vector<16x16x128xf32>
    %117 = vector.shape_cast %116 : vector<16x16x128xf32> to vector<256x128xf32>
    %118 = arith.addf %112, %117 : vector<256x128xf32>
    %cst_53 = arith.constant 0.000000e+00 : f32
    %119 = vector.broadcast %cst_53 : f32 to vector<256x128xf32>
    %120 = arith.maximumf %118, %119 : vector<256x128xf32>
    %121 = vector.shape_cast %120 : vector<256x128xf32> to vector<16x16x128xf32>
    %c0_54 = arith.constant 0 : index
    %c0_55 = arith.constant 0 : index
    %c0_56 = arith.constant 0 : index
    %c0_57 = arith.constant 0 : index
    %122 = vector.load %arg12[%c0_54, %c0_55, %c0_56, %c0_57] : memref<1x16x16x128xf32, #tpu.memory_space<vmem>>, vector<1x16x16x128xf32>
    %123 = vector.shape_cast %122 : vector<1x16x16x128xf32> to vector<16x16x128xf32>
    %124 = vector.shape_cast %121 : vector<16x16x128xf32> to vector<1x16x16x128xf32>
    tpu.vector_store %arg12[%c0_54, %c0_55, %c0_56, %c0_57], %124 {strides = array<i32>} : memref<1x16x16x128xf32, #tpu.memory_space<vmem>>, vector<1x16x16x128xf32>,
    return
  }
  func.func @transform_0(%arg0: i32, %arg1: i32) -> (i32, i32, i32, i32) {
    %c0_i32 = arith.constant 0 : i32
    %c0_i32_0 = arith.constant 0 : i32
    %c0_i32_1 = arith.constant 0 : i32
    %c0_i32_2 = arith.constant 0 : i32
    return %arg0, %c0_i32, %c0_i32_0, %c0_i32_1 : i32, i32, i32, i32
  }
  func.func @transform_1(%arg0: i32, %arg1: i32) -> (i32, i32) {
    %c0_i32 = arith.constant 0 : i32
    %c0_i32_0 = arith.constant 0 : i32
    %c0_i32_1 = arith.constant 0 : i32
    return %c0_i32, %c0_i32_0 : i32, i32
  }
  func.func @transform_2(%arg0: i32, %arg1: i32) -> (i32, i32) {
    %c0_i32 = arith.constant 0 : i32
    %c0_i32_0 = arith.constant 0 : i32
    %c0_i32_1 = arith.constant 0 : i32
    return %c0_i32, %c0_i32_0 : i32, i32
  }
  func.func @transform_3(%arg0: i32, %arg1: i32) -> (i32, i32) {
    %c0_i32 = arith.constant 0 : i32
    %c0_i32_0 = arith.constant 0 : i32
    %c0_i32_1 = arith.constant 0 : i32
    return %c0_i32, %c0_i32_0 : i32, i32
  }
  func.func @transform_4(%arg0: i32, %arg1: i32) -> (i32, i32) {
    %c0_i32 = arith.constant 0 : i32
    %c0_i32_0 = arith.constant 0 : i32
    %c0_i32_1 = arith.constant 0 : i32
    return %c0_i32, %c0_i32_0 : i32, i32
  }
  func.func @transform_5(%arg0: i32, %arg1: i32) -> (i32, i32) {
    %c0_i32 = arith.constant 0 : i32
    %c0_i32_0 = arith.constant 0 : i32
    %c0_i32_1 = arith.constant 0 : i32
    return %c0_i32, %c0_i32_0 : i32, i32
  }
  func.func @transform_6(%arg0: i32, %arg1: i32) -> (i32, i32) {
    %c0_i32 = arith.constant 0 : i32
    %c0_i32_0 = arith.constant 0 : i32
    %c0_i32_1 = arith.constant 0 : i32
    return %c0_i32, %c0_i32_0 : i32, i32
  }
  func.func @transform_7(%arg0: i32, %arg1: i32) -> (i32, i32) {
    %c0_i32 = arith.constant 0 : i32
    %c0_i32_0 = arith.constant 0 : i32
    %c0_i32_1 = arith.constant 0 : i32
    return %c0_i32, %c0_i32_0 : i32, i32
  }
  func.func @transform_8(%arg0: i32, %arg1: i32) -> (i32, i32) {
    %c0_i32 = arith.constant 0 : i32
    %c0_i32_0 = arith.constant 0 : i32
    %c0_i32_1 = arith.constant 0 : i32
    return %c0_i32, %c0_i32_0 : i32, i32
  }
  func.func @transform_9(%arg0: i32, %arg1: i32) -> (i32, i32) {
    %c0_i32 = arith.constant 0 : i32
    %c0_i32_0 = arith.constant 0 : i32
    %c0_i32_1 = arith.constant 0 : i32
    return %c0_i32, %c0_i32_0 : i32, i32
  }
  func.func @transform_10(%arg0: i32, %arg1: i32) -> (i32, i32, i32, i32) {
    %c0_i32 = arith.constant 0 : i32
    %c0_i32_0 = arith.constant 0 : i32
    %c0_i32_1 = arith.constant 0 : i32
    return %arg0, %arg1, %c0_i32, %c0_i32_0 : i32, i32, i32, i32
  }
}

module attributes {stable_mosaic.version = 11 : i64} {
  func.func @bottleneck_kernel(%arg0: i32, %arg1: i32, %arg2: memref<1x16x16x128xbf16, #tpu.memory_space<vmem>>, %arg3: memref<128x128xbf16, #tpu.memory_space<vmem>>, %arg4: memref<1x128xf32, #tpu.memory_space<vmem>>, %arg5: memref<1x128xf32, #tpu.memory_space<vmem>>, %arg6: memref<1152x128xbf16, #tpu.memory_space<vmem>>, %arg7: memref<1x128xf32, #tpu.memory_space<vmem>>, %arg8: memref<1x128xf32, #tpu.memory_space<vmem>>, %arg9: memref<128x128xbf16, #tpu.memory_space<vmem>>, %arg10: memref<1x128xf32, #tpu.memory_space<vmem>>, %arg11: memref<1x128xf32, #tpu.memory_space<vmem>>, %arg12: memref<1x16x16x128xf32, #tpu.memory_space<vmem>>, %arg13: memref<256x1152xbf16, #tpu.memory_space<vmem>>) attributes {dimension_semantics = [#tpu.dimension_semantics<parallel>, #tpu.dimension_semantics<parallel>], iteration_bounds = array<i64: 2, 1>, scalar_prefetch = 0 : i64, scratch_operands = 1 : i64, tpu.core_type = #tpu.core_type<tc>, window_params = [{transform_indices = @transform_0, window_bounds = array<i64: 1, 16, 16, 128>}, {pipeline_mode = #tpu.pipeline_mode<synchronous>, transform_indices = @transform_1, window_bounds = array<i64: 128, 128>}, {pipeline_mode = #tpu.pipeline_mode<synchronous>, transform_indices = @transform_2, window_bounds = array<i64: 1, 128>}, {pipeline_mode = #tpu.pipeline_mode<synchronous>, transform_indices = @transform_3, window_bounds = array<i64: 1, 128>}, {pipeline_mode = #tpu.pipeline_mode<synchronous>, transform_indices = @transform_4, window_bounds = array<i64: 1152, 128>}, {pipeline_mode = #tpu.pipeline_mode<synchronous>, transform_indices = @transform_5, window_bounds = array<i64: 1, 128>}, {pipeline_mode = #tpu.pipeline_mode<synchronous>, transform_indices = @transform_6, window_bounds = array<i64: 1, 128>}, {pipeline_mode = #tpu.pipeline_mode<synchronous>, transform_indices = @transform_7, window_bounds = array<i64: 128, 128>}, {pipeline_mode = #tpu.pipeline_mode<synchronous>, transform_indices = @transform_8, window_bounds = array<i64: 1, 128>}, {pipeline_mode = #tpu.pipeline_mode<synchronous>, transform_indices = @transform_9, window_bounds = array<i64: 1, 128>}, {transform_indices = @transform_10, window_bounds = array<i64: 1, 16, 16, 128>}]} {
    %c16_i32 = arith.constant 16 : i32
    %0 = arith.muli %arg1, %c16_i32 : i32
    %1 = tpu.assume_multiple %0, 16 : i32
    %c1_i32 = arith.constant 1 : i32
    %2 = arith.subi %1, %c1_i32 : i32
    %c0_i32 = arith.constant 0 : i32
    %3 = arith.maxsi %2, %c0_i32 : i32
    %c0 = arith.constant 0 : index
    %4 = arith.index_cast %3 : i32 to index
    %c0_0 = arith.constant 0 : index
    %c0_1 = arith.constant 0 : index
    %5 = vector.load %arg2[%c0, %4, %c0_0, %c0_1] : memref<1x16x16x128xbf16, #tpu.memory_space<vmem>>, vector<1x1x16x128xbf16>
    %6 = vector.shape_cast %5 : vector<1x1x16x128xbf16> to vector<1x16x128xbf16>
    %c0_2 = arith.constant 0 : index
    %7 = arith.index_cast %1 : i32 to index
    %c0_3 = arith.constant 0 : index
    %c0_4 = arith.constant 0 : index
    %8 = vector.load %arg2[%c0_2, %7, %c0_3, %c0_4] : memref<1x16x16x128xbf16, #tpu.memory_space<vmem>>, vector<1x16x16x128xbf16>
    %9 = vector.shape_cast %8 : vector<1x16x16x128xbf16> to vector<16x16x128xbf16>
    %c16_i32_5 = arith.constant 16 : i32
    %10 = arith.addi %1, %c16_i32_5 : i32
    %c15_i32 = arith.constant 15 : i32
    %11 = arith.minsi %10, %c15_i32 : i32
    %c0_6 = arith.constant 0 : index
    %12 = arith.index_cast %11 : i32 to index
    %c0_7 = arith.constant 0 : index
    %c0_8 = arith.constant 0 : index
    %13 = vector.load %arg2[%c0_6, %12, %c0_7, %c0_8] : memref<1x16x16x128xbf16, #tpu.memory_space<vmem>>, vector<1x1x16x128xbf16>
    %14 = vector.shape_cast %13 : vector<1x1x16x128xbf16> to vector<1x16x128xbf16>
    %15 = tpu.concatenate %6, %9, %14 in 0 : vector<1x16x128xbf16>, vector<16x16x128xbf16>, vector<1x16x128xbf16> -> vector<18x16x128xbf16>
    %16 = vector.shape_cast %15 : vector<18x16x128xbf16> to vector<288x128xbf16>
    %c0_9 = arith.constant 0 : index
    %c0_10 = arith.constant 0 : index
    %17 = vector.load %arg3[%c0_9, %c0_10] : memref<128x128xbf16, #tpu.memory_space<vmem>>, vector<128x128xbf16>
    %cst = arith.constant dense<0.000000e+00> : vector<288x128xf32>
    %18 = tpu.matmul %16, %17, %cst {dimension_numbers = #tpu.dot_dimension_numbers<[1], [0], [0], [1], [0, 0, 1, 1], [], []>} : vector<288x128xbf16>, vector<128x128xbf16>, vector<288x128xf32> -> vector<288x128xf32>
    %c0_11 = arith.constant 0 : index
    %c0_12 = arith.constant 0 : index
    %19 = vector.load %arg4[%c0_11, %c0_12] : memref<1x128xf32, #tpu.memory_space<vmem>>, vector<1x128xf32>
    %20 = vector.broadcast %19 : vector<1x128xf32> to vector<288x128xf32>
    %21 = arith.mulf %18, %20 : vector<288x128xf32>
    %c0_13 = arith.constant 0 : index
    %c0_14 = arith.constant 0 : index
    %22 = vector.load %arg5[%c0_13, %c0_14] : memref<1x128xf32, #tpu.memory_space<vmem>>, vector<1x128xf32>
    %23 = vector.broadcast %22 : vector<1x128xf32> to vector<288x128xf32>
    %24 = arith.addf %21, %23 : vector<288x128xf32>
    %cst_15 = arith.constant 0.000000e+00 : f32
    %25 = vector.broadcast %cst_15 : f32 to vector<288x128xf32>
    %26 = arith.maximumf %24, %25 : vector<288x128xf32>
    %c0_i32_16 = arith.constant 0 : i32
    %27 = arith.cmpi sgt, %1, %c0_i32_16 : i32
    %28 = arith.extui %27 : i1 to i32
    %29 = arith.sitofp %28 : i32 to f32
    %c16_i32_17 = arith.constant 16 : i32
    %30 = arith.addi %1, %c16_i32_17 : i32
    %c16_i32_18 = arith.constant 16 : i32
    %31 = arith.cmpi slt, %30, %c16_i32_18 : i32
    %32 = arith.extui %31 : i1 to i32
    %33 = arith.sitofp %32 : i32 to f32
    %34 = vector.extract_strided_slice %26 {offsets = [0, 0], sizes = [16, 128], strides = [1, 1]} : vector<288x128xf32> to vector<16x128xf32>
    %35 = vector.broadcast %29 : f32 to vector<16x128xf32>
    %36 = arith.mulf %34, %35 : vector<16x128xf32>
    %37 = vector.extract_strided_slice %26 {offsets = [16, 0], sizes = [256, 128], strides = [1, 1]} : vector<288x128xf32> to vector<256x128xf32>
    %38 = vector.extract_strided_slice %26 {offsets = [272, 0], sizes = [16, 128], strides = [1, 1]} : vector<288x128xf32> to vector<16x128xf32>
    %39 = vector.broadcast %33 : f32 to vector<16x128xf32>
    %40 = arith.mulf %38, %39 : vector<16x128xf32>
    %41 = tpu.concatenate %36, %37, %40 in 0 : vector<16x128xf32>, vector<256x128xf32>, vector<16x128xf32> -> vector<288x128xf32>
    %42 = arith.truncf %41 : vector<288x128xf32> to vector<288x128xbf16>
    %cst_19 = arith.constant 0.000000e+00 : bf16
    %43 = vector.broadcast %cst_19 : bf16 to vector<1x128xbf16>
    %44 = vector.extract_strided_slice %42 {offsets = [0, 0], sizes = [287, 128], strides = [1, 1]} : vector<288x128xbf16> to vector<287x128xbf16>
    %45 = tpu.concatenate %43, %44 in 0 : vector<1x128xbf16>, vector<287x128xbf16> -> vector<288x128xbf16>
    %46 = vector.extract_strided_slice %42 {offsets = [1, 0], sizes = [287, 128], strides = [1, 1]} : vector<288x128xbf16> to vector<287x128xbf16>
    %47 = tpu.concatenate %46, %43 in 0 : vector<287x128xbf16>, vector<1x128xbf16> -> vector<288x128xbf16>
    %48 = tpu.iota {dimensions = array<i32: 1>} : vector<1x16x128xi32>
    %49 = vector.shape_cast %42 : vector<288x128xbf16> to vector<18x16x128xbf16>
    %c1_i32_20 = arith.constant 1 : i32
    %50 = vector.broadcast %c1_i32_20 : i32 to vector<1x16x128xi32>
    %51 = arith.cmpi sge, %48, %50 : vector<1x16x128xi32>
    %52 = vector.shape_cast %45 : vector<288x128xbf16> to vector<18x16x128xbf16>
    %cst_21 = arith.constant 0.000000e+00 : f32
    %53 = arith.truncf %cst_21 : f32 to bf16
    %54 = vector.shape_cast %51 : vector<1x16x128xi1> to vector<1x16x128xi1>
    %55 = vector.broadcast %54 : vector<1x16x128xi1> to vector<18x16x128xi1>
    %56 = vector.broadcast %53 : bf16 to vector<18x16x128xbf16>
    %57 = arith.select %55, %52, %56 : vector<18x16x128xi1>, vector<18x16x128xbf16>
    %c14_i32 = arith.constant 14 : i32
    %58 = vector.broadcast %c14_i32 : i32 to vector<1x16x128xi32>
    %59 = arith.cmpi sle, %48, %58 : vector<1x16x128xi32>
    %60 = vector.shape_cast %47 : vector<288x128xbf16> to vector<18x16x128xbf16>
    %cst_22 = arith.constant 0.000000e+00 : f32
    %61 = arith.truncf %cst_22 : f32 to bf16
    %62 = vector.shape_cast %59 : vector<1x16x128xi1> to vector<1x16x128xi1>
    %63 = vector.broadcast %62 : vector<1x16x128xi1> to vector<18x16x128xi1>
    %64 = vector.broadcast %61 : bf16 to vector<18x16x128xbf16>
    %65 = arith.select %63, %60, %64 : vector<18x16x128xi1>, vector<18x16x128xbf16>
    %66 = vector.extract_strided_slice %57 {offsets = [0, 0, 0], sizes = [16, 16, 128], strides = [1, 1, 1]} : vector<18x16x128xbf16> to vector<16x16x128xbf16>
    %67 = vector.shape_cast %66 : vector<16x16x128xbf16> to vector<256x128xbf16>
    %c0_23 = arith.constant 0 : index
    %c0_24 = arith.constant 0 : index
    %68 = vector.load %arg13[%c0_23, %c0_24] : memref<256x1152xbf16, #tpu.memory_space<vmem>>, vector<256x128xbf16>
    tpu.vector_store %arg13[%c0_23, %c0_24], %67 {strides = array<i32>} : memref<256x1152xbf16, #tpu.memory_space<vmem>>, vector<256x128xbf16>,
    %69 = vector.extract_strided_slice %49 {offsets = [0, 0, 0], sizes = [16, 16, 128], strides = [1, 1, 1]} : vector<18x16x128xbf16> to vector<16x16x128xbf16>
    %70 = vector.shape_cast %69 : vector<16x16x128xbf16> to vector<256x128xbf16>
    %c0_25 = arith.constant 0 : index
    %c128 = arith.constant 128 : index
    %71 = vector.load %arg13[%c0_25, %c128] : memref<256x1152xbf16, #tpu.memory_space<vmem>>, vector<256x128xbf16>
    tpu.vector_store %arg13[%c0_25, %c128], %70 {strides = array<i32>} : memref<256x1152xbf16, #tpu.memory_space<vmem>>, vector<256x128xbf16>,
    %72 = vector.extract_strided_slice %65 {offsets = [0, 0, 0], sizes = [16, 16, 128], strides = [1, 1, 1]} : vector<18x16x128xbf16> to vector<16x16x128xbf16>
    %73 = vector.shape_cast %72 : vector<16x16x128xbf16> to vector<256x128xbf16>
    %c0_26 = arith.constant 0 : index
    %c256 = arith.constant 256 : index
    %74 = vector.load %arg13[%c0_26, %c256] : memref<256x1152xbf16, #tpu.memory_space<vmem>>, vector<256x128xbf16>
    tpu.vector_store %arg13[%c0_26, %c256], %73 {strides = array<i32>} : memref<256x1152xbf16, #tpu.memory_space<vmem>>, vector<256x128xbf16>,
    %75 = vector.extract_strided_slice %57 {offsets = [1, 0, 0], sizes = [16, 16, 128], strides = [1, 1, 1]} : vector<18x16x128xbf16> to vector<16x16x128xbf16>
    %76 = vector.shape_cast %75 : vector<16x16x128xbf16> to vector<256x128xbf16>
    %c0_27 = arith.constant 0 : index
    %c384 = arith.constant 384 : index
    %77 = vector.load %arg13[%c0_27, %c384] : memref<256x1152xbf16, #tpu.memory_space<vmem>>, vector<256x128xbf16>
    tpu.vector_store %arg13[%c0_27, %c384], %76 {strides = array<i32>} : memref<256x1152xbf16, #tpu.memory_space<vmem>>, vector<256x128xbf16>,
    %78 = vector.extract_strided_slice %49 {offsets = [1, 0, 0], sizes = [16, 16, 128], strides = [1, 1, 1]} : vector<18x16x128xbf16> to vector<16x16x128xbf16>
    %79 = vector.shape_cast %78 : vector<16x16x128xbf16> to vector<256x128xbf16>
    %c0_28 = arith.constant 0 : index
    %c512 = arith.constant 512 : index
    %80 = vector.load %arg13[%c0_28, %c512] : memref<256x1152xbf16, #tpu.memory_space<vmem>>, vector<256x128xbf16>
    tpu.vector_store %arg13[%c0_28, %c512], %79 {strides = array<i32>} : memref<256x1152xbf16, #tpu.memory_space<vmem>>, vector<256x128xbf16>,
    %81 = vector.extract_strided_slice %65 {offsets = [1, 0, 0], sizes = [16, 16, 128], strides = [1, 1, 1]} : vector<18x16x128xbf16> to vector<16x16x128xbf16>
    %82 = vector.shape_cast %81 : vector<16x16x128xbf16> to vector<256x128xbf16>
    %c0_29 = arith.constant 0 : index
    %c640 = arith.constant 640 : index
    %83 = vector.load %arg13[%c0_29, %c640] : memref<256x1152xbf16, #tpu.memory_space<vmem>>, vector<256x128xbf16>
    tpu.vector_store %arg13[%c0_29, %c640], %82 {strides = array<i32>} : memref<256x1152xbf16, #tpu.memory_space<vmem>>, vector<256x128xbf16>,
    %84 = vector.extract_strided_slice %57 {offsets = [2, 0, 0], sizes = [16, 16, 128], strides = [1, 1, 1]} : vector<18x16x128xbf16> to vector<16x16x128xbf16>
    %85 = vector.shape_cast %84 : vector<16x16x128xbf16> to vector<256x128xbf16>
    %c0_30 = arith.constant 0 : index
    %c768 = arith.constant 768 : index
    %86 = vector.load %arg13[%c0_30, %c768] : memref<256x1152xbf16, #tpu.memory_space<vmem>>, vector<256x128xbf16>
    tpu.vector_store %arg13[%c0_30, %c768], %85 {strides = array<i32>} : memref<256x1152xbf16, #tpu.memory_space<vmem>>, vector<256x128xbf16>,
    %87 = vector.extract_strided_slice %49 {offsets = [2, 0, 0], sizes = [16, 16, 128], strides = [1, 1, 1]} : vector<18x16x128xbf16> to vector<16x16x128xbf16>
    %88 = vector.shape_cast %87 : vector<16x16x128xbf16> to vector<256x128xbf16>
    %c0_31 = arith.constant 0 : index
    %c896 = arith.constant 896 : index
    %89 = vector.load %arg13[%c0_31, %c896] : memref<256x1152xbf16, #tpu.memory_space<vmem>>, vector<256x128xbf16>
    tpu.vector_store %arg13[%c0_31, %c896], %88 {strides = array<i32>} : memref<256x1152xbf16, #tpu.memory_space<vmem>>, vector<256x128xbf16>,
    %90 = vector.extract_strided_slice %65 {offsets = [2, 0, 0], sizes = [16, 16, 128], strides = [1, 1, 1]} : vector<18x16x128xbf16> to vector<16x16x128xbf16>
    %91 = vector.shape_cast %90 : vector<16x16x128xbf16> to vector<256x128xbf16>
    %c0_32 = arith.constant 0 : index
    %c1024 = arith.constant 1024 : index
    %92 = vector.load %arg13[%c0_32, %c1024] : memref<256x1152xbf16, #tpu.memory_space<vmem>>, vector<256x128xbf16>
    tpu.vector_store %arg13[%c0_32, %c1024], %91 {strides = array<i32>} : memref<256x1152xbf16, #tpu.memory_space<vmem>>, vector<256x128xbf16>,
    %c0_33 = arith.constant 0 : index
    %c0_34 = arith.constant 0 : index
    %93 = vector.load %arg13[%c0_33, %c0_34] : memref<256x1152xbf16, #tpu.memory_space<vmem>>, vector<256x1152xbf16>
    %c0_35 = arith.constant 0 : index
    %c0_36 = arith.constant 0 : index
    %94 = vector.load %arg6[%c0_35, %c0_36] : memref<1152x128xbf16, #tpu.memory_space<vmem>>, vector<1152x128xbf16>
    %cst_37 = arith.constant dense<0.000000e+00> : vector<256x128xf32>
    %95 = tpu.matmul %93, %94, %cst_37 {dimension_numbers = #tpu.dot_dimension_numbers<[1], [0], [0], [1], [0, 0, 1, 1], [], []>} : vector<256x1152xbf16>, vector<1152x128xbf16>, vector<256x128xf32> -> vector<256x128xf32>
    %c0_38 = arith.constant 0 : index
    %c0_39 = arith.constant 0 : index
    %96 = vector.load %arg7[%c0_38, %c0_39] : memref<1x128xf32, #tpu.memory_space<vmem>>, vector<1x128xf32>
    %97 = vector.broadcast %96 : vector<1x128xf32> to vector<256x128xf32>
    %98 = arith.mulf %95, %97 : vector<256x128xf32>
    %c0_40 = arith.constant 0 : index
    %c0_41 = arith.constant 0 : index
    %99 = vector.load %arg8[%c0_40, %c0_41] : memref<1x128xf32, #tpu.memory_space<vmem>>, vector<1x128xf32>
    %100 = vector.broadcast %99 : vector<1x128xf32> to vector<256x128xf32>
    %101 = arith.addf %98, %100 : vector<256x128xf32>
    %cst_42 = arith.constant 0.000000e+00 : f32
    %102 = vector.broadcast %cst_42 : f32 to vector<256x128xf32>
    %103 = arith.maximumf %101, %102 : vector<256x128xf32>
    %104 = arith.truncf %103 : vector<256x128xf32> to vector<256x128xbf16>
    %c0_43 = arith.constant 0 : index
    %c0_44 = arith.constant 0 : index
    %105 = vector.load %arg9[%c0_43, %c0_44] : memref<128x128xbf16, #tpu.memory_space<vmem>>, vector<128x128xbf16>
    %cst_45 = arith.constant dense<0.000000e+00> : vector<256x128xf32>
    %106 = tpu.matmul %104, %105, %cst_45 {dimension_numbers = #tpu.dot_dimension_numbers<[1], [0], [0], [1], [0, 0, 1, 1], [], []>} : vector<256x128xbf16>, vector<128x128xbf16>, vector<256x128xf32> -> vector<256x128xf32>
    %c0_46 = arith.constant 0 : index
    %c0_47 = arith.constant 0 : index
    %107 = vector.load %arg10[%c0_46, %c0_47] : memref<1x128xf32, #tpu.memory_space<vmem>>, vector<1x128xf32>
    %108 = vector.broadcast %107 : vector<1x128xf32> to vector<256x128xf32>
    %109 = arith.mulf %106, %108 : vector<256x128xf32>
    %c0_48 = arith.constant 0 : index
    %c0_49 = arith.constant 0 : index
    %110 = vector.load %arg11[%c0_48, %c0_49] : memref<1x128xf32, #tpu.memory_space<vmem>>, vector<1x128xf32>
    %111 = vector.broadcast %110 : vector<1x128xf32> to vector<256x128xf32>
    %112 = arith.addf %109, %111 : vector<256x128xf32>
    %c0_50 = arith.constant 0 : index
    %113 = arith.index_cast %1 : i32 to index
    %c0_51 = arith.constant 0 : index
    %c0_52 = arith.constant 0 : index
    %114 = vector.load %arg2[%c0_50, %113, %c0_51, %c0_52] : memref<1x16x16x128xbf16, #tpu.memory_space<vmem>>, vector<1x16x16x128xbf16>
    %115 = vector.shape_cast %114 : vector<1x16x16x128xbf16> to vector<16x16x128xbf16>
    %116 = arith.extf %115 : vector<16x16x128xbf16> to vector<16x16x128xf32>
    %117 = vector.shape_cast %116 : vector<16x16x128xf32> to vector<256x128xf32>
    %118 = arith.addf %112, %117 : vector<256x128xf32>
    %cst_53 = arith.constant 0.000000e+00 : f32
    %119 = vector.broadcast %cst_53 : f32 to vector<256x128xf32>
    %120 = arith.maximumf %118, %119 : vector<256x128xf32>
    %121 = vector.shape_cast %120 : vector<256x128xf32> to vector<16x16x128xf32>
    %c0_54 = arith.constant 0 : index
    %c0_55 = arith.constant 0 : index
    %c0_56 = arith.constant 0 : index
    %c0_57 = arith.constant 0 : index
    %122 = vector.load %arg12[%c0_54, %c0_55, %c0_56, %c0_57] : memref<1x16x16x128xf32, #tpu.memory_space<vmem>>, vector<1x16x16x128xf32>
    %123 = vector.shape_cast %122 : vector<1x16x16x128xf32> to vector<16x16x128xf32>
    %124 = vector.shape_cast %121 : vector<16x16x128xf32> to vector<1x16x16x128xf32>
    tpu.vector_store %arg12[%c0_54, %c0_55, %c0_56, %c0_57], %124 {strides = array<i32>} : memref<1x16x16x128xf32, #tpu.memory_space<vmem>>, vector<1x16x16x128xf32>,
    return
  }
  func.func @transform_0(%arg0: i32, %arg1: i32) -> (i32, i32, i32, i32) {
    %c0_i32 = arith.constant 0 : i32
    %c0_i32_0 = arith.constant 0 : i32
    %c0_i32_1 = arith.constant 0 : i32
    %c0_i32_2 = arith.constant 0 : i32
    return %arg0, %c0_i32, %c0_i32_0, %c0_i32_1 : i32, i32, i32, i32
  }
  func.func @transform_1(%arg0: i32, %arg1: i32) -> (i32, i32) {
    %c0_i32 = arith.constant 0 : i32
    %c0_i32_0 = arith.constant 0 : i32
    %c0_i32_1 = arith.constant 0 : i32
    return %c0_i32, %c0_i32_0 : i32, i32
  }
  func.func @transform_2(%arg0: i32, %arg1: i32) -> (i32, i32) {
    %c0_i32 = arith.constant 0 : i32
    %c0_i32_0 = arith.constant 0 : i32
    %c0_i32_1 = arith.constant 0 : i32
    return %c0_i32, %c0_i32_0 : i32, i32
  }
  func.func @transform_3(%arg0: i32, %arg1: i32) -> (i32, i32) {
    %c0_i32 = arith.constant 0 : i32
    %c0_i32_0 = arith.constant 0 : i32
    %c0_i32_1 = arith.constant 0 : i32
    return %c0_i32, %c0_i32_0 : i32, i32
  }
  func.func @transform_4(%arg0: i32, %arg1: i32) -> (i32, i32) {
    %c0_i32 = arith.constant 0 : i32
    %c0_i32_0 = arith.constant 0 : i32
    %c0_i32_1 = arith.constant 0 : i32
    return %c0_i32, %c0_i32_0 : i32, i32
  }
  func.func @transform_5(%arg0: i32, %arg1: i32) -> (i32, i32) {
    %c0_i32 = arith.constant 0 : i32
    %c0_i32_0 = arith.constant 0 : i32
    %c0_i32_1 = arith.constant 0 : i32
    return %c0_i32, %c0_i32_0 : i32, i32
  }
  func.func @transform_6(%arg0: i32, %arg1: i32) -> (i32, i32) {
    %c0_i32 = arith.constant 0 : i32
    %c0_i32_0 = arith.constant 0 : i32
    %c0_i32_1 = arith.constant 0 : i32
    return %c0_i32, %c0_i32_0 : i32, i32
  }
  func.func @transform_7(%arg0: i32, %arg1: i32) -> (i32, i32) {
    %c0_i32 = arith.constant 0 : i32
    %c0_i32_0 = arith.constant 0 : i32
    %c0_i32_1 = arith.constant 0 : i32
    return %c0_i32, %c0_i32_0 : i32, i32
  }
  func.func @transform_8(%arg0: i32, %arg1: i32) -> (i32, i32) {
    %c0_i32 = arith.constant 0 : i32
    %c0_i32_0 = arith.constant 0 : i32
    %c0_i32_1 = arith.constant 0 : i32
    return %c0_i32, %c0_i32_0 : i32, i32
  }
  func.func @transform_9(%arg0: i32, %arg1: i32) -> (i32, i32) {
    %c0_i32 = arith.constant 0 : i32
    %c0_i32_0 = arith.constant 0 : i32
    %c0_i32_1 = arith.constant 0 : i32
    return %c0_i32, %c0_i32_0 : i32, i32
  }
  func.func @transform_10(%arg0: i32, %arg1: i32) -> (i32, i32, i32, i32) {
    %c0_i32 = arith.constant 0 : i32
    %c0_i32_0 = arith.constant 0 : i32
    %c0_i32_1 = arith.constant 0 : i32
    return %arg0, %arg1, %c0_i32, %c0_i32_0 : i32, i32, i32, i32
  }
}

</mosaic_0001>

<bundles_post_ra>
// kernel: tpu_custom_call.1
= control target key start
LH: loop header
LB: loop body
LE: loop exit
PB: predicated region body
PF: predicated region fallthrough
CT: control target
= control target key end

     0   :  { %s6616_s0 = inlined_call_operand.hbm [shape: bf16[2,16,16,128], index: 0, kind: input, shape index: {}]   ;;  %s6617_s1 = inlined_call_operand.hbm [shape: bf16[128,128], index: 1, kind: input, shape index: {}]   ;;  %s6618_s2 = inlined_call_operand.vmem [shape: f32[1,128], index: 2, kind: input, shape index: {}]   ;;  %s6619_s3 = inlined_call_operand.vmem [shape: f32[1,128], index: 3, kind: input, shape index: {}]   ;;  %s6620_s4 = inlined_call_operand.hbm [shape: bf16[1152,128], index: 4, kind: input, shape index: {}]   ;;  %s6621_s5 = inlined_call_operand.vmem [shape: f32[1,128], index: 5, kind: input, shape index: {}]   ;;  %s6622_s6 = inlined_call_operand.vmem [shape: f32[1,128], index: 6, kind: input, shape index: {}]   ;;  %s6623_s7 = inlined_call_operand.hbm [shape: bf16[128,128], index: 7, kind: input, shape index: {}]   ;;  %s6624_s8 = inlined_call_operand.vmem [shape: f32[1,128], index: 8, kind: input, shape index: {}]   ;;  %s6625_s9 = inlined_call_operand.vmem [shape: f32[1,128], index: 9, kind: input, shape index: {}]   ;;  %s6626_s10 = inlined_call_operand.hbm [shape: f32[2,16,16,128], index: 10, kind: output, shape index: {}]  }
   0x1   :  { %6636 = sst [smem:[#allocation19_spill]] %s6622_s6 }
   0x2   :  { %6637 = sst [smem:[#allocation20_spill]] %s6624_s8 }
   0x3   :  { %6638 = sst [smem:[#allocation21_spill]] %s6625_s9 }
   0x4   :  { %6639 = sst [smem:[#allocation22_spill]] %s6626_s10 }
   0x5   :  { %15 = vsyncpa [#allocation4], 0 }
   0x6   :  { %17 = vsyncpa [#allocation4 + $0x1], 0 }
   0x7   :  { %18 = vsyncpa [#allocation7], 0 }
   0x8   :  { %19 = vsyncpa [#allocation10], 0 }
   0x9   :  { %20 = vsyncpa [#allocation5], 0 }
   0xa   :  { %22 = vsyncpa [#allocation5 + $0x1], 0  ;;  %s5171_s13 = smov 0   ;;  %s5173_s14 = smov 0  }
   0xb   :  { %s5175_s15 = smov 0   ;;  %s5177_s16 = smov 0  }
   0xc   :  { %s5179_s17 = smov 0   ;;  %s5181_s18 = smov 0  }
   0xd LB: > { %6640 = sst [smem:[#allocation16_spill]] %s5083_s13  ;;  %s3694_s19 = sadd.s32 4294967295, %s5103_s18   ;;  %s5103_s18 = sphi %s5181_s18, %s28_s18   ;;  %s5099_s17 = sphi %s5179_s17, %s6677_s17   ;;  %s5095_s16 = sphi %s5177_s16, %s6676_s16   ;;  %s5091_s15 = sphi %s5175_s15, %s6675_s15   ;;  %s5087_s14 = sphi %s5173_s14, %s6674_s14   ;;  %s5083_s13 = sphi %s5171_s13, %s6673_s13  }
   0xe   : > { %6641 = sst [smem:[#allocation17_spill]] %s5095_s16  ;;  %s3695_s20 = sadd.s32 4294967294, %s5103_s18  }
   0xf   : > { %p60_p0 = scmp.ne.s32.totalorder %s5087_s14, %s5083_s13  ;;  %p5205_p1 = scmp.eq.s32.totalorder %s3694_s19, 0 }
  0x10   : > { %p5209_p2 = scmp.eq.s32.totalorder %s3694_s19, 1  ;;  %p281_p3 = scmp.eq.s32.totalorder %s3695_s20, 1 }
  0x11   : > { %s6642_s21 = scalar_select %p5205_p1, 1, 0 }
  0x12   : > { %s6643_s22 = scalar_select %p5209_p2, 1, 0 }
  0x13   : > { %p5215_p4 = por %p5205_p1, %p60_p0  ;;  %p3696_p5 = scmp.ge.s32.totalorder %s5103_s18, 1 }
  0x14   : > { %p5220_p6 = por %p281_p3, %p60_p0  ;;  %p288_p7 = scmp.lt.s32.totalorder %s5103_s18, 3 }
  0x15   : > { %s6644_s23 = scalar_select %p5215_p4, 1, 0 }
  0x16   : > { %s6645_s24 = scalar_select %p5220_p6, 1, 0 }
  0x17   : > { %p5225_p8 = pnand %p3696_p5, %p288_p7  ;;  %s5105_s26 = smov [#allocation6]  }
  0x18   : > { %6646 = sst [smem:[#allocation18_spill]] %s6645_s24  ;;  %s300_s27 = sshll.u32 %s5105_s26, 4  ;;  %s5229_s27 = int_to_ptr.vmem [resolvable:$true] %s300_s27 }
  0x19   : > { %s6647_s25 = scalar_select %p5225_p8, 1, 0 }
  0x1a   : > { %p4710_p9 = pneg %p5225_p8  ;;  %s5106_s29 = smov [#allocation8]  }
  0x1b   : > { %s319_s30 = sshll.u32 %s5106_s29, 4  ;;  %s5107_s11 = smov [#allocation9]   ;;  %s5240_s30 = int_to_ptr.vmem [resolvable:$true] %s319_s30 }
  0x1c   : > { %p5236_p11 = pnand %p4710_p9, %p5205_p1  ;;  %s5242_s12 = sshll.u32 %s5107_s11, 4  ;;  %s339_s12 = int_to_ptr.vmem [resolvable:$true] %s5242_s12 }
  0x1d   : > { %s4899_s26 = scalar_lea.hbm %s6617_s1, 1024 }
  0x1e   : > { %p4900_p12 = scmp.ne.s32.totalorder %s6617_s1, %s4899_s26  ;;  %p5252_p13 = pneg %p5236_p11 }
  0x1f   : > { %p4906_p5 = scmp.lt.u32.totalorder %s4899_s26, %s6617_s1 }
  0x20   : > { %p4902_p0 = pnand %p5252_p13, %p4900_p12 }
  0x22   : > { %p4903_p3 = pneg %p4902_p0 }
  0x24   : > { %p4908_p7 = pnand %p4906_p5, %p4903_p3 }
  0x26   : > { %4911 = shalt.err (!%p4908_p7)
}
  0x27   : > { %s4912_s13 = scalar_lea.vmem %s5229_s27, 1024  ;;  %p4920_p1 = scmp.lt.s32.totalorder %s5229_s27, %s5229_s27 }
  0x28   : > { %p4913_p9 = scmp.ne.s32.totalorder %s5229_s27, %s4912_s13  ;;  %p4921_p4 = scmp.lt.s32.totalorder %s4912_s13, %s4912_s13 }
  0x2a   : > { %p4915_p10 = pnand %p4913_p9, %p5252_p13  ;;  %p4922_p12 = por %p4921_p4, %p4920_p1 }
  0x2c   : > { %p4916_p6 = pneg %p4915_p10 }
  0x2e   : > { %p4923_p0 = pnand %p4922_p12, %p4916_p6 }
  0x30   : > { %4926 = shalt.err (!%p4923_p0)
}
  0x31   : > { %s5108_s24 = smov 64   ;;  %s5109_s19 = smov 4  }
  0x32   : > { %4713 = dma.hbm_to_vmem [thread:$0]  (!%p5236_p11), %s6617_s1, 1024, %s5229_s27, [#allocation7], %s5108_s24, %s5108_s24, %s5109_s19  }
  0x33   : > { %s4927_s13 = scalar_lea.hbm %s6620_s4, 9216 }
  0x34   : > { %p4928_p1 = scmp.ne.s32.totalorder %s6620_s4, %s4927_s13  ;;  %p4934_p10 = scmp.lt.u32.totalorder %s4927_s13, %s6620_s4 }
  0x36   : > { %p4930_p4 = pnand %p4928_p1, %p5252_p13 }
  0x38   : > { %p4931_p6 = pneg %p4930_p4 }
  0x3a   : > { %p4936_p3 = pnand %p4934_p10, %p4931_p6 }
  0x3c   : > { %4939 = shalt.err (!%p4936_p3)
}
  0x3d   : > { %s4940_s27 = scalar_lea.vmem %s5240_s30, 9216  ;;  %p4948_p12 = scmp.lt.s32.totalorder %s5240_s30, %s5240_s30 }
  0x3e   : > { %p4941_p5 = scmp.ne.s32.totalorder %s5240_s30, %s4940_s27  ;;  %p4949_p0 = scmp.lt.s32.totalorder %s4940_s27, %s4940_s27 }
  0x40   : > { %p4943_p7 = pnand %p4941_p5, %p5252_p13  ;;  %p4950_p1 = por %p4949_p0, %p4948_p12 }
  0x42   : > { %p4944_p9 = pneg %p4943_p7 }
  0x44   : > { %p4951_p4 = pnand %p4950_p1, %p4944_p9 }
  0x46   : > { %4954 = shalt.err (!%p4951_p4)
}
  0x47   : > { %4716 = dma.hbm_to_vmem [thread:$0]  (!%p5236_p11), %s6620_s4, 9216, %s5240_s30, [#allocation7], %s5108_s24, %s5108_s24, %s5109_s19  }
  0x48   : > { %s4955_s20 = scalar_lea.hbm %s6623_s7, 1024 }
  0x49   : > { %p4956_p6 = scmp.ne.s32.totalorder %s6623_s7, %s4955_s20  ;;  %p4962_p5 = scmp.lt.u32.totalorder %s4955_s20, %s6623_s7 }
  0x4b   : > { %p4958_p10 = pnand %p4956_p6, %p5252_p13 }
  0x4d   : > { %p4959_p3 = pneg %p4958_p10 }
  0x4f   : > { %p4964_p7 = pnand %p4962_p5, %p4959_p3 }
  0x51   : > { %4967 = shalt.err (!%p4964_p7)
}
  0x52   : > { %s4968_s27 = scalar_lea.vmem %s339_s12, 1024  ;;  %p4976_p1 = scmp.lt.s32.totalorder %s339_s12, %s339_s12 }
  0x53   : > { %p4969_p9 = scmp.ne.s32.totalorder %s339_s12, %s4968_s27  ;;  %p4977_p4 = scmp.lt.s32.totalorder %s4968_s27, %s4968_s27 }
  0x55   : > { %p4971_p12 = pnand %p4969_p9, %p5252_p13  ;;  %p4978_p8 = por %p4977_p4, %p4976_p1 }
  0x57   : > { %p4972_p0 = pneg %p4971_p12 }
  0x59   : > { %p4979_p2 = pnand %p4978_p8, %p4972_p0 }
  0x5b   : > { %4982 = shalt.err (!%p4979_p2)
}
  0x5c   : > { %4719 = dma.hbm_to_vmem [thread:$0]  (!%p5236_p11), %s6623_s7, 1024, %s339_s12, [#allocation10], %s5108_s24, %s5108_s24, %s5109_s19  }
  0x5d   : > { %s47_s10 = sadd.s32 1, %s5091_s15  ;;  %s40_s28 = sadd.s32 1, %s5099_s17 }
  0x5e   : > { %p54_p2 = scmp.ne.s32.totalorder %s5091_s15, %s5087_s14  ;;  %p42_p8 = scmp.ge.s32.totalorder %s40_s28, 2 }
  0x5f   : > { %p55_p13 = scmp.eq.s32.totalorder %s5103_s18, 0  ;;  %p6650_p6 = scmp.ne.s32.totalorder %s6643_s22, 0 }
  0x60   : > { %p4731_p3 = scmp.lt.s32.totalorder %s5103_s18, 2  ;;  %s6679_s28 = smov (%p42_p8, %s40_s28), 0 }
  0x61   : > { %p5331_p10 = por %p6650_p6, %p54_p2  ;;  %p56_p5 = por %p55_p13, %p54_p2 }
  0x62   : > { %s358_s9 = sand.u32 1, %s5091_s15   ;;  %s44_s16 = ssub.s32 %s5099_s17, %s6679_s28 }
  0x63   : > { %p45_p7 = scmp.eq.s32.totalorder %s44_s16, 0  ;;  %s3701_s12 = sshll.u32 %s358_s9, 7 }
  0x64   : > { %s3831_s20 = sshll.u32 %s5099_s17, 11  ;;  %s362_s13 = scalar_lea.vmem [#allocation3], %s3701_s12 }
  0x65   : > { %s5343_s26 = scalar_select %p45_p7, %s5091_s15, %s47_s10  }
  0x66   : > { %s5348_s22 = scalar_lea.hbm %s6616_s0, %s3831_s20  ;;  %s369_s27 = sshll.u32 %s362_s13, 4  ;;  %s5350_s27 = int_to_ptr.vmem [resolvable:$true] %s369_s27 }
  0x67   : > { %p5354_p11 = pnand %p4731_p3, %p56_p5  ;;  %s5358_s6 = scalar_lea.sflag [#allocation4], %s358_s9 }
  0x68   : > { %s4983_s10 = scalar_lea.hbm %s5348_s22, 2048  ;;  %s4988_s20 = scalar_lea.hbm %s6616_s0, 4096 }
  0x69   : > { %p4984_p9 = scmp.ne.s32.totalorder %s5348_s22, %s4983_s10  ;;  %p4985_p12 = pneg %p5354_p11 }
  0x6a   : > { %p4989_p4 = scmp.lt.u32.totalorder %s5348_s22, %s6616_s0  ;;  %p4990_p2 = scmp.lt.u32.totalorder %s4988_s20, %s4983_s10 }
  0x6b   : > { %p4986_p0 = pnand %p4985_p12, %p4984_p9  ;;  %p4992_p13 = scmp.lt.u32.totalorder %s4983_s10, %s5348_s22 }
  0x6c   : > { %p4991_p8 = por %p4990_p2, %p4989_p4 }
  0x6d   : > { %p4987_p1 = pneg %p4986_p0 }
  0x6e   : > { %p4993_p6 = por %p4992_p13, %p4991_p8 }
  0x70   : > { %p4994_p3 = pnand %p4993_p6, %p4987_p1 }
  0x72   : > { %4997 = shalt.err (!%p4994_p3)
}
  0x73   : > { %s4998_s9 = scalar_lea.vmem %s5350_s27, 2048  ;;  %s5110_s13 = smov [#allocation3]  }
  0x74   : > { %p4999_p5 = scmp.ne.s32.totalorder %s5350_s27, %s4998_s9  ;;  %s5003_s16 = sshll.u32 %s5110_s13, 4  ;;  %s5004_s16 = int_to_ptr.vmem [resolvable:$false] %s5003_s16 }
  0x75   : > { %s5005_s12 = scalar_lea.vmem %s5004_s16, 4096  ;;  %p5006_p0 = scmp.lt.s32.totalorder %s5350_s27, %s5004_s16 }
  0x76   : > { %p5001_p7 = pnand %p4999_p5, %p4985_p12  ;;  %p5007_p4 = scmp.lt.s32.totalorder %s5005_s12, %s4998_s9 }
  0x78   : > { %p5002_p9 = pneg %p5001_p7  ;;  %p5008_p2 = por %p5007_p4, %p5006_p0 }
  0x7a   : > { %p5009_p8 = pnand %p5008_p2, %p5002_p9 }
  0x7c   : > { %5012 = shalt.err (!%p5009_p8)
}
  0x7d   : > { %4723 = dma.hbm_to_vmem [thread:$0]  (!%p5354_p11), %s5348_s22, 2048, %s5350_s27, %s5358_s6, %s5108_s24, %s5108_s24, %s5109_s19  }
  0x7e   : > { %p6653_p12 = scmp.ne.s32.totalorder %s6647_s25, 0 }
  0x7f   : > { %s5392_s10 = sand.u32 (!%p6653_p12), 1, %s5087_s14   ;;  %p6654_p1 = scmp.ne.s32.totalorder (!%p6653_p12), %s6644_s23, 0 }
  0x80   : > { %381 = sbr.rel (%p6653_p12) target bundleno = 1189 (0x4a5), region = 60  ;;  %s3705_s20 = sshll.u32 (!%p6653_p12), %s5392_s10, 7 }
  0x81   : > { %s384_s29 = scalar_lea.sflag (!%p6653_p12), [#allocation4], %s5392_s10  ;;  %s5396_s11 = scalar_lea.vmem (!%p6653_p12), [#allocation3], %s3705_s20 }
  0x87   : > { %5066 = dma.done.wait (%p6654_p1), %s384_s29, 2048  }
  0x88   : > { %5068 = vsyncadd (%p6654_p1), %s384_s29, 4294965248  ;;  %p6655_p11 = scmp.ne.s32.totalorder %s6642_s21, 0 }
  0x8a   : > { %5070 = dma.done.wait (%p6655_p11), [#allocation7], 10240  }
  0x8b   : > { %5072 = vsyncadd (%p6655_p11), [#allocation7], 4294957056 }
  0x8c   : > { %5074 = dma.done.wait (%p6655_p11), [#allocation10], 1024  }
  0x8d   : > { %5076 = vsyncadd (%p6655_p11), [#allocation10], 4294966272  ;;  %v4793_v0 = vld [vmem:[#allocation6] sm:$0xff]   ;;  %v4794_v1 = vld [vmem:[#allocation6 + $0x8] sm:$0xff]   ;;  %v1233_v60 = vlaneseq  ;;  %vm5111_vm3 = vmmov 1   ;;  %vm1155_vm7 = vcmask 1040384  }
  0x8e   : > { %4530 = vmatprep.subr.bf16.mxu0 %v4793_v0  ;;  %v4795_v2 = vld [vmem:[#allocation6 + $0x10] sm:$0xff]   ;;  %v4796_v3 = vld [vmem:[#allocation6 + $0x18] sm:$0xff]   ;;  %v4801_v4 = vld [vmem:[%s5396_s11] sm:$0xff]   ;;  %vm993_vm6 = vsmask.f32 256  ;;  %vm1230_vm12 = vcmask 1047552  }
  0x8f   : > { %4531 = vmatpush3.bf16.msra.mxu0 %v4793_v0  ;;  %4546 = vmatprep.mubr.bf16.mxu0 %v4801_v4  ;;  %v4797_v5 = vld [vmem:[#allocation6 + $0x20] sm:$0xff]   ;;  %v4798_v6 = vld [vmem:[#allocation6 + $0x28] sm:$0xff]   ;;  %v4799_v7 = vld [vmem:[#allocation6 + $0x30] sm:$0xff]   ;;  %v1234_v61 = vshrl.u32 %v1233_v60, 7  ;;  %vm1158_vm9 = vsmask.f32 7424 }
  0x90   : > { %4532 = vmatprep.subr.bf16.mxu0 %v4794_v1  ;;  %v4800_v8 = vld [vmem:[#allocation6 + $0x38] sm:$0xff]   ;;  %v4819_v9 = vld [vmem:[#allocation8 + $0xc0] sm:$0xff]   ;;  %v4803_v11 = vld [vmem:[%s5396_s11 + $0x8] sm:$0xff]   ;;  %s6664_s6 = sld [smem:[#allocation19_spill]]  ;;  %s6665_s16 = sld [smem:[#allocation20_spill]] }
  0x91   : > { %v4802_v10 = vld [vmem:[%s5396_s11] sm:$0xff]   ;;  %v4821_v13 = vld [vmem:[#allocation8 + $0xc8] sm:$0xff]   ;;  %v4823_v15 = vld [vmem:[#allocation8 + $0xd0] sm:$0xff]   ;;  %v1235_v63 = vadd.s32 8, %v1234_v61  ;;  %vm1236_vm0 = vcmp.ge.s32.totalorder %v1234_v61, 1  ;;  %s6666_s29 = sld [smem:[#allocation21_spill]] }
  0x92   : > { %v4820_v12 = vld [vmem:[#allocation8 + $0x80] sm:$0xff]   ;;  %v4822_v14 = vld [vmem:[#allocation8 + $0x88] sm:$0xff]   ;;  %v4804_v16 = vld [vmem:[%s5396_s11 + $0x10] sm:$0xff]   ;;  %s3709_s21 = sshll.u32 %s5392_s10, 8  ;;  %s6667_s25 = sld [smem:[#allocation17_spill]] }
  0x93   : > { %4533 = vmatpush3.bf16.msra.mxu0 %v4794_v1  ;;  %v4829_v17 = vld [vmem:[#allocation8 + $0x40] sm:$0xff]   ;;  %v4805_v18 = vld [vmem:[%s5396_s11 + $0x18] sm:$0xff]   ;;  %v4824_v19 = vld [vmem:[#allocation8 + $0x90] sm:$0xff]   ;;  %vm1269_vm1 = vcmp.le.s32.totalorder %v1235_v63, 14  ;;  %s6458_s23 = scalar_lea.vmem [#allocation11], %s3709_s21  ;;  %s6668_s27 = sld [smem:[#allocation22_spill]] }
  0x94   : > { %4534 = vmatprep.subr.bf16.mxu0 %v4795_v2  ;;  %v4830_v20 = vld [vmem:[#allocation8] sm:$0xff]   ;;  %4034 = vmatprep.subr.bf16.mxu1 %v4829_v17  ;;  %v4831_v21 = vld [vmem:[#allocation8 + $0x48] sm:$0xff]   ;;  %v4825_v22 = vld [vmem:[#allocation8 + $0xd8] sm:$0xff]   ;;  %s3575_s24 = sshll.u32 %s6458_s23, 4  ;;  %s5113_s13 = smov [#allocation11]   ;;  %s6564_s24 = int_to_ptr.vmem [resolvable:$true] %s3575_s24 }
  0x95   : > { %4035 = vmatpush3.bf16.msra.mxu1 %v4830_v20  ;;  %v4833_v23 = vld [vmem:[#allocation8 + $0x8] sm:$0xff]   ;;  %v4826_v24 = vld [vmem:[#allocation8 + $0x98] sm:$0xff]   ;;  %v4827_v25 = vld [vmem:[#allocation8 + $0xe0] sm:$0xff]   ;;  %s5013_s9 = scalar_lea.vmem %s6564_s24, 4096 }
  0x96   : > { %4036 = vmatprep.subr.bf16.mxu1 %v4831_v21  ;;  %v4835_v26 = vld [vmem:[#allocation8 + $0x50] sm:$0xff]   ;;  %v4806_v28 = vld [vmem:[%s5396_s11 + $0x20] sm:$0xff]   ;;  %v4807_v29 = vld [vmem:[%s5396_s11 + $0x28] sm:$0xff]   ;;  %p5014_p13 = scmp.ne.s32.totalorder %s6564_s24, %s5013_s9 }
  0x97   : > { %4535 = vmatpush3.bf16.msra.mxu0 %v4795_v2  ;;  %v4836_v27 = vld [vmem:[#allocation8 + $0x10] sm:$0xff]   ;;  %v4828_v30 = vld [vmem:[#allocation8 + $0xa0] sm:$0xff]   ;;  %v4832_v31 = vld [vmem:[#allocation8 + $0xe8] sm:$0xff]  }
  0x98   : > { %4536 = vmatprep.subr.bf16.mxu0 %v4796_v3  ;;  %v4834_v32 = vld [vmem:[#allocation8 + $0xa8] sm:$0xff]   ;;  %v4808_v33 = vld [vmem:[%s5396_s11 + $0x30] sm:$0xff]   ;;  %v4809_v34 = vld [vmem:[%s5396_s11 + $0x38] sm:$0xff]   ;;  %p5015_p6 = pnand %p5014_p13, %p5331_p10 }
  0x99   : > { %4037 = vmatpush3.bf16.msra.mxu1 %v4833_v23  ;;  %v4810_v35 = vld [vmem:[%s5396_s11 + $0x40] sm:$0xff]   ;;  %v4811_v36 = vld [vmem:[%s5396_s11 + $0x48] sm:$0xff]   ;;  %v4812_v37 = vld [vmem:[%s5396_s11 + $0x50] sm:$0xff]  }
  0x9a   : > { %4038 = vmatprep.subr.bf16.mxu1 %v4835_v26  ;;  %v4813_v38 = vld [vmem:[%s5396_s11 + $0x58] sm:$0xff]   ;;  %v4814_v39 = vld [vmem:[%s5396_s11 + $0x60] sm:$0xff]   ;;  %v4815_v40 = vld [vmem:[%s5396_s11 + $0x68] sm:$0xff]   ;;  %p5016_p3 = pneg %p5015_p6 }
  0x9b   : > { %4537 = vmatpush3.bf16.msra.mxu0 %v4796_v3  ;;  %v4816_v41 = vld [vmem:[%s5396_s11 + $0x70] sm:$0xff]   ;;  %v4817_v42 = vld [vmem:[%s5396_s11 + $0x78] sm:$0xff]   ;;  %v4841_v46 = vld [vmem:[#allocation8 + $0x60] sm:$0xff]  }
  0x9c   : > { %4538 = vmatprep.subr.bf16.mxu0 %v4797_v5  ;;  %v4818_v43 = vld [vmem:[%s5396_s11 + $0x78] sm:$0xff]   ;;  %v4842_v47 = vld [vmem:[#allocation8 + $0x20] sm:$0xff]   ;;  %v4843_v48 = vld [vmem:[#allocation8 + $0x68] sm:$0xff]  }
  0x9d   : > { %4039 = vmatpush3.bf16.msra.mxu1 %v4836_v27  ;;  %v4837_v44 = vld [vmem:[#allocation8 + $0x58] sm:$0xff]   ;;  %v4844_v49 = vld [vmem:[#allocation8 + $0x28] sm:$0xff]   ;;  %v4839_v50 = vld [vmem:[#allocation8 + $0xf0] sm:$0xff]  }
  0x9e   : > { %v4838_v45 = vld [vmem:[#allocation8 + $0x18] sm:$0xff]   ;;  %4040 = vmatprep.subr.bf16.mxu1 %v4837_v44  ;;  %v4840_v51 = vld [vmem:[#allocation8 + $0xb0] sm:$0xff]   ;;  %v4851_v58 = vld [vmem:[#allocation8 + $0x1c0] sm:$0xff]  }
  0x9f   : > { %4539 = vmatpush3.bf16.msra.mxu0 %v4797_v5  ;;  %v4847_v52 = vld [vmem:[#allocation8 + $0x70] sm:$0xff]   ;;  %v4845_v54 = vld [vmem:[#allocation8 + $0xf8] sm:$0xff]   ;;  %v4855_v59 = vld [vmem:[#allocation8 + $0x140] sm:$0xff]  }
  0xa0   : > { %4540 = vmatprep.subr.bf16.mxu0 %v4798_v6  ;;  %v4848_v53 = vld [vmem:[#allocation8 + $0x30] sm:$0xff]   ;;  %v4849_v55 = vld [vmem:[#allocation8 + $0x78] sm:$0xff]   ;;  %v5431_v62 = vld [vmem:[%s6618_s2] ss:$0 sm:$0xff] }
  0xa1   : > { %4041 = vmatpush3.bf16.msra.mxu1 %v4838_v45  ;;  %v4846_v56 = vld [vmem:[#allocation8 + $0xb8] sm:$0xff]   ;;  %v5436_v1 = vld [vmem:[%s6619_s3] ss:$0 sm:$0xff]  ;;  %vm1242_vm2 = vmpackc.low %vm1236_vm0, %vm1236_vm0 }
  0xa2   : > { %4042 = vmatprep.subr.bf16.mxu1 %v4841_v46  ;;  %v4850_v57 = vld [vmem:[#allocation8 + $0x38] sm:$0xff]   ;;  %vm1243_vm4 = vmpackc.low %vm5111_vm3, %vm5111_vm3 }
  0xa3   : > { %4541 = vmatpush3.bf16.msra.mxu0 %v4798_v6  ;;  %vm1275_vm5 = vmpackc.low %vm1269_vm1, %vm1269_vm1 }
  0xa4   : > { %4542 = vmatprep.subr.bf16.mxu0 %v4799_v7  ;;  %vm5471_vm10 = vmand %vm1155_vm7, %vm993_vm6 }
  0xa5   : > { %4043 = vmatpush3.bf16.msra.mxu1 %v4842_v47  ;;  %vm1231_vm13 = vmand %vm1230_vm12, %vm1158_vm9 }
  0xa6   : > { %4044 = vmatprep.subr.bf16.mxu1 %v4843_v48 }
  0xa7   : > { %4543 = vmatpush3.bf16.msra.mxu0 %v4799_v7 }
  0xa8   : > { %4544 = vmatprep.subr.bf16.mxu0 %v4800_v8 }
  0xa9   : > { %4045 = vmatpush3.bf16.msra.mxu1 %v4844_v49 }
  0xaa   : > { %4046 = vmatprep.subr.bf16.mxu1 %v4847_v52 }
  0xab   : > { %4545 = vmatpush3.bf16.msra.mxu0 %v4800_v8 }
  0xac   : > { %4146 = vmatprep.subr.bf16.mxu0 %v4819_v9 }
  0xad   : > { %4047 = vmatpush3.bf16.msra.mxu1 %v4848_v53 }
  0xae   : > { %4547 = vmatmul.mubr.bf16.vlgmr.msra.gmra.mrb[0].mxu0 %v4802_v10  ;;  %4048 = vmatprep.subr.bf16.mxu1 %v4849_v55 }
  0xaf   : > { %4550 = vmatprep.mubr.bf16.mxu0 %v4803_v11  ;;  %4147 = vmatpush3.bf16.msra.mxu0 %v4820_v12 }
  0xb0   : > { %4148 = vmatprep.subr.bf16.mxu0 %v4821_v13 }
  0xb1   : > { %4049 = vmatpush3.bf16.msra.mxu1 %v4850_v57 }
  0xb2   : > { %4258 = vmatprep.subr.bf16.mxu1 %v4855_v59 }
  0xb3   : > { %4149 = vmatpush3.bf16.msra.mxu0 %v4822_v14 }
  0xb4   : > { %4150 = vmatprep.subr.bf16.mxu0 %v4823_v15 }
  0xb6   : > { %4551 = vmatmul.mubr.bf16.gmra.mrb[4].mxu0 %v4804_v16 }
  0xb7   : > { %4554 = vmatprep.mubr.bf16.mxu0 %v4805_v18  ;;  %4151 = vmatpush3.bf16.msra.mxu0 %v4824_v19  ;;  %v5112_v18 = vmov 0  }
  0xb8   : > { %4152 = vmatprep.subr.bf16.mxu0 %v4825_v22  ;;  %v1244_v19 = vsel %vm1242_vm2, 65537, %v5112_v18  ;;  %v1245_v20 = vsel %vm1243_vm4, 65537, %v5112_v18 }
  0xbb   : > { %4153 = vmatpush3.bf16.msra.mxu0 %v4826_v24  ;;  %v1277_v24 = vsel %vm1275_vm5, 65537, %v5112_v18 }
  0xbc   : > { %4154 = vmatprep.subr.bf16.mxu0 %v4827_v25 }
  0xbe   : > { %4555 = vmatmul.mubr.bf16.gmra.mrb[8].mxu0 %v4806_v28 }
  0xbf   : > { %4558 = vmatprep.mubr.bf16.mxu0 %v4807_v29  ;;  %4155 = vmatpush3.bf16.msra.mxu0 %v4828_v30 }
  0xc0   : > { %4156 = vmatprep.subr.bf16.mxu0 %v4832_v31 }
  0xc3   : > { %4157 = vmatpush3.bf16.msra.mxu0 %v4834_v32 }
  0xc4   : > { %4158 = vmatprep.subr.bf16.mxu0 %v4839_v50 }
  0xc6   : > { %4559 = vmatmul.mubr.bf16.gmra.mrb[12].mxu0 %v4808_v33  ;;  %v3740_v33 = vcombine.low %v1244_v19, %v1245_v20 }
  0xc7   : > { %4562 = vmatprep.mubr.bf16.mxu0 %v4809_v34  ;;  %4159 = vmatpush3.bf16.msra.mxu0 %v4840_v51 }
  0xc8   : > { %4160 = vmatprep.subr.bf16.mxu0 %v4845_v54  ;;  %vm5463_vm8 = vcmp.ne.s16.totalorder %v3740_v33, 0 }
  0xcb   : > { %4161 = vmatpush3.bf16.msra.mxu0 %v4846_v56 }
  0xcc   : > { %4370 = vmatprep.subr.bf16.mxu0 %v4851_v58 }
  0xce   : > { %4563 = vmatmul.mubr.bf16.gmra.mrb[16].mxu0 %v4810_v35 }
  0xcf   : > { %4566 = vmatprep.mubr.bf16.mxu0 %v4811_v36 }
  0xd6   : > { %4567 = vmatmul.mubr.bf16.gmra.mrb[20].mxu0 %v4812_v37  ;;  %v3741_v37 = vcombine.low %v1245_v20, %v1277_v24 }
  0xd7   : > { %4570 = vmatprep.mubr.bf16.mxu0 %v4813_v38 }
  0xd8   : > { %vm5475_vm11 = vcmp.ne.s16.totalorder %v3741_v37, 0  ;;  %v4863_v37 = vld [vmem:[#allocation8 + $0x150] sm:$0xff]  }
  0xde   : > { %4571 = vmatmul.mubr.bf16.gmra.mrb[24].mxu0 %v4814_v39 }
  0xdf   : > { %4574 = vmatprep.mubr.bf16.mxu0 %v4815_v40 }
  0xe6   : > { %4575 = vmatmul.mubr.bf16.gmra.mrb[28].mxu0 %v4816_v41 }
  0xe7   : > { %4578 = vmatprep.mubr.bf16.mxu0 %v4817_v42 }
  0xee   : > { %4579 = vmatmul.mubr.bf16.gmra.mrb[32].mxu0 %v4818_v43 }
 0x181   : > { %v4548_v0 = vpop.f32.mrb[0].mxu0 }
 0x182   : > { %v850_v2 = vmul.f32 %v4548_v0, %v5431_v62  ;;  %v698_v3 = vpop.f32.mrb[1].mxu0 }
 0x183   : > { %v848_v4 = vmul.f32 %v5431_v62, %v698_v3  ;;  %v4549_v5 = vpop.f32.mrb[2].mxu0 }
 0x184   : > { %v893_v6 = vadd.f32 %v5436_v1, %v850_v2  ;;  %v851_v7 = vmul.f32 %v4549_v5, %v5431_v62  ;;  %v701_v8 = vpop.f32.mrb[3].mxu0 }
 0x185   : > { %v891_v9 = vadd.f32 %v5436_v1, %v848_v4  ;;  %v849_v10 = vmul.f32 %v5431_v62, %v701_v8  ;;  %v4857_v8 = vld [vmem:[#allocation8 + $0x100] sm:$0xff]  }
 0x186   : > { %v894_v11 = vadd.f32 %v5436_v1, %v851_v7  ;;  %v929_v14 = vmax.f32 %v893_v6, 0.0  ;;  %v4852_v6 = vld [vmem:[#allocation8 + $0x180] sm:$0xff]  }
 0x187   : > { %v927_v12 = vmax.f32 %v891_v9, 0.0  ;;  %v892_v13 = vadd.f32 %v5436_v1, %v849_v10 }
 0x188   : > { %v930_v15 = vmax.f32 %v894_v11, 0.0 }
 0x189   : > { %v928_v16 = vmax.f32 %v892_v13, 0.0  ;;  %v4552_v17 = vpop.f32.mrb[4].mxu0  ;;  %v970_v25 = vmul.f32 0.0, %v927_v12  ;;  %v4853_v13 = vld [vmem:[#allocation8 + $0x1c8] sm:$0xff]  }
 0x18a   : > { %v5446_v21 = vpack.c.bf16 %v930_v15, %v929_v14  ;;  %v854_v22 = vmul.f32 %v4552_v17, %v5431_v62  ;;  %v714_v23 = vpop.f32.mrb[5].mxu0  ;;  %v4859_v14 = vld [vmem:[#allocation8 + $0x148] sm:$0xff]  }
 0x18b   : > { %v971_v26 = vmul.f32 0.0, %v928_v16  ;;  %v852_v27 = vmul.f32 %v5431_v62, %v714_v23  ;;  %v4553_v28 = vpop.f32.mrb[6].mxu0 }
 0x18c   : > { %v897_v29 = vadd.f32 %v5436_v1, %v854_v22  ;;  %v855_v30 = vmul.f32 %v4553_v28, %v5431_v62  ;;  %v717_v31 = vpop.f32.mrb[7].mxu0  ;;  %v1002_v32 = vshrl.u32 %v5446_v21, 16  ;;  %v1005_v41 = vshll.u32 %v5446_v21, 16 }
 0x18d   : > { %v895_v34 = vadd.f32 %v5436_v1, %v852_v27  ;;  %v853_v35 = vmul.f32 %v5431_v62, %v717_v31  ;;  %v975_v36 = vpack.c.bf16 %v971_v26, %v970_v25  ;;  %v4854_v25 = vld [vmem:[#allocation8 + $0x188] sm:$0xff]  }
 0x18e   : > { %v933_v38 = vmax.f32 %v897_v29, 0.0  ;;  %v898_v39 = vadd.f32 %v5436_v1, %v855_v30  ;;  %v5458_v40 = vrot.slane %v1002_v32, 7  ;;  %v1161_v56 = vrot.slane %v1005_v41, 1  ;;  %v4856_v30 = vld [vmem:[#allocation8 + $0x1d0] sm:$0xff]   ;;  %v4861_v31 = vld [vmem:[#allocation8 + $0x108] sm:$0xff]  }
 0x18f   : > { %v896_v42 = vadd.f32 %v5436_v1, %v853_v35  ;;  %v995_v43 = vshrl.u32 %v975_v36, 16  ;;  %2196 = vmatprep.mubr.bf16.mxu1 %v975_v36  ;;  %v998_v44 = vshll.u32 %v975_v36, 16  ;;  %v931_v48 = vmax.f32 %v895_v34, 0.0 }
 0x190   : > { %v934_v45 = vmax.f32 %v898_v39, 0.0  ;;  %v1007_v46 = vor.u32 %v1005_v41, %v5458_v40 }
 0x191   : > { %v932_v49 = vmax.f32 %v896_v42, 0.0  ;;  %v4556_v50 = vpop.f32.mrb[8].mxu0  ;;  %v997_v51 = vrot.slane %v995_v43, 7  ;;  %v1159_v52 = vrot.slane %v998_v44, 1 }
 0x192   : > { %v5467_v53 = vpack.c.bf16 %v934_v45, %v933_v38  ;;  %v858_v54 = vmul.f32 %v4556_v50, %v5431_v62  ;;  %v730_v55 = vpop.f32.mrb[9].mxu0 }
 0x193   : > { %v5479_v59 = vpack.c.bf16 %v932_v49, %v931_v48  ;;  %v856_v60 = vmul.f32 %v5431_v62, %v730_v55  ;;  %v4557_v61 = vpop.f32.mrb[10].mxu0  ;;  %v5483_v63 = vsel %vm993_vm6, %v997_v51, %v1007_v46  ;;  %v1000_v0 = vor.u32 %v998_v44, %v997_v51  ;;  %v4858_v49 = vld [vmem:[#allocation8 + $0x190] sm:$0xff]  }
 0x194   : > { %v901_v2 = vadd.f32 %v5436_v1, %v858_v54  ;;  %v859_v3 = vmul.f32 %v4557_v61, %v5431_v62  ;;  %v733_v4 = vpop.f32.mrb[11].mxu0  ;;  %3928 = vmatprep.mubr.msk.bf16.mxu0 %vm5463_vm8, %v5483_v63  ;;  %v1160_v5 = vor.u32 %v1159_v52, %v995_v43  ;;  %v1018_v7 = vshrl.u32 %v5467_v53, 16  ;;  %v4860_v52 = vld [vmem:[#allocation8 + $0x1d8] sm:$0xff]   ;;  %v4865_v54 = vld [vmem:[#allocation8 + $0x110] sm:$0xff]  }
 0x195   : > { %v899_v9 = vadd.f32 %v5436_v1, %v856_v60  ;;  %v857_v10 = vmul.f32 %v5431_v62, %v733_v4  ;;  %v1157_v11 = vsel %vm5471_vm10, 0, %v1000_v0  ;;  %v1010_v12 = vshrl.u32 %v5479_v59, 16 }
 0x196   : > { %v937_v15 = vmax.f32 %v901_v2, 0.0  ;;  %v902_v16 = vadd.f32 %v5436_v1, %v859_v3  ;;  %3912 = vmatmul.mubr.msk.bf16.vlgmr.msra.gmra.mrb[0].mxu1 %vm5463_vm8, %v1157_v11  ;;  %v1162_v17 = vsel %vm1158_vm9, %v1160_v5, %v1161_v56  ;;  %v1013_v18 = vshll.u32 %v5479_v59, 16  ;;  %v4862_v3 = vld [vmem:[#allocation8 + $0x198] sm:$0xff]  }
 0x197   : > { %v935_v19 = vmax.f32 %v899_v9, 0.0  ;;  %v900_v20 = vadd.f32 %v5436_v1, %v857_v10  ;;  %3929 = vmatmul.mubr.msk.bf16.vlgmr.msra.gmra.mrb[36].mxu0 %vm5475_vm11, %v1162_v17  ;;  %2204 = vmatprep.mubr.bf16.mxu1 %v5446_v21  ;;  %v1012_v22 = vrot.slane %v1010_v12, 7  ;;  %v5509_v23 = vrot.slane %v1018_v7, 7  ;;  %v4869_v9 = vld [vmem:[#allocation8 + $0x118] sm:$0xff]  }
 0x198   : > { %v938_v24 = vmax.f32 %v902_v16, 0.0  ;;  %4371 = vmatpush3.bf16.msra.mxu0 %v4852_v6  ;;  %4259 = vmatpush3.bf16.msra.mxu1 %v4857_v8  ;;  %v1021_v29 = vshll.u32 %v5467_v53, 16  ;;  %v1164_v36 = vrot.slane %v1013_v18, 1  ;;  %v1163_v48 = vor.u32 %v1161_v56, %v1002_v32  ;;  %v4867_v56 = vld [vmem:[#allocation8 + $0x158] sm:$0xff]   ;;  %v4864_v8 = vld [vmem:[#allocation8 + $0x1e0] sm:$0xff]  }
 0x199   : > { %v936_v26 = vmax.f32 %v900_v20, 0.0  ;;  %v4560_v27 = vpop.f32.mrb[12].mxu0  ;;  %v1015_v28 = vor.u32 %v1013_v18, %v1012_v22  ;;  %4372 = vmatprep.subr.bf16.mxu0 %v4853_v13  ;;  %4260 = vmatprep.subr.bf16.mxu1 %v4859_v14 }
 0x19a   : > { %v5512_v33 = vpack.c.bf16 %v938_v24, %v937_v15  ;;  %v862_v34 = vmul.f32 %v4560_v27, %v5431_v62  ;;  %v746_v35 = vpop.f32.mrb[13].mxu0  ;;  %v1023_v43 = vor.u32 %v1021_v29, %v5509_v23  ;;  %v5540_v32 = vsel %vm1158_vm9, %v1163_v48, %v1164_v36  ;;  %v4871_v15 = vld [vmem:[#allocation8 + $0x160] sm:$0xff]  }
 0x19b   : > { %v5515_v38 = vpack.c.bf16 %v936_v26, %v935_v19  ;;  %v860_v39 = vmul.f32 %v5431_v62, %v746_v35  ;;  %v4561_v41 = vpop.f32.mrb[14].mxu0  ;;  %v5520_v42 = vsel %vm993_vm6, %v5458_v40, %v1015_v28  ;;  %v1166_v14 = vor.u32 %v1164_v36, %v1010_v12  ;;  %v4866_v12 = vld [vmem:[#allocation8 + $0x1a0] sm:$0xff]   ;;  %v4875_v36 = vld [vmem:[#allocation8 + $0x168] sm:$0xff]  }
 0x19c   : > { %v905_v44 = vadd.f32 %v5436_v1, %v862_v34  ;;  %v863_v45 = vmul.f32 %v4561_v41, %v5431_v62  ;;  %v749_v46 = vpop.f32.mrb[15].mxu0  ;;  %3930 = vmatprep.mubr.msk.bf16.mxu0 %vm5463_vm8, %v5520_v42  ;;  %4373 = vmatpush3.bf16.msra.mxu0 %v4854_v25  ;;  %v5548_v0 = vsel %vm993_vm6, %v1012_v22, %v1023_v43  ;;  %v1034_v20 = vshrl.u32 %v5512_v33, 16 }
 0x19d   : > { %v903_v40 = vadd.f32 %v5436_v1, %v860_v39  ;;  %v861_v50 = vmul.f32 %v5431_v62, %v749_v46  ;;  %v1026_v51 = vshrl.u32 %v5515_v38, 16  ;;  %4374 = vmatprep.subr.bf16.mxu0 %v4856_v30  ;;  %4261 = vmatpush3.bf16.msra.mxu1 %v4861_v31  ;;  %v1029_v6 = vshll.u32 %v5515_v38, 16  ;;  %v4868_v30 = vld [vmem:[#allocation8 + $0x1e8] sm:$0xff]   ;;  %v4873_v31 = vld [vmem:[#allocation8 + $0x120] sm:$0xff]  }
 0x19e   : > { %v941_v55 = vmax.f32 %v905_v44, 0.0  ;;  %v906_v57 = vadd.f32 %v5436_v1, %v863_v45  ;;  %3913 = vmatmul.mubr.msk.bf16.gmra.mrb[4].mxu1 %vm5463_vm8, %v5483_v63  ;;  %4262 = vmatprep.subr.bf16.mxu1 %v4863_v37  ;;  %v1167_v24 = vrot.slane %v1021_v29, 1  ;;  %v5592_v43 = vrot.slane %v1034_v20, 7  ;;  %v4870_v45 = vld [vmem:[#allocation8 + $0x1a8] sm:$0xff]  }
 0x19f   : > { %v939_v60 = vmax.f32 %v903_v40, 0.0  ;;  %v904_v61 = vadd.f32 %v5436_v1, %v861_v50  ;;  %3931 = vmatmul.mubr.msk.bf16.gmra.mrb[40].mxu0 %vm5475_vm11, %v5540_v32  ;;  %2212 = vmatprep.mubr.bf16.mxu1 %v5479_v59  ;;  %v5552_v63 = vrot.slane %v1026_v51, 7  ;;  %v1037_v48 = vshll.u32 %v5512_v33, 16  ;;  %v4877_v40 = vld [vmem:[#allocation8 + $0x128] sm:$0xff]  }
 0x1a0   : > { %v942_v2 = vmax.f32 %v906_v57, 0.0  ;;  %3932 = vmatprep.mubr.msk.bf16.mxu0 %vm5463_vm8, %v5548_v0  ;;  %4375 = vmatpush3.bf16.msra.mxu0 %v4858_v49  ;;  %v5578_v29 = vsel %vm1158_vm9, %v1166_v14, %v1167_v24  ;;  %v4879_v57 = vld [vmem:[#allocation8 + $0x170] sm:$0xff]   ;;  %v4876_v14 = vld [vmem:[#allocation8 + $0x1f8] sm:$0xff]  }
 0x1a1   : > { %v940_v4 = vmax.f32 %v904_v61, 0.0  ;;  %v4564_v5 = vpop.f32.mrb[16].mxu0  ;;  %4376 = vmatprep.subr.bf16.mxu0 %v4860_v52  ;;  %4263 = vmatpush3.bf16.msra.mxu1 %v4865_v54  ;;  %v1031_v19 = vor.u32 %v1029_v6, %v5552_v63  ;;  %v1170_v52 = vrot.slane %v1029_v6, 1 }
 0x1a2   : > { %v5558_v10 = vpack.c.bf16 %v942_v2, %v941_v55  ;;  %v866_v11 = vmul.f32 %v4564_v5, %v5431_v62  ;;  %v762_v13 = vpop.f32.mrb[17].mxu0  ;;  %4264 = vmatprep.subr.bf16.mxu1 %v4867_v56 }
 0x1a3   : > { %v5563_v16 = vpack.c.bf16 %v940_v4, %v939_v60  ;;  %v864_v17 = vmul.f32 %v5431_v62, %v762_v13  ;;  %v4565_v18 = vpop.f32.mrb[18].mxu0  ;;  %v5587_v39 = vsel %vm993_vm6, %v5509_v23, %v1031_v19  ;;  %v4872_v23 = vld [vmem:[#allocation8 + $0x1f0] sm:$0xff]   ;;  %v1039_v60 = vor.u32 %v1037_v48, %v5592_v43  ;;  %v4881_v19 = vld [vmem:[#allocation8 + $0x178] sm:$0xff]  }
 0x1a4   : > { %v909_v22 = vadd.f32 %v5436_v1, %v866_v11  ;;  %v867_v25 = vmul.f32 %v4565_v18, %v5431_v62  ;;  %v765_v26 = vpop.f32.mrb[19].mxu0  ;;  %4377 = vmatpush3.bf16.msra.mxu0 %v4862_v3  ;;  %v1169_v4 = vor.u32 %v1167_v24, %v1018_v7 }
 0x1a5   : > { %v907_v27 = vadd.f32 %v5436_v1, %v864_v17  ;;  %v865_v28 = vmul.f32 %v5431_v62, %v765_v26  ;;  %4378 = vmatprep.subr.bf16.mxu0 %v4864_v8  ;;  %4265 = vmatpush3.bf16.msra.mxu1 %v4869_v9  ;;  %v1042_v3 = vshrl.u32 %v5563_v16, 16  ;;  %v4874_v9 = vld [vmem:[#allocation8 + $0x1b0] sm:$0xff]  }
 0x1a6   : > { %v945_v34 = vmax.f32 %v909_v22, 0.0  ;;  %3914 = vmatmul.mubr.msk.bf16.gmra.mrb[8].mxu1 %vm5463_vm8, %v5520_v42  ;;  %v910_v35 = vadd.f32 %v5436_v1, %v867_v25  ;;  %4266 = vmatprep.subr.bf16.mxu1 %v4871_v15  ;;  %v4880_v15 = vld [vmem:[#allocation8 + $0x130] sm:$0xff]   ;;  %v5616_v7 = vsel %vm1158_vm9, %v1169_v4, %v1170_v52  ;;  %v5625_v22 = vsel %vm993_vm6, %v5552_v63, %v1039_v60  ;;  %v4882_v63 = vld [vmem:[#allocation8 + $0x138] sm:$0xff]  }
 0x1a7   : > { %v943_v37 = vmax.f32 %v907_v27, 0.0  ;;  %3933 = vmatmul.mubr.msk.bf16.gmra.mrb[44].mxu0 %vm5475_vm11, %v5578_v29  ;;  %2220 = vmatprep.mubr.bf16.mxu1 %v5467_v53  ;;  %v908_v41 = vadd.f32 %v5436_v1, %v865_v28  ;;  %v5629_v25 = vrot.slane %v1042_v3, 7  ;;  %v4878_v27 = vld [vmem:[#allocation8 + $0x1b8] sm:$0xff]   ;;  %v1045_v28 = vshll.u32 %v5563_v16, 16 }
 0x1a8   : > { %v946_v44 = vmax.f32 %v910_v35, 0.0  ;;  %3934 = vmatprep.mubr.msk.bf16.mxu0 %vm5463_vm8, %v5587_v39  ;;  %4379 = vmatpush3.bf16.msra.mxu0 %v4866_v12  ;;  %v1172_v35 = vor.u32 %v1170_v52, %v1026_v51 }
 0x1a9   : > { %v944_v46 = vmax.f32 %v908_v41, 0.0  ;;  %v4568_v49 = vpop.f32.mrb[20].mxu0  ;;  %4380 = vmatprep.subr.bf16.mxu0 %v4868_v30  ;;  %4267 = vmatpush3.bf16.msra.mxu1 %v4873_v31 }
 0x1aa   : > { %v5598_v50 = vpack.c.bf16 %v946_v44, %v945_v34  ;;  %v870_v54 = vmul.f32 %v4568_v49, %v5431_v62  ;;  %v778_v55 = vpop.f32.mrb[21].mxu0  ;;  %4268 = vmatprep.subr.bf16.mxu1 %v4875_v36  ;;  %v5636_v34 = vld [vmem:[#allocation8 + $0x200] sm:$0xff]   ;;  %v1047_v44 = vor.u32 %v1045_v28, %v5629_v25 }
 0x1ab   : > { %v5601_v56 = vpack.c.bf16 %v944_v46, %v943_v37  ;;  %v868_v61 = vmul.f32 %v5431_v62, %v778_v55  ;;  %v4569_v2 = vpop.f32.mrb[22].mxu0  ;;  %v1050_v46 = vshrl.u32 %v5558_v10, 16 }
 0x1ac   : > { %v913_v5 = vadd.f32 %v5436_v1, %v870_v54  ;;  %v871_v6 = vmul.f32 %v4569_v2, %v5431_v62  ;;  %v781_v8 = vpop.f32.mrb[23].mxu0  ;;  %4381 = vmatpush3.bf16.msra.mxu0 %v4870_v45  ;;  %v5667_v2 = vsel %vm993_vm6, %v5592_v43, %v1047_v44 }
 0x1ad   : > { %v911_v11 = vadd.f32 %v5436_v1, %v868_v61  ;;  %v869_v13 = vmul.f32 %v5431_v62, %v781_v8  ;;  %4382 = vmatprep.subr.bf16.mxu0 %v4872_v23  ;;  %4269 = vmatpush3.bf16.msra.mxu1 %v4877_v40  ;;  %v1173_v40 = vrot.slane %v1037_v48, 1  ;;  %v1052_v4 = vrot.slane %v1050_v46, 7 }
 0x1ae   : > { %3915 = vmatmul.mubr.msk.bf16.gmra.mrb[12].mxu1 %vm5463_vm8, %v5548_v0  ;;  %v949_v17 = vmax.f32 %v913_v5, 0.0  ;;  %v914_v18 = vadd.f32 %v5436_v1, %v871_v6  ;;  %4270 = vmatprep.subr.bf16.mxu1 %v4879_v57 }
 0x1af   : > { %3935 = vmatmul.mubr.msk.bf16.gmra.mrb[48].mxu0 %vm5475_vm11, %v5616_v7  ;;  %2228 = vmatprep.mubr.bf16.mxu1 %v5515_v38  ;;  %v947_v24 = vmax.f32 %v911_v11, 0.0  ;;  %v912_v26 = vadd.f32 %v5436_v1, %v869_v13  ;;  %v5657_v60 = vsel %vm1158_vm9, %v1172_v35, %v1173_v40 }
 0x1b0   : > { %3936 = vmatprep.mubr.msk.bf16.mxu0 %vm5463_vm8, %v5625_v22  ;;  %v950_v12 = vmax.f32 %v914_v18, 0.0  ;;  %4383 = vmatpush3.bf16.msra.mxu0 %v4874_v9  ;;  %v1053_v9 = vshll.u32 %v5558_v10, 16 }
 0x1b1   : > { %v948_v30 = vmax.f32 %v912_v26, 0.0  ;;  %v4572_v31 = vpop.f32.mrb[24].mxu0  ;;  %4384 = vmatprep.subr.bf16.mxu0 %v4876_v14  ;;  %4271 = vmatpush3.bf16.msra.mxu1 %v4880_v15  ;;  %v1176_v14 = vrot.slane %v1045_v28, 1 }
 0x1b2   : > { %v5640_v36 = vpack.c.bf16 %v950_v12, %v949_v17  ;;  %v874_v37 = vmul.f32 %v4572_v31, %v5431_v62  ;;  %v794_v41 = vpop.f32.mrb[25].mxu0  ;;  %4272 = vmatprep.subr.bf16.mxu1 %v4881_v19  ;;  %v1055_v18 = vor.u32 %v1053_v9, %v1052_v4  ;;  %v1058_v19 = vshrl.u32 %v5601_v56, 16 }
 0x1b3   : > { %v5644_v45 = vpack.c.bf16 %v948_v30, %v947_v24  ;;  %v872_v49 = vmul.f32 %v5431_v62, %v794_v41  ;;  %v4573_v23 = vpop.f32.mrb[26].mxu0  ;;  %v1061_v41 = vshll.u32 %v5601_v56, 16 }
 0x1b4   : > { %v917_v54 = vadd.f32 %v5436_v1, %v874_v37  ;;  %v875_v51 = vmul.f32 %v4573_v23, %v5431_v62  ;;  %v797_v52 = vpop.f32.mrb[27].mxu0  ;;  %4385 = vmatpush3.bf16.msra.mxu0 %v4878_v27  ;;  %v1175_v27 = vor.u32 %v1173_v40, %v1034_v20  ;;  %v1060_v23 = vrot.slane %v1058_v19, 7 }
 0x1b5   : > { %v915_v55 = vadd.f32 %v5436_v1, %v872_v49  ;;  %v873_v57 = vmul.f32 %v5431_v62, %v797_v52  ;;  %4273 = vmatpush3.bf16.msra.mxu1 %v4882_v63  ;;  %4582 = vmatprep.subr.bf16.mxu0 %v5636_v34  ;;  %v5703_v49 = vsel %vm993_vm6, %v5629_v25, %v1055_v18 }
 0x1b6   : > { %3916 = vmatmul.mubr.msk.bf16.gmra.mrb[16].mxu1 %vm5463_vm8, %v5587_v39  ;;  %v953_v48 = vmax.f32 %v917_v54, 0.0  ;;  %v918_v61 = vadd.f32 %v5436_v1, %v875_v51  ;;  %4678 = vmatprep.subr.bf16.mxu1 %v5636_v34  ;;  %v5693_v37 = vsel %vm1158_vm9, %v1175_v27, %v1176_v14 }
 0x1b7   : > { %3937 = vmatmul.mubr.msk.bf16.gmra.mrb[52].mxu0 %vm5475_vm11, %v5657_v60  ;;  %2236 = vmatprep.mubr.bf16.mxu1 %v5512_v33  ;;  %v951_v5 = vmax.f32 %v915_v55, 0.0  ;;  %v916_v6 = vadd.f32 %v5436_v1, %v873_v57  ;;  %v1178_v57 = vor.u32 %v1176_v14, %v1042_v3 }
 0x1b8   : > { %3938 = vmatprep.mubr.msk.bf16.mxu0 %vm5463_vm8, %v5667_v2  ;;  %v954_v8 = vmax.f32 %v918_v61, 0.0 }
 0x1b9   : > { %v952_v11 = vmax.f32 %v916_v6, 0.0  ;;  %v4576_v13 = vpop.f32.mrb[28].mxu0  ;;  %v1066_v6 = vshrl.u32 %v5598_v50, 16 }
 0x1ba   : > { %v5676_v15 = vpack.c.bf16 %v954_v8, %v953_v48  ;;  %v878_v43 = vmul.f32 %v4576_v13, %v5431_v62  ;;  %v810_v17 = vpop.f32.mrb[29].mxu0 }
 0x1bb   : > { %v5680_v24 = vpack.c.bf16 %v952_v11, %v951_v5  ;;  %v876_v26 = vmul.f32 %v5431_v62, %v810_v17  ;;  %v4577_v12 = vpop.f32.mrb[30].mxu0  ;;  %v1063_v5 = vor.u32 %v1061_v41, %v1060_v23 }
 0x1bc   : > { %v921_v30 = vadd.f32 %v5436_v1, %v878_v43  ;;  %v879_v28 = vmul.f32 %v4577_v12, %v5431_v62  ;;  %v813_v31 = vpop.f32.mrb[31].mxu0  ;;  %v1179_v43 = vrot.slane %v1053_v9, 1 }
 0x1bd   : > { %v919_v63 = vadd.f32 %v5436_v1, %v876_v26  ;;  %v877_v35 = vmul.f32 %v5431_v62, %v813_v31  ;;  %v5736_v9 = vsel %vm993_vm6, %v1052_v4, %v1063_v5  ;;  %v1182_v4 = vrot.slane %v1061_v41, 1 }
 0x1be   : > { %3917 = vmatmul.mubr.msk.bf16.gmra.mrb[20].mxu1 %vm5463_vm8, %v5625_v22  ;;  %v957_v44 = vmax.f32 %v921_v30, 0.0  ;;  %v922_v20 = vadd.f32 %v5436_v1, %v879_v28  ;;  %v5728_v12 = vsel %vm1158_vm9, %v1178_v57, %v1179_v43 }
 0x1bf   : > { %3939 = vmatmul.mubr.msk.bf16.gmra.mrb[56].mxu0 %vm5475_vm11, %v5693_v37  ;;  %2244 = vmatprep.mubr.bf16.mxu1 %v5563_v16  ;;  %v955_v40 = vmax.f32 %v919_v63, 0.0  ;;  %v920_v54 = vadd.f32 %v5436_v1, %v877_v35 }
 0x1c0   : > { %3940 = vmatprep.mubr.msk.bf16.mxu0 %vm5463_vm8, %v5703_v49  ;;  %v958_v51 = vmax.f32 %v922_v20, 0.0 }
 0x1c1   : > { %v956_v52 = vmax.f32 %v920_v54, 0.0  ;;  %v4580_v55 = vpop.f32.mrb[32].mxu0 }
 0x1c2   : > { %v5713_v48 = vpack.c.bf16 %v958_v51, %v957_v44  ;;  %v882_v25 = vmul.f32 %v4580_v55, %v5431_v62  ;;  %v826_v61 = vpop.f32.mrb[33].mxu0  ;;  %v1069_v44 = vshll.u32 %v5598_v50, 16 }
 0x1c3   : > { %v5717_v8 = vpack.c.bf16 %v956_v52, %v955_v40  ;;  %v880_v11 = vmul.f32 %v5431_v62, %v826_v61  ;;  %v4581_v13 = vpop.f32.mrb[34].mxu0  ;;  %v1181_v40 = vor.u32 %v1179_v43, %v1050_v46  ;;  %v1074_v52 = vshrl.u32 %v5644_v45, 16 }
 0x1c4   : > { %v925_v17 = vadd.f32 %v5436_v1, %v882_v25  ;;  %v883_v18 = vmul.f32 %v4581_v13, %v5431_v62  ;;  %v829_v26 = vpop.f32.mrb[35].mxu0  ;;  %v1077_v13 = vshll.u32 %v5644_v45, 16 }
 0x1c5   : > { %v923_v3 = vadd.f32 %v5436_v1, %v880_v11  ;;  %v881_v14 = vmul.f32 %v5431_v62, %v829_v26  ;;  %v1068_v62 = vrot.slane %v1066_v6, 7  ;;  %v5757_v25 = vsel %vm1158_vm9, %v1181_v40, %v1182_v4 }
 0x1c6   : > { %3918 = vmatmul.mubr.msk.bf16.gmra.mrb[24].mxu1 %vm5463_vm8, %v5667_v2  ;;  %v961_v27 = vmax.f32 %v925_v17, 0.0  ;;  %v926_v30 = vadd.f32 %v5436_v1, %v883_v18  ;;  %v1076_v11 = vrot.slane %v1074_v52, 7 }
 0x1c7   : > { %3941 = vmatmul.mubr.msk.bf16.gmra.mrb[60].mxu0 %vm5475_vm11, %v5728_v12  ;;  %2252 = vmatprep.mubr.bf16.mxu1 %v5558_v10  ;;  %v959_v28 = vmax.f32 %v923_v3, 0.0  ;;  %v924_v31 = vadd.f32 %v5436_v1, %v881_v14  ;;  %v1071_v51 = vor.u32 %v1069_v44, %v1068_v62 }
 0x1c8   : > { %3942 = vmatprep.mubr.msk.bf16.mxu0 %vm5463_vm8, %v5736_v9  ;;  %v973_v63 = vmul.f32 0.0, %v961_v27  ;;  %v962_v35 = vmax.f32 %v926_v30, 0.0  ;;  %v1079_v27 = vor.u32 %v1077_v13, %v1076_v11  ;;  %v1082_v30 = vshrl.u32 %v5640_v36, 16 }
 0x1c9   : > { %v960_v20 = vmax.f32 %v924_v31, 0.0  ;;  %v5767_v5 = vsel %vm993_vm6, %v1060_v23, %v1071_v51  ;;  %v1184_v23 = vor.u32 %v1182_v4, %v1058_v19  ;;  %v1185_v31 = vrot.slane %v1069_v44, 1 }
 0x1ca   : > { %v974_v54 = vmul.f32 0.0, %v962_v35  ;;  %v5806_v35 = vsel %vm993_vm6, %v1068_v62, %v1079_v27  ;;  %v1084_v44 = vrot.slane %v1082_v30, 7  ;;  %v1188_v4 = vrot.slane %v1077_v13, 1 }
 0x1cb   : > { %v5748_v55 = vpack.c.bf16 %v960_v20, %v959_v28  ;;  %v5799_v19 = vsel %vm1158_vm9, %v1184_v23, %v1185_v31  ;;  %v1085_v20 = vshll.u32 %v5640_v36, 16  ;;  %v1187_v40 = vor.u32 %v1185_v31, %v1066_v6 }
 0x1cc   : > { %v5750_v1 = vpack.c.bf16 %v974_v54, %v973_v63  ;;  %v1090_v51 = vshrl.u32 %v5680_v24, 16  ;;  %v1190_v13 = vor.u32 %v1188_v4, %v1074_v52  ;;  %v1101_v27 = vshll.u32 %v5676_v15, 16 }
 0x1cd   : > { %v6635_v57 = vshll.u32 %v5748_v55, 16  ;;  %v1122_v41 = vshrl.u32 %v5748_v55, 16  ;;  %v1087_v54 = vor.u32 %v1085_v20, %v1084_v44  ;;  %v5819_v62 = vsel %vm1158_vm9, %v1187_v40, %v1188_v4 }
 0x1ce   : > { %3919 = vmatmul.mubr.msk.bf16.gmra.mrb[28].mxu1 %vm5463_vm8, %v5703_v49  ;;  %v6634_v46 = vshrl.u32 %v5750_v1, 16  ;;  %v1133_v61 = vshll.u32 %v5750_v1, 16  ;;  %v1092_v6 = vrot.slane %v1090_v51, 7  ;;  %v1191_v23 = vrot.slane %v1085_v20, 1 }
 0x1cf   : > { %3943 = vmatmul.mubr.msk.bf16.gmra.mrb[64].mxu0 %vm5475_vm11, %v5757_v25  ;;  %2260 = vmatprep.mubr.bf16.mxu1 %v5601_v56  ;;  %v5772_v43 = vrot.slane %v6635_v57, 1  ;;  %v5784_v3 = vrot.slane %v1122_v41, 7  ;;  %v1106_v4 = vshrl.u32 %v5717_v8, 16 }
 0x1d0   : > { %3944 = vmatprep.mubr.msk.bf16.mxu0 %vm5463_vm8, %v5767_v5  ;;  %v5777_v17 = vrot.slane %v1133_v61, 1  ;;  %v1132_v18 = vrot.slane %v6634_v46, 7  ;;  %v1193_v31 = vor.u32 %v1191_v23, %v1082_v30 }
 0x1d1   : > { %v1208_v26 = vor.u32 %v5772_v43, %v1122_v41  ;;  %v5826_v41 = vsel %vm993_vm6, %v1076_v11, %v1087_v54  ;;  %v1108_v30 = vrot.slane %v1106_v4, 7 }
 0x1d2   : > { %v1135_v14 = vor.u32 %v1133_v61, %v1132_v18  ;;  %v1093_v61 = vshll.u32 %v5680_v24, 16 }
 0x1d3   : > { %v5789_v28 = vsel %vm1158_vm9, %v1208_v26, %v5777_v17  ;;  %v1098_v26 = vshrl.u32 %v5676_v15, 16 }
 0x1d4   : > { %v5793_v63 = vsel %vm993_vm6, %v5784_v3, %v1135_v14  ;;  %v1095_v18 = vor.u32 %v1093_v61, %v1092_v6  ;;  %v5837_v14 = vsel %vm1158_vm9, %v1190_v13, %v1191_v23  ;;  %v1194_v20 = vrot.slane %v1093_v61, 1 }
 0x1d5   : > { %v1100_v52 = vrot.slane %v1098_v26, 7  ;;  %v1109_v61 = vshll.u32 %v5717_v8, 16  ;;  %v1114_v23 = vshrl.u32 %v5713_v48, 16 }
 0x1d6   : > { %3920 = vmatmul.mubr.msk.bf16.gmra.mrb[32].mxu1 %vm5463_vm8, %v5736_v9  ;;  %v5844_v11 = vsel %vm993_vm6, %v1084_v44, %v1095_v18  ;;  %v5855_v54 = vsel %vm1158_vm9, %v1193_v31, %v1194_v20  ;;  %v1196_v13 = vor.u32 %v1194_v20, %v1090_v51  ;;  %v1197_v31 = vrot.slane %v1101_v27, 1 }
 0x1d7   : > { %3945 = vmatmul.mubr.msk.bf16.gmra.mrb[68].mxu0 %vm5475_vm11, %v5799_v19  ;;  %2268 = vmatprep.mubr.bf16.mxu1 %v5598_v50  ;;  %v1103_v40 = vor.u32 %v1101_v27, %v1100_v52  ;;  %v1111_v18 = vor.u32 %v1109_v61, %v1108_v30  ;;  %v1116_v51 = vrot.slane %v1114_v23, 7  ;;  %v1117_v27 = vshll.u32 %v5713_v48, 16 }
 0x1d8   : > { %3946 = vmatprep.mubr.msk.bf16.mxu0 %vm5463_vm8, %v5806_v35  ;;  %v5873_v46 = vsel %vm1158_vm9, %v1196_v13, %v1197_v31  ;;  %v1199_v20 = vor.u32 %v1197_v31, %v1098_v26 }
 0x1d9   : > { %v5862_v44 = vsel %vm993_vm6, %v1092_v6, %v1103_v40  ;;  %v5880_v6 = vsel %vm993_vm6, %v1100_v52, %v1111_v18  ;;  %v1200_v40 = vrot.slane %v1109_v61, 1  ;;  %v1119_v13 = vor.u32 %v1117_v27, %v1116_v51 }
 0x1da   : > { %v6662_v61 = vshll.u32 %v5748_v55, 16  ;;  %v1203_v31 = vrot.slane %v1117_v27, 1 }
 0x1db   : > { %v5890_v57 = vsel %vm1158_vm9, %v1199_v20, %v1200_v40  ;;  %v5897_v52 = vsel %vm993_vm6, %v1108_v30, %v1119_v13  ;;  %v1202_v26 = vor.u32 %v1200_v40, %v1106_v4 }
 0x1dc   : > { %v1127_v18 = vor.u32 %v6662_v61, %v5784_v3  ;;  %v1205_v3 = vor.u32 %v1203_v31, %v1114_v23 }
 0x1dd   : > { %v5909_v20 = vsel %vm1158_vm9, %v1202_v26, %v1203_v31 }
 0x1de   : > { %3921 = vmatmul.mubr.msk.bf16.gmra.mrb[36].mxu1 %vm5463_vm8, %v5767_v5  ;;  %v5916_v4 = vsel %vm993_vm6, %v1116_v51, %v1127_v18  ;;  %v5926_v30 = vsel %vm1158_vm9, %v1205_v3, %v5772_v43  ;;  %v4884_v51 = vld [vmem:[#allocation8 + $0x208] sm:$0xff]   ;;  %v4885_v43 = vld [vmem:[#allocation8 + $0x210] sm:$0xff]  }
 0x1df   : > { %3947 = vmatmul.mubr.msk.bf16.gmra.mrb[72].mxu0 %vm5475_vm11, %v5819_v62  ;;  %2276 = vmatprep.mubr.bf16.mxu1 %v5644_v45 }
 0x1e0   : > { %3948 = vmatprep.mubr.msk.bf16.mxu0 %vm5463_vm8, %v5826_v41 }
 0x1e6   : > { %3922 = vmatmul.mubr.msk.bf16.gmra.mrb[40].mxu1 %vm5463_vm8, %v5806_v35 }
 0x1e7   : > { %3949 = vmatmul.mubr.msk.bf16.gmra.mrb[76].mxu0 %vm5475_vm11, %v5837_v14  ;;  %2284 = vmatprep.mubr.bf16.mxu1 %v5640_v36 }
 0x1e8   : > { %3950 = vmatprep.mubr.msk.bf16.mxu0 %vm5463_vm8, %v5844_v11 }
 0x1ee   : > { %3923 = vmatmul.mubr.msk.bf16.gmra.mrb[44].mxu1 %vm5463_vm8, %v5826_v41 }
 0x1ef   : > { %3951 = vmatmul.mubr.msk.bf16.gmra.mrb[80].mxu0 %vm5475_vm11, %v5855_v54  ;;  %2292 = vmatprep.mubr.bf16.mxu1 %v5680_v24 }
 0x1f0   : > { %3952 = vmatprep.mubr.msk.bf16.mxu0 %vm5463_vm8, %v5862_v44 }
 0x1f6   : > { %3924 = vmatmul.mubr.msk.bf16.gmra.mrb[48].mxu1 %vm5463_vm8, %v5844_v11 }
 0x1f7   : > { %3953 = vmatmul.mubr.msk.bf16.gmra.mrb[84].mxu0 %vm5475_vm11, %v5873_v46  ;;  %2300 = vmatprep.mubr.bf16.mxu1 %v5676_v15 }
 0x1f8   : > { %3954 = vmatprep.mubr.msk.bf16.mxu0 %vm5463_vm8, %v5880_v6 }
 0x1fe   : > { %3925 = vmatmul.mubr.msk.bf16.gmra.mrb[52].mxu1 %vm5463_vm8, %v5862_v44 }
 0x1ff   : > { %3955 = vmatmul.mubr.msk.bf16.gmra.mrb[88].mxu0 %vm5475_vm11, %v5890_v57  ;;  %2308 = vmatprep.mubr.bf16.mxu1 %v5717_v8 }
 0x200   : > { %3956 = vmatprep.mubr.msk.bf16.mxu0 %vm5463_vm8, %v5897_v52 }
 0x206   : > { %3926 = vmatmul.mubr.msk.bf16.gmra.mrb[56].mxu1 %vm5463_vm8, %v5880_v6 }
 0x207   : > { %3957 = vmatmul.mubr.msk.bf16.gmra.mrb[92].mxu0 %vm5475_vm11, %v5909_v20  ;;  %2316 = vmatprep.mubr.bf16.mxu1 %v5713_v48 }
 0x208   : > { %3958 = vmatprep.mubr.msk.bf16.mxu0 %vm5463_vm8, %v5916_v4 }
 0x20e   : > { %3927 = vmatmul.mubr.msk.bf16.gmra.mrb[60].mxu1 %vm5463_vm8, %v5897_v52 }
 0x20f   : > { %3959 = vmatmul.mubr.msk.bf16.gmra.mrb[96].mxu0 %vm5475_vm11, %v5926_v30  ;;  %3960 = vmatprep.mubr.msk.bf16.mxu1 %vm5475_vm11, %v5540_v32  ;;  %v4888_v32 = vld [vmem:[#allocation8 + $0x228] sm:$0xff]  }
 0x210   : > { %2679 = vmatprep.mubr.bf16.mxu0 %v5479_v59 }
 0x216   : > { %2519 = vmatmul.mubr.bf16.vlgmr.msra.gmra.mrb[64].mxu1 %v5446_v21  ;;  %v4886_v21 = vld [vmem:[#allocation8 + $0x218] sm:$0xff]  }
 0x217   : > { %3976 = vmatmul.mubr.msk.bf16.vlgmr.msra.gmra.mrb[100].mxu0 %vm5463_vm8, %v5520_v42  ;;  %3961 = vmatprep.mubr.msk.bf16.mxu1 %vm5475_vm11, %v5578_v29  ;;  %v4887_v42 = vld [vmem:[#allocation8 + $0x220] sm:$0xff]  }
 0x218   : > { %4583 = vmatpush3.bf16.msra.mxu0 %v5636_v34  ;;  %2687 = vmatprep.mubr.bf16.mxu0 %v5467_v53 }
 0x219   : > { %4584 = vmatprep.subr.bf16.mxu0 %v4884_v51  ;;  %4686 = vmatpush3.bf16.msra.mxu1 %v5636_v34 }
 0x21a   : > { %4679 = vmatprep.subr.bf16.mxu1 %v4884_v51 }
 0x21c   : > { %4585 = vmatpush3.bf16.msra.mxu0 %v4884_v51 }
 0x21d   : > { %4586 = vmatprep.subr.bf16.mxu0 %v4885_v43  ;;  %4687 = vmatpush3.bf16.msra.mxu1 %v4884_v51 }
 0x21e   : > { %2527 = vmatmul.mubr.bf16.gmra.mrb[68].mxu1 %v5479_v59  ;;  %4680 = vmatprep.subr.bf16.mxu1 %v4885_v43  ;;  %v4889_v59 = vld [vmem:[#allocation8 + $0x230] sm:$0xff]  }
 0x21f   : > { %3977 = vmatmul.mubr.msk.bf16.gmra.mrb[104].mxu0 %vm5463_vm8, %v5548_v0  ;;  %3962 = vmatprep.mubr.msk.bf16.mxu1 %vm5475_vm11, %v5616_v7  ;;  %v4890_v0 = vld [vmem:[#allocation8 + $0x238] sm:$0xff]  }
 0x220   : > { %2695 = vmatprep.mubr.bf16.mxu0 %v5515_v38  ;;  %4587 = vmatpush3.bf16.msra.mxu0 %v4885_v43 }
 0x221   : > { %4588 = vmatprep.subr.bf16.mxu0 %v4886_v21  ;;  %4688 = vmatpush3.bf16.msra.mxu1 %v4885_v43 }
 0x222   : > { %4681 = vmatprep.subr.bf16.mxu1 %v4886_v21 }
 0x224   : > { %4589 = vmatpush3.bf16.msra.mxu0 %v4886_v21 }
 0x225   : > { %4590 = vmatprep.subr.bf16.mxu0 %v4887_v42  ;;  %4689 = vmatpush3.bf16.msra.mxu1 %v4886_v21 }
 0x226   : > { %2535 = vmatmul.mubr.bf16.gmra.mrb[72].mxu1 %v5467_v53  ;;  %4682 = vmatprep.subr.bf16.mxu1 %v4887_v42 }
 0x227   : > { %3978 = vmatmul.mubr.msk.bf16.gmra.mrb[108].mxu0 %vm5463_vm8, %v5587_v39  ;;  %3963 = vmatprep.mubr.msk.bf16.mxu1 %vm5475_vm11, %v5657_v60 }
 0x228   : > { %2703 = vmatprep.mubr.bf16.mxu0 %v5512_v33  ;;  %4591 = vmatpush3.bf16.msra.mxu0 %v4887_v42 }
 0x229   : > { %4592 = vmatprep.subr.bf16.mxu0 %v4888_v32  ;;  %4690 = vmatpush3.bf16.msra.mxu1 %v4887_v42 }
 0x22a   : > { %4683 = vmatprep.subr.bf16.mxu1 %v4888_v32 }
 0x22c   : > { %4593 = vmatpush3.bf16.msra.mxu0 %v4888_v32 }
 0x22d   : > { %4594 = vmatprep.subr.bf16.mxu0 %v4889_v59  ;;  %4691 = vmatpush3.bf16.msra.mxu1 %v4888_v32 }
 0x22e   : > { %2543 = vmatmul.mubr.bf16.gmra.mrb[76].mxu1 %v5515_v38  ;;  %4684 = vmatprep.subr.bf16.mxu1 %v4889_v59 }
 0x22f   : > { %3979 = vmatmul.mubr.msk.bf16.gmra.mrb[112].mxu0 %vm5463_vm8, %v5625_v22  ;;  %3964 = vmatprep.mubr.msk.bf16.mxu1 %vm5475_vm11, %v5693_v37 }
 0x230   : > { %2711 = vmatprep.mubr.bf16.mxu0 %v5563_v16  ;;  %4595 = vmatpush3.bf16.msra.mxu0 %v4889_v59 }
 0x231   : > { %4596 = vmatprep.subr.bf16.mxu0 %v4890_v0  ;;  %4692 = vmatpush3.bf16.msra.mxu1 %v4889_v59 }
 0x232   : > { %4685 = vmatprep.subr.bf16.mxu1 %v4890_v0 }
 0x234   : > { %4597 = vmatpush3.bf16.msra.mxu0 %v4890_v0 }
 0x235   : > { %4693 = vmatpush3.bf16.msra.mxu1 %v4890_v0 }
 0x236   : > { %2551 = vmatmul.mubr.bf16.gmra.mrb[80].mxu1 %v5512_v33 }
 0x237   : > { %3980 = vmatmul.mubr.msk.bf16.gmra.mrb[116].mxu0 %vm5463_vm8, %v5667_v2  ;;  %3965 = vmatprep.mubr.msk.bf16.mxu1 %vm5475_vm11, %v5728_v12 }
 0x238   : > { %2719 = vmatprep.mubr.bf16.mxu0 %v5558_v10 }
 0x23e   : > { %2559 = vmatmul.mubr.bf16.gmra.mrb[84].mxu1 %v5563_v16 }
 0x23f   : > { %3981 = vmatmul.mubr.msk.bf16.gmra.mrb[120].mxu0 %vm5463_vm8, %v5703_v49  ;;  %3966 = vmatprep.mubr.msk.bf16.mxu1 %vm5475_vm11, %v5757_v25 }
 0x240   : > { %2727 = vmatprep.mubr.bf16.mxu0 %v5601_v56 }
 0x246   : > { %2567 = vmatmul.mubr.bf16.gmra.mrb[88].mxu1 %v5558_v10 }
 0x247   : > { %3982 = vmatmul.mubr.msk.bf16.gmra.mrb[124].mxu0 %vm5463_vm8, %v5736_v9  ;;  %3967 = vmatprep.mubr.msk.bf16.mxu1 %vm5475_vm11, %v5799_v19 }
 0x248   : > { %2735 = vmatprep.mubr.bf16.mxu0 %v5598_v50 }
 0x24e   : > { %2575 = vmatmul.mubr.bf16.gmra.mrb[92].mxu1 %v5601_v56 }
 0x24f   : > { %3983 = vmatmul.mubr.msk.bf16.gmra.mrb[128].mxu0 %vm5463_vm8, %v5767_v5  ;;  %3968 = vmatprep.mubr.msk.bf16.mxu1 %vm5475_vm11, %v5819_v62 }
 0x250   : > { %2743 = vmatprep.mubr.bf16.mxu0 %v5644_v45 }
 0x256   : > { %2583 = vmatmul.mubr.bf16.gmra.mrb[96].mxu1 %v5598_v50 }
 0x257   : > { %3984 = vmatmul.mubr.msk.bf16.gmra.mrb[132].mxu0 %vm5463_vm8, %v5806_v35  ;;  %3969 = vmatprep.mubr.msk.bf16.mxu1 %vm5475_vm11, %v5837_v14 }
 0x258   : > { %2751 = vmatprep.mubr.bf16.mxu0 %v5640_v36 }
 0x25e   : > { %2591 = vmatmul.mubr.bf16.gmra.mrb[100].mxu1 %v5644_v45 }
 0x25f   : > { %3985 = vmatmul.mubr.msk.bf16.gmra.mrb[136].mxu0 %vm5463_vm8, %v5826_v41  ;;  %3970 = vmatprep.mubr.msk.bf16.mxu1 %vm5475_vm11, %v5855_v54 }
 0x260   : > { %2759 = vmatprep.mubr.bf16.mxu0 %v5680_v24 }
 0x266   : > { %2599 = vmatmul.mubr.bf16.gmra.mrb[104].mxu1 %v5640_v36 }
 0x267   : > { %3986 = vmatmul.mubr.msk.bf16.gmra.mrb[140].mxu0 %vm5463_vm8, %v5844_v11  ;;  %3971 = vmatprep.mubr.msk.bf16.mxu1 %vm5475_vm11, %v5873_v46 }
 0x268   : > { %2767 = vmatprep.mubr.bf16.mxu0 %v5676_v15 }
 0x269   : > { %v4050_v53 = vpop.f32.mrb[0].mxu1 }
 0x26a   : > { %v4162_v33 = vpop.f32.mrb[36].mxu0  ;;  %v4051_v38 = vpop.f32.mrb[1].mxu1 }
 0x26b   : > { %v4052_v10 = vadd.f32 %v4051_v38, %v4050_v53  ;;  %v4163_v16 = vpop.f32.mrb[37].mxu0  ;;  %v4053_v39 = vpop.f32.mrb[2].mxu1 }
 0x26c   : > { %v4164_v50 = vadd.f32 %v4163_v16, %v4162_v33  ;;  %v4165_v56 = vpop.f32.mrb[38].mxu0  ;;  %v4054_v22 = vpop.f32.mrb[3].mxu1 }
 0x26d   : > { %v4055_v34 = vadd.f32 %v4054_v22, %v4053_v39  ;;  %v4166_v36 = vpop.f32.mrb[39].mxu0 }
 0x26e   : > { %v6025_v45 = vadd.f32 %v4164_v50, %v4052_v10  ;;  %v4167_v2 = vadd.f32 %v4166_v36, %v4165_v56  ;;  %2607 = vmatmul.mubr.bf16.gmra.mrb[108].mxu1 %v5680_v24 }
 0x26f   : > { %3987 = vmatmul.mubr.msk.bf16.gmra.mrb[144].mxu0 %vm5463_vm8, %v5862_v44  ;;  %3972 = vmatprep.mubr.msk.bf16.mxu1 %vm5475_vm11, %v5890_v57 }
 0x270   : > { %v6034_v49 = vadd.f32 %v4167_v2, %v4055_v34  ;;  %2775 = vmatprep.mubr.bf16.mxu0 %v5717_v8 }
 0x271   : > { %v4056_v9 = vpop.f32.mrb[4].mxu1 }
 0x272   : > { %v4168_v5 = vpop.f32.mrb[40].mxu0  ;;  %v4057_v35 = vpop.f32.mrb[5].mxu1 }
 0x273   : > { %v4058_v41 = vadd.f32 %v4057_v35, %v4056_v9  ;;  %v4169_v11 = vpop.f32.mrb[41].mxu0  ;;  %v4059_v23 = vpop.f32.mrb[6].mxu1 }
 0x274   : > { %v4170_v27 = vadd.f32 %v4169_v11, %v4168_v5  ;;  %v4171_v24 = vpop.f32.mrb[42].mxu0  ;;  %v4060_v40 = vpop.f32.mrb[7].mxu1 }
 0x275   : > { %v4061_v13 = vadd.f32 %v4060_v40, %v4059_v23  ;;  %v4172_v26 = vpop.f32.mrb[43].mxu0 }
 0x276   : > { %v6037_v44 = vadd.f32 %v4170_v27, %v4058_v41  ;;  %v4173_v61 = vadd.f32 %v4172_v26, %v4171_v24  ;;  %2615 = vmatmul.mubr.bf16.gmra.mrb[112].mxu1 %v5676_v15 }
 0x277   : > { %3988 = vmatmul.mubr.msk.bf16.gmra.mrb[148].mxu0 %vm5463_vm8, %v5880_v6  ;;  %3973 = vmatprep.mubr.msk.bf16.mxu1 %vm5475_vm11, %v5909_v20 }
 0x278   : > { %v6046_v18 = vadd.f32 %v4173_v61, %v4061_v13  ;;  %2783 = vmatprep.mubr.bf16.mxu0 %v5713_v48 }
 0x279   : > { %v4062_v31 = vpop.f32.mrb[8].mxu1 }
 0x27a   : > { %v4174_v3 = vpop.f32.mrb[44].mxu0  ;;  %v4063_v51 = vpop.f32.mrb[9].mxu1 }
 0x27b   : > { %v4064_v43 = vadd.f32 %v4063_v51, %v4062_v31  ;;  %v4175_v21 = vpop.f32.mrb[45].mxu0  ;;  %v4065_v42 = vpop.f32.mrb[10].mxu1 }
 0x27c   : > { %v4176_v32 = vadd.f32 %v4175_v21, %v4174_v3  ;;  %v4177_v15 = vpop.f32.mrb[46].mxu0  ;;  %v4066_v59 = vpop.f32.mrb[11].mxu1 }
 0x27d   : > { %v4067_v0 = vadd.f32 %v4066_v59, %v4065_v42  ;;  %v4178_v53 = vpop.f32.mrb[47].mxu0 }
 0x27e   : > { %v6049_v6 = vadd.f32 %v4176_v32, %v4064_v43  ;;  %v4179_v33 = vadd.f32 %v4178_v53, %v4177_v15  ;;  %2623 = vmatmul.mubr.bf16.gmra.mrb[116].mxu1 %v5717_v8 }
 0x27f   : > { %3989 = vmatmul.mubr.msk.bf16.gmra.mrb[152].mxu0 %vm5463_vm8, %v5897_v52  ;;  %3974 = vmatprep.mubr.msk.bf16.mxu1 %vm5475_vm11, %v5926_v30 }
 0x280   : > { %v6058_v38 = vadd.f32 %v4179_v33, %v4067_v0  ;;  %2791 = vmatprep.mubr.bf16.mxu0 %v5748_v55 }
 0x281   : > { %v4068_v10 = vpop.f32.mrb[12].mxu1 }
 0x282   : > { %v4180_v16 = vpop.f32.mrb[48].mxu0  ;;  %v4069_v39 = vpop.f32.mrb[13].mxu1 }
 0x283   : > { %v4070_v50 = vadd.f32 %v4069_v39, %v4068_v10  ;;  %v4181_v56 = vpop.f32.mrb[49].mxu0  ;;  %v4071_v22 = vpop.f32.mrb[14].mxu1 }
 0x284   : > { %v4182_v34 = vadd.f32 %v4181_v56, %v4180_v16  ;;  %v4183_v8 = vpop.f32.mrb[50].mxu0  ;;  %v4072_v36 = vpop.f32.mrb[15].mxu1 }
 0x285   : > { %v4073_v2 = vadd.f32 %v4072_v36, %v4071_v22  ;;  %v4184_v9 = vpop.f32.mrb[51].mxu0 }
 0x286   : > { %v6061_v52 = vadd.f32 %v4182_v34, %v4070_v50  ;;  %v4185_v5 = vadd.f32 %v4184_v9, %v4183_v8  ;;  %2631 = vmatmul.mubr.bf16.gmra.mrb[120].mxu1 %v5713_v48 }
 0x287   : > { %3990 = vmatmul.mubr.msk.bf16.gmra.mrb[156].mxu0 %vm5463_vm8, %v5916_v4  ;;  %3975 = vmatprep.mubr.msk.bf16.mxu1 %vm5475_vm11, %v5789_v28 }
 0x288   : > { %v6070_v35 = vadd.f32 %v4185_v5, %v4073_v2  ;;  %2799 = vmatprep.mubr.bf16.mxu0 %v5750_v1 }
 0x289   : > { %v4074_v41 = vpop.f32.mrb[16].mxu1 }
 0x28a   : > { %v4186_v11 = vpop.f32.mrb[52].mxu0  ;;  %v4075_v23 = vpop.f32.mrb[17].mxu1 }
 0x28b   : > { %v4076_v27 = vadd.f32 %v4075_v23, %v4074_v41  ;;  %v4187_v24 = vpop.f32.mrb[53].mxu0  ;;  %v4077_v40 = vpop.f32.mrb[18].mxu1 }
 0x28c   : > { %v4188_v13 = vadd.f32 %v4187_v24, %v4186_v11  ;;  %v4189_v48 = vpop.f32.mrb[54].mxu0  ;;  %v4078_v26 = vpop.f32.mrb[19].mxu1 }
 0x28d   : > { %v4079_v61 = vadd.f32 %v4078_v26, %v4077_v40  ;;  %v4190_v31 = vpop.f32.mrb[55].mxu0 }
 0x28e   : > { %v6073_v4 = vadd.f32 %v4188_v13, %v4076_v27  ;;  %v4191_v3 = vadd.f32 %v4190_v31, %v4189_v48  ;;  %2639 = vmatmul.mubr.bf16.gmra.mrb[124].mxu1 %v5748_v55 }
 0x28f   : > { %3991 = vmatmul.mubr.msk.bf16.gmra.mrb[160].mxu0 %vm5463_vm8, %v5793_v63  ;;  %4614 = vmatprep.mubr.msk.bf16.mxu1 %vm5475_vm11, %v5837_v14 }
 0x290   : > { %v6082_v51 = vadd.f32 %v4191_v3, %v4079_v61  ;;  %4598 = vmatprep.mubr.msk.bf16.mxu0 %vm5475_vm11, %v5578_v29  ;;  %v6663_v61 = vshrl.u32 %v5750_v1, 16 }
 0x291   : > { %v4080_v43 = vpop.f32.mrb[20].mxu1 }
 0x292   : > { %v4192_v21 = vpop.f32.mrb[56].mxu0  ;;  %v4081_v42 = vpop.f32.mrb[21].mxu1 }
 0x293   : > { %v4082_v32 = vadd.f32 %v4081_v42, %v4080_v43  ;;  %v4193_v15 = vpop.f32.mrb[57].mxu0  ;;  %v4083_v55 = vpop.f32.mrb[22].mxu1 }
 0x294   : > { %v4194_v59 = vadd.f32 %v4193_v15, %v4192_v21  ;;  %v4195_v0 = vpop.f32.mrb[58].mxu0  ;;  %v4084_v47 = vpop.f32.mrb[23].mxu1 }
 0x295   : > { %v4085_v63 = vadd.f32 %v4084_v47, %v4083_v55  ;;  %v4196_v53 = vpop.f32.mrb[59].mxu0 }
 0x296   : > { %v6087_v33 = vadd.f32 %v4194_v59, %v4082_v32  ;;  %v4197_v14 = vadd.f32 %v4196_v53, %v4195_v0  ;;  %4615 = vmatmul.mubr.msk.bf16.vlgmr.msra.gmra.mrb[128].mxu1 %vm5475_vm11, %v5855_v54 }
 0x297   : > { %4599 = vmatmul.mubr.msk.bf16.vlgmr.msra.gmra.mrb[164].mxu0 %vm5475_vm11, %v5616_v7  ;;  %4618 = vmatprep.mubr.msk.bf16.mxu1 %vm5475_vm11, %v5873_v46 }
 0x298   : > { %v6098_v29 = vadd.f32 %v4197_v14, %v4085_v63  ;;  %4602 = vmatprep.mubr.msk.bf16.mxu0 %vm5475_vm11, %v5657_v60 }
 0x299   : > { %v4086_v10 = vpop.f32.mrb[24].mxu1 }
 0x29a   : > { %v4198_v16 = vpop.f32.mrb[60].mxu0  ;;  %v4087_v39 = vpop.f32.mrb[25].mxu1 }
 0x29b   : > { %v4088_v50 = vadd.f32 %v4087_v39, %v4086_v10  ;;  %v4199_v56 = vpop.f32.mrb[61].mxu0  ;;  %v4089_v54 = vpop.f32.mrb[26].mxu1 }
 0x29c   : > { %v4200_v22 = vadd.f32 %v4199_v56, %v4198_v16  ;;  %v4201_v34 = vpop.f32.mrb[62].mxu0  ;;  %v4090_v8 = vpop.f32.mrb[27].mxu1 }
 0x29d   : > { %v4091_v7 = vadd.f32 %v4090_v8, %v4089_v54  ;;  %v4202_v36 = vpop.f32.mrb[63].mxu0 }
 0x29e   : > { %v6103_v2 = vadd.f32 %v4200_v22, %v4088_v50  ;;  %v4203_v46 = vadd.f32 %v4202_v36, %v4201_v34  ;;  %4619 = vmatmul.mubr.msk.bf16.gmra.mrb[132].mxu1 %vm5475_vm11, %v5890_v57 }
 0x29f   : > { %4603 = vmatmul.mubr.msk.bf16.gmra.mrb[168].mxu0 %vm5475_vm11, %v5693_v37  ;;  %4622 = vmatprep.mubr.msk.bf16.mxu1 %vm5475_vm11, %v5909_v20 }
 0x2a0   : > { %v6114_v60 = vadd.f32 %v4203_v46, %v4091_v7  ;;  %4606 = vmatprep.mubr.msk.bf16.mxu0 %vm5475_vm11, %v5728_v12 }
 0x2a1   : > { %v4092_v9 = vpop.f32.mrb[28].mxu1 }
 0x2a2   : > { %v4204_v5 = vpop.f32.mrb[64].mxu0  ;;  %v4093_v41 = vpop.f32.mrb[29].mxu1 }
 0x2a3   : > { %v4094_v11 = vadd.f32 %v4093_v41, %v4092_v9  ;;  %v4205_v23 = vpop.f32.mrb[65].mxu0  ;;  %v4095_v57 = vpop.f32.mrb[30].mxu1 }
 0x2a4   : > { %v4206_v27 = vadd.f32 %v4205_v23, %v4204_v5  ;;  %v4207_v24 = vpop.f32.mrb[66].mxu0  ;;  %v4096_v40 = vpop.f32.mrb[31].mxu1 }
 0x2a5   : > { %v4097_v37 = vadd.f32 %v4096_v40, %v4095_v57  ;;  %v4208_v13 = vpop.f32.mrb[67].mxu0 }
 0x2a6   : > { %v6119_v48 = vadd.f32 %v4206_v27, %v4094_v11  ;;  %v4209_v20 = vadd.f32 %v4208_v13, %v4207_v24  ;;  %4623 = vmatmul.mubr.msk.bf16.gmra.mrb[136].mxu1 %vm5475_vm11, %v5926_v30  ;;  %v1211_v30 = vor.u32 %v5777_v17, %v6663_v61 }
 0x2a7   : > { %4607 = vmatmul.mubr.msk.bf16.gmra.mrb[172].mxu0 %vm5475_vm11, %v5757_v25  ;;  %4626 = vmatprep.mubr.msk.bf16.mxu1 %vm5475_vm11, %v5789_v28 }
 0x2a8   : > { %v6130_v12 = vadd.f32 %v4209_v20, %v4097_v37  ;;  %4610 = vmatprep.mubr.msk.bf16.mxu0 %vm5475_vm11, %v5799_v19  ;;  %v1232_v59 = vsel %vm1231_vm13, %v1211_v30, 0 }
 0x2a9   : > { %v4098_v26 = vpop.f32.mrb[32].mxu1 }
 0x2aa   : > { %v4210_v31 = vpop.f32.mrb[68].mxu0  ;;  %v4099_v3 = vpop.f32.mrb[33].mxu1 }
 0x2ab   : > { %v4100_v25 = vadd.f32 %v4099_v3, %v4098_v26  ;;  %v4211_v43 = vpop.f32.mrb[69].mxu0  ;;  %v4101_v21 = vpop.f32.mrb[34].mxu1 }
 0x2ac   : > { %v4212_v28 = vadd.f32 %v4211_v43, %v4210_v31  ;;  %v4213_v42 = vpop.f32.mrb[70].mxu0  ;;  %v4102_v32 = vpop.f32.mrb[35].mxu1 }
 0x2ad   : > { %v4103_v15 = vadd.f32 %v4102_v32, %v4101_v21  ;;  %v4214_v55 = vpop.f32.mrb[71].mxu0 }
 0x2ae   : > { %v6139_v0 = vadd.f32 %v4212_v28, %v4100_v25  ;;  %v4215_v19 = vadd.f32 %v4214_v55, %v4213_v42  ;;  %4627 = vmatmul.mubr.msk.bf16.gmra.mrb[140].mxu1 %vm5475_vm11, %v1232_v59 }
 0x2af   : > { %4611 = vmatmul.mubr.msk.bf16.gmra.mrb[176].mxu0 %vm5475_vm11, %v5819_v62 }
 0x2b0   : > { %v6146_v1 = vadd.f32 %v4215_v19, %v4103_v15 }
 0x2b1   : > { %v4104_v17 = vpop.f32.mrb[36].mxu1 }
 0x2b2   : > { %v4216_v47 = vpop.f32.mrb[72].mxu0  ;;  %v4105_v63 = vpop.f32.mrb[37].mxu1 }
 0x2b3   : > { %v4106_v53 = vadd.f32 %v4105_v63, %v4104_v17  ;;  %v4217_v14 = vpop.f32.mrb[73].mxu0  ;;  %v4107_v10 = vpop.f32.mrb[38].mxu1 }
 0x2b4   : > { %v4218_v16 = vadd.f32 %v4217_v14, %v4216_v47  ;;  %v4219_v39 = vpop.f32.mrb[74].mxu0  ;;  %v4108_v50 = vpop.f32.mrb[39].mxu1 }
 0x2b5   : > { %v4109_v56 = vadd.f32 %v4108_v50, %v4107_v10  ;;  %v4220_v54 = vpop.f32.mrb[75].mxu0 }
 0x2b6   : > { %v6148_v22 = vadd.f32 %v4218_v16, %v4106_v53  ;;  %v4221_v34 = vadd.f32 %v4220_v54, %v4219_v39 }
 0x2b8   : > { %v6150_v8 = vadd.f32 %v4221_v34, %v4109_v56 }
 0x2b9   : > { %v4110_v58 = vpop.f32.mrb[40].mxu1 }
 0x2ba   : > { %v4222_v62 = vpop.f32.mrb[76].mxu0  ;;  %v4111_v7 = vpop.f32.mrb[41].mxu1 }
 0x2bb   : > { %v4112_v36 = vadd.f32 %v4111_v7, %v4110_v58  ;;  %v4223_v46 = vpop.f32.mrb[77].mxu0  ;;  %v4113_v9 = vpop.f32.mrb[42].mxu1 }
 0x2bc   : > { %v4224_v5 = vadd.f32 %v4223_v46, %v4222_v62  ;;  %v4225_v41 = vpop.f32.mrb[78].mxu0  ;;  %v4114_v11 = vpop.f32.mrb[43].mxu1 }
 0x2bd   : > { %v4115_v23 = vadd.f32 %v4114_v11, %v4113_v9  ;;  %v4226_v57 = vpop.f32.mrb[79].mxu0 }
 0x2be   : > { %v6152_v27 = vadd.f32 %v4224_v5, %v4112_v36  ;;  %v4227_v24 = vadd.f32 %v4226_v57, %v4225_v41 }
 0x2c0   : > { %v6154_v40 = vadd.f32 %v4227_v24, %v4115_v23  ;;  %v4891_v24 = vld [vmem:[#allocation9] sm:$0xff]  }
 0x2c1   : > { %v4116_v37 = vpop.f32.mrb[44].mxu1  ;;  %4630 = vmatprep.subr.bf16.mxu1 %v4891_v24 }
 0x2c2   : > { %v4228_v13 = vpop.f32.mrb[80].mxu0  ;;  %v4117_v20 = vpop.f32.mrb[45].mxu1  ;;  %4631 = vmatpush3.bf16.msra.mxu1 %v4891_v24 }
 0x2c3   : > { %v4118_v26 = vadd.f32 %v4117_v20, %v4116_v37  ;;  %v4229_v61 = vpop.f32.mrb[81].mxu0  ;;  %v4119_v30 = vpop.f32.mrb[46].mxu1 }
 0x2c4   : > { %v4230_v31 = vadd.f32 %v4229_v61, %v4228_v13  ;;  %v4231_v3 = vpop.f32.mrb[82].mxu0  ;;  %v4120_v25 = vpop.f32.mrb[47].mxu1 }
 0x2c5   : > { %v4121_v43 = vadd.f32 %v4120_v25, %v4119_v30  ;;  %v4232_v21 = vpop.f32.mrb[83].mxu0 }
 0x2c6   : > { %v6156_v28 = vadd.f32 %v4230_v31, %v4118_v26  ;;  %v4233_v42 = vadd.f32 %v4232_v21, %v4231_v3 }
 0x2c8   : > { %v6158_v32 = vadd.f32 %v4233_v42, %v4121_v43 }
 0x2c9   : > { %v4122_v15 = vpop.f32.mrb[48].mxu1 }
 0x2ca   : > { %v4234_v55 = vpop.f32.mrb[84].mxu0  ;;  %v4123_v59 = vpop.f32.mrb[49].mxu1 }
 0x2cb   : > { %v4124_v19 = vadd.f32 %v4123_v59, %v4122_v15  ;;  %v4235_v17 = vpop.f32.mrb[85].mxu0  ;;  %v4125_v47 = vpop.f32.mrb[50].mxu1  ;;  %v4892_v15 = vld [vmem:[#allocation9 + $0x8] sm:$0xff]  }
 0x2cc   : > { %v4236_v63 = vadd.f32 %v4235_v17, %v4234_v55  ;;  %v4237_v53 = vpop.f32.mrb[86].mxu0  ;;  %v4126_v14 = vpop.f32.mrb[51].mxu1  ;;  %4632 = vmatprep.subr.bf16.mxu1 %v4892_v15 }
 0x2cd   : > { %v4127_v10 = vadd.f32 %v4126_v14, %v4125_v47  ;;  %v4238_v16 = vpop.f32.mrb[87].mxu0  ;;  %4633 = vmatpush3.bf16.msra.mxu1 %v4892_v15  ;;  %v4896_v15 = vld [vmem:[#allocation9 + $0x28] sm:$0xff]  }
 0x2ce   : > { %v6160_v39 = vadd.f32 %v4236_v63, %v4124_v19  ;;  %v4239_v50 = vadd.f32 %v4238_v16, %v4237_v53  ;;  %v4893_v19 = vld [vmem:[#allocation9 + $0x10] sm:$0xff]  }
 0x2cf   : > { %4634 = vmatprep.subr.bf16.mxu1 %v4893_v19 }
 0x2d0   : > { %v6162_v56 = vadd.f32 %v4239_v50, %v4127_v10 }
 0x2d1   : > { %v4128_v54 = vpop.f32.mrb[52].mxu1  ;;  %4635 = vmatpush3.bf16.msra.mxu1 %v4893_v19 }
 0x2d2   : > { %v4240_v34 = vpop.f32.mrb[88].mxu0  ;;  %v4129_v58 = vpop.f32.mrb[53].mxu1 }
 0x2d3   : > { %v4130_v62 = vadd.f32 %v4129_v58, %v4128_v54  ;;  %v4241_v7 = vpop.f32.mrb[89].mxu0  ;;  %v4131_v36 = vpop.f32.mrb[54].mxu1 }
 0x2d4   : > { %v4242_v46 = vadd.f32 %v4241_v7, %v4240_v34  ;;  %v4243_v9 = vpop.f32.mrb[90].mxu0  ;;  %v4132_v5 = vpop.f32.mrb[55].mxu1  ;;  %v4894_v7 = vld [vmem:[#allocation9 + $0x18] sm:$0xff]  }
 0x2d5   : > { %v4133_v41 = vadd.f32 %v4132_v5, %v4131_v36  ;;  %v4244_v11 = vpop.f32.mrb[91].mxu0  ;;  %4636 = vmatprep.subr.bf16.mxu1 %v4894_v7 }
 0x2d6   : > { %v6164_v23 = vadd.f32 %v4242_v46, %v4130_v62  ;;  %v4245_v57 = vadd.f32 %v4244_v11, %v4243_v9  ;;  %v4895_v9 = vld [vmem:[#allocation9 + $0x20] sm:$0xff]   ;;  %4637 = vmatpush3.bf16.msra.mxu1 %v4894_v7 }
 0x2d7   : > { %4638 = vmatprep.subr.bf16.mxu1 %v4895_v9 }
 0x2d8   : > { %v6166_v37 = vadd.f32 %v4245_v57, %v4133_v41 }
 0x2d9   : > { %v4134_v13 = vpop.f32.mrb[56].mxu1 }
 0x2da   : > { %v4246_v20 = vpop.f32.mrb[92].mxu0  ;;  %v4135_v26 = vpop.f32.mrb[57].mxu1  ;;  %4639 = vmatpush3.bf16.msra.mxu1 %v4895_v9  ;;  %v4898_v9 = vld [vmem:[#allocation9 + $0x38] sm:$0xff]  }
 0x2db   : > { %v4136_v61 = vadd.f32 %v4135_v26, %v4134_v13  ;;  %v4247_v30 = vpop.f32.mrb[93].mxu0  ;;  %v4137_v31 = vpop.f32.mrb[58].mxu1  ;;  %4640 = vmatprep.subr.bf16.mxu1 %v4896_v15 }
 0x2dc   : > { %v4248_v3 = vadd.f32 %v4247_v30, %v4246_v20  ;;  %v4249_v25 = vpop.f32.mrb[94].mxu0  ;;  %v4138_v43 = vpop.f32.mrb[59].mxu1 }
 0x2dd   : > { %v4139_v21 = vadd.f32 %v4138_v43, %v4137_v31  ;;  %v4250_v42 = vpop.f32.mrb[95].mxu0 }
 0x2de   : > { %v6168_v55 = vadd.f32 %v4248_v3, %v4136_v61  ;;  %v4251_v59 = vadd.f32 %v4250_v42, %v4249_v25  ;;  %4641 = vmatpush3.bf16.msra.mxu1 %v4896_v15 }
 0x2e0   : > { %v6170_v17 = vadd.f32 %v4251_v59, %v4139_v21 }
 0x2e1   : > { %v4140_v47 = vpop.f32.mrb[60].mxu1 }
 0x2e2   : > { %v4252_v63 = vpop.f32.mrb[96].mxu0  ;;  %v4141_v53 = vpop.f32.mrb[61].mxu1 }
 0x2e3   : > { %v4142_v14 = vadd.f32 %v4141_v53, %v4140_v47  ;;  %v4253_v10 = vpop.f32.mrb[97].mxu0  ;;  %v4143_v16 = vpop.f32.mrb[62].mxu1 }
 0x2e4   : > { %v4254_v50 = vadd.f32 %v4253_v10, %v4252_v63  ;;  %v4255_v54 = vpop.f32.mrb[98].mxu0  ;;  %v4144_v34 = vpop.f32.mrb[63].mxu1 }
 0x2e5   : > { %v4145_v58 = vadd.f32 %v4144_v34, %v4143_v16  ;;  %v4256_v62 = vpop.f32.mrb[99].mxu0 }
 0x2e6   : > { %v6172_v36 = vadd.f32 %v4254_v50, %v4142_v14  ;;  %v4257_v46 = vadd.f32 %v4256_v62, %v4255_v54  ;;  %v4897_v54 = vld [vmem:[#allocation9 + $0x30] sm:$0xff]  }
 0x2e7   : > { %4642 = vmatprep.subr.bf16.mxu1 %v4897_v54 }
 0x2e8   : > { %v6174_v5 = vadd.f32 %v4257_v46, %v4145_v58  ;;  %4643 = vmatpush3.bf16.msra.mxu1 %v4897_v54 }
 0x2e9   : > { %v4274_v41 = vpop.f32.mrb[64].mxu1  ;;  %4644 = vmatprep.subr.bf16.mxu1 %v4898_v9 }
 0x2ea   : > { %v4386_v11 = vpop.f32.mrb[100].mxu0  ;;  %v4275_v57 = vpop.f32.mrb[65].mxu1 }
 0x2eb   : > { %v4276_v24 = vadd.f32 %v4275_v57, %v4274_v41  ;;  %v4387_v13 = vpop.f32.mrb[101].mxu0  ;;  %v4277_v20 = vpop.f32.mrb[66].mxu1 }
 0x2ec   : > { %v4388_v26 = vadd.f32 %v4387_v13, %v4386_v11  ;;  %v4389_v61 = vpop.f32.mrb[102].mxu0  ;;  %v4278_v30 = vpop.f32.mrb[67].mxu1  ;;  %4645 = vmatpush3.bf16.msra.mxu1 %v4898_v9 }
 0x2ed   : > { %v2521_v31 = vadd.f32 %v4276_v24, %v6025_v45  ;;  %v4279_v3 = vadd.f32 %v4278_v30, %v4277_v20  ;;  %v4390_v25 = vpop.f32.mrb[103].mxu0 }
 0x2ee   : > { %v4391_v43 = vadd.f32 %v4390_v25, %v4389_v61 }
 0x2ef   : > { %v2524_v21 = vadd.f32 %v4279_v3, %v6034_v49  ;;  %v6178_v42 = vadd.f32 %v4388_v26, %v2521_v31 }
 0x2f1   : > { %v4280_v59 = vpop.f32.mrb[68].mxu1  ;;  %v6180_v19 = vadd.f32 %v4391_v43, %v2524_v21 }
 0x2f2   : > { %v4392_v47 = vpop.f32.mrb[104].mxu0  ;;  %v4281_v63 = vpop.f32.mrb[69].mxu1 }
 0x2f3   : > { %v4282_v53 = vadd.f32 %v4281_v63, %v4280_v59  ;;  %v4393_v14 = vpop.f32.mrb[105].mxu0  ;;  %v4283_v10 = vpop.f32.mrb[70].mxu1 }
 0x2f4   : > { %v4394_v16 = vadd.f32 %v4393_v14, %v4392_v47  ;;  %v4395_v45 = vpop.f32.mrb[106].mxu0  ;;  %v4284_v50 = vpop.f32.mrb[71].mxu1 }
 0x2f5   : > { %v2529_v34 = vadd.f32 %v4282_v53, %v6037_v44  ;;  %v4285_v49 = vadd.f32 %v4284_v50, %v4283_v10  ;;  %v4396_v58 = vpop.f32.mrb[107].mxu0 }
 0x2f6   : > { %v4397_v62 = vadd.f32 %v4396_v58, %v4395_v45 }
 0x2f7   : > { %v2532_v7 = vadd.f32 %v4285_v49, %v6046_v18  ;;  %v6184_v46 = vadd.f32 %v4394_v16, %v2529_v34 }
 0x2f9   : > { %v4286_v41 = vpop.f32.mrb[72].mxu1  ;;  %v6186_v11 = vadd.f32 %v4397_v62, %v2532_v7 }
 0x2fa   : > { %v4398_v57 = vpop.f32.mrb[108].mxu0  ;;  %v4287_v24 = vpop.f32.mrb[73].mxu1 }
 0x2fb   : > { %v4288_v13 = vadd.f32 %v4287_v24, %v4286_v41  ;;  %v4399_v20 = vpop.f32.mrb[109].mxu0  ;;  %v4289_v26 = vpop.f32.mrb[74].mxu1 }
 0x2fc   : > { %v4400_v44 = vadd.f32 %v4399_v20, %v4398_v57  ;;  %v4401_v61 = vpop.f32.mrb[110].mxu0  ;;  %v4290_v30 = vpop.f32.mrb[75].mxu1 }
 0x2fd   : > { %v2537_v31 = vadd.f32 %v4288_v13, %v6049_v6  ;;  %v4291_v18 = vadd.f32 %v4290_v30, %v4289_v26  ;;  %v4402_v3 = vpop.f32.mrb[111].mxu0 }
 0x2fe   : > { %v4403_v25 = vadd.f32 %v4402_v3, %v4401_v61 }
 0x2ff   : > { %v2540_v43 = vadd.f32 %v4291_v18, %v6058_v38  ;;  %v6190_v21 = vadd.f32 %v4400_v44, %v2537_v31 }
 0x301   : > { %v4292_v15 = vpop.f32.mrb[76].mxu1  ;;  %v6192_v59 = vadd.f32 %v4403_v25, %v2540_v43 }
 0x302   : > { %v4404_v47 = vpop.f32.mrb[112].mxu0  ;;  %v4293_v63 = vpop.f32.mrb[77].mxu1 }
 0x303   : > { %v4294_v53 = vadd.f32 %v4293_v63, %v4292_v15  ;;  %v4405_v14 = vpop.f32.mrb[113].mxu0  ;;  %v4295_v10 = vpop.f32.mrb[78].mxu1 }
 0x304   : > { %v4406_v16 = vadd.f32 %v4405_v14, %v4404_v47  ;;  %v4407_v45 = vpop.f32.mrb[114].mxu0  ;;  %v4296_v50 = vpop.f32.mrb[79].mxu1 }
 0x305   : > { %v2545_v6 = vadd.f32 %v4294_v53, %v6061_v52  ;;  %v4297_v54 = vadd.f32 %v4296_v50, %v4295_v10  ;;  %v4408_v34 = vpop.f32.mrb[115].mxu0 }
 0x306   : > { %v4409_v49 = vadd.f32 %v4408_v34, %v4407_v45 }
 0x307   : > { %v2548_v38 = vadd.f32 %v4297_v54, %v6070_v35  ;;  %v6196_v58 = vadd.f32 %v4406_v16, %v2545_v6 }
 0x309   : > { %v4298_v62 = vpop.f32.mrb[80].mxu1  ;;  %v6198_v7 = vadd.f32 %v4409_v49, %v2548_v38 }
 0x30a   : > { %v4410_v9 = vpop.f32.mrb[116].mxu0  ;;  %v4299_v41 = vpop.f32.mrb[81].mxu1 }
 0x30b   : > { %v4300_v57 = vadd.f32 %v4299_v41, %v4298_v62  ;;  %v4411_v24 = vpop.f32.mrb[117].mxu0  ;;  %v4301_v13 = vpop.f32.mrb[82].mxu1 }
 0x30c   : > { %v4412_v20 = vadd.f32 %v4411_v24, %v4410_v9  ;;  %v4413_v26 = vpop.f32.mrb[118].mxu0  ;;  %v4302_v44 = vpop.f32.mrb[83].mxu1 }
 0x30d   : > { %v2553_v52 = vadd.f32 %v4300_v57, %v6073_v4  ;;  %v4303_v61 = vadd.f32 %v4302_v44, %v4301_v13  ;;  %v4414_v30 = vpop.f32.mrb[119].mxu0 }
 0x30e   : > { %v4415_v31 = vadd.f32 %v4414_v30, %v4413_v26 }
 0x30f   : > { %v2556_v35 = vadd.f32 %v4303_v61, %v6082_v51  ;;  %v6202_v18 = vadd.f32 %v4412_v20, %v2553_v52 }
 0x311   : > { %v4304_v3 = vpop.f32.mrb[84].mxu1  ;;  %v6204_v25 = vadd.f32 %v4415_v31, %v2556_v35 }
 0x312   : > { %v4416_v43 = vpop.f32.mrb[120].mxu0  ;;  %v4305_v15 = vpop.f32.mrb[85].mxu1 }
 0x313   : > { %v4306_v47 = vadd.f32 %v4305_v15, %v4304_v3  ;;  %v4417_v63 = vpop.f32.mrb[121].mxu0  ;;  %v4307_v53 = vpop.f32.mrb[86].mxu1 }
 0x314   : > { %v4418_v14 = vadd.f32 %v4417_v63, %v4416_v43  ;;  %v4419_v10 = vpop.f32.mrb[122].mxu0  ;;  %v4308_v16 = vpop.f32.mrb[87].mxu1 }
 0x315   : > { %v2561_v4 = vadd.f32 %v4306_v47, %v6087_v33  ;;  %v4309_v45 = vadd.f32 %v4308_v16, %v4307_v53  ;;  %v4420_v50 = vpop.f32.mrb[123].mxu0 }
 0x316   : > { %v4421_v6 = vadd.f32 %v4420_v50, %v4419_v10 }
 0x317   : > { %v2564_v51 = vadd.f32 %v4309_v45, %v6098_v29  ;;  %v6208_v54 = vadd.f32 %v4418_v14, %v2561_v4 }
 0x319   : > { %v4310_v34 = vpop.f32.mrb[88].mxu1  ;;  %v6210_v49 = vadd.f32 %v4421_v6, %v2564_v51 }
 0x31a   : > { %v4422_v38 = vpop.f32.mrb[124].mxu0  ;;  %v4311_v62 = vpop.f32.mrb[89].mxu1 }
 0x31b   : > { %v4312_v9 = vadd.f32 %v4311_v62, %v4310_v34  ;;  %v4423_v41 = vpop.f32.mrb[125].mxu0  ;;  %v4313_v57 = vpop.f32.mrb[90].mxu1 }
 0x31c   : > { %v4424_v24 = vadd.f32 %v4423_v41, %v4422_v38  ;;  %v4425_v13 = vpop.f32.mrb[126].mxu0  ;;  %v4314_v20 = vpop.f32.mrb[91].mxu1 }
 0x31d   : > { %v2569_v33 = vadd.f32 %v4312_v9, %v6103_v2  ;;  %v4315_v26 = vadd.f32 %v4314_v20, %v4313_v57  ;;  %v4426_v44 = vpop.f32.mrb[127].mxu0 }
 0x31e   : > { %v4427_v52 = vadd.f32 %v4426_v44, %v4425_v13 }
 0x31f   : > { %v2572_v29 = vadd.f32 %v4315_v26, %v6114_v60  ;;  %v6214_v61 = vadd.f32 %v4424_v24, %v2569_v33 }
 0x321   : > { %v4316_v30 = vpop.f32.mrb[92].mxu1  ;;  %v6216_v31 = vadd.f32 %v4427_v52, %v2572_v29 }
 0x322   : > { %v4428_v35 = vpop.f32.mrb[128].mxu0  ;;  %v4317_v3 = vpop.f32.mrb[93].mxu1 }
 0x323   : > { %v4318_v43 = vadd.f32 %v4317_v3, %v4316_v30  ;;  %v4429_v15 = vpop.f32.mrb[129].mxu0  ;;  %v4319_v47 = vpop.f32.mrb[94].mxu1 }
 0x324   : > { %v4430_v63 = vadd.f32 %v4429_v15, %v4428_v35  ;;  %v4431_v53 = vpop.f32.mrb[130].mxu0  ;;  %v4320_v14 = vpop.f32.mrb[95].mxu1 }
 0x325   : > { %v2577_v2 = vadd.f32 %v4318_v43, %v6119_v48  ;;  %v4321_v10 = vadd.f32 %v4320_v14, %v4319_v47  ;;  %v4432_v16 = vpop.f32.mrb[131].mxu0 }
 0x326   : > { %v4433_v4 = vadd.f32 %v4432_v16, %v4431_v53 }
 0x327   : > { %v2580_v60 = vadd.f32 %v4321_v10, %v6130_v12  ;;  %v6220_v45 = vadd.f32 %v4430_v63, %v2577_v2 }
 0x329   : > { %v4322_v50 = vpop.f32.mrb[96].mxu1  ;;  %v6222_v6 = vadd.f32 %v4433_v4, %v2580_v60 }
 0x32a   : > { %v4434_v51 = vpop.f32.mrb[132].mxu0  ;;  %v4323_v34 = vpop.f32.mrb[97].mxu1 }
 0x32b   : > { %v4324_v38 = vadd.f32 %v4323_v34, %v4322_v50  ;;  %v4435_v62 = vpop.f32.mrb[133].mxu0  ;;  %v4325_v9 = vpop.f32.mrb[98].mxu1 }
 0x32c   : > { %v4436_v41 = vadd.f32 %v4435_v62, %v4434_v51  ;;  %v4437_v57 = vpop.f32.mrb[134].mxu0  ;;  %v4326_v24 = vpop.f32.mrb[99].mxu1 }
 0x32d   : > { %v2585_v48 = vadd.f32 %v4324_v38, %v6139_v0  ;;  %v4327_v13 = vadd.f32 %v4326_v24, %v4325_v9  ;;  %v4438_v20 = vpop.f32.mrb[135].mxu0 }
 0x32e   : > { %v4439_v33 = vadd.f32 %v4438_v20, %v4437_v57 }
 0x32f   : > { %v2588_v12 = vadd.f32 %v4327_v13, %v6146_v1  ;;  %v6226_v26 = vadd.f32 %v4436_v41, %v2585_v48 }
 0x331   : > { %v4328_v44 = vpop.f32.mrb[100].mxu1  ;;  %v6228_v52 = vadd.f32 %v4439_v33, %v2588_v12 }
 0x332   : > { %v4440_v29 = vpop.f32.mrb[136].mxu0  ;;  %v4329_v30 = vpop.f32.mrb[101].mxu1 }
 0x333   : > { %v4330_v35 = vadd.f32 %v4329_v30, %v4328_v44  ;;  %v4441_v3 = vpop.f32.mrb[137].mxu0  ;;  %v4331_v43 = vpop.f32.mrb[102].mxu1 }
 0x334   : > { %v4442_v15 = vadd.f32 %v4441_v3, %v4440_v29  ;;  %v4443_v47 = vpop.f32.mrb[138].mxu0  ;;  %v4332_v63 = vpop.f32.mrb[103].mxu1 }
 0x335   : > { %v2593_v0 = vadd.f32 %v4330_v35, %v6148_v22  ;;  %v4333_v53 = vadd.f32 %v4332_v63, %v4331_v43  ;;  %v4444_v14 = vpop.f32.mrb[139].mxu0 }
 0x336   : > { %v4445_v2 = vadd.f32 %v4444_v14, %v4443_v47 }
 0x337   : > { %v2596_v1 = vadd.f32 %v4333_v53, %v6150_v8  ;;  %v6232_v10 = vadd.f32 %v4442_v15, %v2593_v0 }
 0x339   : > { %v4334_v16 = vpop.f32.mrb[104].mxu1  ;;  %v6234_v4 = vadd.f32 %v4445_v2, %v2596_v1 }
 0x33a   : > { %v4446_v60 = vpop.f32.mrb[140].mxu0  ;;  %v4335_v50 = vpop.f32.mrb[105].mxu1 }
 0x33b   : > { %v4336_v51 = vadd.f32 %v4335_v50, %v4334_v16  ;;  %v4447_v34 = vpop.f32.mrb[141].mxu0  ;;  %v4337_v38 = vpop.f32.mrb[106].mxu1 }
 0x33c   : > { %v4448_v62 = vadd.f32 %v4447_v34, %v4446_v60  ;;  %v4449_v9 = vpop.f32.mrb[142].mxu0  ;;  %v4338_v41 = vpop.f32.mrb[107].mxu1 }
 0x33d   : > { %v2601_v22 = vadd.f32 %v4336_v51, %v6152_v27  ;;  %v4339_v57 = vadd.f32 %v4338_v41, %v4337_v38  ;;  %v4450_v24 = vpop.f32.mrb[143].mxu0 }
 0x33e   : > { %v4451_v48 = vadd.f32 %v4450_v24, %v4449_v9 }
 0x33f   : > { %v2604_v8 = vadd.f32 %v4339_v57, %v6154_v40  ;;  %v6238_v13 = vadd.f32 %v4448_v62, %v2601_v22 }
 0x341   : > { %v4340_v20 = vpop.f32.mrb[108].mxu1  ;;  %v6240_v33 = vadd.f32 %v4451_v48, %v2604_v8 }
 0x342   : > { %v4452_v12 = vpop.f32.mrb[144].mxu0  ;;  %v4341_v44 = vpop.f32.mrb[109].mxu1 }
 0x343   : > { %v4342_v29 = vadd.f32 %v4341_v44, %v4340_v20  ;;  %v4453_v30 = vpop.f32.mrb[145].mxu0  ;;  %v4343_v35 = vpop.f32.mrb[110].mxu1 }
 0x344   : > { %v4454_v3 = vadd.f32 %v4453_v30, %v4452_v12  ;;  %v4455_v43 = vpop.f32.mrb[146].mxu0  ;;  %v4344_v15 = vpop.f32.mrb[111].mxu1 }
 0x345   : > { %v2609_v27 = vadd.f32 %v4342_v29, %v6156_v28  ;;  %v4345_v47 = vadd.f32 %v4344_v15, %v4343_v35  ;;  %v4456_v63 = vpop.f32.mrb[147].mxu0 }
 0x346   : > { %v4457_v0 = vadd.f32 %v4456_v63, %v4455_v43 }
 0x347   : > { %v2612_v40 = vadd.f32 %v4345_v47, %v6158_v32  ;;  %v6244_v53 = vadd.f32 %v4454_v3, %v2609_v27 }
 0x349   : > { %v4346_v14 = vpop.f32.mrb[112].mxu1  ;;  %v6246_v2 = vadd.f32 %v4457_v0, %v2612_v40 }
 0x34a   : > { %v4458_v1 = vpop.f32.mrb[148].mxu0  ;;  %v4347_v16 = vpop.f32.mrb[113].mxu1 }
 0x34b   : > { %v4348_v60 = vadd.f32 %v4347_v16, %v4346_v14  ;;  %v4459_v50 = vpop.f32.mrb[149].mxu0  ;;  %v4349_v51 = vpop.f32.mrb[114].mxu1 }
 0x34c   : > { %v4460_v34 = vadd.f32 %v4459_v50, %v4458_v1  ;;  %v4461_v38 = vpop.f32.mrb[150].mxu0  ;;  %v4350_v62 = vpop.f32.mrb[115].mxu1 }
 0x34d   : > { %v2617_v28 = vadd.f32 %v4348_v60, %v6160_v39  ;;  %v4351_v9 = vadd.f32 %v4350_v62, %v4349_v51  ;;  %v4462_v41 = vpop.f32.mrb[151].mxu0 }
 0x34e   : > { %v4463_v22 = vadd.f32 %v4462_v41, %v4461_v38 }
 0x34f   : > { %v2620_v32 = vadd.f32 %v4351_v9, %v6162_v56  ;;  %v6250_v57 = vadd.f32 %v4460_v34, %v2617_v28 }
 0x351   : > { %v4352_v24 = vpop.f32.mrb[116].mxu1  ;;  %v6252_v48 = vadd.f32 %v4463_v22, %v2620_v32 }
 0x352   : > { %v4464_v8 = vpop.f32.mrb[152].mxu0  ;;  %v4353_v20 = vpop.f32.mrb[117].mxu1 }
 0x353   : > { %v4354_v12 = vadd.f32 %v4353_v20, %v4352_v24  ;;  %v4465_v44 = vpop.f32.mrb[153].mxu0  ;;  %v4355_v29 = vpop.f32.mrb[118].mxu1 }
 0x354   : > { %v4466_v30 = vadd.f32 %v4465_v44, %v4464_v8  ;;  %v4467_v35 = vpop.f32.mrb[154].mxu0  ;;  %v4356_v3 = vpop.f32.mrb[119].mxu1 }
 0x355   : > { %v2625_v39 = vadd.f32 %v4354_v12, %v6164_v23  ;;  %v4357_v43 = vadd.f32 %v4356_v3, %v4355_v29  ;;  %v4468_v15 = vpop.f32.mrb[155].mxu0 }
 0x356   : > { %v4469_v27 = vadd.f32 %v4468_v15, %v4467_v35  ;;  %v6273_v15 = vld [vmem:[%s6621_s5] ss:$0 sm:$0xff] }
 0x357   : > { %v2628_v56 = vadd.f32 %v4357_v43, %v6166_v37  ;;  %v6256_v47 = vadd.f32 %v4466_v30, %v2625_v39 }
 0x359   : > { %v4358_v63 = vpop.f32.mrb[120].mxu1  ;;  %v6258_v0 = vadd.f32 %v4469_v27, %v2628_v56 }
 0x35a   : > { %v4470_v40 = vpop.f32.mrb[156].mxu0  ;;  %v4359_v14 = vpop.f32.mrb[121].mxu1 }
 0x35b   : > { %v4360_v1 = vadd.f32 %v4359_v14, %v4358_v63  ;;  %v4471_v16 = vpop.f32.mrb[157].mxu0  ;;  %v4361_v60 = vpop.f32.mrb[122].mxu1 }
 0x35c   : > { %v4472_v50 = vadd.f32 %v4471_v16, %v4470_v40  ;;  %v4473_v51 = vpop.f32.mrb[158].mxu0  ;;  %v4362_v34 = vpop.f32.mrb[123].mxu1 }
 0x35d   : > { %v2633_v23 = vadd.f32 %v4360_v1, %v6168_v55  ;;  %v4363_v38 = vadd.f32 %v4362_v34, %v4361_v60  ;;  %v4474_v62 = vpop.f32.mrb[159].mxu0 }
 0x35e   : > { %v4475_v28 = vadd.f32 %v4474_v62, %v4473_v51 }
 0x35f   : > { %v2636_v37 = vadd.f32 %v4363_v38, %v6170_v17  ;;  %v6262_v9 = vadd.f32 %v4472_v50, %v2633_v23 }
 0x361   : > { %v4364_v41 = vpop.f32.mrb[124].mxu1  ;;  %v6264_v22 = vadd.f32 %v4475_v28, %v2636_v37 }
 0x362   : > { %v4476_v32 = vpop.f32.mrb[160].mxu0  ;;  %v4365_v24 = vpop.f32.mrb[125].mxu1 }
 0x363   : > { %v4366_v8 = vadd.f32 %v4365_v24, %v4364_v41  ;;  %v4477_v20 = vpop.f32.mrb[161].mxu0  ;;  %v4367_v12 = vpop.f32.mrb[126].mxu1 }
 0x364   : > { %v4478_v44 = vadd.f32 %v4477_v20, %v4476_v32  ;;  %v4479_v29 = vpop.f32.mrb[162].mxu0  ;;  %v4368_v30 = vpop.f32.mrb[127].mxu1 }
 0x365   : > { %v2641_v55 = vadd.f32 %v4366_v8, %v6172_v36  ;;  %v4369_v35 = vadd.f32 %v4368_v30, %v4367_v12  ;;  %v4480_v3 = vpop.f32.mrb[163].mxu0 }
 0x366   : > { %v4481_v39 = vadd.f32 %v4480_v3, %v4479_v29 }
 0x367   : > { %v2644_v17 = vadd.f32 %v4369_v35, %v6174_v5  ;;  %v6268_v43 = vadd.f32 %v4478_v44, %v2641_v55  ;;  %v6282_v5 = vld [vmem:[%s6664_s6] ss:$0 sm:$0xff]  ;;  %s3559_s6 = scalar_lea.sflag [#allocation5], %s5392_s10 }
 0x369   : > { %v4616_v27 = vpop.f32.mrb[128].mxu1  ;;  %v6275_v56 = vadd.f32 %v4481_v39, %v2644_v17 }
 0x36a   : > { %v4600_v63 = vpop.f32.mrb[164].mxu0  ;;  %v2915_v40 = vadd.f32 %v4616_v27, %v6232_v10  ;;  %v2906_v14 = vpop.f32.mrb[129].mxu1 }
 0x36b   : > { %v2851_v36 = vadd.f32 %v4600_v63, %v6184_v46  ;;  %v2842_v1 = vpop.f32.mrb[165].mxu0  ;;  %v2907_v16 = vadd.f32 %v2906_v14, %v6226_v26  ;;  %v4617_v60 = vpop.f32.mrb[130].mxu1 }
 0x36c   : > { %v2994_v50 = vmul.f32 %v6273_v15, %v2915_v40  ;;  %v2843_v51 = vadd.f32 %v2842_v1, %v6178_v42  ;;  %v4601_v34 = vpop.f32.mrb[166].mxu0  ;;  %v2918_v23 = vadd.f32 %v4617_v60, %v6234_v4  ;;  %v2909_v10 = vpop.f32.mrb[131].mxu1 }
 0x36d   : > { %v2978_v38 = vmul.f32 %v6273_v15, %v2851_v36  ;;  %v2992_v46 = vmul.f32 %v6273_v15, %v2907_v16  ;;  %v2854_v62 = vadd.f32 %v4601_v34, %v6186_v11  ;;  %v2845_v28 = vpop.f32.mrb[167].mxu0  ;;  %v2910_v37 = vadd.f32 %v2909_v10, %v6228_v52 }
 0x36e   : > { %v6293_v26 = vadd.f32 %v6282_v5, %v2994_v50  ;;  %v2976_v41 = vmul.f32 %v6273_v15, %v2843_v51  ;;  %v2995_v42 = vmul.f32 %v6273_v15, %v2918_v23  ;;  %v2846_v32 = vadd.f32 %v2845_v28, %v6180_v19 }
 0x36f   : > { %v3017_v4 = vadd.f32 %v6282_v5, %v2978_v38  ;;  %v6300_v24 = vadd.f32 %v6282_v5, %v2992_v46  ;;  %v2979_v8 = vmul.f32 %v6273_v15, %v2854_v62  ;;  %v2993_v11 = vmul.f32 %v6273_v15, %v2910_v37 }
 0x370   : > { %v3065_v52 = vmax.f32 %v6293_v26, 0.0  ;;  %v3015_v20 = vadd.f32 %v6282_v5, %v2976_v41  ;;  %v6307_v12 = vadd.f32 %v6282_v5, %v2995_v42  ;;  %v2977_v44 = vmul.f32 %v6273_v15, %v2846_v32 }
 0x371   : > { %v3049_v29 = vmax.f32 %v3017_v4, 0.0  ;;  %v3063_v19 = vmax.f32 %v6300_v24, 0.0  ;;  %v3018_v30 = vadd.f32 %v6282_v5, %v2979_v8  ;;  %v6313_v55 = vadd.f32 %v6282_v5, %v2993_v11  ;;  %v4620_v35 = vpop.f32.mrb[132].mxu1 }
 0x372   : > { %v3047_v3 = vmax.f32 %v3015_v20, 0.0  ;;  %v3066_v39 = vmax.f32 %v6307_v12, 0.0  ;;  %v3016_v17 = vadd.f32 %v6282_v5, %v2977_v44  ;;  %v4604_v27 = vpop.f32.mrb[168].mxu0  ;;  %v2931_v63 = vadd.f32 %v4620_v35, %v6244_v53  ;;  %v2922_v40 = vpop.f32.mrb[133].mxu1 }
 0x373   : > { %v3050_v14 = vmax.f32 %v3018_v30, 0.0  ;;  %v3064_v36 = vmax.f32 %v6313_v55, 0.0  ;;  %v2867_v1 = vadd.f32 %v4604_v27, %v6196_v58  ;;  %v2858_v16 = vpop.f32.mrb[169].mxu0  ;;  %v2923_v60 = vadd.f32 %v2922_v40, %v6238_v13  ;;  %v4621_v50 = vpop.f32.mrb[134].mxu1  ;;  %v6438_v55 = vld [vmem:[%s6665_s16] ss:$0 sm:$0xff] }
 0x374   : > { %v3048_v51 = vmax.f32 %v3016_v17, 0.0  ;;  %v2998_v34 = vmul.f32 %v6273_v15, %v2931_v63  ;;  %v2859_v23 = vadd.f32 %v2858_v16, %v6190_v21  ;;  %v4605_v10 = vpop.f32.mrb[170].mxu0  ;;  %v2934_v38 = vadd.f32 %v4621_v50, %v6246_v2  ;;  %v2925_v46 = vpop.f32.mrb[135].mxu1  ;;  %s5017_s16 = sshll.u32 %s5113_s13, 4  ;;  %s5018_s16 = int_to_ptr.vmem [resolvable:$false] %s5017_s16 }
 0x375   : > { %v3080_v53 = vpack.c.bf16 %v3050_v14, %v3049_v29  ;;  %v2982_v62 = vmul.f32 %v6273_v15, %v2867_v1  ;;  %v2996_v28 = vmul.f32 %v6273_v15, %v2923_v60  ;;  %v2870_v58 = vadd.f32 %v4605_v10, %v6198_v7  ;;  %v2861_v37 = vpop.f32.mrb[171].mxu0  ;;  %s5019_s12 = scalar_lea.vmem %s5018_s16, 8192  ;;  %p5020_p5 = scmp.lt.s32.totalorder %s6564_s24, %s5018_s16 }
 0x376   : > { %v6328_v13 = vadd.f32 %v6282_v5, %v2998_v34  ;;  %v2980_v41 = vmul.f32 %v6273_v15, %v2859_v23  ;;  %v2999_v42 = vmul.f32 %v6273_v15, %v2934_v38  ;;  %v2862_v21 = vadd.f32 %v2861_v37, %v6192_v59  ;;  %p5021_p7 = scmp.lt.s32.totalorder %s5019_s12, %s5013_s9 }
 0x377   : > { %v6334_v2 = vadd.f32 %v6282_v5, %v2982_v62  ;;  %v6337_v32 = vadd.f32 %v6282_v5, %v2996_v28  ;;  %v2983_v4 = vmul.f32 %v6273_v15, %v2870_v58  ;;  %v2926_v7 = vadd.f32 %v2925_v46, %v6240_v33 }
 0x378   : > { %v3069_v8 = vmax.f32 %v6328_v13, 0.0  ;;  %v3019_v11 = vadd.f32 %v6282_v5, %v2980_v41  ;;  %v6344_v20 = vadd.f32 %v6282_v5, %v2999_v42  ;;  %v2981_v44 = vmul.f32 %v6273_v15, %v2862_v21  ;;  %p5022_p9 = por %p5021_p7, %p5020_p5 }
 0x379   : > { %v3053_v59 = vmax.f32 %v6334_v2, 0.0  ;;  %v3067_v29 = vmax.f32 %v6337_v32, 0.0  ;;  %v3022_v30 = vadd.f32 %v6282_v5, %v2983_v4  ;;  %v2997_v35 = vmul.f32 %v6273_v15, %v2926_v7  ;;  %v4624_v17 = vpop.f32.mrb[136].mxu1  ;;  %v6445_v32 = vld [vmem:[%s6666_s29] ss:$0 sm:$0xff] }
 0x37a   : > { %v3051_v27 = vmax.f32 %v3019_v11, 0.0  ;;  %v3070_v33 = vmax.f32 %v6344_v20, 0.0  ;;  %v3020_v63 = vadd.f32 %v6282_v5, %v2981_v44  ;;  %v3079_v40 = vpack.c.bf16 %v3048_v51, %v3047_v3  ;;  %v4608_v14 = vpop.f32.mrb[172].mxu0  ;;  %v2938_v1 = vpop.f32.mrb[137].mxu1  ;;  %p5023_p0 = pnand %p5022_p9, %p5016_p3 }
 0x37b   : > { %v3054_v16 = vmax.f32 %v3022_v30, 0.0  ;;  %v6354_v60 = vadd.f32 %v6282_v5, %v2997_v35  ;;  %v2883_v50 = vadd.f32 %v4608_v14, %v6208_v54  ;;  %v2947_v34 = vadd.f32 %v4624_v17, %v6256_v47  ;;  %v2874_v23 = vpop.f32.mrb[173].mxu0  ;;  %v4625_v10 = vpop.f32.mrb[138].mxu1 }
 0x37c   : > { %v3052_v38 = vmax.f32 %v3020_v63, 0.0  ;;  %4646 = vmatprep.mubr.bf16.mxu1 %v3079_v40  ;;  %v2875_v46 = vadd.f32 %v2874_v23, %v6202_v18  ;;  %v2939_v62 = vadd.f32 %v2938_v1, %v6250_v57  ;;  %v4609_v28 = vpop.f32.mrb[174].mxu0  ;;  %v2950_v3 = vadd.f32 %v4625_v10, %v6258_v0  ;;  %v2941_v51 = vpop.f32.mrb[139].mxu1 }
 0x37d   : > { %v3068_v58 = vmax.f32 %v6354_v60, 0.0  ;;  %4647 = vmatmul.mubr.bf16.vlgmr.msra.gmra.mrb[144].mxu1 %v3080_v53  ;;  %v2986_v37 = vmul.f32 %v6273_v15, %v2883_v50  ;;  %v3002_v54 = vmul.f32 %v6273_v15, %v2947_v34  ;;  %v2886_v47 = vadd.f32 %v4609_v28, %v6210_v49  ;;  %v2877_v41 = vpop.f32.mrb[175].mxu0 }
 0x37e   : > { %v2984_v42 = vmul.f32 %v6273_v15, %v2875_v46  ;;  %v3000_v18 = vmul.f32 %v6273_v15, %v2939_v62  ;;  %v3003_v57 = vmul.f32 %v6273_v15, %v2950_v3  ;;  %v2878_v21 = vadd.f32 %v2877_v41, %v6204_v25 }
 0x37f   : > { %v6370_v0 = vadd.f32 %v6282_v5, %v2986_v37  ;;  %v6373_v53 = vadd.f32 %v6282_v5, %v3002_v54  ;;  %v2987_v2 = vmul.f32 %v6273_v15, %v2886_v47  ;;  %v2942_v4 = vadd.f32 %v2941_v51, %v6252_v48 }
 0x380   : > { %v3023_v49 = vadd.f32 %v6282_v5, %v2984_v42  ;;  %v6379_v7 = vadd.f32 %v6282_v5, %v3000_v18  ;;  %v6382_v11 = vadd.f32 %v6282_v5, %v3003_v57  ;;  %v2985_v25 = vmul.f32 %v6273_v15, %v2878_v21 }
 0x381   : > { %v3057_v44 = vmax.f32 %v6370_v0, 0.0  ;;  %v3073_v30 = vmax.f32 %v6373_v53, 0.0  ;;  %v3026_v35 = vadd.f32 %v6282_v5, %v2987_v2  ;;  %v3001_v17 = vmul.f32 %v6273_v15, %v2942_v4  ;;  %v4628_v63 = vpop.f32.mrb[140].mxu1 }
 0x382   : > { %v3055_v48 = vmax.f32 %v3023_v49, 0.0  ;;  %v3071_v40 = vmax.f32 %v6379_v7, 0.0  ;;  %v3074_v14 = vmax.f32 %v6382_v11, 0.0  ;;  %v3024_v1 = vadd.f32 %v6282_v5, %v2985_v25  ;;  %v4612_v50 = vpop.f32.mrb[176].mxu0  ;;  %v2954_v34 = vpop.f32.mrb[141].mxu1 }
 0x383   : > { %v3058_v23 = vmax.f32 %v3026_v35, 0.0  ;;  %v3040_v10 = vadd.f32 %v6282_v5, %v3001_v17  ;;  %v3081_v46 = vpack.c.bf16 %v3052_v38, %v3051_v27  ;;  %v3082_v62 = vpack.c.bf16 %v3054_v16, %v3053_v59  ;;  %v2890_v28 = vpop.f32.mrb[177].mxu0  ;;  %v4629_v3 = vpop.f32.mrb[142].mxu1 }
 0x384   : > { %v3056_v51 = vmax.f32 %v3024_v1, 0.0  ;;  %v2899_v37 = vadd.f32 %v4612_v50, %v6220_v45  ;;  %v2963_v54 = vadd.f32 %v4628_v63, %v6268_v43  ;;  %v2891_v47 = vadd.f32 %v2890_v28, %v6214_v61  ;;  %v4613_v41 = vpop.f32.mrb[178].mxu0  ;;  %v2957_v42 = vpop.f32.mrb[143].mxu1 }
 0x385   : > { %v3072_v18 = vmax.f32 %v3040_v10, 0.0  ;;  %4650 = vmatprep.mubr.bf16.mxu1 %v3081_v46  ;;  %v2955_v57 = vadd.f32 %v2954_v34, %v6262_v9  ;;  %v2902_v21 = vadd.f32 %v4613_v41, %v6222_v6  ;;  %v2966_v27 = vadd.f32 %v4629_v3, %v6275_v56  ;;  %v2893_v59 = vpop.f32.mrb[179].mxu0 }
 0x386   : > { %4651 = vmatmul.mubr.bf16.gmra.mrb[148].mxu1 %v3082_v62  ;;  %v2990_v16 = vmul.f32 %v6273_v15, %v2899_v37  ;;  %v3006_v45 = vmul.f32 %v6273_v15, %v2963_v54  ;;  %v2988_v43 = vmul.f32 %v6273_v15, %v2891_v47  ;;  %v2894_v61 = vadd.f32 %v2893_v59, %v6216_v31 }
 0x387   : > { %v3004_v38 = vmul.f32 %v6273_v15, %v2955_v57  ;;  %v2991_v0 = vmul.f32 %v6273_v15, %v2902_v21  ;;  %v3007_v9 = vmul.f32 %v6273_v15, %v2966_v27  ;;  %v2958_v6 = vadd.f32 %v2957_v42, %v6264_v22  ;;  %v3899_v27 = vld [vmem:[%s5396_s11 + $0x18] sm:$0xff]  }
 0x388   : > { %v3029_v56 = vadd.f32 %v6282_v5, %v2990_v16  ;;  %v3045_v2 = vadd.f32 %v6282_v5, %v3006_v45  ;;  %v3027_v4 = vadd.f32 %v6282_v5, %v2988_v43  ;;  %v2989_v49 = vmul.f32 %v6273_v15, %v2894_v61  ;;  %v3898_v45 = vld [vmem:[%s5396_s11 + $0x10] sm:$0xff]  }
 0x389   : > { %v3043_v7 = vadd.f32 %v6282_v5, %v3004_v38  ;;  %v3030_v31 = vadd.f32 %v6282_v5, %v2991_v0  ;;  %v3046_v11 = vadd.f32 %v6282_v5, %v3007_v9  ;;  %v3005_v25 = vmul.f32 %v6273_v15, %v2958_v6 }
 0x38a   : > { %v3061_v35 = vmax.f32 %v3029_v56, 0.0  ;;  %v3077_v17 = vmax.f32 %v3045_v2, 0.0  ;;  %v3059_v63 = vmax.f32 %v3027_v4, 0.0  ;;  %v3028_v22 = vadd.f32 %v6282_v5, %v2989_v49 }
 0x38b   : > { %v3075_v1 = vmax.f32 %v3043_v7, 0.0  ;;  %v3062_v50 = vmax.f32 %v3030_v31, 0.0  ;;  %v3078_v34 = vmax.f32 %v3046_v11, 0.0  ;;  %v3044_v10 = vadd.f32 %v6282_v5, %v3005_v25 }
 0x38c   : > { %v3060_v46 = vmax.f32 %v3028_v22, 0.0  ;;  %v3083_v62 = vpack.c.bf16 %v3056_v51, %v3055_v48  ;;  %v3084_v28 = vpack.c.bf16 %v3058_v23, %v3057_v44  ;;  %v3087_v3 = vpack.c.bf16 %v3064_v36, %v3063_v19  ;;  %v3834_v36 = vld [vmem:[%s5396_s11] sm:$0xff]  }
 0x38d   : > { %v3076_v37 = vmax.f32 %v3044_v10, 0.0  ;;  %v3086_v15 = vpack.c.bf16 %v3062_v50, %v3061_v35  ;;  %v3088_v54 = vpack.c.bf16 %v3066_v39, %v3065_v52  ;;  %v3089_v5 = vpack.c.bf16 %v3068_v58, %v3067_v29  ;;  %v3897_v39 = vld [vmem:[%s5396_s11 + $0x8] sm:$0xff]  }
 0x38e   : > { %4654 = vmatprep.mubr.bf16.mxu1 %v3083_v62  ;;  %v3085_v48 = vpack.c.bf16 %v3060_v46, %v3059_v63  ;;  %v3090_v24 = vpack.c.bf16 %v3070_v33, %v3069_v8  ;;  %v3091_v19 = vpack.c.bf16 %v3072_v18, %v3071_v40  ;;  %v3092_v26 = vpack.c.bf16 %v3074_v14, %v3073_v30  ;;  %v3901_v46 = vld [vmem:[%s5396_s11 + $0x28] sm:$0xff]  }
 0x38f   : > { %4655 = vmatmul.mubr.bf16.gmra.mrb[152].mxu1 %v3084_v28  ;;  %v3093_v52 = vpack.c.bf16 %v3076_v37, %v3075_v1  ;;  %v3094_v12 = vpack.c.bf16 %v3078_v34, %v3077_v17  ;;  %v3839_v20 = vunpack.c.l.bf16 %v3897_v39  ;;  %v3835_v60 = vunpack.c.l.bf16 %v3834_v36 }
 0x390   : > { %4658 = vmatprep.mubr.bf16.mxu1 %v3085_v48  ;;  %v3840_v30 = vunpack.c.h.bf16 %v3897_v39  ;;  %v3836_v51 = vunpack.c.h.bf16 %v3834_v36  ;;  %v3847_v9 = vunpack.c.l.bf16 %v3899_v27  ;;  %v3843_v2 = vunpack.c.l.bf16 %v3898_v45 }
 0x391   : > { %v3848_v31 = vunpack.c.h.bf16 %v3899_v27  ;;  %v3844_v17 = vunpack.c.h.bf16 %v3898_v45  ;;  %v3855_v48 = vunpack.c.l.bf16 %v3901_v46  ;;  %v3856_v36 = vunpack.c.h.bf16 %v3901_v46 }
 0x397   : > { %4659 = vmatmul.mubr.bf16.gmra.mrb[156].mxu1 %v3086_v15 }
 0x398   : > { %4662 = vmatprep.mubr.bf16.mxu1 %v3087_v3  ;;  %v3900_v3 = vld [vmem:[%s5396_s11 + $0x20] sm:$0xff]  }
 0x39f   : > { %4663 = vmatmul.mubr.bf16.gmra.mrb[160].mxu1 %v3088_v54 }
 0x3a0   : > { %4666 = vmatprep.mubr.bf16.mxu1 %v3089_v5 }
 0x3a7   : > { %4667 = vmatmul.mubr.bf16.gmra.mrb[164].mxu1 %v3090_v24 }
 0x3a8   : > { %4670 = vmatprep.mubr.bf16.mxu1 %v3091_v19 }
 0x3af   : > { %4671 = vmatmul.mubr.bf16.gmra.mrb[168].mxu1 %v3092_v26  ;;  %v3851_v26 = vunpack.c.l.bf16 %v3900_v3 }
 0x3b0   : > { %4674 = vmatprep.mubr.bf16.mxu1 %v3093_v52 }
 0x3b7   : > { %4675 = vmatmul.mubr.bf16.gmra.mrb[172].mxu1 %v3094_v12 }
 0x450   : > { %v4648_v13 = vpop.f32.mrb[144].mxu1 }
 0x451   : > { %v3329_v8 = vmul.f32 %v4648_v13, %v6438_v55  ;;  %v3193_v29 = vpop.f32.mrb[145].mxu1 }
 0x452   : > { %v3327_v33 = vmul.f32 %v6438_v55, %v3193_v29  ;;  %v4649_v58 = vpop.f32.mrb[146].mxu1  ;;  %v3852_v29 = vunpack.c.h.bf16 %v3900_v3 }
 0x453   : > { %v3368_v53 = vadd.f32 %v6445_v32, %v3329_v8  ;;  %v3330_v44 = vmul.f32 %v4649_v58, %v6438_v55  ;;  %v3196_v40 = vpop.f32.mrb[147].mxu1 }
 0x454   : > { %v3366_v14 = vadd.f32 %v6445_v32, %v3327_v33  ;;  %v3328_v23 = vmul.f32 %v6438_v55, %v3196_v40 }
 0x455   : > { %v3464_v47 = vadd.f32 %v3839_v20, %v3368_v53  ;;  %v3369_v41 = vadd.f32 %v6445_v32, %v3330_v44  ;;  %v3903_v44 = vld [vmem:[%s5396_s11 + $0x38] sm:$0xff]  }
 0x456   : > { %v3462_v42 = vadd.f32 %v3835_v60, %v3366_v14  ;;  %v3367_v18 = vadd.f32 %v6445_v32, %v3328_v23  ;;  %v3902_v14 = vld [vmem:[%s5396_s11 + $0x30] sm:$0xff]  }
 0x457   : > { %v3496_v57 = vmax.f32 %v3464_v47, 0.0  ;;  %v3465_v21 = vadd.f32 %v3840_v30, %v3369_v41 }
 0x458   : > { %v3494_v59 = vmax.f32 %v3462_v42, 0.0  ;;  %v3463_v16 = vadd.f32 %v3836_v51, %v3367_v18  ;;  %v3863_v18 = vunpack.c.l.bf16 %v3903_v44 }
 0x459   : > { %3528 = vst [vmem:[%s6458_s23 + $0x10] sm:$0xff] %v3496_v57  ;;  %v3497_v43 = vmax.f32 %v3465_v21, 0.0  ;;  %v4652_v61 = vpop.f32.mrb[148].mxu1 }
 0x45a   : > { %3526 = vst [vmem:[%s6458_s23] sm:$0xff] %v3494_v59  ;;  %v3495_v38 = vmax.f32 %v3463_v16, 0.0  ;;  %v3333_v0 = vmul.f32 %v4652_v61, %v6438_v55  ;;  %v3209_v6 = vpop.f32.mrb[149].mxu1  ;;  %v3859_v59 = vunpack.c.l.bf16 %v3902_v14  ;;  %v3864_v61 = vunpack.c.h.bf16 %v3903_v44 }
 0x45b   : > { %3529 = vst [vmem:[%s6458_s23 + $0x18] sm:$0xff] %v3497_v43  ;;  %v3331_v56 = vmul.f32 %v6438_v55, %v3209_v6  ;;  %v4653_v4 = vpop.f32.mrb[150].mxu1  ;;  %v3860_v6 = vunpack.c.h.bf16 %v3902_v14 }
 0x45c   : > { %3527 = vst [vmem:[%s6458_s23 + $0x8] sm:$0xff] %v3495_v38  ;;  %v3372_v49 = vadd.f32 %v6445_v32, %v3333_v0  ;;  %v3334_v7 = vmul.f32 %v4653_v4, %v6438_v55  ;;  %v3212_v11 = vpop.f32.mrb[151].mxu1 }
 0x45d   : > { %v3370_v25 = vadd.f32 %v6445_v32, %v3331_v56  ;;  %v3332_v35 = vmul.f32 %v6438_v55, %v3212_v11 }
 0x45e   : > { %v3468_v63 = vadd.f32 %v3847_v9, %v3372_v49  ;;  %v3373_v22 = vadd.f32 %v6445_v32, %v3334_v7  ;;  %v3905_v7 = vld [vmem:[%s5396_s11 + $0x48] sm:$0xff]  }
 0x45f   : > { %v3466_v1 = vadd.f32 %v3843_v2, %v3370_v25  ;;  %v3371_v50 = vadd.f32 %v6445_v32, %v3332_v35  ;;  %v3904_v25 = vld [vmem:[%s5396_s11 + $0x40] sm:$0xff]  }
 0x460   : > { %v3500_v34 = vmax.f32 %v3468_v63, 0.0  ;;  %v3469_v10 = vadd.f32 %v3848_v31, %v3373_v22 }
 0x461   : > { %v3498_v62 = vmax.f32 %v3466_v1, 0.0  ;;  %v3467_v28 = vadd.f32 %v3844_v17, %v3371_v50  ;;  %v3871_v50 = vunpack.c.l.bf16 %v3905_v7 }
 0x462   : > { %3532 = vst [vmem:[%s6458_s23 + $0x30] sm:$0xff] %v3500_v34  ;;  %v3501_v37 = vmax.f32 %v3469_v10, 0.0  ;;  %v4656_v15 = vpop.f32.mrb[152].mxu1 }
 0x463   : > { %3530 = vst [vmem:[%s6458_s23 + $0x20] sm:$0xff] %v3498_v62  ;;  %v3499_v54 = vmax.f32 %v3467_v28, 0.0  ;;  %v3337_v5 = vmul.f32 %v4656_v15, %v6438_v55  ;;  %v3225_v24 = vpop.f32.mrb[153].mxu1  ;;  %v3867_v62 = vunpack.c.l.bf16 %v3904_v25  ;;  %v3872_v15 = vunpack.c.h.bf16 %v3905_v7 }
 0x464   : > { %3533 = vst [vmem:[%s6458_s23 + $0x38] sm:$0xff] %v3501_v37  ;;  %v3335_v19 = vmul.f32 %v6438_v55, %v3225_v24  ;;  %v4657_v52 = vpop.f32.mrb[154].mxu1  ;;  %v3868_v24 = vunpack.c.h.bf16 %v3904_v25 }
 0x465   : > { %3531 = vst [vmem:[%s6458_s23 + $0x28] sm:$0xff] %v3499_v54  ;;  %v3376_v12 = vadd.f32 %v6445_v32, %v3337_v5  ;;  %v3338_v39 = vmul.f32 %v4657_v52, %v6438_v55  ;;  %v3228_v13 = vpop.f32.mrb[155].mxu1 }
 0x466   : > { %v3374_v8 = vadd.f32 %v6445_v32, %v3335_v19  ;;  %v3336_v20 = vmul.f32 %v6438_v55, %v3228_v13 }
 0x467   : > { %v3472_v33 = vadd.f32 %v3855_v48, %v3376_v12  ;;  %v3377_v60 = vadd.f32 %v6445_v32, %v3338_v39  ;;  %v3907_v39 = vld [vmem:[%s5396_s11 + $0x58] sm:$0xff]  }
 0x468   : > { %v3470_v58 = vadd.f32 %v3851_v26, %v3374_v8  ;;  %v3375_v53 = vadd.f32 %v6445_v32, %v3336_v20  ;;  %v3906_v8 = vld [vmem:[%s5396_s11 + $0x50] sm:$0xff]  }
 0x469   : > { %v3504_v30 = vmax.f32 %v3472_v33, 0.0  ;;  %v3473_v40 = vadd.f32 %v3856_v36, %v3377_v60  ;;  %v3875_v14 = vunpack.c.l.bf16 %v3906_v8 }
 0x46a   : > { %v3502_v23 = vmax.f32 %v3470_v58, 0.0  ;;  %v3471_v51 = vadd.f32 %v3852_v29, %v3375_v53  ;;  %v4660_v47 = vpop.f32.mrb[156].mxu1  ;;  %v3879_v53 = vunpack.c.l.bf16 %v3907_v39 }
 0x46b   : > { %3536 = vst [vmem:[%s6458_s23 + $0x50] sm:$0xff] %v3504_v30  ;;  %v3505_v41 = vmax.f32 %v3473_v40, 0.0  ;;  %v3341_v42 = vmul.f32 %v4660_v47, %v6438_v55  ;;  %v3241_v57 = vpop.f32.mrb[157].mxu1 }
 0x46c   : > { %3534 = vst [vmem:[%s6458_s23 + $0x40] sm:$0xff] %v3502_v23  ;;  %v3503_v21 = vmax.f32 %v3471_v51, 0.0  ;;  %v3339_v27 = vmul.f32 %v6438_v55, %v3241_v57  ;;  %v4661_v16 = vpop.f32.mrb[158].mxu1 }
 0x46d   : > { %3537 = vst [vmem:[%s6458_s23 + $0x58] sm:$0xff] %v3505_v41  ;;  %v3380_v45 = vadd.f32 %v6445_v32, %v3341_v42  ;;  %v3342_v43 = vmul.f32 %v4661_v16, %v6438_v55  ;;  %v3244_v38 = vpop.f32.mrb[159].mxu1  ;;  %v3880_v41 = vunpack.c.h.bf16 %v3907_v39 }
 0x46e   : > { %3535 = vst [vmem:[%s6458_s23 + $0x48] sm:$0xff] %v3503_v21  ;;  %v3378_v0 = vadd.f32 %v6445_v32, %v3339_v27  ;;  %v3340_v9 = vmul.f32 %v6438_v55, %v3244_v38  ;;  %v3876_v21 = vunpack.c.h.bf16 %v3906_v8 }
 0x46f   : > { %v3476_v56 = vadd.f32 %v3863_v18, %v3380_v45  ;;  %v3381_v2 = vadd.f32 %v6445_v32, %v3342_v43  ;;  %v3909_v43 = vld [vmem:[%s5396_s11 + $0x68] sm:$0xff]  }
 0x470   : > { %v3474_v4 = vadd.f32 %v3859_v59, %v3378_v0  ;;  %v3379_v49 = vadd.f32 %v6445_v32, %v3340_v9  ;;  %v3908_v0 = vld [vmem:[%s5396_s11 + $0x60] sm:$0xff]  }
 0x471   : > { %v3508_v31 = vmax.f32 %v3476_v56, 0.0  ;;  %v3477_v11 = vadd.f32 %v3864_v61, %v3381_v2  ;;  %v3883_v25 = vunpack.c.l.bf16 %v3908_v0 }
 0x472   : > { %v3506_v35 = vmax.f32 %v3474_v4, 0.0  ;;  %v3475_v17 = vadd.f32 %v3860_v6, %v3379_v49  ;;  %v4664_v63 = vpop.f32.mrb[160].mxu1  ;;  %v3887_v49 = vunpack.c.l.bf16 %v3909_v43 }
 0x473   : > { %3540 = vst [vmem:[%s6458_s23 + $0x70] sm:$0xff] %v3508_v31  ;;  %v3509_v22 = vmax.f32 %v3477_v11, 0.0  ;;  %v3345_v1 = vmul.f32 %v4664_v63, %v6438_v55  ;;  %v3257_v34 = vpop.f32.mrb[161].mxu1 }
 0x474   : > { %3538 = vst [vmem:[%s6458_s23 + $0x60] sm:$0xff] %v3506_v35  ;;  %v3507_v10 = vmax.f32 %v3475_v17, 0.0  ;;  %v3343_v46 = vmul.f32 %v6438_v55, %v3257_v34  ;;  %v4665_v28 = vpop.f32.mrb[162].mxu1 }
 0x475   : > { %3541 = vst [vmem:[%s6458_s23 + $0x78] sm:$0xff] %v3509_v22  ;;  %v3384_v3 = vadd.f32 %v6445_v32, %v3345_v1  ;;  %v3346_v37 = vmul.f32 %v4665_v28, %v6438_v55  ;;  %v3260_v54 = vpop.f32.mrb[163].mxu1  ;;  %v3888_v22 = vunpack.c.h.bf16 %v3909_v43 }
 0x476   : > { %3539 = vst [vmem:[%s6458_s23 + $0x68] sm:$0xff] %v3507_v10  ;;  %v3382_v5 = vadd.f32 %v6445_v32, %v3343_v46  ;;  %v3344_v48 = vmul.f32 %v6438_v55, %v3260_v54  ;;  %v3884_v10 = vunpack.c.h.bf16 %v3908_v0 }
 0x477   : > { %v3480_v19 = vadd.f32 %v3871_v50, %v3384_v3  ;;  %v3385_v26 = vadd.f32 %v6445_v32, %v3346_v37  ;;  %v3911_v37 = vld [vmem:[%s5396_s11 + $0x78] sm:$0xff]  }
 0x478   : > { %v3478_v52 = vadd.f32 %v3867_v62, %v3382_v5  ;;  %v3383_v12 = vadd.f32 %v6445_v32, %v3344_v48  ;;  %v3910_v5 = vld [vmem:[%s5396_s11 + $0x70] sm:$0xff]   ;;  %s3832_s11 = sshll.u32 %s6667_s25, 12 }
 0x479   : > { %v3512_v36 = vmax.f32 %v3480_v19, 0.0  ;;  %v3481_v13 = vadd.f32 %v3872_v15, %v3385_v26  ;;  %v3891_v8 = vunpack.c.l.bf16 %v3910_v5  ;;  %s6562_s30 = scalar_lea.hbm %s6668_s27, %s3832_s11 }
 0x47a   : > { %v3510_v20 = vmax.f32 %v3478_v52, 0.0  ;;  %v3479_v29 = vadd.f32 %v3868_v24, %v3383_v12  ;;  %v4668_v33 = vpop.f32.mrb[164].mxu1  ;;  %v3895_v12 = vunpack.c.l.bf16 %v3911_v37 }
 0x47b   : > { %3544 = vst [vmem:[%s6458_s23 + $0x90] sm:$0xff] %v3512_v36  ;;  %v3513_v60 = vmax.f32 %v3481_v13, 0.0  ;;  %v3349_v58 = vmul.f32 %v4668_v33, %v6438_v55  ;;  %v3273_v44 = vpop.f32.mrb[165].mxu1 }
 0x47c   : > { %3542 = vst [vmem:[%s6458_s23 + $0x80] sm:$0xff] %v3510_v20  ;;  %v3511_v30 = vmax.f32 %v3479_v29, 0.0  ;;  %v3347_v40 = vmul.f32 %v6438_v55, %v3273_v44  ;;  %v4669_v23 = vpop.f32.mrb[166].mxu1 }
 0x47d   : > { %3545 = vst [vmem:[%s6458_s23 + $0x98] sm:$0xff] %v3513_v60  ;;  %v3388_v51 = vadd.f32 %v6445_v32, %v3349_v58  ;;  %v3350_v47 = vmul.f32 %v4669_v23, %v6438_v55  ;;  %v3276_v42 = vpop.f32.mrb[167].mxu1  ;;  %v3896_v60 = vunpack.c.h.bf16 %v3911_v37 }
 0x47e   : > { %3543 = vst [vmem:[%s6458_s23 + $0x88] sm:$0xff] %v3511_v30  ;;  %v3386_v18 = vadd.f32 %v6445_v32, %v3347_v40  ;;  %v3348_v57 = vmul.f32 %v6438_v55, %v3276_v42  ;;  %v3892_v30 = vunpack.c.h.bf16 %v3910_v5 }
 0x47f   : > { %v3484_v27 = vadd.f32 %v3879_v53, %v3388_v51  ;;  %v3389_v59 = vadd.f32 %v6445_v32, %v3350_v47 }
 0x480   : > { %v3482_v16 = vadd.f32 %v3875_v14, %v3386_v18  ;;  %v3387_v45 = vadd.f32 %v6445_v32, %v3348_v57 }
 0x481   : > { %v3516_v61 = vmax.f32 %v3484_v27, 0.0  ;;  %v3485_v38 = vadd.f32 %v3880_v41, %v3389_v59 }
 0x482   : > { %v3514_v9 = vmax.f32 %v3482_v16, 0.0  ;;  %v3483_v6 = vadd.f32 %v3876_v21, %v3387_v45  ;;  %v4672_v56 = vpop.f32.mrb[168].mxu1 }
 0x483   : > { %3548 = vst [vmem:[%s6458_s23 + $0xb0] sm:$0xff] %v3516_v61  ;;  %v3517_v2 = vmax.f32 %v3485_v38, 0.0  ;;  %v3353_v4 = vmul.f32 %v4672_v56, %v6438_v55  ;;  %v3289_v7 = vpop.f32.mrb[169].mxu1 }
 0x484   : > { %3546 = vst [vmem:[%s6458_s23 + $0xa0] sm:$0xff] %v3514_v9  ;;  %v3515_v31 = vmax.f32 %v3483_v6, 0.0  ;;  %v3351_v11 = vmul.f32 %v6438_v55, %v3289_v7  ;;  %v4673_v35 = vpop.f32.mrb[170].mxu1 }
 0x485   : > { %3549 = vst [vmem:[%s6458_s23 + $0xb8] sm:$0xff] %v3517_v2  ;;  %v3392_v17 = vadd.f32 %v6445_v32, %v3353_v4  ;;  %v3354_v63 = vmul.f32 %v4673_v35, %v6438_v55  ;;  %v3292_v1 = vpop.f32.mrb[171].mxu1 }
 0x486   : > { %3547 = vst [vmem:[%s6458_s23 + $0xa8] sm:$0xff] %v3515_v31  ;;  %v3390_v50 = vadd.f32 %v6445_v32, %v3351_v11  ;;  %v3352_v34 = vmul.f32 %v6438_v55, %v3292_v1 }
 0x487   : > { %v3488_v46 = vadd.f32 %v3887_v49, %v3392_v17  ;;  %v3393_v62 = vadd.f32 %v6445_v32, %v3354_v63 }
 0x488   : > { %v3486_v28 = vadd.f32 %v3883_v25, %v3390_v50  ;;  %v3391_v3 = vadd.f32 %v6445_v32, %v3352_v34 }
 0x489   : > { %v3520_v15 = vmax.f32 %v3488_v46, 0.0  ;;  %v3489_v54 = vadd.f32 %v3888_v22, %v3393_v62 }
 0x48a   : > { %v3518_v48 = vmax.f32 %v3486_v28, 0.0  ;;  %v3487_v24 = vadd.f32 %v3884_v10, %v3391_v3  ;;  %v4676_v19 = vpop.f32.mrb[172].mxu1 }
 0x48b   : > { %3552 = vst [vmem:[%s6458_s23 + $0xd0] sm:$0xff] %v3520_v15  ;;  %v3521_v26 = vmax.f32 %v3489_v54, 0.0  ;;  %v3357_v52 = vmul.f32 %v4676_v19, %v6438_v55  ;;  %v3305_v39 = vpop.f32.mrb[173].mxu1 }
 0x48c   : > { %3550 = vst [vmem:[%s6458_s23 + $0xc0] sm:$0xff] %v3518_v48  ;;  %v3519_v36 = vmax.f32 %v3487_v24, 0.0  ;;  %v3355_v13 = vmul.f32 %v6438_v55, %v3305_v39  ;;  %v4677_v20 = vpop.f32.mrb[174].mxu1 }
 0x48d   : > { %3553 = vst [vmem:[%s6458_s23 + $0xd8] sm:$0xff] %v3521_v26  ;;  %v3396_v29 = vadd.f32 %v6445_v32, %v3357_v52  ;;  %v3358_v33 = vmul.f32 %v4677_v20, %v6438_v55  ;;  %v3308_v58 = vpop.f32.mrb[175].mxu1 }
 0x48e   : > { %3551 = vst [vmem:[%s6458_s23 + $0xc8] sm:$0xff] %v3519_v36  ;;  %v3394_v53 = vadd.f32 %v6445_v32, %v3355_v13  ;;  %v3356_v44 = vmul.f32 %v6438_v55, %v3308_v58 }
 0x48f   : > { %v3492_v40 = vadd.f32 %v3895_v12, %v3396_v29  ;;  %v3397_v14 = vadd.f32 %v6445_v32, %v3358_v33 }
 0x490   : > { %v3490_v23 = vadd.f32 %v3891_v8, %v3394_v53  ;;  %v3395_v51 = vadd.f32 %v6445_v32, %v3356_v44 }
 0x491   : > { %v3524_v47 = vmax.f32 %v3492_v40, 0.0  ;;  %v3493_v41 = vadd.f32 %v3896_v60, %v3397_v14 }
 0x492   : > { %v3522_v42 = vmax.f32 %v3490_v23, 0.0  ;;  %v3491_v18 = vadd.f32 %v3892_v30, %v3395_v51 }
 0x493   : > { %3556 = vst [vmem:[%s6458_s23 + $0xf0] sm:$0xff] %v3524_v47  ;;  %v3525_v55 = vmax.f32 %v3493_v41, 0.0 }
 0x494   : > { %3554 = vst [vmem:[%s6458_s23 + $0xe0] sm:$0xff] %v3522_v42  ;;  %v3523_v32 = vmax.f32 %v3491_v18, 0.0 }
 0x495   : > { %3557 = vst [vmem:[%s6458_s23 + $0xf8] sm:$0xff] %v3525_v55 }
 0x496   : > { %3555 = vst [vmem:[%s6458_s23 + $0xe8] sm:$0xff] %v3523_v32 }
 0x497   : > { %5026 = shalt.err (!%p5023_p0)
}
 0x498   : > { %s5027_s20 = scalar_lea.hbm %s6562_s30, 4096  ;;  %s5031_s23 = scalar_lea.hbm %s6668_s27, 8192 }
 0x499   : > { %p5028_p4 = scmp.ne.s32.totalorder %s6562_s30, %s5027_s20  ;;  %p5032_p12 = scmp.lt.u32.totalorder %s6562_s30, %s6668_s27 }
 0x49a   : > { %p5033_p1 = scmp.lt.u32.totalorder %s5031_s23, %s5027_s20  ;;  %p5035_p13 = scmp.lt.u32.totalorder %s5027_s20, %s6562_s30 }
 0x49b   : > { %p5029_p2 = pnand %p5028_p4, %p5331_p10 }
 0x49c   : > { %p5034_p11 = por %p5033_p1, %p5032_p12 }
 0x49d   : > { %p5030_p8 = pneg %p5029_p2 }
 0x49e   : > { %p5036_p6 = por %p5035_p13, %p5034_p11 }
 0x4a0   : > { %p5037_p3 = pnand %p5036_p6, %p5030_p8 }
 0x4a2   : > { %5040 = shalt.err (!%p5037_p3)
}
 0x4a3   : > { %s5114_s19 = smov 128   ;;  %s5115_s22 = smov 8  }
 0x4a4   : > { %4708 = dma.vmem_to_hbm [thread:$0]  (%p5331_p10), %s6564_s24, 4096, %s6562_s30, %s3559_s6, %s5114_s19, %s5114_s19, %s5115_s22  }
 0x4a5 PF: > { %s6669_s9 = sld [smem:[#allocation16_spill]]  ;;  %s6670_s13 = sld [smem:[#allocation18_spill]] }
 0x4a6   : > { %p6672_p7 = scmp.ge.s32.totalorder %s5103_s18, 2 }
 0x4ab   : > { %s3590_s16 = sand.u32 1, %s6669_s9   ;;  %p6671_p5 = scmp.ne.s32.totalorder %s6670_s13, 0 }
 0x4ac   : > { %s3591_s12 = scalar_lea.sflag [#allocation5], %s3590_s16 }
 0x4ad   : > { %p4725_p9 = pnand %p6672_p7, %p6671_p5 }
 0x4af   : > { %5078 = dma.done.wait (!%p4725_p9), %s3591_s12, 4096  }
 0x4b0   : > { %5080 = vsyncadd (!%p4725_p9), %s3591_s12, 4294963200  ;;  %s28_s18 = sadd.s32 1, %s5103_s18   ;;  %s6673_s13 = smov %s5087_s14 }
 0x4b1   : > { %p25_p0 = scmp.ge.s32.totalorder %s28_s18, 4   ;;  %s6674_s14 = smov %s5091_s15 }
 0x4b2   : > { %s6675_s15 = smov %s5343_s26  ;;  %s6676_s16 = smov %s5099_s17 }
 0x4b3   : > { %s6677_s17 = smov %s6679_s28  ;;  %27 = sbr.rel (!%p25_p0) target bundleno = 13 (0xd), region = 120 }
 0x4ba   :  { %3596 = vsyncpa [#allocation4], 1 }
 0x4bb   :  { %3598 = vsyncpa [#allocation4 + $0x1], 1 }
 0x4bc   :  { %3599 = vsyncpa [#allocation7], 1 }
 0x4bd   :  { %3600 = vsyncpa [#allocation10], 1 }
 0x4be   :  { %3601 = vsyncpa [#allocation5], 1 }
 0x4bf   :  { %3603 = vsyncpa [#allocation5 + $0x1], 1 }

// kernel: tpu_custom_call.1
= control target key start
LH: loop header
LB: loop body
LE: loop exit
PB: predicated region body
PF: predicated region fallthrough
CT: control target
= control target key end

     0   :  { %s6616_s0 = inlined_call_operand.hbm [shape: bf16[2,16,16,128], index: 0, kind: input, shape index: {}]   ;;  %s6617_s1 = inlined_call_operand.hbm [shape: bf16[128,128], index: 1, kind: input, shape index: {}]   ;;  %s6618_s2 = inlined_call_operand.vmem [shape: f32[1,128], index: 2, kind: input, shape index: {}]   ;;  %s6619_s3 = inlined_call_operand.vmem [shape: f32[1,128], index: 3, kind: input, shape index: {}]   ;;  %s6620_s4 = inlined_call_operand.hbm [shape: bf16[1152,128], index: 4, kind: input, shape index: {}]   ;;  %s6621_s5 = inlined_call_operand.vmem [shape: f32[1,128], index: 5, kind: input, shape index: {}]   ;;  %s6622_s6 = inlined_call_operand.vmem [shape: f32[1,128], index: 6, kind: input, shape index: {}]   ;;  %s6623_s7 = inlined_call_operand.hbm [shape: bf16[128,128], index: 7, kind: input, shape index: {}]   ;;  %s6624_s8 = inlined_call_operand.vmem [shape: f32[1,128], index: 8, kind: input, shape index: {}]   ;;  %s6625_s9 = inlined_call_operand.vmem [shape: f32[1,128], index: 9, kind: input, shape index: {}]   ;;  %s6626_s10 = inlined_call_operand.hbm [shape: f32[2,16,16,128], index: 10, kind: output, shape index: {}]  }
   0x1   :  { %6636 = sst [smem:[#allocation19_spill]] %s6622_s6 }
   0x2   :  { %6637 = sst [smem:[#allocation20_spill]] %s6624_s8 }
   0x3   :  { %6638 = sst [smem:[#allocation21_spill]] %s6625_s9 }
   0x4   :  { %6639 = sst [smem:[#allocation22_spill]] %s6626_s10 }
   0x5   :  { %15 = vsyncpa [#allocation4], 0 }
   0x6   :  { %17 = vsyncpa [#allocation4 + $0x1], 0 }
   0x7   :  { %18 = vsyncpa [#allocation7], 0 }
   0x8   :  { %19 = vsyncpa [#allocation10], 0 }
   0x9   :  { %20 = vsyncpa [#allocation5], 0 }
   0xa   :  { %22 = vsyncpa [#allocation5 + $0x1], 0  ;;  %s5171_s13 = smov 0   ;;  %s5173_s14 = smov 0  }
   0xb   :  { %s5175_s15 = smov 0   ;;  %s5177_s16 = smov 0  }
   0xc   :  { %s5179_s17 = smov 0   ;;  %s5181_s18 = smov 0  }
   0xd LB: > { %6640 = sst [smem:[#allocation16_spill]] %s5083_s13  ;;  %s3694_s19 = sadd.s32 4294967295, %s5103_s18   ;;  %s5103_s18 = sphi %s5181_s18, %s28_s18   ;;  %s5099_s17 = sphi %s5179_s17, %s6677_s17   ;;  %s5095_s16 = sphi %s5177_s16, %s6676_s16   ;;  %s5091_s15 = sphi %s5175_s15, %s6675_s15   ;;  %s5087_s14 = sphi %s5173_s14, %s6674_s14   ;;  %s5083_s13 = sphi %s5171_s13, %s6673_s13  }
   0xe   : > { %6641 = sst [smem:[#allocation17_spill]] %s5095_s16  ;;  %s3695_s20 = sadd.s32 4294967294, %s5103_s18  }
   0xf   : > { %p60_p0 = scmp.ne.s32.totalorder %s5087_s14, %s5083_s13  ;;  %p5205_p1 = scmp.eq.s32.totalorder %s3694_s19, 0 }
  0x10   : > { %p5209_p2 = scmp.eq.s32.totalorder %s3694_s19, 1  ;;  %p281_p3 = scmp.eq.s32.totalorder %s3695_s20, 1 }
  0x11   : > { %s6642_s21 = scalar_select %p5205_p1, 1, 0 }
  0x12   : > { %s6643_s22 = scalar_select %p5209_p2, 1, 0 }
  0x13   : > { %p5215_p4 = por %p5205_p1, %p60_p0  ;;  %p3696_p5 = scmp.ge.s32.totalorder %s5103_s18, 1 }
  0x14   : > { %p5220_p6 = por %p281_p3, %p60_p0  ;;  %p288_p7 = scmp.lt.s32.totalorder %s5103_s18, 3 }
  0x15   : > { %s6644_s23 = scalar_select %p5215_p4, 1, 0 }
  0x16   : > { %s6645_s24 = scalar_select %p5220_p6, 1, 0 }
  0x17   : > { %p5225_p8 = pnand %p3696_p5, %p288_p7  ;;  %s5105_s26 = smov [#allocation6]  }
  0x18   : > { %6646 = sst [smem:[#allocation18_spill]] %s6645_s24  ;;  %s300_s27 = sshll.u32 %s5105_s26, 4  ;;  %s5229_s27 = int_to_ptr.vmem [resolvable:$true] %s300_s27 }
  0x19   : > { %s6647_s25 = scalar_select %p5225_p8, 1, 0 }
  0x1a   : > { %p4710_p9 = pneg %p5225_p8  ;;  %s5106_s29 = smov [#allocation8]  }
  0x1b   : > { %s319_s30 = sshll.u32 %s5106_s29, 4  ;;  %s5107_s11 = smov [#allocation9]   ;;  %s5240_s30 = int_to_ptr.vmem [resolvable:$true] %s319_s30 }
  0x1c   : > { %p5236_p11 = pnand %p4710_p9, %p5205_p1  ;;  %s5242_s12 = sshll.u32 %s5107_s11, 4  ;;  %s339_s12 = int_to_ptr.vmem [resolvable:$true] %s5242_s12 }
  0x1d   : > { %s4899_s26 = scalar_lea.hbm %s6617_s1, 1024 }
  0x1e   : > { %p4900_p12 = scmp.ne.s32.totalorder %s6617_s1, %s4899_s26  ;;  %p5252_p13 = pneg %p5236_p11 }
  0x1f   : > { %p4906_p5 = scmp.lt.u32.totalorder %s4899_s26, %s6617_s1 }
  0x20   : > { %p4902_p0 = pnand %p5252_p13, %p4900_p12 }
  0x22   : > { %p4903_p3 = pneg %p4902_p0 }
  0x24   : > { %p4908_p7 = pnand %p4906_p5, %p4903_p3 }
  0x26   : > { %4911 = shalt.err (!%p4908_p7)
}
  0x27   : > { %s4912_s13 = scalar_lea.vmem %s5229_s27, 1024  ;;  %p4920_p1 = scmp.lt.s32.totalorder %s5229_s27, %s5229_s27 }
  0x28   : > { %p4913_p9 = scmp.ne.s32.totalorder %s5229_s27, %s4912_s13  ;;  %p4921_p4 = scmp.lt.s32.totalorder %s4912_s13, %s4912_s13 }
  0x2a   : > { %p4915_p10 = pnand %p4913_p9, %p5252_p13  ;;  %p4922_p12 = por %p4921_p4, %p4920_p1 }
  0x2c   : > { %p4916_p6 = pneg %p4915_p10 }
  0x2e   : > { %p4923_p0 = pnand %p4922_p12, %p4916_p6 }
  0x30   : > { %4926 = shalt.err (!%p4923_p0)
}
  0x31   : > { %s5108_s24 = smov 64   ;;  %s5109_s19 = smov 4  }
  0x32   : > { %4713 = dma.hbm_to_vmem [thread:$0]  (!%p5236_p11), %s6617_s1, 1024, %s5229_s27, [#allocation7], %s5108_s24, %s5108_s24, %s5109_s19  }
  0x33   : > { %s4927_s13 = scalar_lea.hbm %s6620_s4, 9216 }
  0x34   : > { %p4928_p1 = scmp.ne.s32.totalorder %s6620_s4, %s4927_s13  ;;  %p4934_p10 = scmp.lt.u32.totalorder %s4927_s13, %s6620_s4 }
  0x36   : > { %p4930_p4 = pnand %p4928_p1, %p5252_p13 }
  0x38   : > { %p4931_p6 = pneg %p4930_p4 }
  0x3a   : > { %p4936_p3 = pnand %p4934_p10, %p4931_p6 }
  0x3c   : > { %4939 = shalt.err (!%p4936_p3)
}
  0x3d   : > { %s4940_s27 = scalar_lea.vmem %s5240_s30, 9216  ;;  %p4948_p12 = scmp.lt.s32.totalorder %s5240_s30, %s5240_s30 }
  0x3e   : > { %p4941_p5 = scmp.ne.s32.totalorder %s5240_s30, %s4940_s27  ;;  %p4949_p0 = scmp.lt.s32.totalorder %s4940_s27, %s4940_s27 }
  0x40   : > { %p4943_p7 = pnand %p4941_p5, %p5252_p13  ;;  %p4950_p1 = por %p4949_p0, %p4948_p12 }
  0x42   : > { %p4944_p9 = pneg %p4943_p7 }
  0x44   : > { %p4951_p4 = pnand %p4950_p1, %p4944_p9 }
  0x46   : > { %4954 = shalt.err (!%p4951_p4)
}
  0x47   : > { %4716 = dma.hbm_to_vmem [thread:$0]  (!%p5236_p11), %s6620_s4, 9216, %s5240_s30, [#allocation7], %s5108_s24, %s5108_s24, %s5109_s19  }
  0x48   : > { %s4955_s20 = scalar_lea.hbm %s6623_s7, 1024 }
  0x49   : > { %p4956_p6 = scmp.ne.s32.totalorder %s6623_s7, %s4955_s20  ;;  %p4962_p5 = scmp.lt.u32.totalorder %s4955_s20, %s6623_s7 }
  0x4b   : > { %p4958_p10 = pnand %p4956_p6, %p5252_p13 }
  0x4d   : > { %p4959_p3 = pneg %p4958_p10 }
  0x4f   : > { %p4964_p7 = pnand %p4962_p5, %p4959_p3 }
  0x51   : > { %4967 = shalt.err (!%p4964_p7)
}
  0x52   : > { %s4968_s27 = scalar_lea.vmem %s339_s12, 1024  ;;  %p4976_p1 = scmp.lt.s32.totalorder %s339_s12, %s339_s12 }
  0x53   : > { %p4969_p9 = scmp.ne.s32.totalorder %s339_s12, %s4968_s27  ;;  %p4977_p4 = scmp.lt.s32.totalorder %s4968_s27, %s4968_s27 }
  0x55   : > { %p4971_p12 = pnand %p4969_p9, %p5252_p13  ;;  %p4978_p8 = por %p4977_p4, %p4976_p1 }
  0x57   : > { %p4972_p0 = pneg %p4971_p12 }
  0x59   : > { %p4979_p2 = pnand %p4978_p8, %p4972_p0 }
  0x5b   : > { %4982 = shalt.err (!%p4979_p2)
}
  0x5c   : > { %4719 = dma.hbm_to_vmem [thread:$0]  (!%p5236_p11), %s6623_s7, 1024, %s339_s12, [#allocation10], %s5108_s24, %s5108_s24, %s5109_s19  }
  0x5d   : > { %s47_s10 = sadd.s32 1, %s5091_s15  ;;  %s40_s28 = sadd.s32 1, %s5099_s17 }
  0x5e   : > { %p54_p2 = scmp.ne.s32.totalorder %s5091_s15, %s5087_s14  ;;  %p42_p8 = scmp.ge.s32.totalorder %s40_s28, 2 }
  0x5f   : > { %p55_p13 = scmp.eq.s32.totalorder %s5103_s18, 0  ;;  %p6650_p6 = scmp.ne.s32.totalorder %s6643_s22, 0 }
  0x60   : > { %p4731_p3 = scmp.lt.s32.totalorder %s5103_s18, 2  ;;  %s6679_s28 = smov (%p42_p8, %s40_s28), 0 }
  0x61   : > { %p5331_p10 = por %p6650_p6, %p54_p2  ;;  %p56_p5 = por %p55_p13, %p54_p2 }
  0x62   : > { %s358_s9 = sand.u32 1, %s5091_s15   ;;  %s44_s16 = ssub.s32 %s5099_s17, %s6679_s28 }
  0x63   : > { %p45_p7 = scmp.eq.s32.totalorder %s44_s16, 0  ;;  %s3701_s12 = sshll.u32 %s358_s9, 7 }
  0x64   : > { %s3831_s20 = sshll.u32 %s5099_s17, 11  ;;  %s362_s13 = scalar_lea.vmem [#allocation3], %s3701_s12 }
  0x65   : > { %s5343_s26 = scalar_select %p45_p7, %s5091_s15, %s47_s10  }
  0x66   : > { %s5348_s22 = scalar_lea.hbm %s6616_s0, %s3831_s20  ;;  %s369_s27 = sshll.u32 %s362_s13, 4  ;;  %s5350_s27 = int_to_ptr.vmem [resolvable:$true] %s369_s27 }
  0x67   : > { %p5354_p11 = pnand %p4731_p3, %p56_p5  ;;  %s5358_s6 = scalar_lea.sflag [#allocation4], %s358_s9 }
  0x68   : > { %s4983_s10 = scalar_lea.hbm %s5348_s22, 2048  ;;  %s4988_s20 = scalar_lea.hbm %s6616_s0, 4096 }
  0x69   : > { %p4984_p9 = scmp.ne.s32.totalorder %s5348_s22, %s4983_s10  ;;  %p4985_p12 = pneg %p5354_p11 }
  0x6a   : > { %p4989_p4 = scmp.lt.u32.totalorder %s5348_s22, %s6616_s0  ;;  %p4990_p2 = scmp.lt.u32.totalorder %s4988_s20, %s4983_s10 }
  0x6b   : > { %p4986_p0 = pnand %p4985_p12, %p4984_p9  ;;  %p4992_p13 = scmp.lt.u32.totalorder %s4983_s10, %s5348_s22 }
  0x6c   : > { %p4991_p8 = por %p4990_p2, %p4989_p4 }
  0x6d   : > { %p4987_p1 = pneg %p4986_p0 }
  0x6e   : > { %p4993_p6 = por %p4992_p13, %p4991_p8 }
  0x70   : > { %p4994_p3 = pnand %p4993_p6, %p4987_p1 }
  0x72   : > { %4997 = shalt.err (!%p4994_p3)
}
  0x73   : > { %s4998_s9 = scalar_lea.vmem %s5350_s27, 2048  ;;  %s5110_s13 = smov [#allocation3]  }
  0x74   : > { %p4999_p5 = scmp.ne.s32.totalorder %s5350_s27, %s4998_s9  ;;  %s5003_s16 = sshll.u32 %s5110_s13, 4  ;;  %s5004_s16 = int_to_ptr.vmem [resolvable:$false] %s5003_s16 }
  0x75   : > { %s5005_s12 = scalar_lea.vmem %s5004_s16, 4096  ;;  %p5006_p0 = scmp.lt.s32.totalorder %s5350_s27, %s5004_s16 }
  0x76   : > { %p5001_p7 = pnand %p4999_p5, %p4985_p12  ;;  %p5007_p4 = scmp.lt.s32.totalorder %s5005_s12, %s4998_s9 }
  0x78   : > { %p5002_p9 = pneg %p5001_p7  ;;  %p5008_p2 = por %p5007_p4, %p5006_p0 }
  0x7a   : > { %p5009_p8 = pnand %p5008_p2, %p5002_p9 }
  0x7c   : > { %5012 = shalt.err (!%p5009_p8)
}
  0x7d   : > { %4723 = dma.hbm_to_vmem [thread:$0]  (!%p5354_p11), %s5348_s22, 2048, %s5350_s27, %s5358_s6, %s5108_s24, %s5108_s24, %s5109_s19  }
  0x7e   : > { %p6653_p12 = scmp.ne.s32.totalorder %s6647_s25, 0 }
  0x7f   : > { %s5392_s10 = sand.u32 (!%p6653_p12), 1, %s5087_s14   ;;  %p6654_p1 = scmp.ne.s32.totalorder (!%p6653_p12), %s6644_s23, 0 }
  0x80   : > { %381 = sbr.rel (%p6653_p12) target bundleno = 1189 (0x4a5), region = 60  ;;  %s3705_s20 = sshll.u32 (!%p6653_p12), %s5392_s10, 7 }
  0x81   : > { %s384_s29 = scalar_lea.sflag (!%p6653_p12), [#allocation4], %s5392_s10  ;;  %s5396_s11 = scalar_lea.vmem (!%p6653_p12), [#allocation3], %s3705_s20 }
  0x87   : > { %5066 = dma.done.wait (%p6654_p1), %s384_s29, 2048  }
  0x88   : > { %5068 = vsyncadd (%p6654_p1), %s384_s29, 4294965248  ;;  %p6655_p11 = scmp.ne.s32.totalorder %s6642_s21, 0 }
  0x8a   : > { %5070 = dma.done.wait (%p6655_p11), [#allocation7], 10240  }
  0x8b   : > { %5072 = vsyncadd (%p6655_p11), [#allocation7], 4294957056 }
  0x8c   : > { %5074 = dma.done.wait (%p6655_p11), [#allocation10], 1024  }
  0x8d   : > { %5076 = vsyncadd (%p6655_p11), [#allocation10], 4294966272  ;;  %v4793_v0 = vld [vmem:[#allocation6] sm:$0xff]   ;;  %v4794_v1 = vld [vmem:[#allocation6 + $0x8] sm:$0xff]   ;;  %v1233_v60 = vlaneseq  ;;  %vm5111_vm3 = vmmov 1   ;;  %vm1155_vm7 = vcmask 1040384  }
  0x8e   : > { %4530 = vmatprep.subr.bf16.mxu0 %v4793_v0  ;;  %v4795_v2 = vld [vmem:[#allocation6 + $0x10] sm:$0xff]   ;;  %v4796_v3 = vld [vmem:[#allocation6 + $0x18] sm:$0xff]   ;;  %v4801_v4 = vld [vmem:[%s5396_s11] sm:$0xff]   ;;  %vm993_vm6 = vsmask.f32 256  ;;  %vm1230_vm12 = vcmask 1047552  }
  0x8f   : > { %4531 = vmatpush3.bf16.msra.mxu0 %v4793_v0  ;;  %4546 = vmatprep.mubr.bf16.mxu0 %v4801_v4  ;;  %v4797_v5 = vld [vmem:[#allocation6 + $0x20] sm:$0xff]   ;;  %v4798_v6 = vld [vmem:[#allocation6 + $0x28] sm:$0xff]   ;;  %v4799_v7 = vld [vmem:[#allocation6 + $0x30] sm:$0xff]   ;;  %v1234_v61 = vshrl.u32 %v1233_v60, 7  ;;  %vm1158_vm9 = vsmask.f32 7424 }
  0x90   : > { %4532 = vmatprep.subr.bf16.mxu0 %v4794_v1  ;;  %v4800_v8 = vld [vmem:[#allocation6 + $0x38] sm:$0xff]   ;;  %v4819_v9 = vld [vmem:[#allocation8 + $0xc0] sm:$0xff]   ;;  %v4803_v11 = vld [vmem:[%s5396_s11 + $0x8] sm:$0xff]   ;;  %s6664_s6 = sld [smem:[#allocation19_spill]]  ;;  %s6665_s16 = sld [smem:[#allocation20_spill]] }
  0x91   : > { %v4802_v10 = vld [vmem:[%s5396_s11] sm:$0xff]   ;;  %v4821_v13 = vld [vmem:[#allocation8 + $0xc8] sm:$0xff]   ;;  %v4823_v15 = vld [vmem:[#allocation8 + $0xd0] sm:$0xff]   ;;  %v1235_v63 = vadd.s32 8, %v1234_v61  ;;  %vm1236_vm0 = vcmp.ge.s32.totalorder %v1234_v61, 1  ;;  %s6666_s29 = sld [smem:[#allocation21_spill]] }
  0x92   : > { %v4820_v12 = vld [vmem:[#allocation8 + $0x80] sm:$0xff]   ;;  %v4822_v14 = vld [vmem:[#allocation8 + $0x88] sm:$0xff]   ;;  %v4804_v16 = vld [vmem:[%s5396_s11 + $0x10] sm:$0xff]   ;;  %s3709_s21 = sshll.u32 %s5392_s10, 8  ;;  %s6667_s25 = sld [smem:[#allocation17_spill]] }
  0x93   : > { %4533 = vmatpush3.bf16.msra.mxu0 %v4794_v1  ;;  %v4829_v17 = vld [vmem:[#allocation8 + $0x40] sm:$0xff]   ;;  %v4805_v18 = vld [vmem:[%s5396_s11 + $0x18] sm:$0xff]   ;;  %v4824_v19 = vld [vmem:[#allocation8 + $0x90] sm:$0xff]   ;;  %vm1269_vm1 = vcmp.le.s32.totalorder %v1235_v63, 14  ;;  %s6458_s23 = scalar_lea.vmem [#allocation11], %s3709_s21  ;;  %s6668_s27 = sld [smem:[#allocation22_spill]] }
  0x94   : > { %4534 = vmatprep.subr.bf16.mxu0 %v4795_v2  ;;  %v4830_v20 = vld [vmem:[#allocation8] sm:$0xff]   ;;  %4034 = vmatprep.subr.bf16.mxu1 %v4829_v17  ;;  %v4831_v21 = vld [vmem:[#allocation8 + $0x48] sm:$0xff]   ;;  %v4825_v22 = vld [vmem:[#allocation8 + $0xd8] sm:$0xff]   ;;  %s3575_s24 = sshll.u32 %s6458_s23, 4  ;;  %s5113_s13 = smov [#allocation11]   ;;  %s6564_s24 = int_to_ptr.vmem [resolvable:$true] %s3575_s24 }
  0x95   : > { %4035 = vmatpush3.bf16.msra.mxu1 %v4830_v20  ;;  %v4833_v23 = vld [vmem:[#allocation8 + $0x8] sm:$0xff]   ;;  %v4826_v24 = vld [vmem:[#allocation8 + $0x98] sm:$0xff]   ;;  %v4827_v25 = vld [vmem:[#allocation8 + $0xe0] sm:$0xff]   ;;  %s5013_s9 = scalar_lea.vmem %s6564_s24, 4096 }
  0x96   : > { %4036 = vmatprep.subr.bf16.mxu1 %v4831_v21  ;;  %v4835_v26 = vld [vmem:[#allocation8 + $0x50] sm:$0xff]   ;;  %v4806_v28 = vld [vmem:[%s5396_s11 + $0x20] sm:$0xff]   ;;  %v4807_v29 = vld [vmem:[%s5396_s11 + $0x28] sm:$0xff]   ;;  %p5014_p13 = scmp.ne.s32.totalorder %s6564_s24, %s5013_s9 }
  0x97   : > { %4535 = vmatpush3.bf16.msra.mxu0 %v4795_v2  ;;  %v4836_v27 = vld [vmem:[#allocation8 + $0x10] sm:$0xff]   ;;  %v4828_v30 = vld [vmem:[#allocation8 + $0xa0] sm:$0xff]   ;;  %v4832_v31 = vld [vmem:[#allocation8 + $0xe8] sm:$0xff]  }
  0x98   : > { %4536 = vmatprep.subr.bf16.mxu0 %v4796_v3  ;;  %v4834_v32 = vld [vmem:[#allocation8 + $0xa8] sm:$0xff]   ;;  %v4808_v33 = vld [vmem:[%s5396_s11 + $0x30] sm:$0xff]   ;;  %v4809_v34 = vld [vmem:[%s5396_s11 + $0x38] sm:$0xff]   ;;  %p5015_p6 = pnand %p5014_p13, %p5331_p10 }
  0x99   : > { %4037 = vmatpush3.bf16.msra.mxu1 %v4833_v23  ;;  %v4810_v35 = vld [vmem:[%s5396_s11 + $0x40] sm:$0xff]   ;;  %v4811_v36 = vld [vmem:[%s5396_s11 + $0x48] sm:$0xff]   ;;  %v4812_v37 = vld [vmem:[%s5396_s11 + $0x50] sm:$0xff]  }
  0x9a   : > { %4038 = vmatprep.subr.bf16.mxu1 %v4835_v26  ;;  %v4813_v38 = vld [vmem:[%s5396_s11 + $0x58] sm:$0xff]   ;;  %v4814_v39 = vld [vmem:[%s5396_s11 + $0x60] sm:$0xff]   ;;  %v4815_v40 = vld [vmem:[%s5396_s11 + $0x68] sm:$0xff]   ;;  %p5016_p3 = pneg %p5015_p6 }
  0x9b   : > { %4537 = vmatpush3.bf16.msra.mxu0 %v4796_v3  ;;  %v4816_v41 = vld [vmem:[%s5396_s11 + $0x70] sm:$0xff]   ;;  %v4817_v42 = vld [vmem:[%s5396_s11 + $0x78] sm:$0xff]   ;;  %v4841_v46 = vld [vmem:[#allocation8 + $0x60] sm:$0xff]  }
  0x9c   : > { %4538 = vmatprep.subr.bf16.mxu0 %v4797_v5  ;;  %v4818_v43 = vld [vmem:[%s5396_s11 + $0x78] sm:$0xff]   ;;  %v4842_v47 = vld [vmem:[#allocation8 + $0x20] sm:$0xff]   ;;  %v4843_v48 = vld [vmem:[#allocation8 + $0x68] sm:$0xff]  }
  0x9d   : > { %4039 = vmatpush3.bf16.msra.mxu1 %v4836_v27  ;;  %v4837_v44 = vld [vmem:[#allocation8 + $0x58] sm:$0xff]   ;;  %v4844_v49 = vld [vmem:[#allocation8 + $0x28] sm:$0xff]   ;;  %v4839_v50 = vld [vmem:[#allocation8 + $0xf0] sm:$0xff]  }
  0x9e   : > { %v4838_v45 = vld [vmem:[#allocation8 + $0x18] sm:$0xff]   ;;  %4040 = vmatprep.subr.bf16.mxu1 %v4837_v44  ;;  %v4840_v51 = vld [vmem:[#allocation8 + $0xb0] sm:$0xff]   ;;  %v4851_v58 = vld [vmem:[#allocation8 + $0x1c0] sm:$0xff]  }
  0x9f   : > { %4539 = vmatpush3.bf16.msra.mxu0 %v4797_v5  ;;  %v4847_v52 = vld [vmem:[#allocation8 + $0x70] sm:$0xff]   ;;  %v4845_v54 = vld [vmem:[#allocation8 + $0xf8] sm:$0xff]   ;;  %v4855_v59 = vld [vmem:[#allocation8 + $0x140] sm:$0xff]  }
  0xa0   : > { %4540 = vmatprep.subr.bf16.mxu0 %v4798_v6  ;;  %v4848_v53 = vld [vmem:[#allocation8 + $0x30] sm:$0xff]   ;;  %v4849_v55 = vld [vmem:[#allocation8 + $0x78] sm:$0xff]   ;;  %v5431_v62 = vld [vmem:[%s6618_s2] ss:$0 sm:$0xff] }
  0xa1   : > { %4041 = vmatpush3.bf16.msra.mxu1 %v4838_v45  ;;  %v4846_v56 = vld [vmem:[#allocation8 + $0xb8] sm:$0xff]   ;;  %v5436_v1 = vld [vmem:[%s6619_s3] ss:$0 sm:$0xff]  ;;  %vm1242_vm2 = vmpackc.low %vm1236_vm0, %vm1236_vm0 }
  0xa2   : > { %4042 = vmatprep.subr.bf16.mxu1 %v4841_v46  ;;  %v4850_v57 = vld [vmem:[#allocation8 + $0x38] sm:$0xff]   ;;  %vm1243_vm4 = vmpackc.low %vm5111_vm3, %vm5111_vm3 }
  0xa3   : > { %4541 = vmatpush3.bf16.msra.mxu0 %v4798_v6  ;;  %vm1275_vm5 = vmpackc.low %vm1269_vm1, %vm1269_vm1 }
  0xa4   : > { %4542 = vmatprep.subr.bf16.mxu0 %v4799_v7  ;;  %vm5471_vm10 = vmand %vm1155_vm7, %vm993_vm6 }
  0xa5   : > { %4043 = vmatpush3.bf16.msra.mxu1 %v4842_v47  ;;  %vm1231_vm13 = vmand %vm1230_vm12, %vm1158_vm9 }
  0xa6   : > { %4044 = vmatprep.subr.bf16.mxu1 %v4843_v48 }
  0xa7   : > { %4543 = vmatpush3.bf16.msra.mxu0 %v4799_v7 }
  0xa8   : > { %4544 = vmatprep.subr.bf16.mxu0 %v4800_v8 }
  0xa9   : > { %4045 = vmatpush3.bf16.msra.mxu1 %v4844_v49 }
  0xaa   : > { %4046 = vmatprep.subr.bf16.mxu1 %v4847_v52 }
  0xab   : > { %4545 = vmatpush3.bf16.msra.mxu0 %v4800_v8 }
  0xac   : > { %4146 = vmatprep.subr.bf16.mxu0 %v4819_v9 }
  0xad   : > { %4047 = vmatpush3.bf16.msra.mxu1 %v4848_v53 }
  0xae   : > { %4547 = vmatmul.mubr.bf16.vlgmr.msra.gmra.mrb[0].mxu0 %v4802_v10  ;;  %4048 = vmatprep.subr.bf16.mxu1 %v4849_v55 }
  0xaf   : > { %4550 = vmatprep.mubr.bf16.mxu0 %v4803_v11  ;;  %4147 = vmatpush3.bf16.msra.mxu0 %v4820_v12 }
  0xb0   : > { %4148 = vmatprep.subr.bf16.mxu0 %v4821_v13 }
  0xb1   : > { %4049 = vmatpush3.bf16.msra.mxu1 %v4850_v57 }
  0xb2   : > { %4258 = vmatprep.subr.bf16.mxu1 %v4855_v59 }
  0xb3   : > { %4149 = vmatpush3.bf16.msra.mxu0 %v4822_v14 }
  0xb4   : > { %4150 = vmatprep.subr.bf16.mxu0 %v4823_v15 }
  0xb6   : > { %4551 = vmatmul.mubr.bf16.gmra.mrb[4].mxu0 %v4804_v16 }
  0xb7   : > { %4554 = vmatprep.mubr.bf16.mxu0 %v4805_v18  ;;  %4151 = vmatpush3.bf16.msra.mxu0 %v4824_v19  ;;  %v5112_v18 = vmov 0  }
  0xb8   : > { %4152 = vmatprep.subr.bf16.mxu0 %v4825_v22  ;;  %v1244_v19 = vsel %vm1242_vm2, 65537, %v5112_v18  ;;  %v1245_v20 = vsel %vm1243_vm4, 65537, %v5112_v18 }
  0xbb   : > { %4153 = vmatpush3.bf16.msra.mxu0 %v4826_v24  ;;  %v1277_v24 = vsel %vm1275_vm5, 65537, %v5112_v18 }
  0xbc   : > { %4154 = vmatprep.subr.bf16.mxu0 %v4827_v25 }
  0xbe   : > { %4555 = vmatmul.mubr.bf16.gmra.mrb[8].mxu0 %v4806_v28 }
  0xbf   : > { %4558 = vmatprep.mubr.bf16.mxu0 %v4807_v29  ;;  %4155 = vmatpush3.bf16.msra.mxu0 %v4828_v30 }
  0xc0   : > { %4156 = vmatprep.subr.bf16.mxu0 %v4832_v31 }
  0xc3   : > { %4157 = vmatpush3.bf16.msra.mxu0 %v4834_v32 }
  0xc4   : > { %4158 = vmatprep.subr.bf16.mxu0 %v4839_v50 }
  0xc6   : > { %4559 = vmatmul.mubr.bf16.gmra.mrb[12].mxu0 %v4808_v33  ;;  %v3740_v33 = vcombine.low %v1244_v19, %v1245_v20 }
  0xc7   : > { %4562 = vmatprep.mubr.bf16.mxu0 %v4809_v34  ;;  %4159 = vmatpush3.bf16.msra.mxu0 %v4840_v51 }
  0xc8   : > { %4160 = vmatprep.subr.bf16.mxu0 %v4845_v54  ;;  %vm5463_vm8 = vcmp.ne.s16.totalorder %v3740_v33, 0 }
  0xcb   : > { %4161 = vmatpush3.bf16.msra.mxu0 %v4846_v56 }
  0xcc   : > { %4370 = vmatprep.subr.bf16.mxu0 %v4851_v58 }
  0xce   : > { %4563 = vmatmul.mubr.bf16.gmra.mrb[16].mxu0 %v4810_v35 }
  0xcf   : > { %4566 = vmatprep.mubr.bf16.mxu0 %v4811_v36 }
  0xd6   : > { %4567 = vmatmul.mubr.bf16.gmra.mrb[20].mxu0 %v4812_v37  ;;  %v3741_v37 = vcombine.low %v1245_v20, %v1277_v24 }
  0xd7   : > { %4570 = vmatprep.mubr.bf16.mxu0 %v4813_v38 }
  0xd8   : > { %vm5475_vm11 = vcmp.ne.s16.totalorder %v3741_v37, 0  ;;  %v4863_v37 = vld [vmem:[#allocation8 + $0x150] sm:$0xff]  }
  0xde   : > { %4571 = vmatmul.mubr.bf16.gmra.mrb[24].mxu0 %v4814_v39 }
  0xdf   : > { %4574 = vmatprep.mubr.bf16.mxu0 %v4815_v40 }
  0xe6   : > { %4575 = vmatmul.mubr.bf16.gmra.mrb[28].mxu0 %v4816_v41 }
  0xe7   : > { %4578 = vmatprep.mubr.bf16.mxu0 %v4817_v42 }
  0xee   : > { %4579 = vmatmul.mubr.bf16.gmra.mrb[32].mxu0 %v4818_v43 }
 0x181   : > { %v4548_v0 = vpop.f32.mrb[0].mxu0 }
 0x182   : > { %v850_v2 = vmul.f32 %v4548_v0, %v5431_v62  ;;  %v698_v3 = vpop.f32.mrb[1].mxu0 }
 0x183   : > { %v848_v4 = vmul.f32 %v5431_v62, %v698_v3  ;;  %v4549_v5 = vpop.f32.mrb[2].mxu0 }
 0x184   : > { %v893_v6 = vadd.f32 %v5436_v1, %v850_v2  ;;  %v851_v7 = vmul.f32 %v4549_v5, %v5431_v62  ;;  %v701_v8 = vpop.f32.mrb[3].mxu0 }
 0x185   : > { %v891_v9 = vadd.f32 %v5436_v1, %v848_v4  ;;  %v849_v10 = vmul.f32 %v5431_v62, %v701_v8  ;;  %v4857_v8 = vld [vmem:[#allocation8 + $0x100] sm:$0xff]  }
 0x186   : > { %v894_v11 = vadd.f32 %v5436_v1, %v851_v7  ;;  %v929_v14 = vmax.f32 %v893_v6, 0.0  ;;  %v4852_v6 = vld [vmem:[#allocation8 + $0x180] sm:$0xff]  }
 0x187   : > { %v927_v12 = vmax.f32 %v891_v9, 0.0  ;;  %v892_v13 = vadd.f32 %v5436_v1, %v849_v10 }
 0x188   : > { %v930_v15 = vmax.f32 %v894_v11, 0.0 }
 0x189   : > { %v928_v16 = vmax.f32 %v892_v13, 0.0  ;;  %v4552_v17 = vpop.f32.mrb[4].mxu0  ;;  %v970_v25 = vmul.f32 0.0, %v927_v12  ;;  %v4853_v13 = vld [vmem:[#allocation8 + $0x1c8] sm:$0xff]  }
 0x18a   : > { %v5446_v21 = vpack.c.bf16 %v930_v15, %v929_v14  ;;  %v854_v22 = vmul.f32 %v4552_v17, %v5431_v62  ;;  %v714_v23 = vpop.f32.mrb[5].mxu0  ;;  %v4859_v14 = vld [vmem:[#allocation8 + $0x148] sm:$0xff]  }
 0x18b   : > { %v971_v26 = vmul.f32 0.0, %v928_v16  ;;  %v852_v27 = vmul.f32 %v5431_v62, %v714_v23  ;;  %v4553_v28 = vpop.f32.mrb[6].mxu0 }
 0x18c   : > { %v897_v29 = vadd.f32 %v5436_v1, %v854_v22  ;;  %v855_v30 = vmul.f32 %v4553_v28, %v5431_v62  ;;  %v717_v31 = vpop.f32.mrb[7].mxu0  ;;  %v1002_v32 = vshrl.u32 %v5446_v21, 16  ;;  %v1005_v41 = vshll.u32 %v5446_v21, 16 }
 0x18d   : > { %v895_v34 = vadd.f32 %v5436_v1, %v852_v27  ;;  %v853_v35 = vmul.f32 %v5431_v62, %v717_v31  ;;  %v975_v36 = vpack.c.bf16 %v971_v26, %v970_v25  ;;  %v4854_v25 = vld [vmem:[#allocation8 + $0x188] sm:$0xff]  }
 0x18e   : > { %v933_v38 = vmax.f32 %v897_v29, 0.0  ;;  %v898_v39 = vadd.f32 %v5436_v1, %v855_v30  ;;  %v5458_v40 = vrot.slane %v1002_v32, 7  ;;  %v1161_v56 = vrot.slane %v1005_v41, 1  ;;  %v4856_v30 = vld [vmem:[#allocation8 + $0x1d0] sm:$0xff]   ;;  %v4861_v31 = vld [vmem:[#allocation8 + $0x108] sm:$0xff]  }
 0x18f   : > { %v896_v42 = vadd.f32 %v5436_v1, %v853_v35  ;;  %v995_v43 = vshrl.u32 %v975_v36, 16  ;;  %2196 = vmatprep.mubr.bf16.mxu1 %v975_v36  ;;  %v998_v44 = vshll.u32 %v975_v36, 16  ;;  %v931_v48 = vmax.f32 %v895_v34, 0.0 }
 0x190   : > { %v934_v45 = vmax.f32 %v898_v39, 0.0  ;;  %v1007_v46 = vor.u32 %v1005_v41, %v5458_v40 }
 0x191   : > { %v932_v49 = vmax.f32 %v896_v42, 0.0  ;;  %v4556_v50 = vpop.f32.mrb[8].mxu0  ;;  %v997_v51 = vrot.slane %v995_v43, 7  ;;  %v1159_v52 = vrot.slane %v998_v44, 1 }
 0x192   : > { %v5467_v53 = vpack.c.bf16 %v934_v45, %v933_v38  ;;  %v858_v54 = vmul.f32 %v4556_v50, %v5431_v62  ;;  %v730_v55 = vpop.f32.mrb[9].mxu0 }
 0x193   : > { %v5479_v59 = vpack.c.bf16 %v932_v49, %v931_v48  ;;  %v856_v60 = vmul.f32 %v5431_v62, %v730_v55  ;;  %v4557_v61 = vpop.f32.mrb[10].mxu0  ;;  %v5483_v63 = vsel %vm993_vm6, %v997_v51, %v1007_v46  ;;  %v1000_v0 = vor.u32 %v998_v44, %v997_v51  ;;  %v4858_v49 = vld [vmem:[#allocation8 + $0x190] sm:$0xff]  }
 0x194   : > { %v901_v2 = vadd.f32 %v5436_v1, %v858_v54  ;;  %v859_v3 = vmul.f32 %v4557_v61, %v5431_v62  ;;  %v733_v4 = vpop.f32.mrb[11].mxu0  ;;  %3928 = vmatprep.mubr.msk.bf16.mxu0 %vm5463_vm8, %v5483_v63  ;;  %v1160_v5 = vor.u32 %v1159_v52, %v995_v43  ;;  %v1018_v7 = vshrl.u32 %v5467_v53, 16  ;;  %v4860_v52 = vld [vmem:[#allocation8 + $0x1d8] sm:$0xff]   ;;  %v4865_v54 = vld [vmem:[#allocation8 + $0x110] sm:$0xff]  }
 0x195   : > { %v899_v9 = vadd.f32 %v5436_v1, %v856_v60  ;;  %v857_v10 = vmul.f32 %v5431_v62, %v733_v4  ;;  %v1157_v11 = vsel %vm5471_vm10, 0, %v1000_v0  ;;  %v1010_v12 = vshrl.u32 %v5479_v59, 16 }
 0x196   : > { %v937_v15 = vmax.f32 %v901_v2, 0.0  ;;  %v902_v16 = vadd.f32 %v5436_v1, %v859_v3  ;;  %3912 = vmatmul.mubr.msk.bf16.vlgmr.msra.gmra.mrb[0].mxu1 %vm5463_vm8, %v1157_v11  ;;  %v1162_v17 = vsel %vm1158_vm9, %v1160_v5, %v1161_v56  ;;  %v1013_v18 = vshll.u32 %v5479_v59, 16  ;;  %v4862_v3 = vld [vmem:[#allocation8 + $0x198] sm:$0xff]  }
 0x197   : > { %v935_v19 = vmax.f32 %v899_v9, 0.0  ;;  %v900_v20 = vadd.f32 %v5436_v1, %v857_v10  ;;  %3929 = vmatmul.mubr.msk.bf16.vlgmr.msra.gmra.mrb[36].mxu0 %vm5475_vm11, %v1162_v17  ;;  %2204 = vmatprep.mubr.bf16.mxu1 %v5446_v21  ;;  %v1012_v22 = vrot.slane %v1010_v12, 7  ;;  %v5509_v23 = vrot.slane %v1018_v7, 7  ;;  %v4869_v9 = vld [vmem:[#allocation8 + $0x118] sm:$0xff]  }
 0x198   : > { %v938_v24 = vmax.f32 %v902_v16, 0.0  ;;  %4371 = vmatpush3.bf16.msra.mxu0 %v4852_v6  ;;  %4259 = vmatpush3.bf16.msra.mxu1 %v4857_v8  ;;  %v1021_v29 = vshll.u32 %v5467_v53, 16  ;;  %v1164_v36 = vrot.slane %v1013_v18, 1  ;;  %v1163_v48 = vor.u32 %v1161_v56, %v1002_v32  ;;  %v4867_v56 = vld [vmem:[#allocation8 + $0x158] sm:$0xff]   ;;  %v4864_v8 = vld [vmem:[#allocation8 + $0x1e0] sm:$0xff]  }
 0x199   : > { %v936_v26 = vmax.f32 %v900_v20, 0.0  ;;  %v4560_v27 = vpop.f32.mrb[12].mxu0  ;;  %v1015_v28 = vor.u32 %v1013_v18, %v1012_v22  ;;  %4372 = vmatprep.subr.bf16.mxu0 %v4853_v13  ;;  %4260 = vmatprep.subr.bf16.mxu1 %v4859_v14 }
 0x19a   : > { %v5512_v33 = vpack.c.bf16 %v938_v24, %v937_v15  ;;  %v862_v34 = vmul.f32 %v4560_v27, %v5431_v62  ;;  %v746_v35 = vpop.f32.mrb[13].mxu0  ;;  %v1023_v43 = vor.u32 %v1021_v29, %v5509_v23  ;;  %v5540_v32 = vsel %vm1158_vm9, %v1163_v48, %v1164_v36  ;;  %v4871_v15 = vld [vmem:[#allocation8 + $0x160] sm:$0xff]  }
 0x19b   : > { %v5515_v38 = vpack.c.bf16 %v936_v26, %v935_v19  ;;  %v860_v39 = vmul.f32 %v5431_v62, %v746_v35  ;;  %v4561_v41 = vpop.f32.mrb[14].mxu0  ;;  %v5520_v42 = vsel %vm993_vm6, %v5458_v40, %v1015_v28  ;;  %v1166_v14 = vor.u32 %v1164_v36, %v1010_v12  ;;  %v4866_v12 = vld [vmem:[#allocation8 + $0x1a0] sm:$0xff]   ;;  %v4875_v36 = vld [vmem:[#allocation8 + $0x168] sm:$0xff]  }
 0x19c   : > { %v905_v44 = vadd.f32 %v5436_v1, %v862_v34  ;;  %v863_v45 = vmul.f32 %v4561_v41, %v5431_v62  ;;  %v749_v46 = vpop.f32.mrb[15].mxu0  ;;  %3930 = vmatprep.mubr.msk.bf16.mxu0 %vm5463_vm8, %v5520_v42  ;;  %4373 = vmatpush3.bf16.msra.mxu0 %v4854_v25  ;;  %v5548_v0 = vsel %vm993_vm6, %v1012_v22, %v1023_v43  ;;  %v1034_v20 = vshrl.u32 %v5512_v33, 16 }
 0x19d   : > { %v903_v40 = vadd.f32 %v5436_v1, %v860_v39  ;;  %v861_v50 = vmul.f32 %v5431_v62, %v749_v46  ;;  %v1026_v51 = vshrl.u32 %v5515_v38, 16  ;;  %4374 = vmatprep.subr.bf16.mxu0 %v4856_v30  ;;  %4261 = vmatpush3.bf16.msra.mxu1 %v4861_v31  ;;  %v1029_v6 = vshll.u32 %v5515_v38, 16  ;;  %v4868_v30 = vld [vmem:[#allocation8 + $0x1e8] sm:$0xff]   ;;  %v4873_v31 = vld [vmem:[#allocation8 + $0x120] sm:$0xff]  }
 0x19e   : > { %v941_v55 = vmax.f32 %v905_v44, 0.0  ;;  %v906_v57 = vadd.f32 %v5436_v1, %v863_v45  ;;  %3913 = vmatmul.mubr.msk.bf16.gmra.mrb[4].mxu1 %vm5463_vm8, %v5483_v63  ;;  %4262 = vmatprep.subr.bf16.mxu1 %v4863_v37  ;;  %v1167_v24 = vrot.slane %v1021_v29, 1  ;;  %v5592_v43 = vrot.slane %v1034_v20, 7  ;;  %v4870_v45 = vld [vmem:[#allocation8 + $0x1a8] sm:$0xff]  }
 0x19f   : > { %v939_v60 = vmax.f32 %v903_v40, 0.0  ;;  %v904_v61 = vadd.f32 %v5436_v1, %v861_v50  ;;  %3931 = vmatmul.mubr.msk.bf16.gmra.mrb[40].mxu0 %vm5475_vm11, %v5540_v32  ;;  %2212 = vmatprep.mubr.bf16.mxu1 %v5479_v59  ;;  %v5552_v63 = vrot.slane %v1026_v51, 7  ;;  %v1037_v48 = vshll.u32 %v5512_v33, 16  ;;  %v4877_v40 = vld [vmem:[#allocation8 + $0x128] sm:$0xff]  }
 0x1a0   : > { %v942_v2 = vmax.f32 %v906_v57, 0.0  ;;  %3932 = vmatprep.mubr.msk.bf16.mxu0 %vm5463_vm8, %v5548_v0  ;;  %4375 = vmatpush3.bf16.msra.mxu0 %v4858_v49  ;;  %v5578_v29 = vsel %vm1158_vm9, %v1166_v14, %v1167_v24  ;;  %v4879_v57 = vld [vmem:[#allocation8 + $0x170] sm:$0xff]   ;;  %v4876_v14 = vld [vmem:[#allocation8 + $0x1f8] sm:$0xff]  }
 0x1a1   : > { %v940_v4 = vmax.f32 %v904_v61, 0.0  ;;  %v4564_v5 = vpop.f32.mrb[16].mxu0  ;;  %4376 = vmatprep.subr.bf16.mxu0 %v4860_v52  ;;  %4263 = vmatpush3.bf16.msra.mxu1 %v4865_v54  ;;  %v1031_v19 = vor.u32 %v1029_v6, %v5552_v63  ;;  %v1170_v52 = vrot.slane %v1029_v6, 1 }
 0x1a2   : > { %v5558_v10 = vpack.c.bf16 %v942_v2, %v941_v55  ;;  %v866_v11 = vmul.f32 %v4564_v5, %v5431_v62  ;;  %v762_v13 = vpop.f32.mrb[17].mxu0  ;;  %4264 = vmatprep.subr.bf16.mxu1 %v4867_v56 }
 0x1a3   : > { %v5563_v16 = vpack.c.bf16 %v940_v4, %v939_v60  ;;  %v864_v17 = vmul.f32 %v5431_v62, %v762_v13  ;;  %v4565_v18 = vpop.f32.mrb[18].mxu0  ;;  %v5587_v39 = vsel %vm993_vm6, %v5509_v23, %v1031_v19  ;;  %v4872_v23 = vld [vmem:[#allocation8 + $0x1f0] sm:$0xff]   ;;  %v1039_v60 = vor.u32 %v1037_v48, %v5592_v43  ;;  %v4881_v19 = vld [vmem:[#allocation8 + $0x178] sm:$0xff]  }
 0x1a4   : > { %v909_v22 = vadd.f32 %v5436_v1, %v866_v11  ;;  %v867_v25 = vmul.f32 %v4565_v18, %v5431_v62  ;;  %v765_v26 = vpop.f32.mrb[19].mxu0  ;;  %4377 = vmatpush3.bf16.msra.mxu0 %v4862_v3  ;;  %v1169_v4 = vor.u32 %v1167_v24, %v1018_v7 }
 0x1a5   : > { %v907_v27 = vadd.f32 %v5436_v1, %v864_v17  ;;  %v865_v28 = vmul.f32 %v5431_v62, %v765_v26  ;;  %4378 = vmatprep.subr.bf16.mxu0 %v4864_v8  ;;  %4265 = vmatpush3.bf16.msra.mxu1 %v4869_v9  ;;  %v1042_v3 = vshrl.u32 %v5563_v16, 16  ;;  %v4874_v9 = vld [vmem:[#allocation8 + $0x1b0] sm:$0xff]  }
 0x1a6   : > { %v945_v34 = vmax.f32 %v909_v22, 0.0  ;;  %3914 = vmatmul.mubr.msk.bf16.gmra.mrb[8].mxu1 %vm5463_vm8, %v5520_v42  ;;  %v910_v35 = vadd.f32 %v5436_v1, %v867_v25  ;;  %4266 = vmatprep.subr.bf16.mxu1 %v4871_v15  ;;  %v4880_v15 = vld [vmem:[#allocation8 + $0x130] sm:$0xff]   ;;  %v5616_v7 = vsel %vm1158_vm9, %v1169_v4, %v1170_v52  ;;  %v5625_v22 = vsel %vm993_vm6, %v5552_v63, %v1039_v60  ;;  %v4882_v63 = vld [vmem:[#allocation8 + $0x138] sm:$0xff]  }
 0x1a7   : > { %v943_v37 = vmax.f32 %v907_v27, 0.0  ;;  %3933 = vmatmul.mubr.msk.bf16.gmra.mrb[44].mxu0 %vm5475_vm11, %v5578_v29  ;;  %2220 = vmatprep.mubr.bf16.mxu1 %v5467_v53  ;;  %v908_v41 = vadd.f32 %v5436_v1, %v865_v28  ;;  %v5629_v25 = vrot.slane %v1042_v3, 7  ;;  %v4878_v27 = vld [vmem:[#allocation8 + $0x1b8] sm:$0xff]   ;;  %v1045_v28 = vshll.u32 %v5563_v16, 16 }
 0x1a8   : > { %v946_v44 = vmax.f32 %v910_v35, 0.0  ;;  %3934 = vmatprep.mubr.msk.bf16.mxu0 %vm5463_vm8, %v5587_v39  ;;  %4379 = vmatpush3.bf16.msra.mxu0 %v4866_v12  ;;  %v1172_v35 = vor.u32 %v1170_v52, %v1026_v51 }
 0x1a9   : > { %v944_v46 = vmax.f32 %v908_v41, 0.0  ;;  %v4568_v49 = vpop.f32.mrb[20].mxu0  ;;  %4380 = vmatprep.subr.bf16.mxu0 %v4868_v30  ;;  %4267 = vmatpush3.bf16.msra.mxu1 %v4873_v31 }
 0x1aa   : > { %v5598_v50 = vpack.c.bf16 %v946_v44, %v945_v34  ;;  %v870_v54 = vmul.f32 %v4568_v49, %v5431_v62  ;;  %v778_v55 = vpop.f32.mrb[21].mxu0  ;;  %4268 = vmatprep.subr.bf16.mxu1 %v4875_v36  ;;  %v5636_v34 = vld [vmem:[#allocation8 + $0x200] sm:$0xff]   ;;  %v1047_v44 = vor.u32 %v1045_v28, %v5629_v25 }
 0x1ab   : > { %v5601_v56 = vpack.c.bf16 %v944_v46, %v943_v37  ;;  %v868_v61 = vmul.f32 %v5431_v62, %v778_v55  ;;  %v4569_v2 = vpop.f32.mrb[22].mxu0  ;;  %v1050_v46 = vshrl.u32 %v5558_v10, 16 }
 0x1ac   : > { %v913_v5 = vadd.f32 %v5436_v1, %v870_v54  ;;  %v871_v6 = vmul.f32 %v4569_v2, %v5431_v62  ;;  %v781_v8 = vpop.f32.mrb[23].mxu0  ;;  %4381 = vmatpush3.bf16.msra.mxu0 %v4870_v45  ;;  %v5667_v2 = vsel %vm993_vm6, %v5592_v43, %v1047_v44 }
 0x1ad   : > { %v911_v11 = vadd.f32 %v5436_v1, %v868_v61  ;;  %v869_v13 = vmul.f32 %v5431_v62, %v781_v8  ;;  %4382 = vmatprep.subr.bf16.mxu0 %v4872_v23  ;;  %4269 = vmatpush3.bf16.msra.mxu1 %v4877_v40  ;;  %v1173_v40 = vrot.slane %v1037_v48, 1  ;;  %v1052_v4 = vrot.slane %v1050_v46, 7 }
 0x1ae   : > { %3915 = vmatmul.mubr.msk.bf16.gmra.mrb[12].mxu1 %vm5463_vm8, %v5548_v0  ;;  %v949_v17 = vmax.f32 %v913_v5, 0.0  ;;  %v914_v18 = vadd.f32 %v5436_v1, %v871_v6  ;;  %4270 = vmatprep.subr.bf16.mxu1 %v4879_v57 }
 0x1af   : > { %3935 = vmatmul.mubr.msk.bf16.gmra.mrb[48].mxu0 %vm5475_vm11, %v5616_v7  ;;  %2228 = vmatprep.mubr.bf16.mxu1 %v5515_v38  ;;  %v947_v24 = vmax.f32 %v911_v11, 0.0  ;;  %v912_v26 = vadd.f32 %v5436_v1, %v869_v13  ;;  %v5657_v60 = vsel %vm1158_vm9, %v1172_v35, %v1173_v40 }
 0x1b0   : > { %3936 = vmatprep.mubr.msk.bf16.mxu0 %vm5463_vm8, %v5625_v22  ;;  %v950_v12 = vmax.f32 %v914_v18, 0.0  ;;  %4383 = vmatpush3.bf16.msra.mxu0 %v4874_v9  ;;  %v1053_v9 = vshll.u32 %v5558_v10, 16 }
 0x1b1   : > { %v948_v30 = vmax.f32 %v912_v26, 0.0  ;;  %v4572_v31 = vpop.f32.mrb[24].mxu0  ;;  %4384 = vmatprep.subr.bf16.mxu0 %v4876_v14  ;;  %4271 = vmatpush3.bf16.msra.mxu1 %v4880_v15  ;;  %v1176_v14 = vrot.slane %v1045_v28, 1 }
 0x1b2   : > { %v5640_v36 = vpack.c.bf16 %v950_v12, %v949_v17  ;;  %v874_v37 = vmul.f32 %v4572_v31, %v5431_v62  ;;  %v794_v41 = vpop.f32.mrb[25].mxu0  ;;  %4272 = vmatprep.subr.bf16.mxu1 %v4881_v19  ;;  %v1055_v18 = vor.u32 %v1053_v9, %v1052_v4  ;;  %v1058_v19 = vshrl.u32 %v5601_v56, 16 }
 0x1b3   : > { %v5644_v45 = vpack.c.bf16 %v948_v30, %v947_v24  ;;  %v872_v49 = vmul.f32 %v5431_v62, %v794_v41  ;;  %v4573_v23 = vpop.f32.mrb[26].mxu0  ;;  %v1061_v41 = vshll.u32 %v5601_v56, 16 }
 0x1b4   : > { %v917_v54 = vadd.f32 %v5436_v1, %v874_v37  ;;  %v875_v51 = vmul.f32 %v4573_v23, %v5431_v62  ;;  %v797_v52 = vpop.f32.mrb[27].mxu0  ;;  %4385 = vmatpush3.bf16.msra.mxu0 %v4878_v27  ;;  %v1175_v27 = vor.u32 %v1173_v40, %v1034_v20  ;;  %v1060_v23 = vrot.slane %v1058_v19, 7 }
 0x1b5   : > { %v915_v55 = vadd.f32 %v5436_v1, %v872_v49  ;;  %v873_v57 = vmul.f32 %v5431_v62, %v797_v52  ;;  %4273 = vmatpush3.bf16.msra.mxu1 %v4882_v63  ;;  %4582 = vmatprep.subr.bf16.mxu0 %v5636_v34  ;;  %v5703_v49 = vsel %vm993_vm6, %v5629_v25, %v1055_v18 }
 0x1b6   : > { %3916 = vmatmul.mubr.msk.bf16.gmra.mrb[16].mxu1 %vm5463_vm8, %v5587_v39  ;;  %v953_v48 = vmax.f32 %v917_v54, 0.0  ;;  %v918_v61 = vadd.f32 %v5436_v1, %v875_v51  ;;  %4678 = vmatprep.subr.bf16.mxu1 %v5636_v34  ;;  %v5693_v37 = vsel %vm1158_vm9, %v1175_v27, %v1176_v14 }
 0x1b7   : > { %3937 = vmatmul.mubr.msk.bf16.gmra.mrb[52].mxu0 %vm5475_vm11, %v5657_v60  ;;  %2236 = vmatprep.mubr.bf16.mxu1 %v5512_v33  ;;  %v951_v5 = vmax.f32 %v915_v55, 0.0  ;;  %v916_v6 = vadd.f32 %v5436_v1, %v873_v57  ;;  %v1178_v57 = vor.u32 %v1176_v14, %v1042_v3 }
 0x1b8   : > { %3938 = vmatprep.mubr.msk.bf16.mxu0 %vm5463_vm8, %v5667_v2  ;;  %v954_v8 = vmax.f32 %v918_v61, 0.0 }
 0x1b9   : > { %v952_v11 = vmax.f32 %v916_v6, 0.0  ;;  %v4576_v13 = vpop.f32.mrb[28].mxu0  ;;  %v1066_v6 = vshrl.u32 %v5598_v50, 16 }
 0x1ba   : > { %v5676_v15 = vpack.c.bf16 %v954_v8, %v953_v48  ;;  %v878_v43 = vmul.f32 %v4576_v13, %v5431_v62  ;;  %v810_v17 = vpop.f32.mrb[29].mxu0 }
 0x1bb   : > { %v5680_v24 = vpack.c.bf16 %v952_v11, %v951_v5  ;;  %v876_v26 = vmul.f32 %v5431_v62, %v810_v17  ;;  %v4577_v12 = vpop.f32.mrb[30].mxu0  ;;  %v1063_v5 = vor.u32 %v1061_v41, %v1060_v23 }
 0x1bc   : > { %v921_v30 = vadd.f32 %v5436_v1, %v878_v43  ;;  %v879_v28 = vmul.f32 %v4577_v12, %v5431_v62  ;;  %v813_v31 = vpop.f32.mrb[31].mxu0  ;;  %v1179_v43 = vrot.slane %v1053_v9, 1 }
 0x1bd   : > { %v919_v63 = vadd.f32 %v5436_v1, %v876_v26  ;;  %v877_v35 = vmul.f32 %v5431_v62, %v813_v31  ;;  %v5736_v9 = vsel %vm993_vm6, %v1052_v4, %v1063_v5  ;;  %v1182_v4 = vrot.slane %v1061_v41, 1 }
 0x1be   : > { %3917 = vmatmul.mubr.msk.bf16.gmra.mrb[20].mxu1 %vm5463_vm8, %v5625_v22  ;;  %v957_v44 = vmax.f32 %v921_v30, 0.0  ;;  %v922_v20 = vadd.f32 %v5436_v1, %v879_v28  ;;  %v5728_v12 = vsel %vm1158_vm9, %v1178_v57, %v1179_v43 }
 0x1bf   : > { %3939 = vmatmul.mubr.msk.bf16.gmra.mrb[56].mxu0 %vm5475_vm11, %v5693_v37  ;;  %2244 = vmatprep.mubr.bf16.mxu1 %v5563_v16  ;;  %v955_v40 = vmax.f32 %v919_v63, 0.0  ;;  %v920_v54 = vadd.f32 %v5436_v1, %v877_v35 }
 0x1c0   : > { %3940 = vmatprep.mubr.msk.bf16.mxu0 %vm5463_vm8, %v5703_v49  ;;  %v958_v51 = vmax.f32 %v922_v20, 0.0 }
 0x1c1   : > { %v956_v52 = vmax.f32 %v920_v54, 0.0  ;;  %v4580_v55 = vpop.f32.mrb[32].mxu0 }
 0x1c2   : > { %v5713_v48 = vpack.c.bf16 %v958_v51, %v957_v44  ;;  %v882_v25 = vmul.f32 %v4580_v55, %v5431_v62  ;;  %v826_v61 = vpop.f32.mrb[33].mxu0  ;;  %v1069_v44 = vshll.u32 %v5598_v50, 16 }
 0x1c3   : > { %v5717_v8 = vpack.c.bf16 %v956_v52, %v955_v40  ;;  %v880_v11 = vmul.f32 %v5431_v62, %v826_v61  ;;  %v4581_v13 = vpop.f32.mrb[34].mxu0  ;;  %v1181_v40 = vor.u32 %v1179_v43, %v1050_v46  ;;  %v1074_v52 = vshrl.u32 %v5644_v45, 16 }
 0x1c4   : > { %v925_v17 = vadd.f32 %v5436_v1, %v882_v25  ;;  %v883_v18 = vmul.f32 %v4581_v13, %v5431_v62  ;;  %v829_v26 = vpop.f32.mrb[35].mxu0  ;;  %v1077_v13 = vshll.u32 %v5644_v45, 16 }
 0x1c5   : > { %v923_v3 = vadd.f32 %v5436_v1, %v880_v11  ;;  %v881_v14 = vmul.f32 %v5431_v62, %v829_v26  ;;  %v1068_v62 = vrot.slane %v1066_v6, 7  ;;  %v5757_v25 = vsel %vm1158_vm9, %v1181_v40, %v1182_v4 }
 0x1c6   : > { %3918 = vmatmul.mubr.msk.bf16.gmra.mrb[24].mxu1 %vm5463_vm8, %v5667_v2  ;;  %v961_v27 = vmax.f32 %v925_v17, 0.0  ;;  %v926_v30 = vadd.f32 %v5436_v1, %v883_v18  ;;  %v1076_v11 = vrot.slane %v1074_v52, 7 }
 0x1c7   : > { %3941 = vmatmul.mubr.msk.bf16.gmra.mrb[60].mxu0 %vm5475_vm11, %v5728_v12  ;;  %2252 = vmatprep.mubr.bf16.mxu1 %v5558_v10  ;;  %v959_v28 = vmax.f32 %v923_v3, 0.0  ;;  %v924_v31 = vadd.f32 %v5436_v1, %v881_v14  ;;  %v1071_v51 = vor.u32 %v1069_v44, %v1068_v62 }
 0x1c8   : > { %3942 = vmatprep.mubr.msk.bf16.mxu0 %vm5463_vm8, %v5736_v9  ;;  %v973_v63 = vmul.f32 0.0, %v961_v27  ;;  %v962_v35 = vmax.f32 %v926_v30, 0.0  ;;  %v1079_v27 = vor.u32 %v1077_v13, %v1076_v11  ;;  %v1082_v30 = vshrl.u32 %v5640_v36, 16 }
 0x1c9   : > { %v960_v20 = vmax.f32 %v924_v31, 0.0  ;;  %v5767_v5 = vsel %vm993_vm6, %v1060_v23, %v1071_v51  ;;  %v1184_v23 = vor.u32 %v1182_v4, %v1058_v19  ;;  %v1185_v31 = vrot.slane %v1069_v44, 1 }
 0x1ca   : > { %v974_v54 = vmul.f32 0.0, %v962_v35  ;;  %v5806_v35 = vsel %vm993_vm6, %v1068_v62, %v1079_v27  ;;  %v1084_v44 = vrot.slane %v1082_v30, 7  ;;  %v1188_v4 = vrot.slane %v1077_v13, 1 }
 0x1cb   : > { %v5748_v55 = vpack.c.bf16 %v960_v20, %v959_v28  ;;  %v5799_v19 = vsel %vm1158_vm9, %v1184_v23, %v1185_v31  ;;  %v1085_v20 = vshll.u32 %v5640_v36, 16  ;;  %v1187_v40 = vor.u32 %v1185_v31, %v1066_v6 }
 0x1cc   : > { %v5750_v1 = vpack.c.bf16 %v974_v54, %v973_v63  ;;  %v1090_v51 = vshrl.u32 %v5680_v24, 16  ;;  %v1190_v13 = vor.u32 %v1188_v4, %v1074_v52  ;;  %v1101_v27 = vshll.u32 %v5676_v15, 16 }
 0x1cd   : > { %v6635_v57 = vshll.u32 %v5748_v55, 16  ;;  %v1122_v41 = vshrl.u32 %v5748_v55, 16  ;;  %v1087_v54 = vor.u32 %v1085_v20, %v1084_v44  ;;  %v5819_v62 = vsel %vm1158_vm9, %v1187_v40, %v1188_v4 }
 0x1ce   : > { %3919 = vmatmul.mubr.msk.bf16.gmra.mrb[28].mxu1 %vm5463_vm8, %v5703_v49  ;;  %v6634_v46 = vshrl.u32 %v5750_v1, 16  ;;  %v1133_v61 = vshll.u32 %v5750_v1, 16  ;;  %v1092_v6 = vrot.slane %v1090_v51, 7  ;;  %v1191_v23 = vrot.slane %v1085_v20, 1 }
 0x1cf   : > { %3943 = vmatmul.mubr.msk.bf16.gmra.mrb[64].mxu0 %vm5475_vm11, %v5757_v25  ;;  %2260 = vmatprep.mubr.bf16.mxu1 %v5601_v56  ;;  %v5772_v43 = vrot.slane %v6635_v57, 1  ;;  %v5784_v3 = vrot.slane %v1122_v41, 7  ;;  %v1106_v4 = vshrl.u32 %v5717_v8, 16 }
 0x1d0   : > { %3944 = vmatprep.mubr.msk.bf16.mxu0 %vm5463_vm8, %v5767_v5  ;;  %v5777_v17 = vrot.slane %v1133_v61, 1  ;;  %v1132_v18 = vrot.slane %v6634_v46, 7  ;;  %v1193_v31 = vor.u32 %v1191_v23, %v1082_v30 }
 0x1d1   : > { %v1208_v26 = vor.u32 %v5772_v43, %v1122_v41  ;;  %v5826_v41 = vsel %vm993_vm6, %v1076_v11, %v1087_v54  ;;  %v1108_v30 = vrot.slane %v1106_v4, 7 }
 0x1d2   : > { %v1135_v14 = vor.u32 %v1133_v61, %v1132_v18  ;;  %v1093_v61 = vshll.u32 %v5680_v24, 16 }
 0x1d3   : > { %v5789_v28 = vsel %vm1158_vm9, %v1208_v26, %v5777_v17  ;;  %v1098_v26 = vshrl.u32 %v5676_v15, 16 }
 0x1d4   : > { %v5793_v63 = vsel %vm993_vm6, %v5784_v3, %v1135_v14  ;;  %v1095_v18 = vor.u32 %v1093_v61, %v1092_v6  ;;  %v5837_v14 = vsel %vm1158_vm9, %v1190_v13, %v1191_v23  ;;  %v1194_v20 = vrot.slane %v1093_v61, 1 }
 0x1d5   : > { %v1100_v52 = vrot.slane %v1098_v26, 7  ;;  %v1109_v61 = vshll.u32 %v5717_v8, 16  ;;  %v1114_v23 = vshrl.u32 %v5713_v48, 16 }
 0x1d6   : > { %3920 = vmatmul.mubr.msk.bf16.gmra.mrb[32].mxu1 %vm5463_vm8, %v5736_v9  ;;  %v5844_v11 = vsel %vm993_vm6, %v1084_v44, %v1095_v18  ;;  %v5855_v54 = vsel %vm1158_vm9, %v1193_v31, %v1194_v20  ;;  %v1196_v13 = vor.u32 %v1194_v20, %v1090_v51  ;;  %v1197_v31 = vrot.slane %v1101_v27, 1 }
 0x1d7   : > { %3945 = vmatmul.mubr.msk.bf16.gmra.mrb[68].mxu0 %vm5475_vm11, %v5799_v19  ;;  %2268 = vmatprep.mubr.bf16.mxu1 %v5598_v50  ;;  %v1103_v40 = vor.u32 %v1101_v27, %v1100_v52  ;;  %v1111_v18 = vor.u32 %v1109_v61, %v1108_v30  ;;  %v1116_v51 = vrot.slane %v1114_v23, 7  ;;  %v1117_v27 = vshll.u32 %v5713_v48, 16 }
 0x1d8   : > { %3946 = vmatprep.mubr.msk.bf16.mxu0 %vm5463_vm8, %v5806_v35  ;;  %v5873_v46 = vsel %vm1158_vm9, %v1196_v13, %v1197_v31  ;;  %v1199_v20 = vor.u32 %v1197_v31, %v1098_v26 }
 0x1d9   : > { %v5862_v44 = vsel %vm993_vm6, %v1092_v6, %v1103_v40  ;;  %v5880_v6 = vsel %vm993_vm6, %v1100_v52, %v1111_v18  ;;  %v1200_v40 = vrot.slane %v1109_v61, 1  ;;  %v1119_v13 = vor.u32 %v1117_v27, %v1116_v51 }
 0x1da   : > { %v6662_v61 = vshll.u32 %v5748_v55, 16  ;;  %v1203_v31 = vrot.slane %v1117_v27, 1 }
 0x1db   : > { %v5890_v57 = vsel %vm1158_vm9, %v1199_v20, %v1200_v40  ;;  %v5897_v52 = vsel %vm993_vm6, %v1108_v30, %v1119_v13  ;;  %v1202_v26 = vor.u32 %v1200_v40, %v1106_v4 }
 0x1dc   : > { %v1127_v18 = vor.u32 %v6662_v61, %v5784_v3  ;;  %v1205_v3 = vor.u32 %v1203_v31, %v1114_v23 }
 0x1dd   : > { %v5909_v20 = vsel %vm1158_vm9, %v1202_v26, %v1203_v31 }
 0x1de   : > { %3921 = vmatmul.mubr.msk.bf16.gmra.mrb[36].mxu1 %vm5463_vm8, %v5767_v5  ;;  %v5916_v4 = vsel %vm993_vm6, %v1116_v51, %v1127_v18  ;;  %v5926_v30 = vsel %vm1158_vm9, %v1205_v3, %v5772_v43  ;;  %v4884_v51 = vld [vmem:[#allocation8 + $0x208] sm:$0xff]   ;;  %v4885_v43 = vld [vmem:[#allocation8 + $0x210] sm:$0xff]  }
 0x1df   : > { %3947 = vmatmul.mubr.msk.bf16.gmra.mrb[72].mxu0 %vm5475_vm11, %v5819_v62  ;;  %2276 = vmatprep.mubr.bf16.mxu1 %v5644_v45 }
 0x1e0   : > { %3948 = vmatprep.mubr.msk.bf16.mxu0 %vm5463_vm8, %v5826_v41 }
 0x1e6   : > { %3922 = vmatmul.mubr.msk.bf16.gmra.mrb[40].mxu1 %vm5463_vm8, %v5806_v35 }
 0x1e7   : > { %3949 = vmatmul.mubr.msk.bf16.gmra.mrb[76].mxu0 %vm5475_vm11, %v5837_v14  ;;  %2284 = vmatprep.mubr.bf16.mxu1 %v5640_v36 }
 0x1e8   : > { %3950 = vmatprep.mubr.msk.bf16.mxu0 %vm5463_vm8, %v5844_v11 }
 0x1ee   : > { %3923 = vmatmul.mubr.msk.bf16.gmra.mrb[44].mxu1 %vm5463_vm8, %v5826_v41 }
 0x1ef   : > { %3951 = vmatmul.mubr.msk.bf16.gmra.mrb[80].mxu0 %vm5475_vm11, %v5855_v54  ;;  %2292 = vmatprep.mubr.bf16.mxu1 %v5680_v24 }
 0x1f0   : > { %3952 = vmatprep.mubr.msk.bf16.mxu0 %vm5463_vm8, %v5862_v44 }
 0x1f6   : > { %3924 = vmatmul.mubr.msk.bf16.gmra.mrb[48].mxu1 %vm5463_vm8, %v5844_v11 }
 0x1f7   : > { %3953 = vmatmul.mubr.msk.bf16.gmra.mrb[84].mxu0 %vm5475_vm11, %v5873_v46  ;;  %2300 = vmatprep.mubr.bf16.mxu1 %v5676_v15 }
 0x1f8   : > { %3954 = vmatprep.mubr.msk.bf16.mxu0 %vm5463_vm8, %v5880_v6 }
 0x1fe   : > { %3925 = vmatmul.mubr.msk.bf16.gmra.mrb[52].mxu1 %vm5463_vm8, %v5862_v44 }
 0x1ff   : > { %3955 = vmatmul.mubr.msk.bf16.gmra.mrb[88].mxu0 %vm5475_vm11, %v5890_v57  ;;  %2308 = vmatprep.mubr.bf16.mxu1 %v5717_v8 }
 0x200   : > { %3956 = vmatprep.mubr.msk.bf16.mxu0 %vm5463_vm8, %v5897_v52 }
 0x206   : > { %3926 = vmatmul.mubr.msk.bf16.gmra.mrb[56].mxu1 %vm5463_vm8, %v5880_v6 }
 0x207   : > { %3957 = vmatmul.mubr.msk.bf16.gmra.mrb[92].mxu0 %vm5475_vm11, %v5909_v20  ;;  %2316 = vmatprep.mubr.bf16.mxu1 %v5713_v48 }
 0x208   : > { %3958 = vmatprep.mubr.msk.bf16.mxu0 %vm5463_vm8, %v5916_v4 }
 0x20e   : > { %3927 = vmatmul.mubr.msk.bf16.gmra.mrb[60].mxu1 %vm5463_vm8, %v5897_v52 }
 0x20f   : > { %3959 = vmatmul.mubr.msk.bf16.gmra.mrb[96].mxu0 %vm5475_vm11, %v5926_v30  ;;  %3960 = vmatprep.mubr.msk.bf16.mxu1 %vm5475_vm11, %v5540_v32  ;;  %v4888_v32 = vld [vmem:[#allocation8 + $0x228] sm:$0xff]  }
 0x210   : > { %2679 = vmatprep.mubr.bf16.mxu0 %v5479_v59 }
 0x216   : > { %2519 = vmatmul.mubr.bf16.vlgmr.msra.gmra.mrb[64].mxu1 %v5446_v21  ;;  %v4886_v21 = vld [vmem:[#allocation8 + $0x218] sm:$0xff]  }
 0x217   : > { %3976 = vmatmul.mubr.msk.bf16.vlgmr.msra.gmra.mrb[100].mxu0 %vm5463_vm8, %v5520_v42  ;;  %3961 = vmatprep.mubr.msk.bf16.mxu1 %vm5475_vm11, %v5578_v29  ;;  %v4887_v42 = vld [vmem:[#allocation8 + $0x220] sm:$0xff]  }
 0x218   : > { %4583 = vmatpush3.bf16.msra.mxu0 %v5636_v34  ;;  %2687 = vmatprep.mubr.bf16.mxu0 %v5467_v53 }
 0x219   : > { %4584 = vmatprep.subr.bf16.mxu0 %v4884_v51  ;;  %4686 = vmatpush3.bf16.msra.mxu1 %v5636_v34 }
 0x21a   : > { %4679 = vmatprep.subr.bf16.mxu1 %v4884_v51 }
 0x21c   : > { %4585 = vmatpush3.bf16.msra.mxu0 %v4884_v51 }
 0x21d   : > { %4586 = vmatprep.subr.bf16.mxu0 %v4885_v43  ;;  %4687 = vmatpush3.bf16.msra.mxu1 %v4884_v51 }
 0x21e   : > { %2527 = vmatmul.mubr.bf16.gmra.mrb[68].mxu1 %v5479_v59  ;;  %4680 = vmatprep.subr.bf16.mxu1 %v4885_v43  ;;  %v4889_v59 = vld [vmem:[#allocation8 + $0x230] sm:$0xff]  }
 0x21f   : > { %3977 = vmatmul.mubr.msk.bf16.gmra.mrb[104].mxu0 %vm5463_vm8, %v5548_v0  ;;  %3962 = vmatprep.mubr.msk.bf16.mxu1 %vm5475_vm11, %v5616_v7  ;;  %v4890_v0 = vld [vmem:[#allocation8 + $0x238] sm:$0xff]  }
 0x220   : > { %2695 = vmatprep.mubr.bf16.mxu0 %v5515_v38  ;;  %4587 = vmatpush3.bf16.msra.mxu0 %v4885_v43 }
 0x221   : > { %4588 = vmatprep.subr.bf16.mxu0 %v4886_v21  ;;  %4688 = vmatpush3.bf16.msra.mxu1 %v4885_v43 }
 0x222   : > { %4681 = vmatprep.subr.bf16.mxu1 %v4886_v21 }
 0x224   : > { %4589 = vmatpush3.bf16.msra.mxu0 %v4886_v21 }
 0x225   : > { %4590 = vmatprep.subr.bf16.mxu0 %v4887_v42  ;;  %4689 = vmatpush3.bf16.msra.mxu1 %v4886_v21 }
 0x226   : > { %2535 = vmatmul.mubr.bf16.gmra.mrb[72].mxu1 %v5467_v53  ;;  %4682 = vmatprep.subr.bf16.mxu1 %v4887_v42 }
 0x227   : > { %3978 = vmatmul.mubr.msk.bf16.gmra.mrb[108].mxu0 %vm5463_vm8, %v5587_v39  ;;  %3963 = vmatprep.mubr.msk.bf16.mxu1 %vm5475_vm11, %v5657_v60 }
 0x228   : > { %2703 = vmatprep.mubr.bf16.mxu0 %v5512_v33  ;;  %4591 = vmatpush3.bf16.msra.mxu0 %v4887_v42 }
 0x229   : > { %4592 = vmatprep.subr.bf16.mxu0 %v4888_v32  ;;  %4690 = vmatpush3.bf16.msra.mxu1 %v4887_v42 }
 0x22a   : > { %4683 = vmatprep.subr.bf16.mxu1 %v4888_v32 }
 0x22c   : > { %4593 = vmatpush3.bf16.msra.mxu0 %v4888_v32 }
 0x22d   : > { %4594 = vmatprep.subr.bf16.mxu0 %v4889_v59  ;;  %4691 = vmatpush3.bf16.msra.mxu1 %v4888_v32 }
 0x22e   : > { %2543 = vmatmul.mubr.bf16.gmra.mrb[76].mxu1 %v5515_v38  ;;  %4684 = vmatprep.subr.bf16.mxu1 %v4889_v59 }
 0x22f   : > { %3979 = vmatmul.mubr.msk.bf16.gmra.mrb[112].mxu0 %vm5463_vm8, %v5625_v22  ;;  %3964 = vmatprep.mubr.msk.bf16.mxu1 %vm5475_vm11, %v5693_v37 }
 0x230   : > { %2711 = vmatprep.mubr.bf16.mxu0 %v5563_v16  ;;  %4595 = vmatpush3.bf16.msra.mxu0 %v4889_v59 }
 0x231   : > { %4596 = vmatprep.subr.bf16.mxu0 %v4890_v0  ;;  %4692 = vmatpush3.bf16.msra.mxu1 %v4889_v59 }
 0x232   : > { %4685 = vmatprep.subr.bf16.mxu1 %v4890_v0 }
 0x234   : > { %4597 = vmatpush3.bf16.msra.mxu0 %v4890_v0 }
 0x235   : > { %4693 = vmatpush3.bf16.msra.mxu1 %v4890_v0 }
 0x236   : > { %2551 = vmatmul.mubr.bf16.gmra.mrb[80].mxu1 %v5512_v33 }
 0x237   : > { %3980 = vmatmul.mubr.msk.bf16.gmra.mrb[116].mxu0 %vm5463_vm8, %v5667_v2  ;;  %3965 = vmatprep.mubr.msk.bf16.mxu1 %vm5475_vm11, %v5728_v12 }
 0x238   : > { %2719 = vmatprep.mubr.bf16.mxu0 %v5558_v10 }
 0x23e   : > { %2559 = vmatmul.mubr.bf16.gmra.mrb[84].mxu1 %v5563_v16 }
 0x23f   : > { %3981 = vmatmul.mubr.msk.bf16.gmra.mrb[120].mxu0 %vm5463_vm8, %v5703_v49  ;;  %3966 = vmatprep.mubr.msk.bf16.mxu1 %vm5475_vm11, %v5757_v25 }
 0x240   : > { %2727 = vmatprep.mubr.bf16.mxu0 %v5601_v56 }
 0x246   : > { %2567 = vmatmul.mubr.bf16.gmra.mrb[88].mxu1 %v5558_v10 }
 0x247   : > { %3982 = vmatmul.mubr.msk.bf16.gmra.mrb[124].mxu0 %vm5463_vm8, %v5736_v9  ;;  %3967 = vmatprep.mubr.msk.bf16.mxu1 %vm5475_vm11, %v5799_v19 }
 0x248   : > { %2735 = vmatprep.mubr.bf16.mxu0 %v5598_v50 }
 0x24e   : > { %2575 = vmatmul.mubr.bf16.gmra.mrb[92].mxu1 %v5601_v56 }
 0x24f   : > { %3983 = vmatmul.mubr.msk.bf16.gmra.mrb[128].mxu0 %vm5463_vm8, %v5767_v5  ;;  %3968 = vmatprep.mubr.msk.bf16.mxu1 %vm5475_vm11, %v5819_v62 }
 0x250   : > { %2743 = vmatprep.mubr.bf16.mxu0 %v5644_v45 }
 0x256   : > { %2583 = vmatmul.mubr.bf16.gmra.mrb[96].mxu1 %v5598_v50 }
 0x257   : > { %3984 = vmatmul.mubr.msk.bf16.gmra.mrb[132].mxu0 %vm5463_vm8, %v5806_v35  ;;  %3969 = vmatprep.mubr.msk.bf16.mxu1 %vm5475_vm11, %v5837_v14 }
 0x258   : > { %2751 = vmatprep.mubr.bf16.mxu0 %v5640_v36 }
 0x25e   : > { %2591 = vmatmul.mubr.bf16.gmra.mrb[100].mxu1 %v5644_v45 }
 0x25f   : > { %3985 = vmatmul.mubr.msk.bf16.gmra.mrb[136].mxu0 %vm5463_vm8, %v5826_v41  ;;  %3970 = vmatprep.mubr.msk.bf16.mxu1 %vm5475_vm11, %v5855_v54 }
 0x260   : > { %2759 = vmatprep.mubr.bf16.mxu0 %v5680_v24 }
 0x266   : > { %2599 = vmatmul.mubr.bf16.gmra.mrb[104].mxu1 %v5640_v36 }
 0x267   : > { %3986 = vmatmul.mubr.msk.bf16.gmra.mrb[140].mxu0 %vm5463_vm8, %v5844_v11  ;;  %3971 = vmatprep.mubr.msk.bf16.mxu1 %vm5475_vm11, %v5873_v46 }
 0x268   : > { %2767 = vmatprep.mubr.bf16.mxu0 %v5676_v15 }
 0x269   : > { %v4050_v53 = vpop.f32.mrb[0].mxu1 }
 0x26a   : > { %v4162_v33 = vpop.f32.mrb[36].mxu0  ;;  %v4051_v38 = vpop.f32.mrb[1].mxu1 }
 0x26b   : > { %v4052_v10 = vadd.f32 %v4051_v38, %v4050_v53  ;;  %v4163_v16 = vpop.f32.mrb[37].mxu0  ;;  %v4053_v39 = vpop.f32.mrb[2].mxu1 }
 0x26c   : > { %v4164_v50 = vadd.f32 %v4163_v16, %v4162_v33  ;;  %v4165_v56 = vpop.f32.mrb[38].mxu0  ;;  %v4054_v22 = vpop.f32.mrb[3].mxu1 }
 0x26d   : > { %v4055_v34 = vadd.f32 %v4054_v22, %v4053_v39  ;;  %v4166_v36 = vpop.f32.mrb[39].mxu0 }
 0x26e   : > { %v6025_v45 = vadd.f32 %v4164_v50, %v4052_v10  ;;  %v4167_v2 = vadd.f32 %v4166_v36, %v4165_v56  ;;  %2607 = vmatmul.mubr.bf16.gmra.mrb[108].mxu1 %v5680_v24 }
 0x26f   : > { %3987 = vmatmul.mubr.msk.bf16.gmra.mrb[144].mxu0 %vm5463_vm8, %v5862_v44  ;;  %3972 = vmatprep.mubr.msk.bf16.mxu1 %vm5475_vm11, %v5890_v57 }
 0x270   : > { %v6034_v49 = vadd.f32 %v4167_v2, %v4055_v34  ;;  %2775 = vmatprep.mubr.bf16.mxu0 %v5717_v8 }
 0x271   : > { %v4056_v9 = vpop.f32.mrb[4].mxu1 }
 0x272   : > { %v4168_v5 = vpop.f32.mrb[40].mxu0  ;;  %v4057_v35 = vpop.f32.mrb[5].mxu1 }
 0x273   : > { %v4058_v41 = vadd.f32 %v4057_v35, %v4056_v9  ;;  %v4169_v11 = vpop.f32.mrb[41].mxu0  ;;  %v4059_v23 = vpop.f32.mrb[6].mxu1 }
 0x274   : > { %v4170_v27 = vadd.f32 %v4169_v11, %v4168_v5  ;;  %v4171_v24 = vpop.f32.mrb[42].mxu0  ;;  %v4060_v40 = vpop.f32.mrb[7].mxu1 }
 0x275   : > { %v4061_v13 = vadd.f32 %v4060_v40, %v4059_v23  ;;  %v4172_v26 = vpop.f32.mrb[43].mxu0 }
 0x276   : > { %v6037_v44 = vadd.f32 %v4170_v27, %v4058_v41  ;;  %v4173_v61 = vadd.f32 %v4172_v26, %v4171_v24  ;;  %2615 = vmatmul.mubr.bf16.gmra.mrb[112].mxu1 %v5676_v15 }
 0x277   : > { %3988 = vmatmul.mubr.msk.bf16.gmra.mrb[148].mxu0 %vm5463_vm8, %v5880_v6  ;;  %3973 = vmatprep.mubr.msk.bf16.mxu1 %vm5475_vm11, %v5909_v20 }
 0x278   : > { %v6046_v18 = vadd.f32 %v4173_v61, %v4061_v13  ;;  %2783 = vmatprep.mubr.bf16.mxu0 %v5713_v48 }
 0x279   : > { %v4062_v31 = vpop.f32.mrb[8].mxu1 }
 0x27a   : > { %v4174_v3 = vpop.f32.mrb[44].mxu0  ;;  %v4063_v51 = vpop.f32.mrb[9].mxu1 }
 0x27b   : > { %v4064_v43 = vadd.f32 %v4063_v51, %v4062_v31  ;;  %v4175_v21 = vpop.f32.mrb[45].mxu0  ;;  %v4065_v42 = vpop.f32.mrb[10].mxu1 }
 0x27c   : > { %v4176_v32 = vadd.f32 %v4175_v21, %v4174_v3  ;;  %v4177_v15 = vpop.f32.mrb[46].mxu0  ;;  %v4066_v59 = vpop.f32.mrb[11].mxu1 }
 0x27d   : > { %v4067_v0 = vadd.f32 %v4066_v59, %v4065_v42  ;;  %v4178_v53 = vpop.f32.mrb[47].mxu0 }
 0x27e   : > { %v6049_v6 = vadd.f32 %v4176_v32, %v4064_v43  ;;  %v4179_v33 = vadd.f32 %v4178_v53, %v4177_v15  ;;  %2623 = vmatmul.mubr.bf16.gmra.mrb[116].mxu1 %v5717_v8 }
 0x27f   : > { %3989 = vmatmul.mubr.msk.bf16.gmra.mrb[152].mxu0 %vm5463_vm8, %v5897_v52  ;;  %3974 = vmatprep.mubr.msk.bf16.mxu1 %vm5475_vm11, %v5926_v30 }
 0x280   : > { %v6058_v38 = vadd.f32 %v4179_v33, %v4067_v0  ;;  %2791 = vmatprep.mubr.bf16.mxu0 %v5748_v55 }
 0x281   : > { %v4068_v10 = vpop.f32.mrb[12].mxu1 }
 0x282   : > { %v4180_v16 = vpop.f32.mrb[48].mxu0  ;;  %v4069_v39 = vpop.f32.mrb[13].mxu1 }
 0x283   : > { %v4070_v50 = vadd.f32 %v4069_v39, %v4068_v10  ;;  %v4181_v56 = vpop.f32.mrb[49].mxu0  ;;  %v4071_v22 = vpop.f32.mrb[14].mxu1 }
 0x284   : > { %v4182_v34 = vadd.f32 %v4181_v56, %v4180_v16  ;;  %v4183_v8 = vpop.f32.mrb[50].mxu0  ;;  %v4072_v36 = vpop.f32.mrb[15].mxu1 }
 0x285   : > { %v4073_v2 = vadd.f32 %v4072_v36, %v4071_v22  ;;  %v4184_v9 = vpop.f32.mrb[51].mxu0 }
 0x286   : > { %v6061_v52 = vadd.f32 %v4182_v34, %v4070_v50  ;;  %v4185_v5 = vadd.f32 %v4184_v9, %v4183_v8  ;;  %2631 = vmatmul.mubr.bf16.gmra.mrb[120].mxu1 %v5713_v48 }
 0x287   : > { %3990 = vmatmul.mubr.msk.bf16.gmra.mrb[156].mxu0 %vm5463_vm8, %v5916_v4  ;;  %3975 = vmatprep.mubr.msk.bf16.mxu1 %vm5475_vm11, %v5789_v28 }
 0x288   : > { %v6070_v35 = vadd.f32 %v4185_v5, %v4073_v2  ;;  %2799 = vmatprep.mubr.bf16.mxu0 %v5750_v1 }
 0x289   : > { %v4074_v41 = vpop.f32.mrb[16].mxu1 }
 0x28a   : > { %v4186_v11 = vpop.f32.mrb[52].mxu0  ;;  %v4075_v23 = vpop.f32.mrb[17].mxu1 }
 0x28b   : > { %v4076_v27 = vadd.f32 %v4075_v23, %v4074_v41  ;;  %v4187_v24 = vpop.f32.mrb[53].mxu0  ;;  %v4077_v40 = vpop.f32.mrb[18].mxu1 }
 0x28c   : > { %v4188_v13 = vadd.f32 %v4187_v24, %v4186_v11  ;;  %v4189_v48 = vpop.f32.mrb[54].mxu0  ;;  %v4078_v26 = vpop.f32.mrb[19].mxu1 }
 0x28d   : > { %v4079_v61 = vadd.f32 %v4078_v26, %v4077_v40  ;;  %v4190_v31 = vpop.f32.mrb[55].mxu0 }
 0x28e   : > { %v6073_v4 = vadd.f32 %v4188_v13, %v4076_v27  ;;  %v4191_v3 = vadd.f32 %v4190_v31, %v4189_v48  ;;  %2639 = vmatmul.mubr.bf16.gmra.mrb[124].mxu1 %v5748_v55 }
 0x28f   : > { %3991 = vmatmul.mubr.msk.bf16.gmra.mrb[160].mxu0 %vm5463_vm8, %v5793_v63  ;;  %4614 = vmatprep.mubr.msk.bf16.mxu1 %vm5475_vm11, %v5837_v14 }
 0x290   : > { %v6082_v51 = vadd.f32 %v4191_v3, %v4079_v61  ;;  %4598 = vmatprep.mubr.msk.bf16.mxu0 %vm5475_vm11, %v5578_v29  ;;  %v6663_v61 = vshrl.u32 %v5750_v1, 16 }
 0x291   : > { %v4080_v43 = vpop.f32.mrb[20].mxu1 }
 0x292   : > { %v4192_v21 = vpop.f32.mrb[56].mxu0  ;;  %v4081_v42 = vpop.f32.mrb[21].mxu1 }
 0x293   : > { %v4082_v32 = vadd.f32 %v4081_v42, %v4080_v43  ;;  %v4193_v15 = vpop.f32.mrb[57].mxu0  ;;  %v4083_v55 = vpop.f32.mrb[22].mxu1 }
 0x294   : > { %v4194_v59 = vadd.f32 %v4193_v15, %v4192_v21  ;;  %v4195_v0 = vpop.f32.mrb[58].mxu0  ;;  %v4084_v47 = vpop.f32.mrb[23].mxu1 }
 0x295   : > { %v4085_v63 = vadd.f32 %v4084_v47, %v4083_v55  ;;  %v4196_v53 = vpop.f32.mrb[59].mxu0 }
 0x296   : > { %v6087_v33 = vadd.f32 %v4194_v59, %v4082_v32  ;;  %v4197_v14 = vadd.f32 %v4196_v53, %v4195_v0  ;;  %4615 = vmatmul.mubr.msk.bf16.vlgmr.msra.gmra.mrb[128].mxu1 %vm5475_vm11, %v5855_v54 }
 0x297   : > { %4599 = vmatmul.mubr.msk.bf16.vlgmr.msra.gmra.mrb[164].mxu0 %vm5475_vm11, %v5616_v7  ;;  %4618 = vmatprep.mubr.msk.bf16.mxu1 %vm5475_vm11, %v5873_v46 }
 0x298   : > { %v6098_v29 = vadd.f32 %v4197_v14, %v4085_v63  ;;  %4602 = vmatprep.mubr.msk.bf16.mxu0 %vm5475_vm11, %v5657_v60 }
 0x299   : > { %v4086_v10 = vpop.f32.mrb[24].mxu1 }
 0x29a   : > { %v4198_v16 = vpop.f32.mrb[60].mxu0  ;;  %v4087_v39 = vpop.f32.mrb[25].mxu1 }
 0x29b   : > { %v4088_v50 = vadd.f32 %v4087_v39, %v4086_v10  ;;  %v4199_v56 = vpop.f32.mrb[61].mxu0  ;;  %v4089_v54 = vpop.f32.mrb[26].mxu1 }
 0x29c   : > { %v4200_v22 = vadd.f32 %v4199_v56, %v4198_v16  ;;  %v4201_v34 = vpop.f32.mrb[62].mxu0  ;;  %v4090_v8 = vpop.f32.mrb[27].mxu1 }
 0x29d   : > { %v4091_v7 = vadd.f32 %v4090_v8, %v4089_v54  ;;  %v4202_v36 = vpop.f32.mrb[63].mxu0 }
 0x29e   : > { %v6103_v2 = vadd.f32 %v4200_v22, %v4088_v50  ;;  %v4203_v46 = vadd.f32 %v4202_v36, %v4201_v34  ;;  %4619 = vmatmul.mubr.msk.bf16.gmra.mrb[132].mxu1 %vm5475_vm11, %v5890_v57 }
 0x29f   : > { %4603 = vmatmul.mubr.msk.bf16.gmra.mrb[168].mxu0 %vm5475_vm11, %v5693_v37  ;;  %4622 = vmatprep.mubr.msk.bf16.mxu1 %vm5475_vm11, %v5909_v20 }
 0x2a0   : > { %v6114_v60 = vadd.f32 %v4203_v46, %v4091_v7  ;;  %4606 = vmatprep.mubr.msk.bf16.mxu0 %vm5475_vm11, %v5728_v12 }
 0x2a1   : > { %v4092_v9 = vpop.f32.mrb[28].mxu1 }
 0x2a2   : > { %v4204_v5 = vpop.f32.mrb[64].mxu0  ;;  %v4093_v41 = vpop.f32.mrb[29].mxu1 }
 0x2a3   : > { %v4094_v11 = vadd.f32 %v4093_v41, %v4092_v9  ;;  %v4205_v23 = vpop.f32.mrb[65].mxu0  ;;  %v4095_v57 = vpop.f32.mrb[30].mxu1 }
 0x2a4   : > { %v4206_v27 = vadd.f32 %v4205_v23, %v4204_v5  ;;  %v4207_v24 = vpop.f32.mrb[66].mxu0  ;;  %v4096_v40 = vpop.f32.mrb[31].mxu1 }
 0x2a5   : > { %v4097_v37 = vadd.f32 %v4096_v40, %v4095_v57  ;;  %v4208_v13 = vpop.f32.mrb[67].mxu0 }
 0x2a6   : > { %v6119_v48 = vadd.f32 %v4206_v27, %v4094_v11  ;;  %v4209_v20 = vadd.f32 %v4208_v13, %v4207_v24  ;;  %4623 = vmatmul.mubr.msk.bf16.gmra.mrb[136].mxu1 %vm5475_vm11, %v5926_v30  ;;  %v1211_v30 = vor.u32 %v5777_v17, %v6663_v61 }
 0x2a7   : > { %4607 = vmatmul.mubr.msk.bf16.gmra.mrb[172].mxu0 %vm5475_vm11, %v5757_v25  ;;  %4626 = vmatprep.mubr.msk.bf16.mxu1 %vm5475_vm11, %v5789_v28 }
 0x2a8   : > { %v6130_v12 = vadd.f32 %v4209_v20, %v4097_v37  ;;  %4610 = vmatprep.mubr.msk.bf16.mxu0 %vm5475_vm11, %v5799_v19  ;;  %v1232_v59 = vsel %vm1231_vm13, %v1211_v30, 0 }
 0x2a9   : > { %v4098_v26 = vpop.f32.mrb[32].mxu1 }
 0x2aa   : > { %v4210_v31 = vpop.f32.mrb[68].mxu0  ;;  %v4099_v3 = vpop.f32.mrb[33].mxu1 }
 0x2ab   : > { %v4100_v25 = vadd.f32 %v4099_v3, %v4098_v26  ;;  %v4211_v43 = vpop.f32.mrb[69].mxu0  ;;  %v4101_v21 = vpop.f32.mrb[34].mxu1 }
 0x2ac   : > { %v4212_v28 = vadd.f32 %v4211_v43, %v4210_v31  ;;  %v4213_v42 = vpop.f32.mrb[70].mxu0  ;;  %v4102_v32 = vpop.f32.mrb[35].mxu1 }
 0x2ad   : > { %v4103_v15 = vadd.f32 %v4102_v32, %v4101_v21  ;;  %v4214_v55 = vpop.f32.mrb[71].mxu0 }
 0x2ae   : > { %v6139_v0 = vadd.f32 %v4212_v28, %v4100_v25  ;;  %v4215_v19 = vadd.f32 %v4214_v55, %v4213_v42  ;;  %4627 = vmatmul.mubr.msk.bf16.gmra.mrb[140].mxu1 %vm5475_vm11, %v1232_v59 }
 0x2af   : > { %4611 = vmatmul.mubr.msk.bf16.gmra.mrb[176].mxu0 %vm5475_vm11, %v5819_v62 }
 0x2b0   : > { %v6146_v1 = vadd.f32 %v4215_v19, %v4103_v15 }
 0x2b1   : > { %v4104_v17 = vpop.f32.mrb[36].mxu1 }
 0x2b2   : > { %v4216_v47 = vpop.f32.mrb[72].mxu0  ;;  %v4105_v63 = vpop.f32.mrb[37].mxu1 }
 0x2b3   : > { %v4106_v53 = vadd.f32 %v4105_v63, %v4104_v17  ;;  %v4217_v14 = vpop.f32.mrb[73].mxu0  ;;  %v4107_v10 = vpop.f32.mrb[38].mxu1 }
 0x2b4   : > { %v4218_v16 = vadd.f32 %v4217_v14, %v4216_v47  ;;  %v4219_v39 = vpop.f32.mrb[74].mxu0  ;;  %v4108_v50 = vpop.f32.mrb[39].mxu1 }
 0x2b5   : > { %v4109_v56 = vadd.f32 %v4108_v50, %v4107_v10  ;;  %v4220_v54 = vpop.f32.mrb[75].mxu0 }
 0x2b6   : > { %v6148_v22 = vadd.f32 %v4218_v16, %v4106_v53  ;;  %v4221_v34 = vadd.f32 %v4220_v54, %v4219_v39 }
 0x2b8   : > { %v6150_v8 = vadd.f32 %v4221_v34, %v4109_v56 }
 0x2b9   : > { %v4110_v58 = vpop.f32.mrb[40].mxu1 }
 0x2ba   : > { %v4222_v62 = vpop.f32.mrb[76].mxu0  ;;  %v4111_v7 = vpop.f32.mrb[41].mxu1 }
 0x2bb   : > { %v4112_v36 = vadd.f32 %v4111_v7, %v4110_v58  ;;  %v4223_v46 = vpop.f32.mrb[77].mxu0  ;;  %v4113_v9 = vpop.f32.mrb[42].mxu1 }
 0x2bc   : > { %v4224_v5 = vadd.f32 %v4223_v46, %v4222_v62  ;;  %v4225_v41 = vpop.f32.mrb[78].mxu0  ;;  %v4114_v11 = vpop.f32.mrb[43].mxu1 }
 0x2bd   : > { %v4115_v23 = vadd.f32 %v4114_v11, %v4113_v9  ;;  %v4226_v57 = vpop.f32.mrb[79].mxu0 }
 0x2be   : > { %v6152_v27 = vadd.f32 %v4224_v5, %v4112_v36  ;;  %v4227_v24 = vadd.f32 %v4226_v57, %v4225_v41 }
 0x2c0   : > { %v6154_v40 = vadd.f32 %v4227_v24, %v4115_v23  ;;  %v4891_v24 = vld [vmem:[#allocation9] sm:$0xff]  }
 0x2c1   : > { %v4116_v37 = vpop.f32.mrb[44].mxu1  ;;  %4630 = vmatprep.subr.bf16.mxu1 %v4891_v24 }
 0x2c2   : > { %v4228_v13 = vpop.f32.mrb[80].mxu0  ;;  %v4117_v20 = vpop.f32.mrb[45].mxu1  ;;  %4631 = vmatpush3.bf16.msra.mxu1 %v4891_v24 }
 0x2c3   : > { %v4118_v26 = vadd.f32 %v4117_v20, %v4116_v37  ;;  %v4229_v61 = vpop.f32.mrb[81].mxu0  ;;  %v4119_v30 = vpop.f32.mrb[46].mxu1 }
 0x2c4   : > { %v4230_v31 = vadd.f32 %v4229_v61, %v4228_v13  ;;  %v4231_v3 = vpop.f32.mrb[82].mxu0  ;;  %v4120_v25 = vpop.f32.mrb[47].mxu1 }
 0x2c5   : > { %v4121_v43 = vadd.f32 %v4120_v25, %v4119_v30  ;;  %v4232_v21 = vpop.f32.mrb[83].mxu0 }
 0x2c6   : > { %v6156_v28 = vadd.f32 %v4230_v31, %v4118_v26  ;;  %v4233_v42 = vadd.f32 %v4232_v21, %v4231_v3 }
 0x2c8   : > { %v6158_v32 = vadd.f32 %v4233_v42, %v4121_v43 }
 0x2c9   : > { %v4122_v15 = vpop.f32.mrb[48].mxu1 }
 0x2ca   : > { %v4234_v55 = vpop.f32.mrb[84].mxu0  ;;  %v4123_v59 = vpop.f32.mrb[49].mxu1 }
 0x2cb   : > { %v4124_v19 = vadd.f32 %v4123_v59, %v4122_v15  ;;  %v4235_v17 = vpop.f32.mrb[85].mxu0  ;;  %v4125_v47 = vpop.f32.mrb[50].mxu1  ;;  %v4892_v15 = vld [vmem:[#allocation9 + $0x8] sm:$0xff]  }
 0x2cc   : > { %v4236_v63 = vadd.f32 %v4235_v17, %v4234_v55  ;;  %v4237_v53 = vpop.f32.mrb[86].mxu0  ;;  %v4126_v14 = vpop.f32.mrb[51].mxu1  ;;  %4632 = vmatprep.subr.bf16.mxu1 %v4892_v15 }
 0x2cd   : > { %v4127_v10 = vadd.f32 %v4126_v14, %v4125_v47  ;;  %v4238_v16 = vpop.f32.mrb[87].mxu0  ;;  %4633 = vmatpush3.bf16.msra.mxu1 %v4892_v15  ;;  %v4896_v15 = vld [vmem:[#allocation9 + $0x28] sm:$0xff]  }
 0x2ce   : > { %v6160_v39 = vadd.f32 %v4236_v63, %v4124_v19  ;;  %v4239_v50 = vadd.f32 %v4238_v16, %v4237_v53  ;;  %v4893_v19 = vld [vmem:[#allocation9 + $0x10] sm:$0xff]  }
 0x2cf   : > { %4634 = vmatprep.subr.bf16.mxu1 %v4893_v19 }
 0x2d0   : > { %v6162_v56 = vadd.f32 %v4239_v50, %v4127_v10 }
 0x2d1   : > { %v4128_v54 = vpop.f32.mrb[52].mxu1  ;;  %4635 = vmatpush3.bf16.msra.mxu1 %v4893_v19 }
 0x2d2   : > { %v4240_v34 = vpop.f32.mrb[88].mxu0  ;;  %v4129_v58 = vpop.f32.mrb[53].mxu1 }
 0x2d3   : > { %v4130_v62 = vadd.f32 %v4129_v58, %v4128_v54  ;;  %v4241_v7 = vpop.f32.mrb[89].mxu0  ;;  %v4131_v36 = vpop.f32.mrb[54].mxu1 }
 0x2d4   : > { %v4242_v46 = vadd.f32 %v4241_v7, %v4240_v34  ;;  %v4243_v9 = vpop.f32.mrb[90].mxu0  ;;  %v4132_v5 = vpop.f32.mrb[55].mxu1  ;;  %v4894_v7 = vld [vmem:[#allocation9 + $0x18] sm:$0xff]  }
 0x2d5   : > { %v4133_v41 = vadd.f32 %v4132_v5, %v4131_v36  ;;  %v4244_v11 = vpop.f32.mrb[91].mxu0  ;;  %4636 = vmatprep.subr.bf16.mxu1 %v4894_v7 }
 0x2d6   : > { %v6164_v23 = vadd.f32 %v4242_v46, %v4130_v62  ;;  %v4245_v57 = vadd.f32 %v4244_v11, %v4243_v9  ;;  %v4895_v9 = vld [vmem:[#allocation9 + $0x20] sm:$0xff]   ;;  %4637 = vmatpush3.bf16.msra.mxu1 %v4894_v7 }
 0x2d7   : > { %4638 = vmatprep.subr.bf16.mxu1 %v4895_v9 }
 0x2d8   : > { %v6166_v37 = vadd.f32 %v4245_v57, %v4133_v41 }
 0x2d9   : > { %v4134_v13 = vpop.f32.mrb[56].mxu1 }
 0x2da   : > { %v4246_v20 = vpop.f32.mrb[92].mxu0  ;;  %v4135_v26 = vpop.f32.mrb[57].mxu1  ;;  %4639 = vmatpush3.bf16.msra.mxu1 %v4895_v9  ;;  %v4898_v9 = vld [vmem:[#allocation9 + $0x38] sm:$0xff]  }
 0x2db   : > { %v4136_v61 = vadd.f32 %v4135_v26, %v4134_v13  ;;  %v4247_v30 = vpop.f32.mrb[93].mxu0  ;;  %v4137_v31 = vpop.f32.mrb[58].mxu1  ;;  %4640 = vmatprep.subr.bf16.mxu1 %v4896_v15 }
 0x2dc   : > { %v4248_v3 = vadd.f32 %v4247_v30, %v4246_v20  ;;  %v4249_v25 = vpop.f32.mrb[94].mxu0  ;;  %v4138_v43 = vpop.f32.mrb[59].mxu1 }
 0x2dd   : > { %v4139_v21 = vadd.f32 %v4138_v43, %v4137_v31  ;;  %v4250_v42 = vpop.f32.mrb[95].mxu0 }
 0x2de   : > { %v6168_v55 = vadd.f32 %v4248_v3, %v4136_v61  ;;  %v4251_v59 = vadd.f32 %v4250_v42, %v4249_v25  ;;  %4641 = vmatpush3.bf16.msra.mxu1 %v4896_v15 }
 0x2e0   : > { %v6170_v17 = vadd.f32 %v4251_v59, %v4139_v21 }
 0x2e1   : > { %v4140_v47 = vpop.f32.mrb[60].mxu1 }
 0x2e2   : > { %v4252_v63 = vpop.f32.mrb[96].mxu0  ;;  %v4141_v53 = vpop.f32.mrb[61].mxu1 }
 0x2e3   : > { %v4142_v14 = vadd.f32 %v4141_v53, %v4140_v47  ;;  %v4253_v10 = vpop.f32.mrb[97].mxu0  ;;  %v4143_v16 = vpop.f32.mrb[62].mxu1 }
 0x2e4   : > { %v4254_v50 = vadd.f32 %v4253_v10, %v4252_v63  ;;  %v4255_v54 = vpop.f32.mrb[98].mxu0  ;;  %v4144_v34 = vpop.f32.mrb[63].mxu1 }
 0x2e5   : > { %v4145_v58 = vadd.f32 %v4144_v34, %v4143_v16  ;;  %v4256_v62 = vpop.f32.mrb[99].mxu0 }
 0x2e6   : > { %v6172_v36 = vadd.f32 %v4254_v50, %v4142_v14  ;;  %v4257_v46 = vadd.f32 %v4256_v62, %v4255_v54  ;;  %v4897_v54 = vld [vmem:[#allocation9 + $0x30] sm:$0xff]  }
 0x2e7   : > { %4642 = vmatprep.subr.bf16.mxu1 %v4897_v54 }
 0x2e8   : > { %v6174_v5 = vadd.f32 %v4257_v46, %v4145_v58  ;;  %4643 = vmatpush3.bf16.msra.mxu1 %v4897_v54 }
 0x2e9   : > { %v4274_v41 = vpop.f32.mrb[64].mxu1  ;;  %4644 = vmatprep.subr.bf16.mxu1 %v4898_v9 }
 0x2ea   : > { %v4386_v11 = vpop.f32.mrb[100].mxu0  ;;  %v4275_v57 = vpop.f32.mrb[65].mxu1 }
 0x2eb   : > { %v4276_v24 = vadd.f32 %v4275_v57, %v4274_v41  ;;  %v4387_v13 = vpop.f32.mrb[101].mxu0  ;;  %v4277_v20 = vpop.f32.mrb[66].mxu1 }
 0x2ec   : > { %v4388_v26 = vadd.f32 %v4387_v13, %v4386_v11  ;;  %v4389_v61 = vpop.f32.mrb[102].mxu0  ;;  %v4278_v30 = vpop.f32.mrb[67].mxu1  ;;  %4645 = vmatpush3.bf16.msra.mxu1 %v4898_v9 }
 0x2ed   : > { %v2521_v31 = vadd.f32 %v4276_v24, %v6025_v45  ;;  %v4279_v3 = vadd.f32 %v4278_v30, %v4277_v20  ;;  %v4390_v25 = vpop.f32.mrb[103].mxu0 }
 0x2ee   : > { %v4391_v43 = vadd.f32 %v4390_v25, %v4389_v61 }
 0x2ef   : > { %v2524_v21 = vadd.f32 %v4279_v3, %v6034_v49  ;;  %v6178_v42 = vadd.f32 %v4388_v26, %v2521_v31 }
 0x2f1   : > { %v4280_v59 = vpop.f32.mrb[68].mxu1  ;;  %v6180_v19 = vadd.f32 %v4391_v43, %v2524_v21 }
 0x2f2   : > { %v4392_v47 = vpop.f32.mrb[104].mxu0  ;;  %v4281_v63 = vpop.f32.mrb[69].mxu1 }
 0x2f3   : > { %v4282_v53 = vadd.f32 %v4281_v63, %v4280_v59  ;;  %v4393_v14 = vpop.f32.mrb[105].mxu0  ;;  %v4283_v10 = vpop.f32.mrb[70].mxu1 }
 0x2f4   : > { %v4394_v16 = vadd.f32 %v4393_v14, %v4392_v47  ;;  %v4395_v45 = vpop.f32.mrb[106].mxu0  ;;  %v4284_v50 = vpop.f32.mrb[71].mxu1 }
 0x2f5   : > { %v2529_v34 = vadd.f32 %v4282_v53, %v6037_v44  ;;  %v4285_v49 = vadd.f32 %v4284_v50, %v4283_v10  ;;  %v4396_v58 = vpop.f32.mrb[107].mxu0 }
 0x2f6   : > { %v4397_v62 = vadd.f32 %v4396_v58, %v4395_v45 }
 0x2f7   : > { %v2532_v7 = vadd.f32 %v4285_v49, %v6046_v18  ;;  %v6184_v46 = vadd.f32 %v4394_v16, %v2529_v34 }
 0x2f9   : > { %v4286_v41 = vpop.f32.mrb[72].mxu1  ;;  %v6186_v11 = vadd.f32 %v4397_v62, %v2532_v7 }
 0x2fa   : > { %v4398_v57 = vpop.f32.mrb[108].mxu0  ;;  %v4287_v24 = vpop.f32.mrb[73].mxu1 }
 0x2fb   : > { %v4288_v13 = vadd.f32 %v4287_v24, %v4286_v41  ;;  %v4399_v20 = vpop.f32.mrb[109].mxu0  ;;  %v4289_v26 = vpop.f32.mrb[74].mxu1 }
 0x2fc   : > { %v4400_v44 = vadd.f32 %v4399_v20, %v4398_v57  ;;  %v4401_v61 = vpop.f32.mrb[110].mxu0  ;;  %v4290_v30 = vpop.f32.mrb[75].mxu1 }
 0x2fd   : > { %v2537_v31 = vadd.f32 %v4288_v13, %v6049_v6  ;;  %v4291_v18 = vadd.f32 %v4290_v30, %v4289_v26  ;;  %v4402_v3 = vpop.f32.mrb[111].mxu0 }
 0x2fe   : > { %v4403_v25 = vadd.f32 %v4402_v3, %v4401_v61 }
 0x2ff   : > { %v2540_v43 = vadd.f32 %v4291_v18, %v6058_v38  ;;  %v6190_v21 = vadd.f32 %v4400_v44, %v2537_v31 }
 0x301   : > { %v4292_v15 = vpop.f32.mrb[76].mxu1  ;;  %v6192_v59 = vadd.f32 %v4403_v25, %v2540_v43 }
 0x302   : > { %v4404_v47 = vpop.f32.mrb[112].mxu0  ;;  %v4293_v63 = vpop.f32.mrb[77].mxu1 }
 0x303   : > { %v4294_v53 = vadd.f32 %v4293_v63, %v4292_v15  ;;  %v4405_v14 = vpop.f32.mrb[113].mxu0  ;;  %v4295_v10 = vpop.f32.mrb[78].mxu1 }
 0x304   : > { %v4406_v16 = vadd.f32 %v4405_v14, %v4404_v47  ;;  %v4407_v45 = vpop.f32.mrb[114].mxu0  ;;  %v4296_v50 = vpop.f32.mrb[79].mxu1 }
 0x305   : > { %v2545_v6 = vadd.f32 %v4294_v53, %v6061_v52  ;;  %v4297_v54 = vadd.f32 %v4296_v50, %v4295_v10  ;;  %v4408_v34 = vpop.f32.mrb[115].mxu0 }
 0x306   : > { %v4409_v49 = vadd.f32 %v4408_v34, %v4407_v45 }
 0x307   : > { %v2548_v38 = vadd.f32 %v4297_v54, %v6070_v35  ;;  %v6196_v58 = vadd.f32 %v4406_v16, %v2545_v6 }
 0x309   : > { %v4298_v62 = vpop.f32.mrb[80].mxu1  ;;  %v6198_v7 = vadd.f32 %v4409_v49, %v2548_v38 }
 0x30a   : > { %v4410_v9 = vpop.f32.mrb[116].mxu0  ;;  %v4299_v41 = vpop.f32.mrb[81].mxu1 }
 0x30b   : > { %v4300_v57 = vadd.f32 %v4299_v41, %v4298_v62  ;;  %v4411_v24 = vpop.f32.mrb[117].mxu0  ;;  %v4301_v13 = vpop.f32.mrb[82].mxu1 }
 0x30c   : > { %v4412_v20 = vadd.f32 %v4411_v24, %v4410_v9  ;;  %v4413_v26 = vpop.f32.mrb[118].mxu0  ;;  %v4302_v44 = vpop.f32.mrb[83].mxu1 }
 0x30d   : > { %v2553_v52 = vadd.f32 %v4300_v57, %v6073_v4  ;;  %v4303_v61 = vadd.f32 %v4302_v44, %v4301_v13  ;;  %v4414_v30 = vpop.f32.mrb[119].mxu0 }
 0x30e   : > { %v4415_v31 = vadd.f32 %v4414_v30, %v4413_v26 }
 0x30f   : > { %v2556_v35 = vadd.f32 %v4303_v61, %v6082_v51  ;;  %v6202_v18 = vadd.f32 %v4412_v20, %v2553_v52 }
 0x311   : > { %v4304_v3 = vpop.f32.mrb[84].mxu1  ;;  %v6204_v25 = vadd.f32 %v4415_v31, %v2556_v35 }
 0x312   : > { %v4416_v43 = vpop.f32.mrb[120].mxu0  ;;  %v4305_v15 = vpop.f32.mrb[85].mxu1 }
 0x313   : > { %v4306_v47 = vadd.f32 %v4305_v15, %v4304_v3  ;;  %v4417_v63 = vpop.f32.mrb[121].mxu0  ;;  %v4307_v53 = vpop.f32.mrb[86].mxu1 }
 0x314   : > { %v4418_v14 = vadd.f32 %v4417_v63, %v4416_v43  ;;  %v4419_v10 = vpop.f32.mrb[122].mxu0  ;;  %v4308_v16 = vpop.f32.mrb[87].mxu1 }
 0x315   : > { %v2561_v4 = vadd.f32 %v4306_v47, %v6087_v33  ;;  %v4309_v45 = vadd.f32 %v4308_v16, %v4307_v53  ;;  %v4420_v50 = vpop.f32.mrb[123].mxu0 }
 0x316   : > { %v4421_v6 = vadd.f32 %v4420_v50, %v4419_v10 }
 0x317   : > { %v2564_v51 = vadd.f32 %v4309_v45, %v6098_v29  ;;  %v6208_v54 = vadd.f32 %v4418_v14, %v2561_v4 }
 0x319   : > { %v4310_v34 = vpop.f32.mrb[88].mxu1  ;;  %v6210_v49 = vadd.f32 %v4421_v6, %v2564_v51 }
 0x31a   : > { %v4422_v38 = vpop.f32.mrb[124].mxu0  ;;  %v4311_v62 = vpop.f32.mrb[89].mxu1 }
 0x31b   : > { %v4312_v9 = vadd.f32 %v4311_v62, %v4310_v34  ;;  %v4423_v41 = vpop.f32.mrb[125].mxu0  ;;  %v4313_v57 = vpop.f32.mrb[90].mxu1 }
 0x31c   : > { %v4424_v24 = vadd.f32 %v4423_v41, %v4422_v38  ;;  %v4425_v13 = vpop.f32.mrb[126].mxu0  ;;  %v4314_v20 = vpop.f32.mrb[91].mxu1 }
 0x31d   : > { %v2569_v33 = vadd.f32 %v4312_v9, %v6103_v2  ;;  %v4315_v26 = vadd.f32 %v4314_v20, %v4313_v57  ;;  %v4426_v44 = vpop.f32.mrb[127].mxu0 }
 0x31e   : > { %v4427_v52 = vadd.f32 %v4426_v44, %v4425_v13 }
 0x31f   : > { %v2572_v29 = vadd.f32 %v4315_v26, %v6114_v60  ;;  %v6214_v61 = vadd.f32 %v4424_v24, %v2569_v33 }
 0x321   : > { %v4316_v30 = vpop.f32.mrb[92].mxu1  ;;  %v6216_v31 = vadd.f32 %v4427_v52, %v2572_v29 }
 0x322   : > { %v4428_v35 = vpop.f32.mrb[128].mxu0  ;;  %v4317_v3 = vpop.f32.mrb[93].mxu1 }
 0x323   : > { %v4318_v43 = vadd.f32 %v4317_v3, %v4316_v30  ;;  %v4429_v15 = vpop.f32.mrb[129].mxu0  ;;  %v4319_v47 = vpop.f32.mrb[94].mxu1 }
 0x324   : > { %v4430_v63 = vadd.f32 %v4429_v15, %v4428_v35  ;;  %v4431_v53 = vpop.f32.mrb[130].mxu0  ;;  %v4320_v14 = vpop.f32.mrb[95].mxu1 }
 0x325   : > { %v2577_v2 = vadd.f32 %v4318_v43, %v6119_v48  ;;  %v4321_v10 = vadd.f32 %v4320_v14, %v4319_v47  ;;  %v4432_v16 = vpop.f32.mrb[131].mxu0 }
 0x326   : > { %v4433_v4 = vadd.f32 %v4432_v16, %v4431_v53 }
 0x327   : > { %v2580_v60 = vadd.f32 %v4321_v10, %v6130_v12  ;;  %v6220_v45 = vadd.f32 %v4430_v63, %v2577_v2 }
 0x329   : > { %v4322_v50 = vpop.f32.mrb[96].mxu1  ;;  %v6222_v6 = vadd.f32 %v4433_v4, %v2580_v60 }
 0x32a   : > { %v4434_v51 = vpop.f32.mrb[132].mxu0  ;;  %v4323_v34 = vpop.f32.mrb[97].mxu1 }
 0x32b   : > { %v4324_v38 = vadd.f32 %v4323_v34, %v4322_v50  ;;  %v4435_v62 = vpop.f32.mrb[133].mxu0  ;;  %v4325_v9 = vpop.f32.mrb[98].mxu1 }
 0x32c   : > { %v4436_v41 = vadd.f32 %v4435_v62, %v4434_v51  ;;  %v4437_v57 = vpop.f32.mrb[134].mxu0  ;;  %v4326_v24 = vpop.f32.mrb[99].mxu1 }
 0x32d   : > { %v2585_v48 = vadd.f32 %v4324_v38, %v6139_v0  ;;  %v4327_v13 = vadd.f32 %v4326_v24, %v4325_v9  ;;  %v4438_v20 = vpop.f32.mrb[135].mxu0 }
 0x32e   : > { %v4439_v33 = vadd.f32 %v4438_v20, %v4437_v57 }
 0x32f   : > { %v2588_v12 = vadd.f32 %v4327_v13, %v6146_v1  ;;  %v6226_v26 = vadd.f32 %v4436_v41, %v2585_v48 }
 0x331   : > { %v4328_v44 = vpop.f32.mrb[100].mxu1  ;;  %v6228_v52 = vadd.f32 %v4439_v33, %v2588_v12 }
 0x332   : > { %v4440_v29 = vpop.f32.mrb[136].mxu0  ;;  %v4329_v30 = vpop.f32.mrb[101].mxu1 }
 0x333   : > { %v4330_v35 = vadd.f32 %v4329_v30, %v4328_v44  ;;  %v4441_v3 = vpop.f32.mrb[137].mxu0  ;;  %v4331_v43 = vpop.f32.mrb[102].mxu1 }
 0x334   : > { %v4442_v15 = vadd.f32 %v4441_v3, %v4440_v29  ;;  %v4443_v47 = vpop.f32.mrb[138].mxu0  ;;  %v4332_v63 = vpop.f32.mrb[103].mxu1 }
 0x335   : > { %v2593_v0 = vadd.f32 %v4330_v35, %v6148_v22  ;;  %v4333_v53 = vadd.f32 %v4332_v63, %v4331_v43  ;;  %v4444_v14 = vpop.f32.mrb[139].mxu0 }
 0x336   : > { %v4445_v2 = vadd.f32 %v4444_v14, %v4443_v47 }
 0x337   : > { %v2596_v1 = vadd.f32 %v4333_v53, %v6150_v8  ;;  %v6232_v10 = vadd.f32 %v4442_v15, %v2593_v0 }
 0x339   : > { %v4334_v16 = vpop.f32.mrb[104].mxu1  ;;  %v6234_v4 = vadd.f32 %v4445_v2, %v2596_v1 }
 0x33a   : > { %v4446_v60 = vpop.f32.mrb[140].mxu0  ;;  %v4335_v50 = vpop.f32.mrb[105].mxu1 }
 0x33b   : > { %v4336_v51 = vadd.f32 %v4335_v50, %v4334_v16  ;;  %v4447_v34 = vpop.f32.mrb[141].mxu0  ;;  %v4337_v38 = vpop.f32.mrb[106].mxu1 }
 0x33c   : > { %v4448_v62 = vadd.f32 %v4447_v34, %v4446_v60  ;;  %v4449_v9 = vpop.f32.mrb[142].mxu0  ;;  %v4338_v41 = vpop.f32.mrb[107].mxu1 }
 0x33d   : > { %v2601_v22 = vadd.f32 %v4336_v51, %v6152_v27  ;;  %v4339_v57 = vadd.f32 %v4338_v41, %v4337_v38  ;;  %v4450_v24 = vpop.f32.mrb[143].mxu0 }
 0x33e   : > { %v4451_v48 = vadd.f32 %v4450_v24, %v4449_v9 }
 0x33f   : > { %v2604_v8 = vadd.f32 %v4339_v57, %v6154_v40  ;;  %v6238_v13 = vadd.f32 %v4448_v62, %v2601_v22 }
 0x341   : > { %v4340_v20 = vpop.f32.mrb[108].mxu1  ;;  %v6240_v33 = vadd.f32 %v4451_v48, %v2604_v8 }
 0x342   : > { %v4452_v12 = vpop.f32.mrb[144].mxu0  ;;  %v4341_v44 = vpop.f32.mrb[109].mxu1 }
 0x343   : > { %v4342_v29 = vadd.f32 %v4341_v44, %v4340_v20  ;;  %v4453_v30 = vpop.f32.mrb[145].mxu0  ;;  %v4343_v35 = vpop.f32.mrb[110].mxu1 }
 0x344   : > { %v4454_v3 = vadd.f32 %v4453_v30, %v4452_v12  ;;  %v4455_v43 = vpop.f32.mrb[146].mxu0  ;;  %v4344_v15 = vpop.f32.mrb[111].mxu1 }
 0x345   : > { %v2609_v27 = vadd.f32 %v4342_v29, %v6156_v28  ;;  %v4345_v47 = vadd.f32 %v4344_v15, %v4343_v35  ;;  %v4456_v63 = vpop.f32.mrb[147].mxu0 }
 0x346   : > { %v4457_v0 = vadd.f32 %v4456_v63, %v4455_v43 }
 0x347   : > { %v2612_v40 = vadd.f32 %v4345_v47, %v6158_v32  ;;  %v6244_v53 = vadd.f32 %v4454_v3, %v2609_v27 }
 0x349   : > { %v4346_v14 = vpop.f32.mrb[112].mxu1  ;;  %v6246_v2 = vadd.f32 %v4457_v0, %v2612_v40 }
 0x34a   : > { %v4458_v1 = vpop.f32.mrb[148].mxu0  ;;  %v4347_v16 = vpop.f32.mrb[113].mxu1 }
 0x34b   : > { %v4348_v60 = vadd.f32 %v4347_v16, %v4346_v14  ;;  %v4459_v50 = vpop.f32.mrb[149].mxu0  ;;  %v4349_v51 = vpop.f32.mrb[114].mxu1 }
 0x34c   : > { %v4460_v34 = vadd.f32 %v4459_v50, %v4458_v1  ;;  %v4461_v38 = vpop.f32.mrb[150].mxu0  ;;  %v4350_v62 = vpop.f32.mrb[115].mxu1 }
 0x34d   : > { %v2617_v28 = vadd.f32 %v4348_v60, %v6160_v39  ;;  %v4351_v9 = vadd.f32 %v4350_v62, %v4349_v51  ;;  %v4462_v41 = vpop.f32.mrb[151].mxu0 }
 0x34e   : > { %v4463_v22 = vadd.f32 %v4462_v41, %v4461_v38 }
 0x34f   : > { %v2620_v32 = vadd.f32 %v4351_v9, %v6162_v56  ;;  %v6250_v57 = vadd.f32 %v4460_v34, %v2617_v28 }
 0x351   : > { %v4352_v24 = vpop.f32.mrb[116].mxu1  ;;  %v6252_v48 = vadd.f32 %v4463_v22, %v2620_v32 }
 0x352   : > { %v4464_v8 = vpop.f32.mrb[152].mxu0  ;;  %v4353_v20 = vpop.f32.mrb[117].mxu1 }
 0x353   : > { %v4354_v12 = vadd.f32 %v4353_v20, %v4352_v24  ;;  %v4465_v44 = vpop.f32.mrb[153].mxu0  ;;  %v4355_v29 = vpop.f32.mrb[118].mxu1 }
 0x354   : > { %v4466_v30 = vadd.f32 %v4465_v44, %v4464_v8  ;;  %v4467_v35 = vpop.f32.mrb[154].mxu0  ;;  %v4356_v3 = vpop.f32.mrb[119].mxu1 }
 0x355   : > { %v2625_v39 = vadd.f32 %v4354_v12, %v6164_v23  ;;  %v4357_v43 = vadd.f32 %v4356_v3, %v4355_v29  ;;  %v4468_v15 = vpop.f32.mrb[155].mxu0 }
 0x356   : > { %v4469_v27 = vadd.f32 %v4468_v15, %v4467_v35  ;;  %v6273_v15 = vld [vmem:[%s6621_s5] ss:$0 sm:$0xff] }
 0x357   : > { %v2628_v56 = vadd.f32 %v4357_v43, %v6166_v37  ;;  %v6256_v47 = vadd.f32 %v4466_v30, %v2625_v39 }
 0x359   : > { %v4358_v63 = vpop.f32.mrb[120].mxu1  ;;  %v6258_v0 = vadd.f32 %v4469_v27, %v2628_v56 }
 0x35a   : > { %v4470_v40 = vpop.f32.mrb[156].mxu0  ;;  %v4359_v14 = vpop.f32.mrb[121].mxu1 }
 0x35b   : > { %v4360_v1 = vadd.f32 %v4359_v14, %v4358_v63  ;;  %v4471_v16 = vpop.f32.mrb[157].mxu0  ;;  %v4361_v60 = vpop.f32.mrb[122].mxu1 }
 0x35c   : > { %v4472_v50 = vadd.f32 %v4471_v16, %v4470_v40  ;;  %v4473_v51 = vpop.f32.mrb[158].mxu0  ;;  %v4362_v34 = vpop.f32.mrb[123].mxu1 }
 0x35d   : > { %v2633_v23 = vadd.f32 %v4360_v1, %v6168_v55  ;;  %v4363_v38 = vadd.f32 %v4362_v34, %v4361_v60  ;;  %v4474_v62 = vpop.f32.mrb[159].mxu0 }
 0x35e   : > { %v4475_v28 = vadd.f32 %v4474_v62, %v4473_v51 }
 0x35f   : > { %v2636_v37 = vadd.f32 %v4363_v38, %v6170_v17  ;;  %v6262_v9 = vadd.f32 %v4472_v50, %v2633_v23 }
 0x361   : > { %v4364_v41 = vpop.f32.mrb[124].mxu1  ;;  %v6264_v22 = vadd.f32 %v4475_v28, %v2636_v37 }
 0x362   : > { %v4476_v32 = vpop.f32.mrb[160].mxu0  ;;  %v4365_v24 = vpop.f32.mrb[125].mxu1 }
 0x363   : > { %v4366_v8 = vadd.f32 %v4365_v24, %v4364_v41  ;;  %v4477_v20 = vpop.f32.mrb[161].mxu0  ;;  %v4367_v12 = vpop.f32.mrb[126].mxu1 }
 0x364   : > { %v4478_v44 = vadd.f32 %v4477_v20, %v4476_v32  ;;  %v4479_v29 = vpop.f32.mrb[162].mxu0  ;;  %v4368_v30 = vpop.f32.mrb[127].mxu1 }
 0x365   : > { %v2641_v55 = vadd.f32 %v4366_v8, %v6172_v36  ;;  %v4369_v35 = vadd.f32 %v4368_v30, %v4367_v12  ;;  %v4480_v3 = vpop.f32.mrb[163].mxu0 }
 0x366   : > { %v4481_v39 = vadd.f32 %v4480_v3, %v4479_v29 }
 0x367   : > { %v2644_v17 = vadd.f32 %v4369_v35, %v6174_v5  ;;  %v6268_v43 = vadd.f32 %v4478_v44, %v2641_v55  ;;  %v6282_v5 = vld [vmem:[%s6664_s6] ss:$0 sm:$0xff]  ;;  %s3559_s6 = scalar_lea.sflag [#allocation5], %s5392_s10 }
 0x369   : > { %v4616_v27 = vpop.f32.mrb[128].mxu1  ;;  %v6275_v56 = vadd.f32 %v4481_v39, %v2644_v17 }
 0x36a   : > { %v4600_v63 = vpop.f32.mrb[164].mxu0  ;;  %v2915_v40 = vadd.f32 %v4616_v27, %v6232_v10  ;;  %v2906_v14 = vpop.f32.mrb[129].mxu1 }
 0x36b   : > { %v2851_v36 = vadd.f32 %v4600_v63, %v6184_v46  ;;  %v2842_v1 = vpop.f32.mrb[165].mxu0  ;;  %v2907_v16 = vadd.f32 %v2906_v14, %v6226_v26  ;;  %v4617_v60 = vpop.f32.mrb[130].mxu1 }
 0x36c   : > { %v2994_v50 = vmul.f32 %v6273_v15, %v2915_v40  ;;  %v2843_v51 = vadd.f32 %v2842_v1, %v6178_v42  ;;  %v4601_v34 = vpop.f32.mrb[166].mxu0  ;;  %v2918_v23 = vadd.f32 %v4617_v60, %v6234_v4  ;;  %v2909_v10 = vpop.f32.mrb[131].mxu1 }
 0x36d   : > { %v2978_v38 = vmul.f32 %v6273_v15, %v2851_v36  ;;  %v2992_v46 = vmul.f32 %v6273_v15, %v2907_v16  ;;  %v2854_v62 = vadd.f32 %v4601_v34, %v6186_v11  ;;  %v2845_v28 = vpop.f32.mrb[167].mxu0  ;;  %v2910_v37 = vadd.f32 %v2909_v10, %v6228_v52 }
 0x36e   : > { %v6293_v26 = vadd.f32 %v6282_v5, %v2994_v50  ;;  %v2976_v41 = vmul.f32 %v6273_v15, %v2843_v51  ;;  %v2995_v42 = vmul.f32 %v6273_v15, %v2918_v23  ;;  %v2846_v32 = vadd.f32 %v2845_v28, %v6180_v19 }
 0x36f   : > { %v3017_v4 = vadd.f32 %v6282_v5, %v2978_v38  ;;  %v6300_v24 = vadd.f32 %v6282_v5, %v2992_v46  ;;  %v2979_v8 = vmul.f32 %v6273_v15, %v2854_v62  ;;  %v2993_v11 = vmul.f32 %v6273_v15, %v2910_v37 }
 0x370   : > { %v3065_v52 = vmax.f32 %v6293_v26, 0.0  ;;  %v3015_v20 = vadd.f32 %v6282_v5, %v2976_v41  ;;  %v6307_v12 = vadd.f32 %v6282_v5, %v2995_v42  ;;  %v2977_v44 = vmul.f32 %v6273_v15, %v2846_v32 }
 0x371   : > { %v3049_v29 = vmax.f32 %v3017_v4, 0.0  ;;  %v3063_v19 = vmax.f32 %v6300_v24, 0.0  ;;  %v3018_v30 = vadd.f32 %v6282_v5, %v2979_v8  ;;  %v6313_v55 = vadd.f32 %v6282_v5, %v2993_v11  ;;  %v4620_v35 = vpop.f32.mrb[132].mxu1 }
 0x372   : > { %v3047_v3 = vmax.f32 %v3015_v20, 0.0  ;;  %v3066_v39 = vmax.f32 %v6307_v12, 0.0  ;;  %v3016_v17 = vadd.f32 %v6282_v5, %v2977_v44  ;;  %v4604_v27 = vpop.f32.mrb[168].mxu0  ;;  %v2931_v63 = vadd.f32 %v4620_v35, %v6244_v53  ;;  %v2922_v40 = vpop.f32.mrb[133].mxu1 }
 0x373   : > { %v3050_v14 = vmax.f32 %v3018_v30, 0.0  ;;  %v3064_v36 = vmax.f32 %v6313_v55, 0.0  ;;  %v2867_v1 = vadd.f32 %v4604_v27, %v6196_v58  ;;  %v2858_v16 = vpop.f32.mrb[169].mxu0  ;;  %v2923_v60 = vadd.f32 %v2922_v40, %v6238_v13  ;;  %v4621_v50 = vpop.f32.mrb[134].mxu1  ;;  %v6438_v55 = vld [vmem:[%s6665_s16] ss:$0 sm:$0xff] }
 0x374   : > { %v3048_v51 = vmax.f32 %v3016_v17, 0.0  ;;  %v2998_v34 = vmul.f32 %v6273_v15, %v2931_v63  ;;  %v2859_v23 = vadd.f32 %v2858_v16, %v6190_v21  ;;  %v4605_v10 = vpop.f32.mrb[170].mxu0  ;;  %v2934_v38 = vadd.f32 %v4621_v50, %v6246_v2  ;;  %v2925_v46 = vpop.f32.mrb[135].mxu1  ;;  %s5017_s16 = sshll.u32 %s5113_s13, 4  ;;  %s5018_s16 = int_to_ptr.vmem [resolvable:$false] %s5017_s16 }
 0x375   : > { %v3080_v53 = vpack.c.bf16 %v3050_v14, %v3049_v29  ;;  %v2982_v62 = vmul.f32 %v6273_v15, %v2867_v1  ;;  %v2996_v28 = vmul.f32 %v6273_v15, %v2923_v60  ;;  %v2870_v58 = vadd.f32 %v4605_v10, %v6198_v7  ;;  %v2861_v37 = vpop.f32.mrb[171].mxu0  ;;  %s5019_s12 = scalar_lea.vmem %s5018_s16, 8192  ;;  %p5020_p5 = scmp.lt.s32.totalorder %s6564_s24, %s5018_s16 }
 0x376   : > { %v6328_v13 = vadd.f32 %v6282_v5, %v2998_v34  ;;  %v2980_v41 = vmul.f32 %v6273_v15, %v2859_v23  ;;  %v2999_v42 = vmul.f32 %v6273_v15, %v2934_v38  ;;  %v2862_v21 = vadd.f32 %v2861_v37, %v6192_v59  ;;  %p5021_p7 = scmp.lt.s32.totalorder %s5019_s12, %s5013_s9 }
 0x377   : > { %v6334_v2 = vadd.f32 %v6282_v5, %v2982_v62  ;;  %v6337_v32 = vadd.f32 %v6282_v5, %v2996_v28  ;;  %v2983_v4 = vmul.f32 %v6273_v15, %v2870_v58  ;;  %v2926_v7 = vadd.f32 %v2925_v46, %v6240_v33 }
 0x378   : > { %v3069_v8 = vmax.f32 %v6328_v13, 0.0  ;;  %v3019_v11 = vadd.f32 %v6282_v5, %v2980_v41  ;;  %v6344_v20 = vadd.f32 %v6282_v5, %v2999_v42  ;;  %v2981_v44 = vmul.f32 %v6273_v15, %v2862_v21  ;;  %p5022_p9 = por %p5021_p7, %p5020_p5 }
 0x379   : > { %v3053_v59 = vmax.f32 %v6334_v2, 0.0  ;;  %v3067_v29 = vmax.f32 %v6337_v32, 0.0  ;;  %v3022_v30 = vadd.f32 %v6282_v5, %v2983_v4  ;;  %v2997_v35 = vmul.f32 %v6273_v15, %v2926_v7  ;;  %v4624_v17 = vpop.f32.mrb[136].mxu1  ;;  %v6445_v32 = vld [vmem:[%s6666_s29] ss:$0 sm:$0xff] }
 0x37a   : > { %v3051_v27 = vmax.f32 %v3019_v11, 0.0  ;;  %v3070_v33 = vmax.f32 %v6344_v20, 0.0  ;;  %v3020_v63 = vadd.f32 %v6282_v5, %v2981_v44  ;;  %v3079_v40 = vpack.c.bf16 %v3048_v51, %v3047_v3  ;;  %v4608_v14 = vpop.f32.mrb[172].mxu0  ;;  %v2938_v1 = vpop.f32.mrb[137].mxu1  ;;  %p5023_p0 = pnand %p5022_p9, %p5016_p3 }
 0x37b   : > { %v3054_v16 = vmax.f32 %v3022_v30, 0.0  ;;  %v6354_v60 = vadd.f32 %v6282_v5, %v2997_v35  ;;  %v2883_v50 = vadd.f32 %v4608_v14, %v6208_v54  ;;  %v2947_v34 = vadd.f32 %v4624_v17, %v6256_v47  ;;  %v2874_v23 = vpop.f32.mrb[173].mxu0  ;;  %v4625_v10 = vpop.f32.mrb[138].mxu1 }
 0x37c   : > { %v3052_v38 = vmax.f32 %v3020_v63, 0.0  ;;  %4646 = vmatprep.mubr.bf16.mxu1 %v3079_v40  ;;  %v2875_v46 = vadd.f32 %v2874_v23, %v6202_v18  ;;  %v2939_v62 = vadd.f32 %v2938_v1, %v6250_v57  ;;  %v4609_v28 = vpop.f32.mrb[174].mxu0  ;;  %v2950_v3 = vadd.f32 %v4625_v10, %v6258_v0  ;;  %v2941_v51 = vpop.f32.mrb[139].mxu1 }
 0x37d   : > { %v3068_v58 = vmax.f32 %v6354_v60, 0.0  ;;  %4647 = vmatmul.mubr.bf16.vlgmr.msra.gmra.mrb[144].mxu1 %v3080_v53  ;;  %v2986_v37 = vmul.f32 %v6273_v15, %v2883_v50  ;;  %v3002_v54 = vmul.f32 %v6273_v15, %v2947_v34  ;;  %v2886_v47 = vadd.f32 %v4609_v28, %v6210_v49  ;;  %v2877_v41 = vpop.f32.mrb[175].mxu0 }
 0x37e   : > { %v2984_v42 = vmul.f32 %v6273_v15, %v2875_v46  ;;  %v3000_v18 = vmul.f32 %v6273_v15, %v2939_v62  ;;  %v3003_v57 = vmul.f32 %v6273_v15, %v2950_v3  ;;  %v2878_v21 = vadd.f32 %v2877_v41, %v6204_v25 }
 0x37f   : > { %v6370_v0 = vadd.f32 %v6282_v5, %v2986_v37  ;;  %v6373_v53 = vadd.f32 %v6282_v5, %v3002_v54  ;;  %v2987_v2 = vmul.f32 %v6273_v15, %v2886_v47  ;;  %v2942_v4 = vadd.f32 %v2941_v51, %v6252_v48 }
 0x380   : > { %v3023_v49 = vadd.f32 %v6282_v5, %v2984_v42  ;;  %v6379_v7 = vadd.f32 %v6282_v5, %v3000_v18  ;;  %v6382_v11 = vadd.f32 %v6282_v5, %v3003_v57  ;;  %v2985_v25 = vmul.f32 %v6273_v15, %v2878_v21 }
 0x381   : > { %v3057_v44 = vmax.f32 %v6370_v0, 0.0  ;;  %v3073_v30 = vmax.f32 %v6373_v53, 0.0  ;;  %v3026_v35 = vadd.f32 %v6282_v5, %v2987_v2  ;;  %v3001_v17 = vmul.f32 %v6273_v15, %v2942_v4  ;;  %v4628_v63 = vpop.f32.mrb[140].mxu1 }
 0x382   : > { %v3055_v48 = vmax.f32 %v3023_v49, 0.0  ;;  %v3071_v40 = vmax.f32 %v6379_v7, 0.0  ;;  %v3074_v14 = vmax.f32 %v6382_v11, 0.0  ;;  %v3024_v1 = vadd.f32 %v6282_v5, %v2985_v25  ;;  %v4612_v50 = vpop.f32.mrb[176].mxu0  ;;  %v2954_v34 = vpop.f32.mrb[141].mxu1 }
 0x383   : > { %v3058_v23 = vmax.f32 %v3026_v35, 0.0  ;;  %v3040_v10 = vadd.f32 %v6282_v5, %v3001_v17  ;;  %v3081_v46 = vpack.c.bf16 %v3052_v38, %v3051_v27  ;;  %v3082_v62 = vpack.c.bf16 %v3054_v16, %v3053_v59  ;;  %v2890_v28 = vpop.f32.mrb[177].mxu0  ;;  %v4629_v3 = vpop.f32.mrb[142].mxu1 }
 0x384   : > { %v3056_v51 = vmax.f32 %v3024_v1, 0.0  ;;  %v2899_v37 = vadd.f32 %v4612_v50, %v6220_v45  ;;  %v2963_v54 = vadd.f32 %v4628_v63, %v6268_v43  ;;  %v2891_v47 = vadd.f32 %v2890_v28, %v6214_v61  ;;  %v4613_v41 = vpop.f32.mrb[178].mxu0  ;;  %v2957_v42 = vpop.f32.mrb[143].mxu1 }
 0x385   : > { %v3072_v18 = vmax.f32 %v3040_v10, 0.0  ;;  %4650 = vmatprep.mubr.bf16.mxu1 %v3081_v46  ;;  %v2955_v57 = vadd.f32 %v2954_v34, %v6262_v9  ;;  %v2902_v21 = vadd.f32 %v4613_v41, %v6222_v6  ;;  %v2966_v27 = vadd.f32 %v4629_v3, %v6275_v56  ;;  %v2893_v59 = vpop.f32.mrb[179].mxu0 }
 0x386   : > { %4651 = vmatmul.mubr.bf16.gmra.mrb[148].mxu1 %v3082_v62  ;;  %v2990_v16 = vmul.f32 %v6273_v15, %v2899_v37  ;;  %v3006_v45 = vmul.f32 %v6273_v15, %v2963_v54  ;;  %v2988_v43 = vmul.f32 %v6273_v15, %v2891_v47  ;;  %v2894_v61 = vadd.f32 %v2893_v59, %v6216_v31 }
 0x387   : > { %v3004_v38 = vmul.f32 %v6273_v15, %v2955_v57  ;;  %v2991_v0 = vmul.f32 %v6273_v15, %v2902_v21  ;;  %v3007_v9 = vmul.f32 %v6273_v15, %v2966_v27  ;;  %v2958_v6 = vadd.f32 %v2957_v42, %v6264_v22  ;;  %v3899_v27 = vld [vmem:[%s5396_s11 + $0x18] sm:$0xff]  }
 0x388   : > { %v3029_v56 = vadd.f32 %v6282_v5, %v2990_v16  ;;  %v3045_v2 = vadd.f32 %v6282_v5, %v3006_v45  ;;  %v3027_v4 = vadd.f32 %v6282_v5, %v2988_v43  ;;  %v2989_v49 = vmul.f32 %v6273_v15, %v2894_v61  ;;  %v3898_v45 = vld [vmem:[%s5396_s11 + $0x10] sm:$0xff]  }
 0x389   : > { %v3043_v7 = vadd.f32 %v6282_v5, %v3004_v38  ;;  %v3030_v31 = vadd.f32 %v6282_v5, %v2991_v0  ;;  %v3046_v11 = vadd.f32 %v6282_v5, %v3007_v9  ;;  %v3005_v25 = vmul.f32 %v6273_v15, %v2958_v6 }
 0x38a   : > { %v3061_v35 = vmax.f32 %v3029_v56, 0.0  ;;  %v3077_v17 = vmax.f32 %v3045_v2, 0.0  ;;  %v3059_v63 = vmax.f32 %v3027_v4, 0.0  ;;  %v3028_v22 = vadd.f32 %v6282_v5, %v2989_v49 }
 0x38b   : > { %v3075_v1 = vmax.f32 %v3043_v7, 0.0  ;;  %v3062_v50 = vmax.f32 %v3030_v31, 0.0  ;;  %v3078_v34 = vmax.f32 %v3046_v11, 0.0  ;;  %v3044_v10 = vadd.f32 %v6282_v5, %v3005_v25 }
 0x38c   : > { %v3060_v46 = vmax.f32 %v3028_v22, 0.0  ;;  %v3083_v62 = vpack.c.bf16 %v3056_v51, %v3055_v48  ;;  %v3084_v28 = vpack.c.bf16 %v3058_v23, %v3057_v44  ;;  %v3087_v3 = vpack.c.bf16 %v3064_v36, %v3063_v19  ;;  %v3834_v36 = vld [vmem:[%s5396_s11] sm:$0xff]  }
 0x38d   : > { %v3076_v37 = vmax.f32 %v3044_v10, 0.0  ;;  %v3086_v15 = vpack.c.bf16 %v3062_v50, %v3061_v35  ;;  %v3088_v54 = vpack.c.bf16 %v3066_v39, %v3065_v52  ;;  %v3089_v5 = vpack.c.bf16 %v3068_v58, %v3067_v29  ;;  %v3897_v39 = vld [vmem:[%s5396_s11 + $0x8] sm:$0xff]  }
 0x38e   : > { %4654 = vmatprep.mubr.bf16.mxu1 %v3083_v62  ;;  %v3085_v48 = vpack.c.bf16 %v3060_v46, %v3059_v63  ;;  %v3090_v24 = vpack.c.bf16 %v3070_v33, %v3069_v8  ;;  %v3091_v19 = vpack.c.bf16 %v3072_v18, %v3071_v40  ;;  %v3092_v26 = vpack.c.bf16 %v3074_v14, %v3073_v30  ;;  %v3901_v46 = vld [vmem:[%s5396_s11 + $0x28] sm:$0xff]  }
 0x38f   : > { %4655 = vmatmul.mubr.bf16.gmra.mrb[152].mxu1 %v3084_v28  ;;  %v3093_v52 = vpack.c.bf16 %v3076_v37, %v3075_v1  ;;  %v3094_v12 = vpack.c.bf16 %v3078_v34, %v3077_v17  ;;  %v3839_v20 = vunpack.c.l.bf16 %v3897_v39  ;;  %v3835_v60 = vunpack.c.l.bf16 %v3834_v36 }
 0x390   : > { %4658 = vmatprep.mubr.bf16.mxu1 %v3085_v48  ;;  %v3840_v30 = vunpack.c.h.bf16 %v3897_v39  ;;  %v3836_v51 = vunpack.c.h.bf16 %v3834_v36  ;;  %v3847_v9 = vunpack.c.l.bf16 %v3899_v27  ;;  %v3843_v2 = vunpack.c.l.bf16 %v3898_v45 }
 0x391   : > { %v3848_v31 = vunpack.c.h.bf16 %v3899_v27  ;;  %v3844_v17 = vunpack.c.h.bf16 %v3898_v45  ;;  %v3855_v48 = vunpack.c.l.bf16 %v3901_v46  ;;  %v3856_v36 = vunpack.c.h.bf16 %v3901_v46 }
 0x397   : > { %4659 = vmatmul.mubr.bf16.gmra.mrb[156].mxu1 %v3086_v15 }
 0x398   : > { %4662 = vmatprep.mubr.bf16.mxu1 %v3087_v3  ;;  %v3900_v3 = vld [vmem:[%s5396_s11 + $0x20] sm:$0xff]  }
 0x39f   : > { %4663 = vmatmul.mubr.bf16.gmra.mrb[160].mxu1 %v3088_v54 }
 0x3a0   : > { %4666 = vmatprep.mubr.bf16.mxu1 %v3089_v5 }
 0x3a7   : > { %4667 = vmatmul.mubr.bf16.gmra.mrb[164].mxu1 %v3090_v24 }
 0x3a8   : > { %4670 = vmatprep.mubr.bf16.mxu1 %v3091_v19 }
 0x3af   : > { %4671 = vmatmul.mubr.bf16.gmra.mrb[168].mxu1 %v3092_v26  ;;  %v3851_v26 = vunpack.c.l.bf16 %v3900_v3 }
 0x3b0   : > { %4674 = vmatprep.mubr.bf16.mxu1 %v3093_v52 }
 0x3b7   : > { %4675 = vmatmul.mubr.bf16.gmra.mrb[172].mxu1 %v3094_v12 }
 0x450   : > { %v4648_v13 = vpop.f32.mrb[144].mxu1 }
 0x451   : > { %v3329_v8 = vmul.f32 %v4648_v13, %v6438_v55  ;;  %v3193_v29 = vpop.f32.mrb[145].mxu1 }
 0x452   : > { %v3327_v33 = vmul.f32 %v6438_v55, %v3193_v29  ;;  %v4649_v58 = vpop.f32.mrb[146].mxu1  ;;  %v3852_v29 = vunpack.c.h.bf16 %v3900_v3 }
 0x453   : > { %v3368_v53 = vadd.f32 %v6445_v32, %v3329_v8  ;;  %v3330_v44 = vmul.f32 %v4649_v58, %v6438_v55  ;;  %v3196_v40 = vpop.f32.mrb[147].mxu1 }
 0x454   : > { %v3366_v14 = vadd.f32 %v6445_v32, %v3327_v33  ;;  %v3328_v23 = vmul.f32 %v6438_v55, %v3196_v40 }
 0x455   : > { %v3464_v47 = vadd.f32 %v3839_v20, %v3368_v53  ;;  %v3369_v41 = vadd.f32 %v6445_v32, %v3330_v44  ;;  %v3903_v44 = vld [vmem:[%s5396_s11 + $0x38] sm:$0xff]  }
 0x456   : > { %v3462_v42 = vadd.f32 %v3835_v60, %v3366_v14  ;;  %v3367_v18 = vadd.f32 %v6445_v32, %v3328_v23  ;;  %v3902_v14 = vld [vmem:[%s5396_s11 + $0x30] sm:$0xff]  }
 0x457   : > { %v3496_v57 = vmax.f32 %v3464_v47, 0.0  ;;  %v3465_v21 = vadd.f32 %v3840_v30, %v3369_v41 }
 0x458   : > { %v3494_v59 = vmax.f32 %v3462_v42, 0.0  ;;  %v3463_v16 = vadd.f32 %v3836_v51, %v3367_v18  ;;  %v3863_v18 = vunpack.c.l.bf16 %v3903_v44 }
 0x459   : > { %3528 = vst [vmem:[%s6458_s23 + $0x10] sm:$0xff] %v3496_v57  ;;  %v3497_v43 = vmax.f32 %v3465_v21, 0.0  ;;  %v4652_v61 = vpop.f32.mrb[148].mxu1 }
 0x45a   : > { %3526 = vst [vmem:[%s6458_s23] sm:$0xff] %v3494_v59  ;;  %v3495_v38 = vmax.f32 %v3463_v16, 0.0  ;;  %v3333_v0 = vmul.f32 %v4652_v61, %v6438_v55  ;;  %v3209_v6 = vpop.f32.mrb[149].mxu1  ;;  %v3859_v59 = vunpack.c.l.bf16 %v3902_v14  ;;  %v3864_v61 = vunpack.c.h.bf16 %v3903_v44 }
 0x45b   : > { %3529 = vst [vmem:[%s6458_s23 + $0x18] sm:$0xff] %v3497_v43  ;;  %v3331_v56 = vmul.f32 %v6438_v55, %v3209_v6  ;;  %v4653_v4 = vpop.f32.mrb[150].mxu1  ;;  %v3860_v6 = vunpack.c.h.bf16 %v3902_v14 }
 0x45c   : > { %3527 = vst [vmem:[%s6458_s23 + $0x8] sm:$0xff] %v3495_v38  ;;  %v3372_v49 = vadd.f32 %v6445_v32, %v3333_v0  ;;  %v3334_v7 = vmul.f32 %v4653_v4, %v6438_v55  ;;  %v3212_v11 = vpop.f32.mrb[151].mxu1 }
 0x45d   : > { %v3370_v25 = vadd.f32 %v6445_v32, %v3331_v56  ;;  %v3332_v35 = vmul.f32 %v6438_v55, %v3212_v11 }
 0x45e   : > { %v3468_v63 = vadd.f32 %v3847_v9, %v3372_v49  ;;  %v3373_v22 = vadd.f32 %v6445_v32, %v3334_v7  ;;  %v3905_v7 = vld [vmem:[%s5396_s11 + $0x48] sm:$0xff]  }
 0x45f   : > { %v3466_v1 = vadd.f32 %v3843_v2, %v3370_v25  ;;  %v3371_v50 = vadd.f32 %v6445_v32, %v3332_v35  ;;  %v3904_v25 = vld [vmem:[%s5396_s11 + $0x40] sm:$0xff]  }
 0x460   : > { %v3500_v34 = vmax.f32 %v3468_v63, 0.0  ;;  %v3469_v10 = vadd.f32 %v3848_v31, %v3373_v22 }
 0x461   : > { %v3498_v62 = vmax.f32 %v3466_v1, 0.0  ;;  %v3467_v28 = vadd.f32 %v3844_v17, %v3371_v50  ;;  %v3871_v50 = vunpack.c.l.bf16 %v3905_v7 }
 0x462   : > { %3532 = vst [vmem:[%s6458_s23 + $0x30] sm:$0xff] %v3500_v34  ;;  %v3501_v37 = vmax.f32 %v3469_v10, 0.0  ;;  %v4656_v15 = vpop.f32.mrb[152].mxu1 }
 0x463   : > { %3530 = vst [vmem:[%s6458_s23 + $0x20] sm:$0xff] %v3498_v62  ;;  %v3499_v54 = vmax.f32 %v3467_v28, 0.0  ;;  %v3337_v5 = vmul.f32 %v4656_v15, %v6438_v55  ;;  %v3225_v24 = vpop.f32.mrb[153].mxu1  ;;  %v3867_v62 = vunpack.c.l.bf16 %v3904_v25  ;;  %v3872_v15 = vunpack.c.h.bf16 %v3905_v7 }
 0x464   : > { %3533 = vst [vmem:[%s6458_s23 + $0x38] sm:$0xff] %v3501_v37  ;;  %v3335_v19 = vmul.f32 %v6438_v55, %v3225_v24  ;;  %v4657_v52 = vpop.f32.mrb[154].mxu1  ;;  %v3868_v24 = vunpack.c.h.bf16 %v3904_v25 }
 0x465   : > { %3531 = vst [vmem:[%s6458_s23 + $0x28] sm:$0xff] %v3499_v54  ;;  %v3376_v12 = vadd.f32 %v6445_v32, %v3337_v5  ;;  %v3338_v39 = vmul.f32 %v4657_v52, %v6438_v55  ;;  %v3228_v13 = vpop.f32.mrb[155].mxu1 }
 0x466   : > { %v3374_v8 = vadd.f32 %v6445_v32, %v3335_v19  ;;  %v3336_v20 = vmul.f32 %v6438_v55, %v3228_v13 }
 0x467   : > { %v3472_v33 = vadd.f32 %v3855_v48, %v3376_v12  ;;  %v3377_v60 = vadd.f32 %v6445_v32, %v3338_v39  ;;  %v3907_v39 = vld [vmem:[%s5396_s11 + $0x58] sm:$0xff]  }
 0x468   : > { %v3470_v58 = vadd.f32 %v3851_v26, %v3374_v8  ;;  %v3375_v53 = vadd.f32 %v6445_v32, %v3336_v20  ;;  %v3906_v8 = vld [vmem:[%s5396_s11 + $0x50] sm:$0xff]  }
 0x469   : > { %v3504_v30 = vmax.f32 %v3472_v33, 0.0  ;;  %v3473_v40 = vadd.f32 %v3856_v36, %v3377_v60  ;;  %v3875_v14 = vunpack.c.l.bf16 %v3906_v8 }
 0x46a   : > { %v3502_v23 = vmax.f32 %v3470_v58, 0.0  ;;  %v3471_v51 = vadd.f32 %v3852_v29, %v3375_v53  ;;  %v4660_v47 = vpop.f32.mrb[156].mxu1  ;;  %v3879_v53 = vunpack.c.l.bf16 %v3907_v39 }
 0x46b   : > { %3536 = vst [vmem:[%s6458_s23 + $0x50] sm:$0xff] %v3504_v30  ;;  %v3505_v41 = vmax.f32 %v3473_v40, 0.0  ;;  %v3341_v42 = vmul.f32 %v4660_v47, %v6438_v55  ;;  %v3241_v57 = vpop.f32.mrb[157].mxu1 }
 0x46c   : > { %3534 = vst [vmem:[%s6458_s23 + $0x40] sm:$0xff] %v3502_v23  ;;  %v3503_v21 = vmax.f32 %v3471_v51, 0.0  ;;  %v3339_v27 = vmul.f32 %v6438_v55, %v3241_v57  ;;  %v4661_v16 = vpop.f32.mrb[158].mxu1 }
 0x46d   : > { %3537 = vst [vmem:[%s6458_s23 + $0x58] sm:$0xff] %v3505_v41  ;;  %v3380_v45 = vadd.f32 %v6445_v32, %v3341_v42  ;;  %v3342_v43 = vmul.f32 %v4661_v16, %v6438_v55  ;;  %v3244_v38 = vpop.f32.mrb[159].mxu1  ;;  %v3880_v41 = vunpack.c.h.bf16 %v3907_v39 }
 0x46e   : > { %3535 = vst [vmem:[%s6458_s23 + $0x48] sm:$0xff] %v3503_v21  ;;  %v3378_v0 = vadd.f32 %v6445_v32, %v3339_v27  ;;  %v3340_v9 = vmul.f32 %v6438_v55, %v3244_v38  ;;  %v3876_v21 = vunpack.c.h.bf16 %v3906_v8 }
 0x46f   : > { %v3476_v56 = vadd.f32 %v3863_v18, %v3380_v45  ;;  %v3381_v2 = vadd.f32 %v6445_v32, %v3342_v43  ;;  %v3909_v43 = vld [vmem:[%s5396_s11 + $0x68] sm:$0xff]  }
 0x470   : > { %v3474_v4 = vadd.f32 %v3859_v59, %v3378_v0  ;;  %v3379_v49 = vadd.f32 %v6445_v32, %v3340_v9  ;;  %v3908_v0 = vld [vmem:[%s5396_s11 + $0x60] sm:$0xff]  }
 0x471   : > { %v3508_v31 = vmax.f32 %v3476_v56, 0.0  ;;  %v3477_v11 = vadd.f32 %v3864_v61, %v3381_v2  ;;  %v3883_v25 = vunpack.c.l.bf16 %v3908_v0 }
 0x472   : > { %v3506_v35 = vmax.f32 %v3474_v4, 0.0  ;;  %v3475_v17 = vadd.f32 %v3860_v6, %v3379_v49  ;;  %v4664_v63 = vpop.f32.mrb[160].mxu1  ;;  %v3887_v49 = vunpack.c.l.bf16 %v3909_v43 }
 0x473   : > { %3540 = vst [vmem:[%s6458_s23 + $0x70] sm:$0xff] %v3508_v31  ;;  %v3509_v22 = vmax.f32 %v3477_v11, 0.0  ;;  %v3345_v1 = vmul.f32 %v4664_v63, %v6438_v55  ;;  %v3257_v34 = vpop.f32.mrb[161].mxu1 }
 0x474   : > { %3538 = vst [vmem:[%s6458_s23 + $0x60] sm:$0xff] %v3506_v35  ;;  %v3507_v10 = vmax.f32 %v3475_v17, 0.0  ;;  %v3343_v46 = vmul.f32 %v6438_v55, %v3257_v34  ;;  %v4665_v28 = vpop.f32.mrb[162].mxu1 }
 0x475   : > { %3541 = vst [vmem:[%s6458_s23 + $0x78] sm:$0xff] %v3509_v22  ;;  %v3384_v3 = vadd.f32 %v6445_v32, %v3345_v1  ;;  %v3346_v37 = vmul.f32 %v4665_v28, %v6438_v55  ;;  %v3260_v54 = vpop.f32.mrb[163].mxu1  ;;  %v3888_v22 = vunpack.c.h.bf16 %v3909_v43 }
 0x476   : > { %3539 = vst [vmem:[%s6458_s23 + $0x68] sm:$0xff] %v3507_v10  ;;  %v3382_v5 = vadd.f32 %v6445_v32, %v3343_v46  ;;  %v3344_v48 = vmul.f32 %v6438_v55, %v3260_v54  ;;  %v3884_v10 = vunpack.c.h.bf16 %v3908_v0 }
 0x477   : > { %v3480_v19 = vadd.f32 %v3871_v50, %v3384_v3  ;;  %v3385_v26 = vadd.f32 %v6445_v32, %v3346_v37  ;;  %v3911_v37 = vld [vmem:[%s5396_s11 + $0x78] sm:$0xff]  }
 0x478   : > { %v3478_v52 = vadd.f32 %v3867_v62, %v3382_v5  ;;  %v3383_v12 = vadd.f32 %v6445_v32, %v3344_v48  ;;  %v3910_v5 = vld [vmem:[%s5396_s11 + $0x70] sm:$0xff]   ;;  %s3832_s11 = sshll.u32 %s6667_s25, 12 }
 0x479   : > { %v3512_v36 = vmax.f32 %v3480_v19, 0.0  ;;  %v3481_v13 = vadd.f32 %v3872_v15, %v3385_v26  ;;  %v3891_v8 = vunpack.c.l.bf16 %v3910_v5  ;;  %s6562_s30 = scalar_lea.hbm %s6668_s27, %s3832_s11 }
 0x47a   : > { %v3510_v20 = vmax.f32 %v3478_v52, 0.0  ;;  %v3479_v29 = vadd.f32 %v3868_v24, %v3383_v12  ;;  %v4668_v33 = vpop.f32.mrb[164].mxu1  ;;  %v3895_v12 = vunpack.c.l.bf16 %v3911_v37 }
 0x47b   : > { %3544 = vst [vmem:[%s6458_s23 + $0x90] sm:$0xff] %v3512_v36  ;;  %v3513_v60 = vmax.f32 %v3481_v13, 0.0  ;;  %v3349_v58 = vmul.f32 %v4668_v33, %v6438_v55  ;;  %v3273_v44 = vpop.f32.mrb[165].mxu1 }
 0x47c   : > { %3542 = vst [vmem:[%s6458_s23 + $0x80] sm:$0xff] %v3510_v20  ;;  %v3511_v30 = vmax.f32 %v3479_v29, 0.0  ;;  %v3347_v40 = vmul.f32 %v6438_v55, %v3273_v44  ;;  %v4669_v23 = vpop.f32.mrb[166].mxu1 }
 0x47d   : > { %3545 = vst [vmem:[%s6458_s23 + $0x98] sm:$0xff] %v3513_v60  ;;  %v3388_v51 = vadd.f32 %v6445_v32, %v3349_v58  ;;  %v3350_v47 = vmul.f32 %v4669_v23, %v6438_v55  ;;  %v3276_v42 = vpop.f32.mrb[167].mxu1  ;;  %v3896_v60 = vunpack.c.h.bf16 %v3911_v37 }
 0x47e   : > { %3543 = vst [vmem:[%s6458_s23 + $0x88] sm:$0xff] %v3511_v30  ;;  %v3386_v18 = vadd.f32 %v6445_v32, %v3347_v40  ;;  %v3348_v57 = vmul.f32 %v6438_v55, %v3276_v42  ;;  %v3892_v30 = vunpack.c.h.bf16 %v3910_v5 }
 0x47f   : > { %v3484_v27 = vadd.f32 %v3879_v53, %v3388_v51  ;;  %v3389_v59 = vadd.f32 %v6445_v32, %v3350_v47 }
 0x480   : > { %v3482_v16 = vadd.f32 %v3875_v14, %v3386_v18  ;;  %v3387_v45 = vadd.f32 %v6445_v32, %v3348_v57 }
 0x481   : > { %v3516_v61 = vmax.f32 %v3484_v27, 0.0  ;;  %v3485_v38 = vadd.f32 %v3880_v41, %v3389_v59 }
 0x482   : > { %v3514_v9 = vmax.f32 %v3482_v16, 0.0  ;;  %v3483_v6 = vadd.f32 %v3876_v21, %v3387_v45  ;;  %v4672_v56 = vpop.f32.mrb[168].mxu1 }
 0x483   : > { %3548 = vst [vmem:[%s6458_s23 + $0xb0] sm:$0xff] %v3516_v61  ;;  %v3517_v2 = vmax.f32 %v3485_v38, 0.0  ;;  %v3353_v4 = vmul.f32 %v4672_v56, %v6438_v55  ;;  %v3289_v7 = vpop.f32.mrb[169].mxu1 }
 0x484   : > { %3546 = vst [vmem:[%s6458_s23 + $0xa0] sm:$0xff] %v3514_v9  ;;  %v3515_v31 = vmax.f32 %v3483_v6, 0.0  ;;  %v3351_v11 = vmul.f32 %v6438_v55, %v3289_v7  ;;  %v4673_v35 = vpop.f32.mrb[170].mxu1 }
 0x485   : > { %3549 = vst [vmem:[%s6458_s23 + $0xb8] sm:$0xff] %v3517_v2  ;;  %v3392_v17 = vadd.f32 %v6445_v32, %v3353_v4  ;;  %v3354_v63 = vmul.f32 %v4673_v35, %v6438_v55  ;;  %v3292_v1 = vpop.f32.mrb[171].mxu1 }
 0x486   : > { %3547 = vst [vmem:[%s6458_s23 + $0xa8] sm:$0xff] %v3515_v31  ;;  %v3390_v50 = vadd.f32 %v6445_v32, %v3351_v11  ;;  %v3352_v34 = vmul.f32 %v6438_v55, %v3292_v1 }
 0x487   : > { %v3488_v46 = vadd.f32 %v3887_v49, %v3392_v17  ;;  %v3393_v62 = vadd.f32 %v6445_v32, %v3354_v63 }
 0x488   : > { %v3486_v28 = vadd.f32 %v3883_v25, %v3390_v50  ;;  %v3391_v3 = vadd.f32 %v6445_v32, %v3352_v34 }
 0x489   : > { %v3520_v15 = vmax.f32 %v3488_v46, 0.0  ;;  %v3489_v54 = vadd.f32 %v3888_v22, %v3393_v62 }
 0x48a   : > { %v3518_v48 = vmax.f32 %v3486_v28, 0.0  ;;  %v3487_v24 = vadd.f32 %v3884_v10, %v3391_v3  ;;  %v4676_v19 = vpop.f32.mrb[172].mxu1 }
 0x48b   : > { %3552 = vst [vmem:[%s6458_s23 + $0xd0] sm:$0xff] %v3520_v15  ;;  %v3521_v26 = vmax.f32 %v3489_v54, 0.0  ;;  %v3357_v52 = vmul.f32 %v4676_v19, %v6438_v55  ;;  %v3305_v39 = vpop.f32.mrb[173].mxu1 }
 0x48c   : > { %3550 = vst [vmem:[%s6458_s23 + $0xc0] sm:$0xff] %v3518_v48  ;;  %v3519_v36 = vmax.f32 %v3487_v24, 0.0  ;;  %v3355_v13 = vmul.f32 %v6438_v55, %v3305_v39  ;;  %v4677_v20 = vpop.f32.mrb[174].mxu1 }
 0x48d   : > { %3553 = vst [vmem:[%s6458_s23 + $0xd8] sm:$0xff] %v3521_v26  ;;  %v3396_v29 = vadd.f32 %v6445_v32, %v3357_v52  ;;  %v3358_v33 = vmul.f32 %v4677_v20, %v6438_v55  ;;  %v3308_v58 = vpop.f32.mrb[175].mxu1 }
 0x48e   : > { %3551 = vst [vmem:[%s6458_s23 + $0xc8] sm:$0xff] %v3519_v36  ;;  %v3394_v53 = vadd.f32 %v6445_v32, %v3355_v13  ;;  %v3356_v44 = vmul.f32 %v6438_v55, %v3308_v58 }
 0x48f   : > { %v3492_v40 = vadd.f32 %v3895_v12, %v3396_v29  ;;  %v3397_v14 = vadd.f32 %v6445_v32, %v3358_v33 }
 0x490   : > { %v3490_v23 = vadd.f32 %v3891_v8, %v3394_v53  ;;  %v3395_v51 = vadd.f32 %v6445_v32, %v3356_v44 }
 0x491   : > { %v3524_v47 = vmax.f32 %v3492_v40, 0.0  ;;  %v3493_v41 = vadd.f32 %v3896_v60, %v3397_v14 }
 0x492   : > { %v3522_v42 = vmax.f32 %v3490_v23, 0.0  ;;  %v3491_v18 = vadd.f32 %v3892_v30, %v3395_v51 }
 0x493   : > { %3556 = vst [vmem:[%s6458_s23 + $0xf0] sm:$0xff] %v3524_v47  ;;  %v3525_v55 = vmax.f32 %v3493_v41, 0.0 }
 0x494   : > { %3554 = vst [vmem:[%s6458_s23 + $0xe0] sm:$0xff] %v3522_v42  ;;  %v3523_v32 = vmax.f32 %v3491_v18, 0.0 }
 0x495   : > { %3557 = vst [vmem:[%s6458_s23 + $0xf8] sm:$0xff] %v3525_v55 }
 0x496   : > { %3555 = vst [vmem:[%s6458_s23 + $0xe8] sm:$0xff] %v3523_v32 }
 0x497   : > { %5026 = shalt.err (!%p5023_p0)
}
 0x498   : > { %s5027_s20 = scalar_lea.hbm %s6562_s30, 4096  ;;  %s5031_s23 = scalar_lea.hbm %s6668_s27, 8192 }
 0x499   : > { %p5028_p4 = scmp.ne.s32.totalorder %s6562_s30, %s5027_s20  ;;  %p5032_p12 = scmp.lt.u32.totalorder %s6562_s30, %s6668_s27 }
 0x49a   : > { %p5033_p1 = scmp.lt.u32.totalorder %s5031_s23, %s5027_s20  ;;  %p5035_p13 = scmp.lt.u32.totalorder %s5027_s20, %s6562_s30 }
 0x49b   : > { %p5029_p2 = pnand %p5028_p4, %p5331_p10 }
 0x49c   : > { %p5034_p11 = por %p5033_p1, %p5032_p12 }
 0x49d   : > { %p5030_p8 = pneg %p5029_p2 }
 0x49e   : > { %p5036_p6 = por %p5035_p13, %p5034_p11 }
 0x4a0   : > { %p5037_p3 = pnand %p5036_p6, %p5030_p8 }
 0x4a2   : > { %5040 = shalt.err (!%p5037_p3)
}
 0x4a3   : > { %s5114_s19 = smov 128   ;;  %s5115_s22 = smov 8  }
 0x4a4   : > { %4708 = dma.vmem_to_hbm [thread:$0]  (%p5331_p10), %s6564_s24, 4096, %s6562_s30, %s3559_s6, %s5114_s19, %s5114_s19, %s5115_s22  }
 0x4a5 PF: > { %s6669_s9 = sld [smem:[#allocation16_spill]]  ;;  %s6670_s13 = sld [smem:[#allocation18_spill]] }
 0x4a6   : > { %p6672_p7 = scmp.ge.s32.totalorder %s5103_s18, 2 }
 0x4ab   : > { %s3590_s16 = sand.u32 1, %s6669_s9   ;;  %p6671_p5 = scmp.ne.s32.totalorder %s6670_s13, 0 }
 0x4ac   : > { %s3591_s12 = scalar_lea.sflag [#allocation5], %s3590_s16 }
 0x4ad   : > { %p4725_p9 = pnand %p6672_p7, %p6671_p5 }
 0x4af   : > { %5078 = dma.done.wait (!%p4725_p9), %s3591_s12, 4096  }
 0x4b0   : > { %5080 = vsyncadd (!%p4725_p9), %s3591_s12, 4294963200  ;;  %s28_s18 = sadd.s32 1, %s5103_s18   ;;  %s6673_s13 = smov %s5087_s14 }
 0x4b1   : > { %p25_p0 = scmp.ge.s32.totalorder %s28_s18, 4   ;;  %s6674_s14 = smov %s5091_s15 }
 0x4b2   : > { %s6675_s15 = smov %s5343_s26  ;;  %s6676_s16 = smov %s5099_s17 }
 0x4b3   : > { %s6677_s17 = smov %s6679_s28  ;;  %27 = sbr.rel (!%p25_p0) target bundleno = 13 (0xd), region = 120 }
 0x4ba   :  { %3596 = vsyncpa [#allocation4], 1 }
 0x4bb   :  { %3598 = vsyncpa [#allocation4 + $0x1], 1 }
 0x4bc   :  { %3599 = vsyncpa [#allocation7], 1 }
 0x4bd   :  { %3600 = vsyncpa [#allocation10], 1 }
 0x4be   :  { %3601 = vsyncpa [#allocation5], 1 }
 0x4bf   :  { %3603 = vsyncpa [#allocation5 + $0x1], 1 }

</bundles_post_ra>
